<compile_context>
chip_gen: v6e
topology: v6e:2x2x1
jax: 0.10.0
libtpu: 0.0.40
codegen_flags: <defaults>
</compile_context>

<pallas_src>
import functools

import numpy as np

import jax
import jax.numpy as jnp
from jax.experimental import pallas as pl
from jax.experimental.pallas import tpu as pltpu

LANE = 128  # MXU / lane width; every channel dim is padded to this once.


# ---------------------------------------------------------------------------
# One-time parameter preprocessing (hoisted off the forward critical path).
# ---------------------------------------------------------------------------
def _prep_conv3x3(w, b):
    """PyTorch (C_out, C_in, 3, 3) -> (9, 128, 128) bf16 taps + (1, 128) f32 bias."""
    c_out, c_in, kh, kw = w.shape
    assert kh == 3 and kw == 3
    assert c_in <= LANE and c_out <= LANE
    taps = jnp.transpose(w, (2, 3, 1, 0)).reshape(9, c_in, c_out)  # t = di*3+dj
    taps = jnp.pad(taps, ((0, 0), (0, LANE - c_in), (0, LANE - c_out)))
    bias = jnp.pad(b, (0, LANE - c_out)).reshape(1, LANE)
    return taps.astype(jnp.bfloat16), bias.astype(jnp.float32)


def prepare_params(params, heads, head_conv=32):
    """Pack raw (PyTorch-layout) params into padded bf16 kernel operands."""
    kp = {}
    # Backbone 3x3 convs.
    for li in range(3):
        kp[f'w{li}'], kp[f'b{li}'] = _prep_conv3x3(params[f'bb{li}_w'],
                                                   params[f'bb{li}_b'])
    # Fused head 3x3 conv: concat the three 32-channel heads -> 96 channels.
    w1_cat = jnp.concatenate([params[f'{n}_w1'] for n in heads], axis=0)
    b1_cat = jnp.concatenate([params[f'{n}_b1'] for n in heads], axis=0)
    kp['w3'], kp['b3'] = _prep_conv3x3(w1_cat, b1_cat)
    # Fused head 1x1 conv: block-diagonal matrix producing the 8 concatenated
    # output channels (heatmap | wh | reg) in one matmul.
    total_in = head_conv * len(heads)
    total_out = sum(heads.values())
    assert total_in <= LANE and total_out <= LANE
    w_bd = jnp.zeros((total_in, total_out), jnp.float32)
    biases = []
    col = 0
    for idx, (name, n_out) in enumerate(heads.items()):
        w2 = params[f'{name}_w2'].reshape(n_out, head_conv)   # (n_out, 32)
        w_bd = w_bd.at[idx * head_conv:(idx + 1) * head_conv,
                       col:col + n_out].set(w2.T)
        biases.append(params[f'{name}_b2'])
        col += n_out
    kp['w4'] = jnp.pad(w_bd, ((0, LANE - total_in),
                              (0, LANE - total_out))).astype(jnp.bfloat16)
    kp['b4'] = jnp.pad(jnp.concatenate(biases),
                       (0, LANE - total_out)).reshape(1, LANE).astype(jnp.float32)
    return kp


# ---------------------------------------------------------------------------
# Static geometry: flattened zero-halo buffers + 0/1 re-layout matrices.
# Activation buffer convention: a (H, W) feature map is stored as the
# row-major flattening of its 1-pixel zero-padded image, shape
# ((H+2)*(W+2) + 2, 128); pixel (i, j) lives at row (i+1)*(W+2) + (j+1).
# ---------------------------------------------------------------------------
def _sel_matrix(h_in, w_in, stride, h_out, w_out, to_buffer):
    """0/1 matrix mapping full-res conv rows -> next padded buffer (or flat)."""
    p_in = w_in + 2
    r_act = h_in * p_in
    if to_buffer:
        p_out = w_out + 2
        r_out = (h_out + 2) * p_out + 2
    else:
        r_out = h_out * w_out
    sel = np.zeros((r_out, r_act), np.float32)
    for io in range(h_out):
        for jo in range(w_out):
            src = stride * io * p_in + stride * jo
            dst = (io + 1) * p_out + (jo + 1) if to_buffer else io * w_out + jo
            sel[dst, src] = 1.0
    return sel


def build_plan(h, w):
    assert h % 4 == 0 and w % 4 == 0
    in_shapes = [(h, w), (h, w), (h // 2, w // 2), (h // 4, w // 4)]
    out_shapes = [(h, w), (h // 2, w // 2), (h // 4, w // 4), (h // 4, w // 4)]
    strides = [1, 2, 2, 1]
    geom, sels = [], []
    for k in range(4):
        hi, wi = in_shapes[k]
        geom.append((wi + 2, hi * (wi + 2)))          # (pitch, n_full_res_rows)
        ho, wo = out_shapes[k]
        sels.append(jnp.asarray(
            _sel_matrix(hi, wi, strides[k], ho, wo, to_buffer=(k < 3)),
            dtype=jnp.bfloat16))
    r_in = (h + 2) * (w + 2) + 2
    buf_rows = [(hh + 2) * (ww + 2) + 2 for (hh, ww) in in_shapes[1:]]
    out_rows = (h // 4) * (w // 4)
    return tuple(geom), sels, r_in, buf_rows, out_rows


def _prepare_input(x_nchw, r_in):
    n, c, h, w = x_nchw.shape
    assert c <= LANE
    x = jnp.transpose(x_nchw, (0, 2, 3, 1)).astype(jnp.float32)
    x = jnp.pad(x, ((0, 0), (1, 1), (1, 1), (0, LANE - c)))
    x = x.reshape(n, (h + 2) * (w + 2), LANE)
    x = jnp.pad(x, ((0, 0), (0, r_in - (h + 2) * (w + 2)), (0, 0)))
    return x.astype(jnp.bfloat16)


# ---------------------------------------------------------------------------
# The fused kernel: whole network for one image per grid step.
# ---------------------------------------------------------------------------
def _centernet_kernel(x_ref,
                      w0_ref, b0_ref, s0_ref,
                      w1_ref, b1_ref, s1_ref,
                      w2_ref, b2_ref, s2_ref,
                      w3_ref, b3_ref, s3_ref,
                      w4_ref, b4_ref,
                      out_ref,
                      buf1_ref, buf2_ref, buf3_ref,
                      *, geom):
    f32, bf16 = jnp.float32, jnp.bfloat16

    def conv3x3_relu(src_ref, w_ref, b_ref, pitch, n_rows):
        # 3x3 conv (pad=1) over the zero-halo flat buffer = 9 shifted matmuls.
        acc = jnp.zeros((n_rows, LANE), f32)
        for di in range(3):
            for dj in range(3):
                off = di * pitch + dj
                tap = src_ref[off:off + n_rows, :]                    # bf16
                acc = acc + jnp.dot(tap, w_ref[di * 3 + dj],
                                    preferred_element_type=f32)
        return jnp.maximum(acc + b_ref[...], 0.0)

    def relayout(s_ref, act):
        # 0/1 selection matmul: applies the conv stride, drops halo garbage
        # and re-embeds valid pixels into the next zero-padded flat buffer.
        # Exact copy of the bf16 activations (entries are 0/1, f32 accum).
        return jnp.dot(s_ref[...], act.astype(bf16),
                       preferred_element_type=f32).astype(bf16)

    # Backbone: 3x3 s1 -> 3x3 s2 -> 3x3 s2 (stride-2 layers are computed at
    # full resolution; the selection matrix picks the strided positions).
    a = conv3x3_relu(x_ref, w0_ref, b0_ref, *geom[0])
    buf1_ref[...] = relayout(s0_ref, a)
    a = conv3x3_relu(buf1_ref, w1_ref, b1_ref, *geom[1])
    buf2_ref[...] = relayout(s1_ref, a)
    a = conv3x3_relu(buf2_ref, w2_ref, b2_ref, *geom[2])
    buf3_ref[...] = relayout(s2_ref, a)
    # Fused heads: one 96-channel 3x3 conv + ReLU ...
    a = conv3x3_relu(buf3_ref, w3_ref, b3_ref, *geom[3])
    v = relayout(s3_ref, a)                      # (Hf*Wf, 128) valid pixels
    # ... then one block-diagonal 1x1 matmul -> 8 concatenated channels.
    out_ref[...] = jnp.dot(v, w4_ref[...],
                           preferred_element_type=f32) + b4_ref[...]


def centernet_forward(kparams, x_nchw, *, n_out_channels):
    n, _, h, w = x_nchw.shape
    geom, sels, r_in, buf_rows, out_rows = build_plan(h, w)
    x_buf = _prepare_input(x_nchw, r_in)

    def full_spec(arr):
        zeros = (0,) * arr.ndim
        return pl.BlockSpec(arr.shape, lambda i: zeros)

    in_arrays = [x_buf]
    in_specs = [pl.BlockSpec((None, r_in, LANE), lambda i: (i, 0, 0))]
    for k in range(4):
        for arr in (kparams[f'w{k}'], kparams[f'b{k}'], sels[k]):
            in_arrays.append(arr)
            in_specs.append(full_spec(arr))
    for arr in (kparams['w4'], kparams['b4']):
        in_arrays.append(arr)
        in_specs.append(full_spec(arr))

    out = pl.pallas_call(
        functools.partial(_centernet_kernel, geom=geom),
        out_shape=jax.ShapeDtypeStruct((n, out_rows, LANE), jnp.float32),
        grid=(n,),
        in_specs=in_specs,
        out_specs=pl.BlockSpec((None, out_rows, LANE), lambda i: (i, 0, 0)),
        scratch_shapes=[pltpu.VMEM((r, LANE), jnp.bfloat16) for r in buf_rows],
        compiler_params=pltpu.CompilerParams(
            dimension_semantics=("parallel",),
            vmem_limit_bytes=32 * 1024 * 1024,
        ),
    )(*in_arrays)

    hf, wf = h // 4, w // 4
    # Single channel slice + reshape at the very end (NHWC, matches
    # torch.permute(torch.cat(outs, dim=1), (0, 2, 3, 1))).
    return out[:, :, :n_out_channels].reshape(n, hf, wf, n_out_channels)


# ---------------------------------------------------------------------------
# Parameter init (deterministic, synthetic) + pure-JAX reference.
# ---------------------------------------------------------------------------
def init_params(key, in_ch, num_classes, head_conv=32, backbone_chs=(16, 32, 64)):
    heads = {'heatmap': num_classes, 'wh': 2, 'reg': 2}
    params = {}

    def conv_param(k, c_out, c_in, kh, kw, scale=0.05):
        kw_, kb_ = jax.random.split(k)
        w = scale * jax.random.normal(kw_, (c_out, c_in, kh, kw), jnp.float32)
        b = scale * jax.random.normal(kb_, (c_out,), jnp.float32)
        return w, b

    keys = jax.random.split(key, 3 + 2 * len(heads))
    ki = 0
    c_prev = in_ch
    for li, c in enumerate(backbone_chs):
        params[f'bb{li}_w'], params[f'bb{li}_b'] = conv_param(keys[ki], c, c_prev, 3, 3)
        ki += 1
        c_prev = c
    feat_ch = backbone_chs[-1]
    for name, n_out in heads.items():
        params[f'{name}_w1'], params[f'{name}_b1'] = conv_param(keys[ki], head_conv, feat_ch, 3, 3)
        ki += 1
        params[f'{name}_w2'], params[f'{name}_b2'] = conv_param(keys[ki], n_out, head_conv, 1, 1)
        ki += 1
    return params, heads


def _reference_forward(params, x_nchw):
    """f32 XLA reference (same math as the PyTorch module's head structure)."""
    def conv(x, w, b, stride, pad, relu):
        w_hwio = jnp.transpose(w, (2, 3, 1, 0))
        y = jax.lax.conv_general_dilated(
            x, w_hwio, window_strides=(stride, stride),
            padding=[(pad, pad), (pad, pad)],
            dimension_numbers=('NHWC', 'HWIO', 'NHWC'))
        y = y + b
        return jnp.maximum(y, 0.0) if relu else y

    x = jnp.transpose(x_nchw, (0, 2, 3, 1)).astype(jnp.float32)
    x = conv(x, params['bb0_w'], params['bb0_b'], 1, 1, True)
    x = conv(x, params['bb1_w'], params['bb1_b'], 2, 1, True)
    x = conv(x, params['bb2_w'], params['bb2_b'], 2, 1, True)
    outs = []
    for name in ('heatmap', 'wh', 'reg'):
        h = conv(x, params[f'{name}_w1'], params[f'{name}_b1'], 1, 1, True)
        h = conv(h, params[f'{name}_w2'], params[f'{name}_b2'], 1, 0, False)
        outs.append(h)
    return jnp.concatenate(outs, axis=-1)


if __name__ == "__main__":
    cfg = {'Model': {'num_classes': 4}}
    num_classes = cfg['Model']['num_classes']
    N, C_in, H, W = 2, 4, 16, 16

    key = jax.random.PRNGKey(0)
    k_params, k_input = jax.random.split(key)
    params, heads = init_params(k_params, C_in, num_classes)
    kparams = prepare_params(params, heads)      # one-time weight prep

    x = jax.random.normal(k_input, (N, C_in, H, W), jnp.float32)

    n_out = sum(heads.values())                  # num_classes + 2 + 2
    fwd = jax.jit(functools.partial(centernet_forward, n_out_channels=n_out))
    out = jax.block_until_ready(fwd(kparams, x))

    assert out.shape == (N, H // 4, W // 4, n_out), out.shape
    assert out.dtype == jnp.float32
    assert bool(jnp.all(jnp.isfinite(out)))

    ref = _reference_forward(params, x)
    err = float(jnp.max(jnp.abs(out - ref)))
    assert jnp.allclose(out, ref, atol=5e-2, rtol=5e-2), err

    print("KERNEL_OK")
</pallas_src>

<mosaic_0001>
module attributes {stable_mosaic.version = 11 : i64} {
  func.func @_centernet_kernel(%arg0: i32, %arg1: memref<1x326x128xbf16, #tpu.memory_space<vmem>>, %arg2: memref<9x128x128xbf16, #tpu.memory_space<vmem>>, %arg3: memref<1x128xf32, #tpu.memory_space<vmem>>, %arg4: memref<326x288xbf16, #tpu.memory_space<vmem>>, %arg5: memref<9x128x128xbf16, #tpu.memory_space<vmem>>, %arg6: memref<1x128xf32, #tpu.memory_space<vmem>>, %arg7: memref<102x288xbf16, #tpu.memory_space<vmem>>, %arg8: memref<9x128x128xbf16, #tpu.memory_space<vmem>>, %arg9: memref<1x128xf32, #tpu.memory_space<vmem>>, %arg10: memref<38x80xbf16, #tpu.memory_space<vmem>>, %arg11: memref<9x128x128xbf16, #tpu.memory_space<vmem>>, %arg12: memref<1x128xf32, #tpu.memory_space<vmem>>, %arg13: memref<16x24xbf16, #tpu.memory_space<vmem>>, %arg14: memref<128x128xbf16, #tpu.memory_space<vmem>>, %arg15: memref<1x128xf32, #tpu.memory_space<vmem>>, %arg16: memref<1x16x128xf32, #tpu.memory_space<vmem>>, %arg17: memref<326x128xbf16, #tpu.memory_space<vmem>>, %arg18: memref<102x128xbf16, #tpu.memory_space<vmem>>, %arg19: memref<38x128xbf16, #tpu.memory_space<vmem>>) attributes {dimension_semantics = [#tpu.dimension_semantics<parallel>], iteration_bounds = array<i64: 2>, scalar_prefetch = 0 : i64, scratch_operands = 3 : i64, tpu.core_type = #tpu.core_type<tc>, window_params = [{transform_indices = @transform_0, window_bounds = array<i64: 1, 326, 128>}, {pipeline_mode = #tpu.pipeline_mode<synchronous>, transform_indices = @transform_1, window_bounds = array<i64: 9, 128, 128>}, {pipeline_mode = #tpu.pipeline_mode<synchronous>, transform_indices = @transform_2, window_bounds = array<i64: 1, 128>}, {pipeline_mode = #tpu.pipeline_mode<synchronous>, transform_indices = @transform_3, window_bounds = array<i64: 326, 288>}, {pipeline_mode = #tpu.pipeline_mode<synchronous>, transform_indices = @transform_4, window_bounds = array<i64: 9, 128, 128>}, {pipeline_mode = #tpu.pipeline_mode<synchronous>, transform_indices = @transform_5, window_bounds = array<i64: 1, 128>}, {pipeline_mode = #tpu.pipeline_mode<synchronous>, transform_indices = @transform_6, window_bounds = array<i64: 102, 288>}, {pipeline_mode = #tpu.pipeline_mode<synchronous>, transform_indices = @transform_7, window_bounds = array<i64: 9, 128, 128>}, {pipeline_mode = #tpu.pipeline_mode<synchronous>, transform_indices = @transform_8, window_bounds = array<i64: 1, 128>}, {pipeline_mode = #tpu.pipeline_mode<synchronous>, transform_indices = @transform_9, window_bounds = array<i64: 38, 80>}, {pipeline_mode = #tpu.pipeline_mode<synchronous>, transform_indices = @transform_10, window_bounds = array<i64: 9, 128, 128>}, {pipeline_mode = #tpu.pipeline_mode<synchronous>, transform_indices = @transform_11, window_bounds = array<i64: 1, 128>}, {pipeline_mode = #tpu.pipeline_mode<synchronous>, transform_indices = @transform_12, window_bounds = array<i64: 16, 24>}, {pipeline_mode = #tpu.pipeline_mode<synchronous>, transform_indices = @transform_13, window_bounds = array<i64: 128, 128>}, {pipeline_mode = #tpu.pipeline_mode<synchronous>, transform_indices = @transform_14, window_bounds = array<i64: 1, 128>}, {transform_indices = @transform_15, window_bounds = array<i64: 1, 16, 128>}]} {
    %cst = arith.constant 0.000000e+00 : f32
    %0 = vector.broadcast %cst : f32 to vector<288x128xf32>
    %c0 = arith.constant 0 : index
    %c0_0 = arith.constant 0 : index
    %c0_1 = arith.constant 0 : index
    %1 = vector.load %arg1[%c0, %c0_0, %c0_1] : memref<1x326x128xbf16, #tpu.memory_space<vmem>>, vector<1x288x128xbf16>
    %2 = vector.shape_cast %1 : vector<1x288x128xbf16> to vector<288x128xbf16>
    %c0_2 = arith.constant 0 : index
    %c0_3 = arith.constant 0 : index
    %c0_4 = arith.constant 0 : index
    %3 = vector.load %arg2[%c0_2, %c0_3, %c0_4] : memref<9x128x128xbf16, #tpu.memory_space<vmem>>, vector<1x128x128xbf16>
    %4 = vector.shape_cast %3 : vector<1x128x128xbf16> to vector<128x128xbf16>
    %cst_5 = arith.constant dense<0.000000e+00> : vector<288x128xf32>
    %5 = tpu.matmul %2, %4, %cst_5 {dimension_numbers = #tpu.dot_dimension_numbers<[1], [0], [0], [1], [0, 0, 1, 1], [], []>} : vector<288x128xbf16>, vector<128x128xbf16>, vector<288x128xf32> -> vector<288x128xf32>
    %6 = arith.addf %0, %5 : vector<288x128xf32>
    %c0_6 = arith.constant 0 : index
    %c1 = arith.constant 1 : index
    %c0_7 = arith.constant 0 : index
    %7 = vector.load %arg1[%c0_6, %c1, %c0_7] : memref<1x326x128xbf16, #tpu.memory_space<vmem>>, vector<1x288x128xbf16>
    %8 = vector.shape_cast %7 : vector<1x288x128xbf16> to vector<288x128xbf16>
    %c1_8 = arith.constant 1 : index
    %c0_9 = arith.constant 0 : index
    %c0_10 = arith.constant 0 : index
    %9 = vector.load %arg2[%c1_8, %c0_9, %c0_10] : memref<9x128x128xbf16, #tpu.memory_space<vmem>>, vector<1x128x128xbf16>
    %10 = vector.shape_cast %9 : vector<1x128x128xbf16> to vector<128x128xbf16>
    %cst_11 = arith.constant dense<0.000000e+00> : vector<288x128xf32>
    %11 = tpu.matmul %8, %10, %cst_11 {dimension_numbers = #tpu.dot_dimension_numbers<[1], [0], [0], [1], [0, 0, 1, 1], [], []>} : vector<288x128xbf16>, vector<128x128xbf16>, vector<288x128xf32> -> vector<288x128xf32>
    %12 = arith.addf %6, %11 : vector<288x128xf32>
    %c0_12 = arith.constant 0 : index
    %c2 = arith.constant 2 : index
    %c0_13 = arith.constant 0 : index
    %13 = vector.load %arg1[%c0_12, %c2, %c0_13] : memref<1x326x128xbf16, #tpu.memory_space<vmem>>, vector<1x288x128xbf16>
    %14 = vector.shape_cast %13 : vector<1x288x128xbf16> to vector<288x128xbf16>
    %c2_14 = arith.constant 2 : index
    %c0_15 = arith.constant 0 : index
    %c0_16 = arith.constant 0 : index
    %15 = vector.load %arg2[%c2_14, %c0_15, %c0_16] : memref<9x128x128xbf16, #tpu.memory_space<vmem>>, vector<1x128x128xbf16>
    %16 = vector.shape_cast %15 : vector<1x128x128xbf16> to vector<128x128xbf16>
    %cst_17 = arith.constant dense<0.000000e+00> : vector<288x128xf32>
    %17 = tpu.matmul %14, %16, %cst_17 {dimension_numbers = #tpu.dot_dimension_numbers<[1], [0], [0], [1], [0, 0, 1, 1], [], []>} : vector<288x128xbf16>, vector<128x128xbf16>, vector<288x128xf32> -> vector<288x128xf32>
    %18 = arith.addf %12, %17 : vector<288x128xf32>
    %c0_18 = arith.constant 0 : index
    %c18 = arith.constant 18 : index
    %c0_19 = arith.constant 0 : index
    %19 = vector.load %arg1[%c0_18, %c18, %c0_19] : memref<1x326x128xbf16, #tpu.memory_space<vmem>>, vector<1x288x128xbf16>
    %20 = vector.shape_cast %19 : vector<1x288x128xbf16> to vector<288x128xbf16>
    %c3 = arith.constant 3 : index
    %c0_20 = arith.constant 0 : index
    %c0_21 = arith.constant 0 : index
    %21 = vector.load %arg2[%c3, %c0_20, %c0_21] : memref<9x128x128xbf16, #tpu.memory_space<vmem>>, vector<1x128x128xbf16>
    %22 = vector.shape_cast %21 : vector<1x128x128xbf16> to vector<128x128xbf16>
    %cst_22 = arith.constant dense<0.000000e+00> : vector<288x128xf32>
    %23 = tpu.matmul %20, %22, %cst_22 {dimension_numbers = #tpu.dot_dimension_numbers<[1], [0], [0], [1], [0, 0, 1, 1], [], []>} : vector<288x128xbf16>, vector<128x128xbf16>, vector<288x128xf32> -> vector<288x128xf32>
    %24 = arith.addf %18, %23 : vector<288x128xf32>
    %c0_23 = arith.constant 0 : index
    %c19 = arith.constant 19 : index
    %c0_24 = arith.constant 0 : index
    %25 = vector.load %arg1[%c0_23, %c19, %c0_24] : memref<1x326x128xbf16, #tpu.memory_space<vmem>>, vector<1x288x128xbf16>
    %26 = vector.shape_cast %25 : vector<1x288x128xbf16> to vector<288x128xbf16>
    %c4 = arith.constant 4 : index
    %c0_25 = arith.constant 0 : index
    %c0_26 = arith.constant 0 : index
    %27 = vector.load %arg2[%c4, %c0_25, %c0_26] : memref<9x128x128xbf16, #tpu.memory_space<vmem>>, vector<1x128x128xbf16>
    %28 = vector.shape_cast %27 : vector<1x128x128xbf16> to vector<128x128xbf16>
    %cst_27 = arith.constant dense<0.000000e+00> : vector<288x128xf32>
    %29 = tpu.matmul %26, %28, %cst_27 {dimension_numbers = #tpu.dot_dimension_numbers<[1], [0], [0], [1], [0, 0, 1, 1], [], []>} : vector<288x128xbf16>, vector<128x128xbf16>, vector<288x128xf32> -> vector<288x128xf32>
    %30 = arith.addf %24, %29 : vector<288x128xf32>
    %c0_28 = arith.constant 0 : index
    %c20 = arith.constant 20 : index
    %c0_29 = arith.constant 0 : index
    %31 = vector.load %arg1[%c0_28, %c20, %c0_29] : memref<1x326x128xbf16, #tpu.memory_space<vmem>>, vector<1x288x128xbf16>
    %32 = vector.shape_cast %31 : vector<1x288x128xbf16> to vector<288x128xbf16>
    %c5 = arith.constant 5 : index
    %c0_30 = arith.constant 0 : index
    %c0_31 = arith.constant 0 : index
    %33 = vector.load %arg2[%c5, %c0_30, %c0_31] : memref<9x128x128xbf16, #tpu.memory_space<vmem>>, vector<1x128x128xbf16>
    %34 = vector.shape_cast %33 : vector<1x128x128xbf16> to vector<128x128xbf16>
    %cst_32 = arith.constant dense<0.000000e+00> : vector<288x128xf32>
    %35 = tpu.matmul %32, %34, %cst_32 {dimension_numbers = #tpu.dot_dimension_numbers<[1], [0], [0], [1], [0, 0, 1, 1], [], []>} : vector<288x128xbf16>, vector<128x128xbf16>, vector<288x128xf32> -> vector<288x128xf32>
    %36 = arith.addf %30, %35 : vector<288x128xf32>
    %c0_33 = arith.constant 0 : index
    %c36 = arith.constant 36 : index
    %c0_34 = arith.constant 0 : index
    %37 = vector.load %arg1[%c0_33, %c36, %c0_34] : memref<1x326x128xbf16, #tpu.memory_space<vmem>>, vector<1x288x128xbf16>
    %38 = vector.shape_cast %37 : vector<1x288x128xbf16> to vector<288x128xbf16>
    %c6 = arith.constant 6 : index
    %c0_35 = arith.constant 0 : index
    %c0_36 = arith.constant 0 : index
    %39 = vector.load %arg2[%c6, %c0_35, %c0_36] : memref<9x128x128xbf16, #tpu.memory_space<vmem>>, vector<1x128x128xbf16>
    %40 = vector.shape_cast %39 : vector<1x128x128xbf16> to vector<128x128xbf16>
    %cst_37 = arith.constant dense<0.000000e+00> : vector<288x128xf32>
    %41 = tpu.matmul %38, %40, %cst_37 {dimension_numbers = #tpu.dot_dimension_numbers<[1], [0], [0], [1], [0, 0, 1, 1], [], []>} : vector<288x128xbf16>, vector<128x128xbf16>, vector<288x128xf32> -> vector<288x128xf32>
    %42 = arith.addf %36, %41 : vector<288x128xf32>
    %c0_38 = arith.constant 0 : index
    %c37 = arith.constant 37 : index
    %c0_39 = arith.constant 0 : index
    %43 = vector.load %arg1[%c0_38, %c37, %c0_39] : memref<1x326x128xbf16, #tpu.memory_space<vmem>>, vector<1x288x128xbf16>
    %44 = vector.shape_cast %43 : vector<1x288x128xbf16> to vector<288x128xbf16>
    %c7 = arith.constant 7 : index
    %c0_40 = arith.constant 0 : index
    %c0_41 = arith.constant 0 : index
    %45 = vector.load %arg2[%c7, %c0_40, %c0_41] : memref<9x128x128xbf16, #tpu.memory_space<vmem>>, vector<1x128x128xbf16>
    %46 = vector.shape_cast %45 : vector<1x128x128xbf16> to vector<128x128xbf16>
    %cst_42 = arith.constant dense<0.000000e+00> : vector<288x128xf32>
    %47 = tpu.matmul %44, %46, %cst_42 {dimension_numbers = #tpu.dot_dimension_numbers<[1], [0], [0], [1], [0, 0, 1, 1], [], []>} : vector<288x128xbf16>, vector<128x128xbf16>, vector<288x128xf32> -> vector<288x128xf32>
    %48 = arith.addf %42, %47 : vector<288x128xf32>
    %c0_43 = arith.constant 0 : index
    %c38 = arith.constant 38 : index
    %c0_44 = arith.constant 0 : index
    %49 = vector.load %arg1[%c0_43, %c38, %c0_44] : memref<1x326x128xbf16, #tpu.memory_space<vmem>>, vector<1x288x128xbf16>
    %50 = vector.shape_cast %49 : vector<1x288x128xbf16> to vector<288x128xbf16>
    %c8 = arith.constant 8 : index
    %c0_45 = arith.constant 0 : index
    %c0_46 = arith.constant 0 : index
    %51 = vector.load %arg2[%c8, %c0_45, %c0_46] : memref<9x128x128xbf16, #tpu.memory_space<vmem>>, vector<1x128x128xbf16>
    %52 = vector.shape_cast %51 : vector<1x128x128xbf16> to vector<128x128xbf16>
    %cst_47 = arith.constant dense<0.000000e+00> : vector<288x128xf32>
    %53 = tpu.matmul %50, %52, %cst_47 {dimension_numbers = #tpu.dot_dimension_numbers<[1], [0], [0], [1], [0, 0, 1, 1], [], []>} : vector<288x128xbf16>, vector<128x128xbf16>, vector<288x128xf32> -> vector<288x128xf32>
    %54 = arith.addf %48, %53 : vector<288x128xf32>
    %c0_48 = arith.constant 0 : index
    %c0_49 = arith.constant 0 : index
    %55 = vector.load %arg3[%c0_48, %c0_49] : memref<1x128xf32, #tpu.memory_space<vmem>>, vector<1x128xf32>
    %56 = vector.broadcast %55 : vector<1x128xf32> to vector<288x128xf32>
    %57 = arith.addf %54, %56 : vector<288x128xf32>
    %cst_50 = arith.constant 0.000000e+00 : f32
    %58 = vector.broadcast %cst_50 : f32 to vector<288x128xf32>
    %59 = arith.maximumf %57, %58 : vector<288x128xf32>
    %c0_51 = arith.constant 0 : index
    %c0_52 = arith.constant 0 : index
    %60 = vector.load %arg4[%c0_51, %c0_52] : memref<326x288xbf16, #tpu.memory_space<vmem>>, vector<326x288xbf16>
    %61 = arith.truncf %59 : vector<288x128xf32> to vector<288x128xbf16>
    %cst_53 = arith.constant dense<0.000000e+00> : vector<326x128xf32>
    %62 = tpu.matmul %60, %61, %cst_53 {dimension_numbers = #tpu.dot_dimension_numbers<[1], [0], [0], [1], [0, 0, 1, 1], [], []>} : vector<326x288xbf16>, vector<288x128xbf16>, vector<326x128xf32> -> vector<326x128xf32>
    %63 = arith.truncf %62 : vector<326x128xf32> to vector<326x128xbf16>
    %c0_54 = arith.constant 0 : index
    %c0_55 = arith.constant 0 : index
    %64 = vector.load %arg17[%c0_54, %c0_55] : memref<326x128xbf16, #tpu.memory_space<vmem>>, vector<326x128xbf16>
    tpu.vector_store %arg17[%c0_54, %c0_55], %63 {strides = array<i32>} : memref<326x128xbf16, #tpu.memory_space<vmem>>, vector<326x128xbf16>,
    %cst_56 = arith.constant 0.000000e+00 : f32
    %65 = vector.broadcast %cst_56 : f32 to vector<288x128xf32>
    %c0_57 = arith.constant 0 : index
    %c0_58 = arith.constant 0 : index
    %66 = vector.load %arg17[%c0_57, %c0_58] : memref<326x128xbf16, #tpu.memory_space<vmem>>, vector<288x128xbf16>
    %c0_59 = arith.constant 0 : index
    %c0_60 = arith.constant 0 : index
    %c0_61 = arith.constant 0 : index
    %67 = vector.load %arg5[%c0_59, %c0_60, %c0_61] : memref<9x128x128xbf16, #tpu.memory_space<vmem>>, vector<1x128x128xbf16>
    %68 = vector.shape_cast %67 : vector<1x128x128xbf16> to vector<128x128xbf16>
    %cst_62 = arith.constant dense<0.000000e+00> : vector<288x128xf32>
    %69 = tpu.matmul %66, %68, %cst_62 {dimension_numbers = #tpu.dot_dimension_numbers<[1], [0], [0], [1], [0, 0, 1, 1], [], []>} : vector<288x128xbf16>, vector<128x128xbf16>, vector<288x128xf32> -> vector<288x128xf32>
    %70 = arith.addf %65, %69 : vector<288x128xf32>
    %c1_63 = arith.constant 1 : index
    %c0_64 = arith.constant 0 : index
    %71 = vector.load %arg17[%c1_63, %c0_64] : memref<326x128xbf16, #tpu.memory_space<vmem>>, vector<288x128xbf16>
    %c1_65 = arith.constant 1 : index
    %c0_66 = arith.constant 0 : index
    %c0_67 = arith.constant 0 : index
    %72 = vector.load %arg5[%c1_65, %c0_66, %c0_67] : memref<9x128x128xbf16, #tpu.memory_space<vmem>>, vector<1x128x128xbf16>
    %73 = vector.shape_cast %72 : vector<1x128x128xbf16> to vector<128x128xbf16>
    %cst_68 = arith.constant dense<0.000000e+00> : vector<288x128xf32>
    %74 = tpu.matmul %71, %73, %cst_68 {dimension_numbers = #tpu.dot_dimension_numbers<[1], [0], [0], [1], [0, 0, 1, 1], [], []>} : vector<288x128xbf16>, vector<128x128xbf16>, vector<288x128xf32> -> vector<288x128xf32>
    %75 = arith.addf %70, %74 : vector<288x128xf32>
    %c2_69 = arith.constant 2 : index
    %c0_70 = arith.constant 0 : index
    %76 = vector.load %arg17[%c2_69, %c0_70] : memref<326x128xbf16, #tpu.memory_space<vmem>>, vector<288x128xbf16>
    %c2_71 = arith.constant 2 : index
    %c0_72 = arith.constant 0 : index
    %c0_73 = arith.constant 0 : index
    %77 = vector.load %arg5[%c2_71, %c0_72, %c0_73] : memref<9x128x128xbf16, #tpu.memory_space<vmem>>, vector<1x128x128xbf16>
    %78 = vector.shape_cast %77 : vector<1x128x128xbf16> to vector<128x128xbf16>
    %cst_74 = arith.constant dense<0.000000e+00> : vector<288x128xf32>
    %79 = tpu.matmul %76, %78, %cst_74 {dimension_numbers = #tpu.dot_dimension_numbers<[1], [0], [0], [1], [0, 0, 1, 1], [], []>} : vector<288x128xbf16>, vector<128x128xbf16>, vector<288x128xf32> -> vector<288x128xf32>
    %80 = arith.addf %75, %79 : vector<288x128xf32>
    %c18_75 = arith.constant 18 : index
    %c0_76 = arith.constant 0 : index
    %81 = vector.load %arg17[%c18_75, %c0_76] : memref<326x128xbf16, #tpu.memory_space<vmem>>, vector<288x128xbf16>
    %c3_77 = arith.constant 3 : index
    %c0_78 = arith.constant 0 : index
    %c0_79 = arith.constant 0 : index
    %82 = vector.load %arg5[%c3_77, %c0_78, %c0_79] : memref<9x128x128xbf16, #tpu.memory_space<vmem>>, vector<1x128x128xbf16>
    %83 = vector.shape_cast %82 : vector<1x128x128xbf16> to vector<128x128xbf16>
    %cst_80 = arith.constant dense<0.000000e+00> : vector<288x128xf32>
    %84 = tpu.matmul %81, %83, %cst_80 {dimension_numbers = #tpu.dot_dimension_numbers<[1], [0], [0], [1], [0, 0, 1, 1], [], []>} : vector<288x128xbf16>, vector<128x128xbf16>, vector<288x128xf32> -> vector<288x128xf32>
    %85 = arith.addf %80, %84 : vector<288x128xf32>
    %c19_81 = arith.constant 19 : index
    %c0_82 = arith.constant 0 : index
    %86 = vector.load %arg17[%c19_81, %c0_82] : memref<326x128xbf16, #tpu.memory_space<vmem>>, vector<288x128xbf16>
    %c4_83 = arith.constant 4 : index
    %c0_84 = arith.constant 0 : index
    %c0_85 = arith.constant 0 : index
    %87 = vector.load %arg5[%c4_83, %c0_84, %c0_85] : memref<9x128x128xbf16, #tpu.memory_space<vmem>>, vector<1x128x128xbf16>
    %88 = vector.shape_cast %87 : vector<1x128x128xbf16> to vector<128x128xbf16>
    %cst_86 = arith.constant dense<0.000000e+00> : vector<288x128xf32>
    %89 = tpu.matmul %86, %88, %cst_86 {dimension_numbers = #tpu.dot_dimension_numbers<[1], [0], [0], [1], [0, 0, 1, 1], [], []>} : vector<288x128xbf16>, vector<128x128xbf16>, vector<288x128xf32> -> vector<288x128xf32>
    %90 = arith.addf %85, %89 : vector<288x128xf32>
    %c20_87 = arith.constant 20 : index
    %c0_88 = arith.constant 0 : index
    %91 = vector.load %arg17[%c20_87, %c0_88] : memref<326x128xbf16, #tpu.memory_space<vmem>>, vector<288x128xbf16>
    %c5_89 = arith.constant 5 : index
    %c0_90 = arith.constant 0 : index
    %c0_91 = arith.constant 0 : index
    %92 = vector.load %arg5[%c5_89, %c0_90, %c0_91] : memref<9x128x128xbf16, #tpu.memory_space<vmem>>, vector<1x128x128xbf16>
    %93 = vector.shape_cast %92 : vector<1x128x128xbf16> to vector<128x128xbf16>
    %cst_92 = arith.constant dense<0.000000e+00> : vector<288x128xf32>
    %94 = tpu.matmul %91, %93, %cst_92 {dimension_numbers = #tpu.dot_dimension_numbers<[1], [0], [0], [1], [0, 0, 1, 1], [], []>} : vector<288x128xbf16>, vector<128x128xbf16>, vector<288x128xf32> -> vector<288x128xf32>
    %95 = arith.addf %90, %94 : vector<288x128xf32>
    %c36_93 = arith.constant 36 : index
    %c0_94 = arith.constant 0 : index
    %96 = vector.load %arg17[%c36_93, %c0_94] : memref<326x128xbf16, #tpu.memory_space<vmem>>, vector<288x128xbf16>
    %c6_95 = arith.constant 6 : index
    %c0_96 = arith.constant 0 : index
    %c0_97 = arith.constant 0 : index
    %97 = vector.load %arg5[%c6_95, %c0_96, %c0_97] : memref<9x128x128xbf16, #tpu.memory_space<vmem>>, vector<1x128x128xbf16>
    %98 = vector.shape_cast %97 : vector<1x128x128xbf16> to vector<128x128xbf16>
    %cst_98 = arith.constant dense<0.000000e+00> : vector<288x128xf32>
    %99 = tpu.matmul %96, %98, %cst_98 {dimension_numbers = #tpu.dot_dimension_numbers<[1], [0], [0], [1], [0, 0, 1, 1], [], []>} : vector<288x128xbf16>, vector<128x128xbf16>, vector<288x128xf32> -> vector<288x128xf32>
    %100 = arith.addf %95, %99 : vector<288x128xf32>
    %c37_99 = arith.constant 37 : index
    %c0_100 = arith.constant 0 : index
    %101 = vector.load %arg17[%c37_99, %c0_100] : memref<326x128xbf16, #tpu.memory_space<vmem>>, vector<288x128xbf16>
    %c7_101 = arith.constant 7 : index
    %c0_102 = arith.constant 0 : index
    %c0_103 = arith.constant 0 : index
    %102 = vector.load %arg5[%c7_101, %c0_102, %c0_103] : memref<9x128x128xbf16, #tpu.memory_space<vmem>>, vector<1x128x128xbf16>
    %103 = vector.shape_cast %102 : vector<1x128x128xbf16> to vector<128x128xbf16>
    %cst_104 = arith.constant dense<0.000000e+00> : vector<288x128xf32>
    %104 = tpu.matmul %101, %103, %cst_104 {dimension_numbers = #tpu.dot_dimension_numbers<[1], [0], [0], [1], [0, 0, 1, 1], [], []>} : vector<288x128xbf16>, vector<128x128xbf16>, vector<288x128xf32> -> vector<288x128xf32>
    %105 = arith.addf %100, %104 : vector<288x128xf32>
    %c38_105 = arith.constant 38 : index
    %c0_106 = arith.constant 0 : index
    %106 = vector.load %arg17[%c38_105, %c0_106] : memref<326x128xbf16, #tpu.memory_space<vmem>>, vector<288x128xbf16>
    %c8_107 = arith.constant 8 : index
    %c0_108 = arith.constant 0 : index
    %c0_109 = arith.constant 0 : index
    %107 = vector.load %arg5[%c8_107, %c0_108, %c0_109] : memref<9x128x128xbf16, #tpu.memory_space<vmem>>, vector<1x128x128xbf16>
    %108 = vector.shape_cast %107 : vector<1x128x128xbf16> to vector<128x128xbf16>
    %cst_110 = arith.constant dense<0.000000e+00> : vector<288x128xf32>
    %109 = tpu.matmul %106, %108, %cst_110 {dimension_numbers = #tpu.dot_dimension_numbers<[1], [0], [0], [1], [0, 0, 1, 1], [], []>} : vector<288x128xbf16>, vector<128x128xbf16>, vector<288x128xf32> -> vector<288x128xf32>
    %110 = arith.addf %105, %109 : vector<288x128xf32>
    %c0_111 = arith.constant 0 : index
    %c0_112 = arith.constant 0 : index
    %111 = vector.load %arg6[%c0_111, %c0_112] : memref<1x128xf32, #tpu.memory_space<vmem>>, vector<1x128xf32>
    %112 = vector.broadcast %111 : vector<1x128xf32> to vector<288x128xf32>
    %113 = arith.addf %110, %112 : vector<288x128xf32>
    %cst_113 = arith.constant 0.000000e+00 : f32
    %114 = vector.broadcast %cst_113 : f32 to vector<288x128xf32>
    %115 = arith.maximumf %113, %114 : vector<288x128xf32>
    %c0_114 = arith.constant 0 : index
    %c0_115 = arith.constant 0 : index
    %116 = vector.load %arg7[%c0_114, %c0_115] : memref<102x288xbf16, #tpu.memory_space<vmem>>, vector<102x288xbf16>
    %117 = arith.truncf %115 : vector<288x128xf32> to vector<288x128xbf16>
    %cst_116 = arith.constant dense<0.000000e+00> : vector<102x128xf32>
    %118 = tpu.matmul %116, %117, %cst_116 {dimension_numbers = #tpu.dot_dimension_numbers<[1], [0], [0], [1], [0, 0, 1, 1], [], []>} : vector<102x288xbf16>, vector<288x128xbf16>, vector<102x128xf32> -> vector<102x128xf32>
    %119 = arith.truncf %118 : vector<102x128xf32> to vector<102x128xbf16>
    %c0_117 = arith.constant 0 : index
    %c0_118 = arith.constant 0 : index
    %120 = vector.load %arg18[%c0_117, %c0_118] : memref<102x128xbf16, #tpu.memory_space<vmem>>, vector<102x128xbf16>
    tpu.vector_store %arg18[%c0_117, %c0_118], %119 {strides = array<i32>} : memref<102x128xbf16, #tpu.memory_space<vmem>>, vector<102x128xbf16>,
    %cst_119 = arith.constant 0.000000e+00 : f32
    %121 = vector.broadcast %cst_119 : f32 to vector<80x128xf32>
    %c0_120 = arith.constant 0 : index
    %c0_121 = arith.constant 0 : index
    %122 = vector.load %arg18[%c0_120, %c0_121] : memref<102x128xbf16, #tpu.memory_space<vmem>>, vector<80x128xbf16>
    %c0_122 = arith.constant 0 : index
    %c0_123 = arith.constant 0 : index
    %c0_124 = arith.constant 0 : index
    %123 = vector.load %arg8[%c0_122, %c0_123, %c0_124] : memref<9x128x128xbf16, #tpu.memory_space<vmem>>, vector<1x128x128xbf16>
    %124 = vector.shape_cast %123 : vector<1x128x128xbf16> to vector<128x128xbf16>
    %cst_125 = arith.constant dense<0.000000e+00> : vector<80x128xf32>
    %125 = tpu.matmul %122, %124, %cst_125 {dimension_numbers = #tpu.dot_dimension_numbers<[1], [0], [0], [1], [0, 0, 1, 1], [], []>} : vector<80x128xbf16>, vector<128x128xbf16>, vector<80x128xf32> -> vector<80x128xf32>
    %126 = arith.addf %121, %125 : vector<80x128xf32>
    %c1_126 = arith.constant 1 : index
    %c0_127 = arith.constant 0 : index
    %127 = vector.load %arg18[%c1_126, %c0_127] : memref<102x128xbf16, #tpu.memory_space<vmem>>, vector<80x128xbf16>
    %c1_128 = arith.constant 1 : index
    %c0_129 = arith.constant 0 : index
    %c0_130 = arith.constant 0 : index
    %128 = vector.load %arg8[%c1_128, %c0_129, %c0_130] : memref<9x128x128xbf16, #tpu.memory_space<vmem>>, vector<1x128x128xbf16>
    %129 = vector.shape_cast %128 : vector<1x128x128xbf16> to vector<128x128xbf16>
    %cst_131 = arith.constant dense<0.000000e+00> : vector<80x128xf32>
    %130 = tpu.matmul %127, %129, %cst_131 {dimension_numbers = #tpu.dot_dimension_numbers<[1], [0], [0], [1], [0, 0, 1, 1], [], []>} : vector<80x128xbf16>, vector<128x128xbf16>, vector<80x128xf32> -> vector<80x128xf32>
    %131 = arith.addf %126, %130 : vector<80x128xf32>
    %c2_132 = arith.constant 2 : index
    %c0_133 = arith.constant 0 : index
    %132 = vector.load %arg18[%c2_132, %c0_133] : memref<102x128xbf16, #tpu.memory_space<vmem>>, vector<80x128xbf16>
    %c2_134 = arith.constant 2 : index
    %c0_135 = arith.constant 0 : index
    %c0_136 = arith.constant 0 : index
    %133 = vector.load %arg8[%c2_134, %c0_135, %c0_136] : memref<9x128x128xbf16, #tpu.memory_space<vmem>>, vector<1x128x128xbf16>
    %134 = vector.shape_cast %133 : vector<1x128x128xbf16> to vector<128x128xbf16>
    %cst_137 = arith.constant dense<0.000000e+00> : vector<80x128xf32>
    %135 = tpu.matmul %132, %134, %cst_137 {dimension_numbers = #tpu.dot_dimension_numbers<[1], [0], [0], [1], [0, 0, 1, 1], [], []>} : vector<80x128xbf16>, vector<128x128xbf16>, vector<80x128xf32> -> vector<80x128xf32>
    %136 = arith.addf %131, %135 : vector<80x128xf32>
    %c10 = arith.constant 10 : index
    %c0_138 = arith.constant 0 : index
    %137 = vector.load %arg18[%c10, %c0_138] : memref<102x128xbf16, #tpu.memory_space<vmem>>, vector<80x128xbf16>
    %c3_139 = arith.constant 3 : index
    %c0_140 = arith.constant 0 : index
    %c0_141 = arith.constant 0 : index
    %138 = vector.load %arg8[%c3_139, %c0_140, %c0_141] : memref<9x128x128xbf16, #tpu.memory_space<vmem>>, vector<1x128x128xbf16>
    %139 = vector.shape_cast %138 : vector<1x128x128xbf16> to vector<128x128xbf16>
    %cst_142 = arith.constant dense<0.000000e+00> : vector<80x128xf32>
    %140 = tpu.matmul %137, %139, %cst_142 {dimension_numbers = #tpu.dot_dimension_numbers<[1], [0], [0], [1], [0, 0, 1, 1], [], []>} : vector<80x128xbf16>, vector<128x128xbf16>, vector<80x128xf32> -> vector<80x128xf32>
    %141 = arith.addf %136, %140 : vector<80x128xf32>
    %c11 = arith.constant 11 : index
    %c0_143 = arith.constant 0 : index
    %142 = vector.load %arg18[%c11, %c0_143] : memref<102x128xbf16, #tpu.memory_space<vmem>>, vector<80x128xbf16>
    %c4_144 = arith.constant 4 : index
    %c0_145 = arith.constant 0 : index
    %c0_146 = arith.constant 0 : index
    %143 = vector.load %arg8[%c4_144, %c0_145, %c0_146] : memref<9x128x128xbf16, #tpu.memory_space<vmem>>, vector<1x128x128xbf16>
    %144 = vector.shape_cast %143 : vector<1x128x128xbf16> to vector<128x128xbf16>
    %cst_147 = arith.constant dense<0.000000e+00> : vector<80x128xf32>
    %145 = tpu.matmul %142, %144, %cst_147 {dimension_numbers = #tpu.dot_dimension_numbers<[1], [0], [0], [1], [0, 0, 1, 1], [], []>} : vector<80x128xbf16>, vector<128x128xbf16>, vector<80x128xf32> -> vector<80x128xf32>
    %146 = arith.addf %141, %145 : vector<80x128xf32>
    %c12 = arith.constant 12 : index
    %c0_148 = arith.constant 0 : index
    %147 = vector.load %arg18[%c12, %c0_148] : memref<102x128xbf16, #tpu.memory_space<vmem>>, vector<80x128xbf16>
    %c5_149 = arith.constant 5 : index
    %c0_150 = arith.constant 0 : index
    %c0_151 = arith.constant 0 : index
    %148 = vector.load %arg8[%c5_149, %c0_150, %c0_151] : memref<9x128x128xbf16, #tpu.memory_space<vmem>>, vector<1x128x128xbf16>
    %149 = vector.shape_cast %148 : vector<1x128x128xbf16> to vector<128x128xbf16>
    %cst_152 = arith.constant dense<0.000000e+00> : vector<80x128xf32>
    %150 = tpu.matmul %147, %149, %cst_152 {dimension_numbers = #tpu.dot_dimension_numbers<[1], [0], [0], [1], [0, 0, 1, 1], [], []>} : vector<80x128xbf16>, vector<128x128xbf16>, vector<80x128xf32> -> vector<80x128xf32>
    %151 = arith.addf %146, %150 : vector<80x128xf32>
    %c20_153 = arith.constant 20 : index
    %c0_154 = arith.constant 0 : index
    %152 = vector.load %arg18[%c20_153, %c0_154] : memref<102x128xbf16, #tpu.memory_space<vmem>>, vector<80x128xbf16>
    %c6_155 = arith.constant 6 : index
    %c0_156 = arith.constant 0 : index
    %c0_157 = arith.constant 0 : index
    %153 = vector.load %arg8[%c6_155, %c0_156, %c0_157] : memref<9x128x128xbf16, #tpu.memory_space<vmem>>, vector<1x128x128xbf16>
    %154 = vector.shape_cast %153 : vector<1x128x128xbf16> to vector<128x128xbf16>
    %cst_158 = arith.constant dense<0.000000e+00> : vector<80x128xf32>
    %155 = tpu.matmul %152, %154, %cst_158 {dimension_numbers = #tpu.dot_dimension_numbers<[1], [0], [0], [1], [0, 0, 1, 1], [], []>} : vector<80x128xbf16>, vector<128x128xbf16>, vector<80x128xf32> -> vector<80x128xf32>
    %156 = arith.addf %151, %155 : vector<80x128xf32>
    %c21 = arith.constant 21 : index
    %c0_159 = arith.constant 0 : index
    %157 = vector.load %arg18[%c21, %c0_159] : memref<102x128xbf16, #tpu.memory_space<vmem>>, vector<80x128xbf16>
    %c7_160 = arith.constant 7 : index
    %c0_161 = arith.constant 0 : index
    %c0_162 = arith.constant 0 : index
    %158 = vector.load %arg8[%c7_160, %c0_161, %c0_162] : memref<9x128x128xbf16, #tpu.memory_space<vmem>>, vector<1x128x128xbf16>
    %159 = vector.shape_cast %158 : vector<1x128x128xbf16> to vector<128x128xbf16>
    %cst_163 = arith.constant dense<0.000000e+00> : vector<80x128xf32>
    %160 = tpu.matmul %157, %159, %cst_163 {dimension_numbers = #tpu.dot_dimension_numbers<[1], [0], [0], [1], [0, 0, 1, 1], [], []>} : vector<80x128xbf16>, vector<128x128xbf16>, vector<80x128xf32> -> vector<80x128xf32>
    %161 = arith.addf %156, %160 : vector<80x128xf32>
    %c22 = arith.constant 22 : index
    %c0_164 = arith.constant 0 : index
    %162 = vector.load %arg18[%c22, %c0_164] : memref<102x128xbf16, #tpu.memory_space<vmem>>, vector<80x128xbf16>
    %c8_165 = arith.constant 8 : index
    %c0_166 = arith.constant 0 : index
    %c0_167 = arith.constant 0 : index
    %163 = vector.load %arg8[%c8_165, %c0_166, %c0_167] : memref<9x128x128xbf16, #tpu.memory_space<vmem>>, vector<1x128x128xbf16>
    %164 = vector.shape_cast %163 : vector<1x128x128xbf16> to vector<128x128xbf16>
    %cst_168 = arith.constant dense<0.000000e+00> : vector<80x128xf32>
    %165 = tpu.matmul %162, %164, %cst_168 {dimension_numbers = #tpu.dot_dimension_numbers<[1], [0], [0], [1], [0, 0, 1, 1], [], []>} : vector<80x128xbf16>, vector<128x128xbf16>, vector<80x128xf32> -> vector<80x128xf32>
    %166 = arith.addf %161, %165 : vector<80x128xf32>
    %c0_169 = arith.constant 0 : index
    %c0_170 = arith.constant 0 : index
    %167 = vector.load %arg9[%c0_169, %c0_170] : memref<1x128xf32, #tpu.memory_space<vmem>>, vector<1x128xf32>
    %168 = vector.broadcast %167 : vector<1x128xf32> to vector<80x128xf32>
    %169 = arith.addf %166, %168 : vector<80x128xf32>
    %cst_171 = arith.constant 0.000000e+00 : f32
    %170 = vector.broadcast %cst_171 : f32 to vector<80x128xf32>
    %171 = arith.maximumf %169, %170 : vector<80x128xf32>
    %c0_172 = arith.constant 0 : index
    %c0_173 = arith.constant 0 : index
    %172 = vector.load %arg10[%c0_172, %c0_173] : memref<38x80xbf16, #tpu.memory_space<vmem>>, vector<38x80xbf16>
    %173 = arith.truncf %171 : vector<80x128xf32> to vector<80x128xbf16>
    %cst_174 = arith.constant dense<0.000000e+00> : vector<38x128xf32>
    %174 = tpu.matmul %172, %173, %cst_174 {dimension_numbers = #tpu.dot_dimension_numbers<[1], [0], [0], [1], [0, 0, 1, 1], [], []>} : vector<38x80xbf16>, vector<80x128xbf16>, vector<38x128xf32> -> vector<38x128xf32>
    %175 = arith.truncf %174 : vector<38x128xf32> to vector<38x128xbf16>
    %c0_175 = arith.constant 0 : index
    %c0_176 = arith.constant 0 : index
    %176 = vector.load %arg19[%c0_175, %c0_176] : memref<38x128xbf16, #tpu.memory_space<vmem>>, vector<38x128xbf16>
    tpu.vector_store %arg19[%c0_175, %c0_176], %175 {strides = array<i32>} : memref<38x128xbf16, #tpu.memory_space<vmem>>, vector<38x128xbf16>,
    %cst_177 = arith.constant 0.000000e+00 : f32
    %177 = vector.broadcast %cst_177 : f32 to vector<24x128xf32>
    %c0_178 = arith.constant 0 : index
    %c0_179 = arith.constant 0 : index
    %178 = vector.load %arg19[%c0_178, %c0_179] : memref<38x128xbf16, #tpu.memory_space<vmem>>, vector<24x128xbf16>
    %c0_180 = arith.constant 0 : index
    %c0_181 = arith.constant 0 : index
    %c0_182 = arith.constant 0 : index
    %179 = vector.load %arg11[%c0_180, %c0_181, %c0_182] : memref<9x128x128xbf16, #tpu.memory_space<vmem>>, vector<1x128x128xbf16>
    %180 = vector.shape_cast %179 : vector<1x128x128xbf16> to vector<128x128xbf16>
    %cst_183 = arith.constant dense<0.000000e+00> : vector<24x128xf32>
    %181 = tpu.matmul %178, %180, %cst_183 {dimension_numbers = #tpu.dot_dimension_numbers<[1], [0], [0], [1], [0, 0, 1, 1], [], []>} : vector<24x128xbf16>, vector<128x128xbf16>, vector<24x128xf32> -> vector<24x128xf32>
    %182 = arith.addf %177, %181 : vector<24x128xf32>
    %c1_184 = arith.constant 1 : index
    %c0_185 = arith.constant 0 : index
    %183 = vector.load %arg19[%c1_184, %c0_185] : memref<38x128xbf16, #tpu.memory_space<vmem>>, vector<24x128xbf16>
    %c1_186 = arith.constant 1 : index
    %c0_187 = arith.constant 0 : index
    %c0_188 = arith.constant 0 : index
    %184 = vector.load %arg11[%c1_186, %c0_187, %c0_188] : memref<9x128x128xbf16, #tpu.memory_space<vmem>>, vector<1x128x128xbf16>
    %185 = vector.shape_cast %184 : vector<1x128x128xbf16> to vector<128x128xbf16>
    %cst_189 = arith.constant dense<0.000000e+00> : vector<24x128xf32>
    %186 = tpu.matmul %183, %185, %cst_189 {dimension_numbers = #tpu.dot_dimension_numbers<[1], [0], [0], [1], [0, 0, 1, 1], [], []>} : vector<24x128xbf16>, vector<128x128xbf16>, vector<24x128xf32> -> vector<24x128xf32>
    %187 = arith.addf %182, %186 : vector<24x128xf32>
    %c2_190 = arith.constant 2 : index
    %c0_191 = arith.constant 0 : index
    %188 = vector.load %arg19[%c2_190, %c0_191] : memref<38x128xbf16, #tpu.memory_space<vmem>>, vector<24x128xbf16>
    %c2_192 = arith.constant 2 : index
    %c0_193 = arith.constant 0 : index
    %c0_194 = arith.constant 0 : index
    %189 = vector.load %arg11[%c2_192, %c0_193, %c0_194] : memref<9x128x128xbf16, #tpu.memory_space<vmem>>, vector<1x128x128xbf16>
    %190 = vector.shape_cast %189 : vector<1x128x128xbf16> to vector<128x128xbf16>
    %cst_195 = arith.constant dense<0.000000e+00> : vector<24x128xf32>
    %191 = tpu.matmul %188, %190, %cst_195 {dimension_numbers = #tpu.dot_dimension_numbers<[1], [0], [0], [1], [0, 0, 1, 1], [], []>} : vector<24x128xbf16>, vector<128x128xbf16>, vector<24x128xf32> -> vector<24x128xf32>
    %192 = arith.addf %187, %191 : vector<24x128xf32>
    %c6_196 = arith.constant 6 : index
    %c0_197 = arith.constant 0 : index
    %193 = vector.load %arg19[%c6_196, %c0_197] : memref<38x128xbf16, #tpu.memory_space<vmem>>, vector<24x128xbf16>
    %c3_198 = arith.constant 3 : index
    %c0_199 = arith.constant 0 : index
    %c0_200 = arith.constant 0 : index
    %194 = vector.load %arg11[%c3_198, %c0_199, %c0_200] : memref<9x128x128xbf16, #tpu.memory_space<vmem>>, vector<1x128x128xbf16>
    %195 = vector.shape_cast %194 : vector<1x128x128xbf16> to vector<128x128xbf16>
    %cst_201 = arith.constant dense<0.000000e+00> : vector<24x128xf32>
    %196 = tpu.matmul %193, %195, %cst_201 {dimension_numbers = #tpu.dot_dimension_numbers<[1], [0], [0], [1], [0, 0, 1, 1], [], []>} : vector<24x128xbf16>, vector<128x128xbf16>, vector<24x128xf32> -> vector<24x128xf32>
    %197 = arith.addf %192, %196 : vector<24x128xf32>
    %c7_202 = arith.constant 7 : index
    %c0_203 = arith.constant 0 : index
    %198 = vector.load %arg19[%c7_202, %c0_203] : memref<38x128xbf16, #tpu.memory_space<vmem>>, vector<24x128xbf16>
    %c4_204 = arith.constant 4 : index
    %c0_205 = arith.constant 0 : index
    %c0_206 = arith.constant 0 : index
    %199 = vector.load %arg11[%c4_204, %c0_205, %c0_206] : memref<9x128x128xbf16, #tpu.memory_space<vmem>>, vector<1x128x128xbf16>
    %200 = vector.shape_cast %199 : vector<1x128x128xbf16> to vector<128x128xbf16>
    %cst_207 = arith.constant dense<0.000000e+00> : vector<24x128xf32>
    %201 = tpu.matmul %198, %200, %cst_207 {dimension_numbers = #tpu.dot_dimension_numbers<[1], [0], [0], [1], [0, 0, 1, 1], [], []>} : vector<24x128xbf16>, vector<128x128xbf16>, vector<24x128xf32> -> vector<24x128xf32>
    %202 = arith.addf %197, %201 : vector<24x128xf32>
    %c8_208 = arith.constant 8 : index
    %c0_209 = arith.constant 0 : index
    %203 = vector.load %arg19[%c8_208, %c0_209] : memref<38x128xbf16, #tpu.memory_space<vmem>>, vector<24x128xbf16>
    %c5_210 = arith.constant 5 : index
    %c0_211 = arith.constant 0 : index
    %c0_212 = arith.constant 0 : index
    %204 = vector.load %arg11[%c5_210, %c0_211, %c0_212] : memref<9x128x128xbf16, #tpu.memory_space<vmem>>, vector<1x128x128xbf16>
    %205 = vector.shape_cast %204 : vector<1x128x128xbf16> to vector<128x128xbf16>
    %cst_213 = arith.constant dense<0.000000e+00> : vector<24x128xf32>
    %206 = tpu.matmul %203, %205, %cst_213 {dimension_numbers = #tpu.dot_dimension_numbers<[1], [0], [0], [1], [0, 0, 1, 1], [], []>} : vector<24x128xbf16>, vector<128x128xbf16>, vector<24x128xf32> -> vector<24x128xf32>
    %207 = arith.addf %202, %206 : vector<24x128xf32>
    %c12_214 = arith.constant 12 : index
    %c0_215 = arith.constant 0 : index
    %208 = vector.load %arg19[%c12_214, %c0_215] : memref<38x128xbf16, #tpu.memory_space<vmem>>, vector<24x128xbf16>
    %c6_216 = arith.constant 6 : index
    %c0_217 = arith.constant 0 : index
    %c0_218 = arith.constant 0 : index
    %209 = vector.load %arg11[%c6_216, %c0_217, %c0_218] : memref<9x128x128xbf16, #tpu.memory_space<vmem>>, vector<1x128x128xbf16>
    %210 = vector.shape_cast %209 : vector<1x128x128xbf16> to vector<128x128xbf16>
    %cst_219 = arith.constant dense<0.000000e+00> : vector<24x128xf32>
    %211 = tpu.matmul %208, %210, %cst_219 {dimension_numbers = #tpu.dot_dimension_numbers<[1], [0], [0], [1], [0, 0, 1, 1], [], []>} : vector<24x128xbf16>, vector<128x128xbf16>, vector<24x128xf32> -> vector<24x128xf32>
    %212 = arith.addf %207, %211 : vector<24x128xf32>
    %c13 = arith.constant 13 : index
    %c0_220 = arith.constant 0 : index
    %213 = vector.load %arg19[%c13, %c0_220] : memref<38x128xbf16, #tpu.memory_space<vmem>>, vector<24x128xbf16>
    %c7_221 = arith.constant 7 : index
    %c0_222 = arith.constant 0 : index
    %c0_223 = arith.constant 0 : index
    %214 = vector.load %arg11[%c7_221, %c0_222, %c0_223] : memref<9x128x128xbf16, #tpu.memory_space<vmem>>, vector<1x128x128xbf16>
    %215 = vector.shape_cast %214 : vector<1x128x128xbf16> to vector<128x128xbf16>
    %cst_224 = arith.constant dense<0.000000e+00> : vector<24x128xf32>
    %216 = tpu.matmul %213, %215, %cst_224 {dimension_numbers = #tpu.dot_dimension_numbers<[1], [0], [0], [1], [0, 0, 1, 1], [], []>} : vector<24x128xbf16>, vector<128x128xbf16>, vector<24x128xf32> -> vector<24x128xf32>
    %217 = arith.addf %212, %216 : vector<24x128xf32>
    %c14 = arith.constant 14 : index
    %c0_225 = arith.constant 0 : index
    %218 = vector.load %arg19[%c14, %c0_225] : memref<38x128xbf16, #tpu.memory_space<vmem>>, vector<24x128xbf16>
    %c8_226 = arith.constant 8 : index
    %c0_227 = arith.constant 0 : index
    %c0_228 = arith.constant 0 : index
    %219 = vector.load %arg11[%c8_226, %c0_227, %c0_228] : memref<9x128x128xbf16, #tpu.memory_space<vmem>>, vector<1x128x128xbf16>
    %220 = vector.shape_cast %219 : vector<1x128x128xbf16> to vector<128x128xbf16>
    %cst_229 = arith.constant dense<0.000000e+00> : vector<24x128xf32>
    %221 = tpu.matmul %218, %220, %cst_229 {dimension_numbers = #tpu.dot_dimension_numbers<[1], [0], [0], [1], [0, 0, 1, 1], [], []>} : vector<24x128xbf16>, vector<128x128xbf16>, vector<24x128xf32> -> vector<24x128xf32>
    %222 = arith.addf %217, %221 : vector<24x128xf32>
    %c0_230 = arith.constant 0 : index
    %c0_231 = arith.constant 0 : index
    %223 = vector.load %arg12[%c0_230, %c0_231] : memref<1x128xf32, #tpu.memory_space<vmem>>, vector<1x128xf32>
    %224 = vector.broadcast %223 : vector<1x128xf32> to vector<24x128xf32>
    %225 = arith.addf %222, %224 : vector<24x128xf32>
    %cst_232 = arith.constant 0.000000e+00 : f32
    %226 = vector.broadcast %cst_232 : f32 to vector<24x128xf32>
    %227 = arith.maximumf %225, %226 : vector<24x128xf32>
    %c0_233 = arith.constant 0 : index
    %c0_234 = arith.constant 0 : index
    %228 = vector.load %arg13[%c0_233, %c0_234] : memref<16x24xbf16, #tpu.memory_space<vmem>>, vector<16x24xbf16>
    %229 = arith.truncf %227 : vector<24x128xf32> to vector<24x128xbf16>
    %cst_235 = arith.constant dense<0.000000e+00> : vector<16x128xf32>
    %230 = tpu.matmul %228, %229, %cst_235 {dimension_numbers = #tpu.dot_dimension_numbers<[1], [0], [0], [1], [0, 0, 1, 1], [], []>} : vector<16x24xbf16>, vector<24x128xbf16>, vector<16x128xf32> -> vector<16x128xf32>
    %231 = arith.truncf %230 : vector<16x128xf32> to vector<16x128xbf16>
    %c0_236 = arith.constant 0 : index
    %c0_237 = arith.constant 0 : index
    %232 = vector.load %arg14[%c0_236, %c0_237] : memref<128x128xbf16, #tpu.memory_space<vmem>>, vector<128x128xbf16>
    %cst_238 = arith.constant dense<0.000000e+00> : vector<16x128xf32>
    %233 = tpu.matmul %231, %232, %cst_238 {dimension_numbers = #tpu.dot_dimension_numbers<[1], [0], [0], [1], [0, 0, 1, 1], [], []>} : vector<16x128xbf16>, vector<128x128xbf16>, vector<16x128xf32> -> vector<16x128xf32>
    %c0_239 = arith.constant 0 : index
    %c0_240 = arith.constant 0 : index
    %234 = vector.load %arg15[%c0_239, %c0_240] : memref<1x128xf32, #tpu.memory_space<vmem>>, vector<1x128xf32>
    %235 = vector.broadcast %234 : vector<1x128xf32> to vector<16x128xf32>
    %236 = arith.addf %233, %235 : vector<16x128xf32>
    %c0_241 = arith.constant 0 : index
    %c0_242 = arith.constant 0 : index
    %c0_243 = arith.constant 0 : index
    %237 = vector.load %arg16[%c0_241, %c0_242, %c0_243] : memref<1x16x128xf32, #tpu.memory_space<vmem>>, vector<1x16x128xf32>
    %238 = vector.shape_cast %237 : vector<1x16x128xf32> to vector<16x128xf32>
    %239 = vector.shape_cast %236 : vector<16x128xf32> to vector<1x16x128xf32>
    tpu.vector_store %arg16[%c0_241, %c0_242, %c0_243], %239 {strides = array<i32>} : memref<1x16x128xf32, #tpu.memory_space<vmem>>, vector<1x16x128xf32>,
    return
  }
  func.func @transform_0(%arg0: i32) -> (i32, i32, i32) {
    %c0_i32 = arith.constant 0 : i32
    %c0_i32_0 = arith.constant 0 : i32
    %c0_i32_1 = arith.constant 0 : i32
    return %arg0, %c0_i32, %c0_i32_0 : i32, i32, i32
  }
  func.func @transform_1(%arg0: i32) -> (i32, i32, i32) {
    %c0_i32 = arith.constant 0 : i32
    %c0_i32_0 = arith.constant 0 : i32
    %c0_i32_1 = arith.constant 0 : i32
    %c0_i32_2 = arith.constant 0 : i32
    return %c0_i32, %c0_i32_0, %c0_i32_1 : i32, i32, i32
  }
  func.func @transform_2(%arg0: i32) -> (i32, i32) {
    %c0_i32 = arith.constant 0 : i32
    %c0_i32_0 = arith.constant 0 : i32
    %c0_i32_1 = arith.constant 0 : i32
    return %c0_i32, %c0_i32_0 : i32, i32
  }
  func.func @transform_3(%arg0: i32) -> (i32, i32) {
    %c0_i32 = arith.constant 0 : i32
    %c0_i32_0 = arith.constant 0 : i32
    %c0_i32_1 = arith.constant 0 : i32
    return %c0_i32, %c0_i32_0 : i32, i32
  }
  func.func @transform_4(%arg0: i32) -> (i32, i32, i32) {
    %c0_i32 = arith.constant 0 : i32
    %c0_i32_0 = arith.constant 0 : i32
    %c0_i32_1 = arith.constant 0 : i32
    %c0_i32_2 = arith.constant 0 : i32
    return %c0_i32, %c0_i32_0, %c0_i32_1 : i32, i32, i32
  }
  func.func @transform_5(%arg0: i32) -> (i32, i32) {
    %c0_i32 = arith.constant 0 : i32
    %c0_i32_0 = arith.constant 0 : i32
    %c0_i32_1 = arith.constant 0 : i32
    return %c0_i32, %c0_i32_0 : i32, i32
  }
  func.func @transform_6(%arg0: i32) -> (i32, i32) {
    %c0_i32 = arith.constant 0 : i32
    %c0_i32_0 = arith.constant 0 : i32
    %c0_i32_1 = arith.constant 0 : i32
    return %c0_i32, %c0_i32_0 : i32, i32
  }
  func.func @transform_7(%arg0: i32) -> (i32, i32, i32) {
    %c0_i32 = arith.constant 0 : i32
    %c0_i32_0 = arith.constant 0 : i32
    %c0_i32_1 = arith.constant 0 : i32
    %c0_i32_2 = arith.constant 0 : i32
    return %c0_i32, %c0_i32_0, %c0_i32_1 : i32, i32, i32
  }
  func.func @transform_8(%arg0: i32) -> (i32, i32) {
    %c0_i32 = arith.constant 0 : i32
    %c0_i32_0 = arith.constant 0 : i32
    %c0_i32_1 = arith.constant 0 : i32
    return %c0_i32, %c0_i32_0 : i32, i32
  }
  func.func @transform_9(%arg0: i32) -> (i32, i32) {
    %c0_i32 = arith.constant 0 : i32
    %c0_i32_0 = arith.constant 0 : i32
    %c0_i32_1 = arith.constant 0 : i32
    return %c0_i32, %c0_i32_0 : i32, i32
  }
  func.func @transform_10(%arg0: i32) -> (i32, i32, i32) {
    %c0_i32 = arith.constant 0 : i32
    %c0_i32_0 = arith.constant 0 : i32
    %c0_i32_1 = arith.constant 0 : i32
    %c0_i32_2 = arith.constant 0 : i32
    return %c0_i32, %c0_i32_0, %c0_i32_1 : i32, i32, i32
  }
  func.func @transform_11(%arg0: i32) -> (i32, i32) {
    %c0_i32 = arith.constant 0 : i32
    %c0_i32_0 = arith.constant 0 : i32
    %c0_i32_1 = arith.constant 0 : i32
    return %c0_i32, %c0_i32_0 : i32, i32
  }
  func.func @transform_12(%arg0: i32) -> (i32, i32) {
    %c0_i32 = arith.constant 0 : i32
    %c0_i32_0 = arith.constant 0 : i32
    %c0_i32_1 = arith.constant 0 : i32
    return %c0_i32, %c0_i32_0 : i32, i32
  }
  func.func @transform_13(%arg0: i32) -> (i32, i32) {
    %c0_i32 = arith.constant 0 : i32
    %c0_i32_0 = arith.constant 0 : i32
    %c0_i32_1 = arith.constant 0 : i32
    return %c0_i32, %c0_i32_0 : i32, i32
  }
  func.func @transform_14(%arg0: i32) -> (i32, i32) {
    %c0_i32 = arith.constant 0 : i32
    %c0_i32_0 = arith.constant 0 : i32
    %c0_i32_1 = arith.constant 0 : i32
    return %c0_i32, %c0_i32_0 : i32, i32
  }
  func.func @transform_15(%arg0: i32) -> (i32, i32, i32) {
    %c0_i32 = arith.constant 0 : i32
    %c0_i32_0 = arith.constant 0 : i32
    %c0_i32_1 = arith.constant 0 : i32
    return %arg0, %c0_i32, %c0_i32_0 : i32, i32, i32
  }
}

</mosaic_0001>

<bundles_post_ra>
// kernel: centernet_forward.1
= control target key start
LH: loop header
LB: loop body
LE: loop exit
PB: predicated region body
PF: predicated region fallthrough
CT: control target
= control target key end

     0   :  { %20 = vsyncpa [#allocation6], 0  ;;  %s22165_s0 = inlined_call_operand.vmem [shape: bf16[2,326,128], index: 0, kind: input, shape index: {}]   ;;  %s22166_s1 = inlined_call_operand.vmem [shape: bf16[9,128,128], index: 1, kind: input, shape index: {}]   ;;  %s22167_s2 = inlined_call_operand.vmem [shape: f32[1,128], index: 2, kind: input, shape index: {}]   ;;  %s22168_s3 = inlined_call_operand.hbm [shape: bf16[326,288], index: 3, kind: input, shape index: {}]   ;;  %s22169_s4 = inlined_call_operand.vmem [shape: bf16[9,128,128], index: 4, kind: input, shape index: {}]   ;;  %s22170_s5 = inlined_call_operand.vmem [shape: f32[1,128], index: 5, kind: input, shape index: {}]   ;;  %s22171_s6 = inlined_call_operand.hbm [shape: bf16[102,288], index: 6, kind: input, shape index: {}]   ;;  %s22172_s7 = inlined_call_operand.vmem [shape: bf16[9,128,128], index: 7, kind: input, shape index: {}]   ;;  %s22173_s8 = inlined_call_operand.vmem [shape: f32[1,128], index: 8, kind: input, shape index: {}]   ;;  %s22174_s9 = inlined_call_operand.vmem [shape: bf16[38,80], index: 9, kind: input, shape index: {}]   ;;  %s22175_s10 = inlined_call_operand.vmem [shape: bf16[9,128,128], index: 10, kind: input, shape index: {}]   ;;  %s22176_s11 = inlined_call_operand.vmem [shape: f32[1,128], index: 11, kind: input, shape index: {}]   ;;  %s22177_s12 = inlined_call_operand.vmem [shape: bf16[16,24], index: 12, kind: input, shape index: {}]   ;;  %s22178_s13 = inlined_call_operand.vmem [shape: bf16[128,128], index: 13, kind: input, shape index: {}]   ;;  %s22179_s14 = inlined_call_operand.vmem [shape: f32[1,128], index: 14, kind: input, shape index: {}]   ;;  %s22180_s15 = inlined_call_operand.hbm [shape: f32[2,16,128], index: 15, kind: output, shape index: {}]  }
   0x1   :  { %21 = vsyncpa [#allocation9], 0 }
   0x2   :  { %22 = vsyncpa [#allocation7], 0 }
   0x3   :  { %24 = vsyncpa [#allocation7 + $0x1], 0  ;;  %s17505_s18 = smov 0   ;;  %s17507_s19 = smov 0  }
   0x4   :  { %s17509_s20 = smov 0   ;;  %s17511_s21 = smov 0  }
   0x5 LB: > { %22225 = sst [smem:[#allocation14_spill]] %s17401_s18  ;;  %s17526_s22 = sadd.s32 4294967295, %s17413_s21   ;;  %s17413_s21 = sphi %s17511_s21, %s22618_s21   ;;  %s17409_s20 = sphi %s17509_s20, %s22620_s20   ;;  %s17405_s19 = sphi %s17507_s19, %s22622_s19   ;;  %s17401_s18 = sphi %s17505_s18, %s22621_s18  }
   0x6   : > { %22226 = sst [smem:[#allocation15_spill]] %s17409_s20  ;;  %s12819_s23 = sadd.s32 4294967294, %s17413_s21  }
   0x7   : > { %s17530_s24 = sadd.s32 1, %s17413_s21   ;;  %s357_s25 = sadd.s32 1, %s17409_s20 }
   0x8   : > { %22227 = sst [smem:[#allocation16_spill]] %s17530_s24  ;;  %s354_s26 = ssub.s32 %s17413_s21, %s17530_s24 }
   0x9   : > { %p367_p0 = scmp.ne.s32.totalorder %s17409_s20, %s17405_s19  ;;  %p355_p1 = scmp.eq.s32.totalorder %s354_s26, 0 }
   0xa   : > { %p368_p2 = scmp.eq.s32.totalorder %s17526_s22, 1  ;;  %p373_p3 = scmp.ne.s32.totalorder %s17405_s19, %s17401_s18 }
   0xb   : > { %p374_p4 = scmp.eq.s32.totalorder %s12819_s23, 1  ;;  %p12820_p7 = scmp.ge.s32.totalorder %s17413_s21, 1 }
   0xc   : > { %s17541_s27 = scalar_select %p355_p1, %s17409_s20, %s357_s25  }
   0xd   : > { %p17543_p5 = por %p368_p2, %p367_p0  ;;  %p17547_p6 = por %p374_p4, %p373_p3 }
   0xe   : > { %22228 = sst [smem:[#allocation17_spill]] %s17541_s27  ;;  %p381_p8 = scmp.lt.s32.totalorder %s17413_s21, 3 }
   0xf   : > { %s22230_s29 = scalar_select %p17547_p6, 1, 0 }
  0x10   : > { %p22185_p9 = scmp.eq.s32.totalorder %s17526_s22, 0  ;;  %p17554_p10 = pnand %p12820_p7, %p381_p8 }
  0x11   : > { %22231 = sst [smem:[#allocation18_spill]] %s22230_s29  ;;  %s17415_s16 = smov [#allocation5]  }
  0x12   : > { %s399_s17 = sshll.u32 %s17415_s16, 4  ;;  %p16633_p11 = pneg %p17554_p10  ;;  %s400_s17 = int_to_ptr.vmem [resolvable:$true] %s399_s17 }
  0x13   : > { %s17416_s25 = smov [#allocation8]   ;;  %s17304_s27 = scalar_lea.vmem %s400_s17, 7872 }
  0x14   : > { %p17562_p12 = pnand %p22185_p9, %p16633_p11  ;;  %s418_s26 = sshll.u32 %s17416_s25, 4  ;;  %s419_s26 = int_to_ptr.vmem [resolvable:$true] %s418_s26 }
  0x15   : > { %p17305_p0 = scmp.ne.s32.totalorder %s400_s17, %s17304_s27  ;;  %p17312_p3 = scmp.lt.s32.totalorder %s400_s17, %s400_s17 }
  0x16   : > { %p17295_p13 = pneg %p17562_p12  ;;  %p17313_p4 = scmp.lt.s32.totalorder %s17304_s27, %s17304_s27 }
  0x18   : > { %p17307_p1 = pnand %p17305_p0, %p17295_p13  ;;  %p17314_p7 = por %p17313_p4, %p17312_p3 }
  0x1a   : > { %p17308_p2 = pneg %p17307_p1 }
  0x1c   : > { %p17315_p8 = pnand %p17314_p7, %p17308_p2 }
  0x1e   : > { %17318 = shalt.err (!%p17315_p8)
}
  0x1f   : > { %s17417_s16 = smov 192   ;;  %s17418_s20 = smov 12  }
  0x20   : > { %16636 = dma.hbm_to_vmem [thread:$0]  (!%p17562_p12), %s22168_s3, 7872, %s400_s17, [#allocation6], %s17417_s16, %s17417_s16, %s17418_s20  }
  0x21   : > { %s17330_s29 = scalar_lea.vmem %s419_s26, 2496  ;;  %p17338_p9 = scmp.lt.s32.totalorder %s419_s26, %s419_s26 }
  0x22   : > { %p17331_p11 = scmp.ne.s32.totalorder %s419_s26, %s17330_s29  ;;  %p17339_p6 = scmp.lt.s32.totalorder %s17330_s29, %s17330_s29 }
  0x24   : > { %p17333_p0 = pnand %p17331_p11, %p17295_p13  ;;  %p17340_p3 = por %p17339_p6, %p17338_p9 }
  0x26   : > { %p17334_p1 = pneg %p17333_p0 }
  0x28   : > { %p17341_p2 = pnand %p17340_p3, %p17334_p1 }
  0x2a   : > { %17344 = shalt.err (!%p17341_p2)
}
  0x2b   : > { %16639 = dma.hbm_to_vmem [thread:$0]  (!%p17562_p12), %s22171_s6, 2496, %s419_s26, [#allocation9], %s17417_s16, %s17417_s16, %s17418_s20  }
  0x2c   : > { %466 = sbr.rel (%p17554_p10) target bundleno = 3162 (0xc5a), region = 80 }
  0x31   : > { %p22234_p4 = scmp.eq.s32.totalorder %s17526_s22, 0 }
  0x33   : > { %17388 = dma.done.wait (%p22234_p4), [#allocation6], 7872   ;;  %p22235_p13 = pmov %p22234_p4 }
  0x34   : > { %p22236_p7 = pmov %p22234_p4 }
  0x35   : > { %17390 = vsyncadd (%p22235_p13), [#allocation6], 4294959424 }
  0x36   : > { %17392 = dma.done.wait (%p22236_p7), [#allocation9], 2496   ;;  %p22237_p6 = pmov %p22234_p4 }
  0x37   : > { %v16690_v0 = vld [vmem:[%s22166_s1 + $0x78] sm:$0xff]   ;;  %p518_p9 = scmp.lt.s32.totalorder %s17526_s22, 1  ;;  %v16692_v2 = vld [vmem:[%s22166_s1 + $0x70] sm:$0xff]   ;;  %v16694_v4 = vld [vmem:[%s22166_s1 + $0x68] sm:$0xff]   ;;  %vm687_vm0 = vsmask.f32 7424 }
  0x38   : > { %17394 = vsyncadd (%p22237_p6), [#allocation9], 4294964800  ;;  %v16691_v1 = vld [vmem:[%s22166_s1 + $0x38] sm:$0xff]   ;;  %14996 = vmatprep.subr.bf16.mxu0 %v16690_v0  ;;  %v16693_v3 = vld [vmem:[%s22166_s1 + $0x30] sm:$0xff]   ;;  %vm1343_vm1 = vcmask 1046528   ;;  %vm2615_vm3 = vcmask 1045504  }
  0x39   : > { %15048 = vmatprep.subr.bf16.mxu1 %v16691_v1  ;;  %14997 = vmatpush3.bf16.msra.mxu0 %v16690_v0  ;;  %v16695_v5 = vld [vmem:[%s22166_s1 + $0x28] sm:$0xff]   ;;  %s519_s29 = scalar_select %p518_p9, %s17526_s22, 1  ;;  %v16696_v6 = vld [vmem:[%s22166_s1 + $0x60] sm:$0xff]   ;;  %v16698_v8 = vld [vmem:[%s22166_s1 + $0x58] sm:$0xff]   ;;  %vm2144_vm2 = vsmask.f32 6400 }
  0x3a   : > { %15049 = vmatpush3.bf16.msra.mxu1 %v16691_v1  ;;  %14998 = vmatprep.subr.bf16.mxu0 %v16692_v2  ;;  %v16697_v7 = vld [vmem:[%s22166_s1 + $0x20] sm:$0xff]   ;;  %v16699_v9 = vld [vmem:[%s22166_s1 + $0x18] sm:$0xff]   ;;  %v16700_v10 = vld [vmem:[%s22166_s1 + $0x50] sm:$0xff]   ;;  %vm3416_vm4 = vsmask.f32 5376  ;;  %vm3887_vm5 = vcmask 1044480  }
  0x3b   : > { %15050 = vmatprep.subr.bf16.mxu1 %v16693_v3  ;;  %s16622_s23 = smul.u32 164, %s519_s29  ;;  %v16701_v11 = vld [vmem:[%s22166_s1 + $0x10] sm:$0xff]   ;;  %v16702_v17 = vld [vmem:[%s22166_s1 + $0x48] sm:$0xff]   ;;  %v16704_v28 = vld [vmem:[%s22166_s1 + $0x40] sm:$0xff]   ;;  %vm17421_vm6 = vmmov 0   ;;  %vm4693_vm7 = vcmask 261120  }
  0x3c   : > { %v16703_v21 = vld [vmem:[%s22166_s1 + $0x8] sm:$0xff]   ;;  %v16705_v31 = vld [vmem:[%s22166_s1] sm:$0xff]   ;;  %v16719_v45 = vld [vmem:[%s22166_s1 + $0xb8] sm:$0xff]   ;;  %vm11271_vm8 = vcmask 654336   ;;  %vm11897_vm9 = vsmask.f32 4352 }
  0x3d   : > { %14999 = vmatpush3.bf16.msra.mxu0 %v16692_v2  ;;  %s17629_s20 = scalar_lea.vmem %s22165_s0, %s16622_s23  ;;  %v16720_v49 = vld [vmem:[%s22166_s1 + $0xf8] sm:$0xff]   ;;  %v16721_v50 = vld [vmem:[%s22166_s1 + $0xb0] sm:$0xff]   ;;  %v16725_v59 = vld [vmem:[%s22166_s1 + $0xa8] sm:$0xff]   ;;  %vm12561_vm10 = vcmask 1043456   ;;  %vm12557_vm11 = vcmask 195584   ;;  %s515_s16 = sand.u32 1, %s17405_s19  }
  0x3e   : > { %15051 = vmatpush3.bf16.msra.mxu1 %v16693_v3  ;;  %15000 = vmatprep.subr.bf16.mxu0 %v16694_v4  ;;  %v524_v12 = vld [vmem:[%s17629_s20] sm:$0xf]  ;;  %v17639_v13 = vld [vmem:[%s17629_s20 + $0x4] sm:$0xf]  ;;  %v17643_v15 = vld [vmem:[%s17629_s20 + $0x8] sm:$0xff]   ;;  %s12827_s25 = sshll.u32 %s515_s16, 4 }
  0x3f   : > { %15052 = vmatprep.subr.bf16.mxu1 %v16695_v5  ;;  %v12845_v14 = vcombine.low %v524_v12, %v17639_v13  ;;  %v17646_v16 = vld [vmem:[%s17629_s20 + $0x10] sm:$0xff]   ;;  %v696_v20 = vshll.u32 %v17643_v15, 16  ;;  %v17656_v22 = vld [vmem:[%s17629_s20 + $0x18] sm:$0xff]   ;;  %v700_v27 = vshrl.u32 %v17643_v15, 16  ;;  %v17670_v34 = vld [vmem:[%s17629_s20 + $0x20] sm:$0xff]   ;;  %s517_s18 = scalar_lea.vmem [#allocation10], %s12827_s25 }
  0x40   : > { %v704_v25 = vshll.u32 %v17646_v16, 16  ;;  %v708_v29 = vshrl.u32 %v17646_v16, 16  ;;  %v712_v30 = vshll.u32 %v17656_v22, 16  ;;  %v17673_v38 = vld [vmem:[%s17629_s20 + $0x28] sm:$0xff]   ;;  %v720_v39 = vshll.u32 %v17670_v34, 16  ;;  %v17685_v46 = vld [vmem:[%s17629_s20 + $0x30] sm:$0xff]  }
  0x41   : > { %15001 = vmatpush3.bf16.msra.mxu0 %v16694_v4  ;;  %v689_v18 = vshrl.u32 %v12845_v14, 16  ;;  %v691_v19 = vshll.u32 %v12845_v14, 16  ;;  %15064 = vmatprep.mubr.bf16.mxu1 %v12845_v14  ;;  %v698_v24 = vrot.slane %v696_v20, 1  ;;  %v716_v41 = vshrl.u32 %v17656_v22, 16  ;;  %v17688_v48 = vld [vmem:[%s17629_s20 + $0x38] sm:$0xff]   ;;  %v16722_v54 = vld [vmem:[%s22166_s1 + $0xf0] sm:$0xff]  }
  0x42   : > { %15053 = vmatpush3.bf16.msra.mxu1 %v16695_v5  ;;  %15002 = vmatprep.subr.bf16.mxu0 %v16696_v6  ;;  %v706_v33 = vrot.slane %v704_v25, 1  ;;  %v714_v37 = vrot.slane %v712_v30, 1  ;;  %v724_v43 = vshrl.u32 %v17670_v34, 16  ;;  %v728_v44 = vshll.u32 %v17673_v38, 16  ;;  %v16726_v62 = vld [vmem:[%s22166_s1 + $0xe8] sm:$0xff]   ;;  %v16727_v63 = vld [vmem:[%s22166_s1 + $0xa0] sm:$0xff]  }
  0x43   : > { %15054 = vmatprep.subr.bf16.mxu1 %v16697_v7  ;;  %v693_v23 = vrot.slane %v691_v19, 1  ;;  %v702_v35 = vor.u32 %v700_v27, %v698_v24  ;;  %v722_v47 = vrot.slane %v720_v39, 1  ;;  %v736_v55 = vshll.u32 %v17685_v46, 16  ;;  %v17717_v1 = vld [vmem:[%s17629_s20 + $0x40] sm:$0xff]   ;;  %v16732_v19 = vld [vmem:[%s22166_s1 + $0xd8] sm:$0xff]   ;;  %v16733_v20 = vld [vmem:[%s22166_s1 + $0x90] sm:$0xff]  }
  0x44   : > { %v710_v36 = vor.u32 %v708_v29, %v706_v33  ;;  %v718_v51 = vor.u32 %v716_v41, %v714_v37  ;;  %v730_v53 = vrot.slane %v728_v44, 1  ;;  %v732_v57 = vshrl.u32 %v17673_v38, 16  ;;  %v16728_v3 = vld [vmem:[%s22166_s1 + $0xe0] sm:$0xff]   ;;  %v16734_v27 = vld [vmem:[%s22166_s1 + $0xd0] sm:$0xff]   ;;  %v16738_v44 = vld [vmem:[%s22166_s1 + $0xc8] sm:$0xff]   ;;  %s12735_s30 = sshll.u32 %s517_s18, 4  ;;  %s22118_s30 = int_to_ptr.vmem [resolvable:$true] %s12735_s30 }
  0x45   : > { %15003 = vmatpush3.bf16.msra.mxu0 %v16696_v6  ;;  %v694_v26 = vor.u32 %v693_v23, %v689_v18  ;;  %v707_v40 = vsel %vm687_vm0, %v702_v35, %v706_v33  ;;  %v726_v52 = vor.u32 %v724_v43, %v722_v47  ;;  %v740_v58 = vshrl.u32 %v17685_v46, 16  ;;  %v17725_v6 = vld [vmem:[%s17629_s20 + $0x48] sm:$0xff]   ;;  %v17752_v25 = vld [vmem:[%s17629_s20 + $0x60] sm:$0xff]   ;;  %v17775_v41 = vld [vmem:[%s17629_s20 + $0x70] sm:$0xff]   ;;  %s14045_s17 = sshll.u32 %s17526_s22, 8  ;;  %s22125_s23 = scalar_lea.sflag [#allocation7], %s515_s16 }
  0x46   : > { %15055 = vmatpush3.bf16.msra.mxu1 %v16697_v7  ;;  %15004 = vmatprep.subr.bf16.mxu0 %v16698_v8  ;;  %v715_v42 = vsel %vm687_vm0, %v710_v36, %v714_v37  ;;  %v723_v56 = vsel %vm687_vm0, %v718_v51, %v722_v47  ;;  %v744_v61 = vshll.u32 %v17688_v48, 16  ;;  %v738_v0 = vrot.slane %v736_v55, 1  ;;  %v16740_v55 = vld [vmem:[%s22166_s1 + $0xc0] sm:$0xff]   ;;  %s17345_s25 = scalar_lea.vmem %s22118_s30, 256  ;;  %s17422_s22 = smov [#allocation10]  }
  0x47   : > { %15056 = vmatprep.subr.bf16.mxu1 %v16699_v9  ;;  %v699_v32 = vsel %vm687_vm0, %v694_v26, %v698_v24  ;;  %v731_v60 = vsel %vm687_vm0, %v726_v52, %v730_v53  ;;  %v734_v2 = vor.u32 %v732_v57, %v730_v53  ;;  %v748_v7 = vshrl.u32 %v17688_v48, 16  ;;  %v17749_v24 = vld [vmem:[%s17629_s20 + $0x58] sm:$0xff]   ;;  %p17346_p10 = scmp.ne.s32.totalorder %s22118_s30, %s17345_s25  ;;  %s17349_s27 = sshll.u32 %s17422_s22, 4  ;;  %s17350_s27 = int_to_ptr.vmem [resolvable:$false] %s17349_s27 }
  0x48   : > { %15012 = vmatprep.mubr.bf16.mxu0 %v699_v32  ;;  %v742_v4 = vor.u32 %v740_v58, %v738_v0  ;;  %v746_v5 = vrot.slane %v744_v61, 1  ;;  %v756_v12 = vshrl.u32 %v17717_v1, 16  ;;  %v1345_v14 = vrot.slane %v17643_v15, 1  ;;  %v16737_v32 = vld [vmem:[%s22166_s1 + $0x88] sm:$0xff]   ;;  %v17809_v61 = vld [vmem:[%s17629_s20 + $0x80] sm:$0xff]   ;;  %s17351_s24 = scalar_lea.vmem %s17350_s27, 512  ;;  %p17352_p11 = scmp.lt.s32.totalorder %s22118_s30, %s17350_s27 }
  0x49   : > { %15005 = vmatpush3.bf16.msra.mxu0 %v16698_v8  ;;  %v16731_v8 = vld [vmem:[%s22166_s1 + $0x98] sm:$0xff]   ;;  %v760_v18 = vshll.u32 %v17725_v6, 16  ;;  %v764_v30 = vshrl.u32 %v17725_v6, 16  ;;  %v776_v35 = vshll.u32 %v17749_v24, 16  ;;  %v780_v37 = vshrl.u32 %v17749_v24, 16  ;;  %p17347_p12 = pnand %p17346_p10, %p17543_p5  ;;  %p17353_p0 = scmp.lt.s32.totalorder %s17351_s24, %s17345_s25 }
  0x4a   : > { %15057 = vmatpush3.bf16.msra.mxu1 %v16699_v9  ;;  %15006 = vmatprep.subr.bf16.mxu0 %v16700_v10  ;;  %v752_v9 = vshll.u32 %v17717_v1, 16  ;;  %v750_v26 = vor.u32 %v748_v7, %v746_v5  ;;  %v784_v39 = vshll.u32 %v17752_v25, 16  ;;  %v1349_v47 = vrot.slane %v17656_v22, 1 }
  0x4b   : > { %15058 = vmatprep.subr.bf16.mxu1 %v16701_v11  ;;  %v762_v29 = vrot.slane %v760_v18, 1  ;;  %v778_v52 = vrot.slane %v776_v35, 1  ;;  %v1353_v58 = vrot.slane %v17673_v38, 1  ;;  %v820_v35 = vshrl.u32 %v17809_v61, 16  ;;  %p17348_p8 = pneg %p17347_p12  ;;  %p17354_p1 = por %p17353_p0, %p17352_p11 }
  0x4c   : > { %v754_v23 = vrot.slane %v752_v9, 1 }
  0x4d   : > { %15007 = vmatpush3.bf16.msra.mxu0 %v16700_v10  ;;  %v17733_v10 = vld [vmem:[%s17629_s20 + $0x50] sm:$0xff]   ;;  %v766_v51 = vor.u32 %v764_v30, %v762_v29  ;;  %p17355_p3 = pnand %p17354_p1, %p17348_p8 }
  0x4e   : > { %15059 = vmatpush3.bf16.msra.mxu1 %v16701_v11  ;;  %15008 = vmatprep.subr.bf16.mxu0 %v16702_v17  ;;  %v739_v11 = vsel %vm687_vm0, %v734_v2, %v738_v0  ;;  %v755_v36 = vsel %vm687_vm0, %v750_v26, %v754_v23  ;;  %v1357_v2 = vrot.slane %v17688_v48, 1 }
  0x4f   : > { %15060 = vmatprep.subr.bf16.mxu1 %v16703_v21 }
  0x51   : > { %15009 = vmatpush3.bf16.msra.mxu0 %v16702_v17  ;;  %v747_v17 = vsel %vm687_vm0, %v742_v4, %v746_v5  ;;  %v788_v4 = vshrl.u32 %v17752_v25, 16 }
  0x52   : > { %15061 = vmatpush3.bf16.msra.mxu1 %v16703_v21  ;;  %15010 = vmatprep.subr.bf16.mxu0 %v16704_v28  ;;  %v1347_v21 = vrot.slane %v17646_v16, 1 }
  0x53   : > { %15062 = vmatprep.subr.bf16.mxu1 %v16705_v31 }
  0x55   : > { %15011 = vmatpush3.bf16.msra.mxu0 %v16704_v28  ;;  %v17759_v28 = vsel %vm1343_vm1, %v1345_v14, %v1347_v21 }
  0x56   : > { %15063 = vmatpush3.bf16.msra.mxu1 %v16705_v31  ;;  %15100 = vmatprep.subr.bf16.mxu0 %v16719_v45  ;;  %v772_v31 = vshrl.u32 %v17733_v10, 16 }
  0x57   : > { %15152 = vmatprep.subr.bf16.mxu1 %v16720_v49 }
  0x58   : > { %15013 = vmatmul.mubr.bf16.vlgmr.msra.gmra.mxu0 %v707_v40  ;;  %v17772_v40 = vld [vmem:[%s17629_s20 + $0x68] sm:$0xff]  }
  0x59   : > { %15065 = vmatmul.mubr.bf16.vlgmr.msra.gmra.mxu1 %v17643_v15  ;;  %15016 = vmatprep.mubr.bf16.mxu0 %v715_v42  ;;  %v768_v15 = vshll.u32 %v17733_v10, 16  ;;  %v1322_v42 = vld [vmem:[%s17629_s20] sm:$0xe]  ;;  %v796_v5 = vshrl.u32 %v17772_v40, 16 }
  0x5a   : > { %15068 = vmatprep.mubr.bf16.mxu1 %v17646_v16  ;;  %15101 = vmatpush3.bf16.msra.mxu0 %v16719_v45  ;;  %v758_v16 = vor.u32 %v756_v12, %v754_v23  ;;  %v12896_v45 = vcombine.low %v1322_v42, %v17639_v13  ;;  %v782_v12 = vor.u32 %v780_v37, %v778_v52  ;;  %v1367_v23 = vrot.slane %v17752_v25, 1  ;;  %v17869_v37 = vld [vmem:[%s22166_s1 + $0x178] sm:$0xff]   ;;  %v17873_v42 = vld [vmem:[%s17629_s20 + $0xc] sm:$0xf] }
  0x5b   : > { %15102 = vmatprep.subr.bf16.mxu0 %v16721_v50  ;;  %15153 = vmatpush3.bf16.msra.mxu1 %v16720_v49  ;;  %v770_v33 = vrot.slane %v768_v15, 1  ;;  %v16739_v49 = vld [vmem:[%s22166_s1 + $0x80] sm:$0xff]  }
  0x5c   : > { %15154 = vmatprep.subr.bf16.mxu1 %v16722_v54  ;;  %v763_v43 = vsel %vm687_vm0, %v758_v16, %v762_v29  ;;  %v1344_v53 = vrot.slane %v12896_v45, 1  ;;  %v17853_v29 = vld [vmem:[%s17629_s20 + $0x88] sm:$0xff]   ;;  %v1371_v45 = vrot.slane %v17775_v41, 1 }
  0x5d   : > { %v774_v13 = vor.u32 %v772_v31, %v770_v33 }
  0x5e   : > { %15103 = vmatpush3.bf16.msra.mxu0 %v16721_v50  ;;  %v1351_v50 = vrot.slane %v17670_v34, 1  ;;  %v17801_v57 = vsel %vm1343_vm1, %v1344_v53, %v1345_v14  ;;  %v1375_v53 = vrot.slane %v17809_v61, 1 }
  0x5f   : > { %15104 = vmatprep.subr.bf16.mxu0 %v16725_v59  ;;  %15155 = vmatpush3.bf16.msra.mxu1 %v16722_v54  ;;  %v17789_v54 = vsel %vm1343_vm1, %v1347_v21, %v1349_v47  ;;  %v1365_v21 = vrot.slane %v17749_v24, 1 }
  0x60   : > { %15017 = vmatmul.mubr.bf16.gmra.mxu0 %v723_v56  ;;  %15156 = vmatprep.subr.bf16.mxu1 %v16726_v62  ;;  %v792_v56 = vshll.u32 %v17772_v40, 16  ;;  %v17814_v0 = vsel %vm1343_vm1, %v1351_v50, %v1353_v58 }
  0x61   : > { %15069 = vmatmul.mubr.bf16.gmra.mxu1 %v17656_v22  ;;  %15020 = vmatprep.mubr.bf16.mxu0 %v731_v60  ;;  %v786_v22 = vrot.slane %v784_v39, 1  ;;  %v17806_v60 = vld [vmem:[%s17629_s20 + $0x78] sm:$0xff]   ;;  %v17859_v31 = vsel %vm1343_vm1, %v1365_v21, %v1367_v23 }
  0x62   : > { %15072 = vmatprep.mubr.bf16.mxu1 %v17670_v34  ;;  %15105 = vmatpush3.bf16.msra.mxu0 %v16725_v59  ;;  %v17796_v34 = vsel %vm1343_vm1, %v1349_v47, %v1351_v50  ;;  %v800_v59 = vshll.u32 %v17775_v41, 16  ;;  %v812_v26 = vshrl.u32 %v17806_v60, 16 }
  0x63   : > { %15106 = vmatprep.subr.bf16.mxu0 %v16727_v63  ;;  %15157 = vmatpush3.bf16.msra.mxu1 %v16726_v62  ;;  %v1355_v62 = vrot.slane %v17685_v46, 1  ;;  %v790_v15 = vor.u32 %v788_v4, %v786_v22 }
  0x64   : > { %15158 = vmatprep.subr.bf16.mxu1 %v16728_v3  ;;  %v802_v14 = vrot.slane %v800_v59, 1  ;;  %v17898_v59 = vld [vmem:[%s17629_s20 + $0x18] sm:$0xff]  }
  0x65   : > { %v17822_v7 = vsel %vm1343_vm1, %v1353_v58, %v1355_v62 }
  0x66   : > { %15107 = vmatpush3.bf16.msra.mxu0 %v16727_v63  ;;  %v771_v63 = vsel %vm687_vm0, %v766_v51, %v770_v33  ;;  %v787_v33 = vsel %vm687_vm0, %v782_v12, %v786_v22  ;;  %v828_v51 = vshrl.u32 %v17853_v29, 16 }
  0x67   : > { %15108 = vmatprep.subr.bf16.mxu0 %v16731_v8  ;;  %15159 = vmatpush3.bf16.msra.mxu1 %v16728_v3  ;;  %v779_v3 = vsel %vm687_vm0, %v774_v13, %v778_v52 }
  0x68   : > { %15021 = vmatmul.mubr.bf16.gmra.mxu0 %v739_v11  ;;  %15160 = vmatprep.subr.bf16.mxu1 %v16732_v19  ;;  %v1363_v11 = vrot.slane %v17733_v10, 1 }
  0x69   : > { %15073 = vmatmul.mubr.bf16.gmra.mxu1 %v17673_v38  ;;  %15024 = vmatprep.mubr.bf16.mxu0 %v747_v17  ;;  %v1359_v38 = vrot.slane %v17717_v1, 1  ;;  %v816_v17 = vshll.u32 %v17809_v61, 16 }
  0x6a   : > { %15076 = vmatprep.mubr.bf16.mxu1 %v17685_v46  ;;  %15109 = vmatpush3.bf16.msra.mxu0 %v16731_v8  ;;  %v794_v46 = vrot.slane %v792_v56, 1  ;;  %v17825_v8 = vsel %vm1343_vm1, %v1355_v62, %v1357_v2  ;;  %v17856_v30 = vsel %vm1343_vm1, %v1363_v11, %v1365_v21  ;;  %v1377_v56 = vrot.slane %v17853_v29, 1 }
  0x6b   : > { %15110 = vmatprep.subr.bf16.mxu0 %v16733_v20  ;;  %15161 = vmatpush3.bf16.msra.mxu1 %v16732_v19  ;;  %v17828_v9 = vsel %vm1343_vm1, %v1357_v2, %v1359_v38  ;;  %v804_v19 = vshrl.u32 %v17775_v41, 16  ;;  %v1810_v21 = vrot.slane %v17898_v59, 1 }
  0x6c   : > { %15162 = vmatprep.subr.bf16.mxu1 %v16734_v27  ;;  %v795_v39 = vsel %vm687_vm0, %v790_v15, %v794_v46  ;;  %v798_v50 = vor.u32 %v796_v5, %v794_v46  ;;  %v17907_v2 = vsel %vm1343_vm1, %v1375_v53, %v1377_v56 }
  0x6d   : > { %v806_v13 = vor.u32 %v804_v19, %v802_v14 }
  0x6e   : > { %15111 = vmatpush3.bf16.msra.mxu0 %v16733_v20 }
  0x6f   : > { %15112 = vmatprep.subr.bf16.mxu0 %v16737_v32  ;;  %15163 = vmatpush3.bf16.msra.mxu1 %v16734_v27  ;;  %v16736_v27 = vld [vmem:[%s17629_s20 + $0x90] ss:$0 sps:$4 sm:$0x11]  }
  0x70   : > { %15025 = vmatmul.mubr.bf16.gmra.mxu0 %v755_v36  ;;  %15164 = vmatprep.subr.bf16.mxu1 %v16738_v44  ;;  %v1660_v36 = vld [vmem:[%s17629_s20 + $0x8] sm:$0xe]  ;;  %v832_v47 = vshll.u32 %v16736_v27, 16  ;;  %v1379_v4 = vrot.slane %v16736_v27, 1 }
  0x71   : > { %15077 = vmatmul.mubr.bf16.gmra.mxu1 %v17688_v48  ;;  %15028 = vmatprep.mubr.bf16.mxu0 %v763_v43  ;;  %v1361_v48 = vrot.slane %v17725_v6, 1  ;;  %v12921_v22 = vcombine.low %v1660_v36, %v17873_v42 }
  0x72   : > { %15080 = vmatprep.mubr.bf16.mxu1 %v17717_v1  ;;  %15113 = vmatpush3.bf16.msra.mxu0 %v16737_v32  ;;  %v808_v1 = vshll.u32 %v17806_v60, 16  ;;  %v1369_v32 = vrot.slane %v17772_v40, 1  ;;  %v17922_v12 = vsel %vm1343_vm1, %v1377_v56, %v1379_v4  ;;  %v2166_v4 = vshll.u32 %v17898_v59, 16 }
  0x73   : > { %15114 = vmatprep.subr.bf16.mxu0 %v16739_v49  ;;  %15165 = vmatpush3.bf16.msra.mxu1 %v16738_v44  ;;  %v17835_v18 = vsel %vm1343_vm1, %v1359_v38, %v1361_v48  ;;  %v17840_v20 = vsel %vm1343_vm1, %v1361_v48, %v1363_v11  ;;  %v824_v44 = vshll.u32 %v17853_v29, 16  ;;  %v803_v38 = vsel %vm687_vm0, %v798_v50, %v802_v14  ;;  %v17915_v48 = vld [vmem:[%s17629_s20 + $0x30] sm:$0xff]   ;;  %v17919_v11 = vld [vmem:[%s17629_s20 + $0x38] sm:$0xff]  }
  0x74   : > { %15166 = vmatprep.subr.bf16.mxu1 %v16740_v55  ;;  %v810_v16 = vrot.slane %v808_v1, 1  ;;  %v17876_v43 = vsel %vm1343_vm1, %v1367_v23, %v1369_v32  ;;  %v17885_v52 = vsel %vm1343_vm1, %v1369_v32, %v1371_v45  ;;  %v1807_v46 = vrot.slane %v12921_v22, 1  ;;  %v17930_v32 = vld [vmem:[%s17629_s20 + $0x40] sm:$0xff]  }
  0x75   : > { %v826_v58 = vrot.slane %v824_v44, 1  ;;  %v2149_v19 = vshll.u32 %v12921_v22, 16  ;;  %v1816_v36 = vrot.slane %v17915_v48, 1 }
  0x76   : > { %15115 = vmatpush3.bf16.msra.mxu0 %v16739_v49  ;;  %v1373_v49 = vrot.slane %v17806_v60, 1  ;;  %v811_v5 = vsel %vm687_vm0, %v806_v13, %v810_v16  ;;  %v814_v14 = vor.u32 %v812_v26, %v810_v16 }
  0x77   : > { %15167 = vmatpush3.bf16.msra.mxu1 %v16740_v55  ;;  %v17891_v55 = vld [vmem:[%s17629_s20 + $0x10] sm:$0xff]  }
  0x78   : > { %15029 = vmatmul.mubr.bf16.gmra.mxu0 %v771_v63  ;;  %15256 = vmatprep.subr.bf16.mxu1 %v17869_v37  ;;  %v17901_v62 = vsel %vm1343_vm1, %v1373_v49, %v1375_v53  ;;  %v834_v63 = vrot.slane %v832_v47, 1  ;;  %v1808_v1 = vrot.slane %v17891_v55, 1  ;;  %v2154_v16 = vshrl.u32 %v17891_v55, 16 }
  0x79   : > { %15081 = vmatmul.mubr.bf16.gmra.mxu1 %v17725_v6  ;;  %15032 = vmatprep.mubr.bf16.mxu0 %v779_v3  ;;  %v17850_v6 = vld [vmem:[%s22166_s1 + $0x138] sm:$0xff]   ;;  %v17911_v3 = vld [vmem:[%s17629_s20 + $0x28] sm:$0xff]  }
  0x7a   : > { %15084 = vmatprep.mubr.bf16.mxu1 %v17733_v10  ;;  %v818_v10 = vrot.slane %v816_v17, 1  ;;  %15204 = vmatprep.subr.bf16.mxu0 %v17850_v6  ;;  %v2146_v17 = vshrl.u32 %v12921_v22, 16  ;;  %v1814_v27 = vrot.slane %v17911_v3, 1  ;;  %v17942_v50 = vsel %vm1343_vm1, %v1808_v1, %v1810_v21 }
  0x7b   : > { %v2156_v56 = vrot.slane %v2154_v16, 1 }
  0x7c   : > { %v822_v15 = vor.u32 %v820_v35, %v818_v10  ;;  %v2148_v44 = vrot.slane %v2146_v17, 1  ;;  %v819_v26 = vsel %vm687_vm0, %v814_v14, %v818_v10  ;;  %v22187_v35 = vrot.slane %v17930_v32, 1 }
  0x7d   : > { %v17951_v53 = vsel %vm1343_vm1, %v1814_v27, %v1816_v36  ;;  %v2619_v17 = vrot.slane %v17898_v59, 2 }
  0x80   : > { %15033 = vmatmul.mubr.bf16.gmra.mxu0 %v787_v33  ;;  %v830_v33 = vor.u32 %v828_v51, %v826_v58 }
  0x81   : > { %15085 = vmatmul.mubr.bf16.gmra.mxu1 %v17749_v24  ;;  %15036 = vmatprep.mubr.bf16.mxu0 %v795_v39  ;;  %v17894_v24 = vsel %vm1343_vm1, %v1371_v45, %v1373_v49  ;;  %v1818_v39 = vrot.slane %v17919_v11, 1  ;;  %v2157_v45 = vshll.u32 %v17891_v55, 16  ;;  %v1809_v49 = vsel %vm1343_vm1, %v1807_v46, %v1808_v1 }
  0x82   : > { %15088 = vmatprep.mubr.bf16.mxu1 %v17752_v25  ;;  %v17904_v25 = vld [vmem:[%s17629_s20 + $0x20] sm:$0xff]   ;;  %v835_v47 = vsel %vm687_vm0, %v830_v33, %v834_v63  ;;  %v2617_v1 = vrot.slane %v17891_v55, 2  ;;  %v2181_v33 = vshrl.u32 %v17911_v3, 16 }
  0x83   : > { %v1812_v23 = vrot.slane %v17904_v25, 1  ;;  %v17954_v13 = vsel %vm1343_vm1, %v1816_v36, %v1818_v39  ;;  %v17961_v63 = vsel %vm1343_vm1, %v1818_v39, %v22187_v35  ;;  %v2172_v14 = vshrl.u32 %v17904_v25, 16 }
  0x85   : > { %v17945_v51 = vsel %vm1343_vm1, %v1810_v21, %v1812_v23  ;;  %v17948_v10 = vsel %vm1343_vm1, %v1812_v23, %v1814_v27  ;;  %v2175_v21 = vshll.u32 %v17904_v25, 16  ;;  %v17975_v27 = vsel %vm2615_vm3, %v2617_v1, %v2619_v17 }
  0x86   : > { %v2174_v36 = vrot.slane %v2172_v14, 1  ;;  %v2211_v14 = vshll.u32 %v17930_v32, 16 }
  0x87   : > { %v2177_v55 = vrot.slane %v2175_v21, 2  ;;  %v18016_v21 = vld [vmem:[%s17629_s20 + $0x58] sm:$0xff]  }
  0x88   : > { %15037 = vmatmul.mubr.bf16.gmra.mxu0 %v803_v38  ;;  %v2163_v38 = vshrl.u32 %v17898_v59, 16  ;;  %v2184_v59 = vshll.u32 %v17911_v3, 16 }
  0x89   : > { %15089 = vmatmul.mubr.bf16.gmra.mxu1 %v17772_v40  ;;  %15040 = vmatprep.mubr.bf16.mxu0 %v811_v5  ;;  %v2151_v40 = vrot.slane %v2149_v19, 2  ;;  %v2594_v5 = vld [vmem:[%s17629_s20 + $0x8] sm:$0xc] }
  0x8a   : > { %15092 = vmatprep.mubr.bf16.mxu1 %v17775_v41  ;;  %v827_v41 = vsel %vm687_vm0, %v822_v15, %v826_v58  ;;  %v2159_v58 = vrot.slane %v2157_v45, 2  ;;  %v2165_v19 = vrot.slane %v2163_v38, 1  ;;  %v2178_v45 = vor.u32 %v2177_v55, %v2174_v36 }
  0x8b   : > { %v2152_v22 = vor.u32 %v2151_v40, %v2148_v44  ;;  %v2183_v44 = vrot.slane %v2181_v33, 1  ;;  %v2621_v40 = vrot.slane %v17904_v25, 2 }
  0x8c   : > { %v2160_v46 = vor.u32 %v2159_v58, %v2156_v56 }
  0x8d   : > { %v17991_v56 = vsel %vm2615_vm3, %v2619_v17, %v2621_v40  ;;  %v18008_v17 = vld [vmem:[%s17629_s20 + $0x50] sm:$0xff]  }
  0x8e   : > { %v17972_v23 = vsel %vm2144_vm2, %v2152_v22, %v2160_v46  ;;  %v2190_v22 = vshrl.u32 %v17915_v48, 16 }
  0x90   : > { %15041 = vmatmul.mubr.bf16.gmra.mxu0 %v819_v26  ;;  %v2623_v26 = vrot.slane %v17911_v3, 2  ;;  %v2193_v3 = vshll.u32 %v17915_v48, 16 }
  0x91   : > { %15093 = vmatmul.mubr.bf16.gmra.mxu1 %v17806_v60  ;;  %15044 = vmatprep.mubr.bf16.mxu0 %v827_v41  ;;  %v12989_v60 = vcombine.low %v2594_v5, %v17873_v42  ;;  %v2186_v41 = vrot.slane %v2184_v59, 2  ;;  %v2213_v59 = vrot.slane %v2211_v14, 2 }
  0x92   : > { %15096 = vmatprep.mubr.bf16.mxu1 %v17809_v61  ;;  %v2168_v61 = vrot.slane %v2166_v4, 2  ;;  %v17994_v25 = vsel %vm2615_vm3, %v2621_v40, %v2623_v26  ;;  %v2202_v4 = vshll.u32 %v17919_v11, 16  ;;  %v2195_v5 = vrot.slane %v2193_v3, 2  ;;  %v16758_v40 = vld [vmem:[%s22166_s1 + $0x170] sm:$0xff]   ;;  %v18039_v3 = vld [vmem:[%s17629_s20 + $0x60] sm:$0xff]  }
  0x93   : > { %v2616_v15 = vrot.slane %v12989_v60, 2  ;;  %v2187_v38 = vor.u32 %v2186_v41, %v2183_v44  ;;  %v2625_v60 = vrot.slane %v17915_v48, 2  ;;  %v2629_v41 = vrot.slane %v17930_v32, 2 }
  0x94   : > { %v2169_v42 = vor.u32 %v2168_v61, %v2165_v19  ;;  %v2208_v61 = vshrl.u32 %v17930_v32, 16 }
  0x95   : > { %v17980_v39 = vsel %vm2615_vm3, %v2616_v15, %v2617_v1  ;;  %v2627_v1 = vrot.slane %v17919_v11, 2  ;;  %v18011_v19 = vsel %vm2144_vm2, %v2178_v45, %v2187_v38  ;;  %v16757_v15 = vld [vmem:[%s22166_s1 + $0x130] sm:$0xff]  }
  0x96   : > { %v17985_v16 = vsel %vm2144_vm2, %v2160_v46, %v2169_v42  ;;  %v17999_v58 = vsel %vm2144_vm2, %v2169_v42, %v2178_v45  ;;  %v2210_v55 = vrot.slane %v2208_v61, 1  ;;  %v2235_v61 = vshrl.u32 %v18016_v21, 16 }
  0x97   : > { %v18025_v33 = vsel %vm2615_vm3, %v2625_v60, %v2627_v1 }
  0x98   : > { %15045 = vmatmul.mubr.bf16.gmra.mxu0 %v835_v47  ;;  %v2199_v47 = vshrl.u32 %v17919_v11, 16  ;;  %v18022_v11 = vsel %vm2615_vm3, %v2623_v26, %v2625_v60 }
  0x99   : > { %15097 = vmatmul.mubr.bf16.gmra.mxu1 %v17853_v29  ;;  %15116 = vmatprep.mubr.bf16.mxu0 %v17801_v57  ;;  %v2192_v29 = vrot.slane %v2190_v22, 1  ;;  %v18003_v57 = vld [vmem:[%s17629_s20 + $0x48] sm:$0xff]  }
  0x9a   : > { %15168 = vmatprep.mubr.bf16.mxu1 %v1809_v49  ;;  %v2201_v46 = vrot.slane %v2199_v47, 1  ;;  %v2204_v49 = vrot.slane %v2202_v4, 2  ;;  %v2217_v42 = vshrl.u32 %v18003_v57, 16  ;;  %v2220_v44 = vshll.u32 %v18003_v57, 16 }
  0x9b   : > { %v2196_v48 = vor.u32 %v2195_v5, %v2192_v29  ;;  %v2631_v22 = vrot.slane %v18003_v57, 2  ;;  %v2214_v29 = vor.u32 %v2213_v59, %v2210_v55  ;;  %v2226_v5 = vshrl.u32 %v18008_v17, 16 }
  0x9c   : > { %v2205_v36 = vor.u32 %v2204_v49, %v2201_v46  ;;  %v2219_v26 = vrot.slane %v2217_v42, 1  ;;  %v2222_v4 = vrot.slane %v2220_v44, 2  ;;  %v16759_v46 = vld [vmem:[%s22166_s1 + $0x128] sm:$0xff]   ;;  %v2229_v49 = vshll.u32 %v18008_v17, 16 }
  0x9d   : > { %v18033_v45 = vsel %vm2144_vm2, %v2187_v38, %v2196_v48  ;;  %v18048_v38 = vld [vmem:[%s17629_s20 + $0x68] sm:$0xff]   ;;  %v18057_v60 = vsel %vm2615_vm3, %v2629_v41, %v2631_v22  ;;  %v2228_v14 = vrot.slane %v2226_v5, 1  ;;  %v2247_v44 = vshll.u32 %v18039_v3, 16 }
  0x9e   : > { %v18042_v47 = vsel %vm2144_vm2, %v2196_v48, %v2205_v36  ;;  %22238 = vst [vmem:[#allocation19_spill] sm:$0xff] %v18057_v60  ;;  %v2238_v48 = vshll.u32 %v18016_v21, 16  ;;  %v2231_v42 = vrot.slane %v2229_v49, 2  ;;  %v2253_v5 = vshrl.u32 %v18048_v38, 16  ;;  %v18086_v49 = vld [vmem:[%s17629_s20 + $0x70] sm:$0xff]  }
  0xa0   : > { %15117 = vmatmul.mubr.bf16.vlgmr.msra.gmra.mxu0 %v17759_v28  ;;  %v18054_v28 = vsel %vm2615_vm3, %v2627_v1, %v2629_v41  ;;  %v16762_v1 = vld [vmem:[%s22166_s1 + $0x168] sm:$0xff]   ;;  %v2240_v59 = vrot.slane %v2238_v48, 2 }
  0xa1   : > { %15169 = vmatmul.mubr.bf16.vlgmr.msra.gmra.mxu1 %v17942_v50  ;;  %15120 = vmatprep.mubr.bf16.mxu0 %v17789_v54  ;;  %v18064_v54 = vsel %vm2144_vm2, %v2205_v36, %v2214_v29  ;;  %v2223_v50 = vor.u32 %v2222_v4, %v2219_v26  ;;  %v2635_v36 = vrot.slane %v18016_v21, 2  ;;  %v2232_v26 = vor.u32 %v2231_v42, %v2228_v14 }
  0xa2   : > { %15172 = vmatprep.mubr.bf16.mxu1 %v17945_v51  ;;  %15205 = vmatpush3.bf16.msra.mxu0 %v17850_v6  ;;  %v2237_v51 = vrot.slane %v2235_v61, 1  ;;  %v2633_v6 = vrot.slane %v18008_v17, 2  ;;  %v18089_v61 = vld [vmem:[%s17629_s20 + $0x78] sm:$0xff]   ;;  %v2249_v14 = vrot.slane %v2247_v44, 2  ;;  %v18114_v44 = vld [vmem:[%s17629_s20 + $0x80] sm:$0xff]  }
  0xa3   : > { %15257 = vmatpush3.bf16.msra.mxu1 %v17869_v37  ;;  %15206 = vmatprep.subr.bf16.mxu0 %v16757_v15  ;;  %v18074_v55 = vsel %vm2144_vm2, %v2214_v29, %v2223_v50  ;;  %v2244_v37 = vshrl.u32 %v18039_v3, 16  ;;  %v16763_v29 = vld [vmem:[%s22166_s1 + $0x120] sm:$0xff]   ;;  %v18099_v42 = vsel %vm2144_vm2, %v2223_v50, %v2232_v26  ;;  %v16765_v50 = vld [vmem:[%s22166_s1 + $0x118] sm:$0xff]  }
  0xa4   : > { %15258 = vmatprep.subr.bf16.mxu1 %v16758_v40  ;;  %v18079_v41 = vsel %vm2615_vm3, %v2631_v22, %v2633_v6  ;;  %v18082_v4 = vsel %vm2615_vm3, %v2633_v6, %v2635_v36  ;;  %v2241_v48 = vor.u32 %v2240_v59, %v2237_v51  ;;  %v2256_v22 = vshll.u32 %v18048_v38, 16  ;;  %22241 = vst [vmem:[#allocation22_spill] sm:$0xff] %v18099_v42 }
  0xa5   : > { %22239 = vst [vmem:[#allocation20_spill] sm:$0xff] %v18079_v41  ;;  %22240 = vst [vmem:[#allocation21_spill] sm:$0xff] %v18082_v4  ;;  %v2246_v35 = vrot.slane %v2244_v37, 1  ;;  %v2255_v6 = vrot.slane %v2253_v5, 1  ;;  %v2637_v4 = vrot.slane %v18039_v3, 2  ;;  %v2639_v41 = vrot.slane %v18048_v38, 2 }
  0xa6   : > { %15207 = vmatpush3.bf16.msra.mxu0 %v16757_v15  ;;  %v16764_v15 = vld [vmem:[%s22166_s1 + $0x160] sm:$0xff]   ;;  %v18105_v51 = vsel %vm2144_vm2, %v2232_v26, %v2241_v48  ;;  %v2258_v59 = vrot.slane %v2256_v22, 2  ;;  %v2262_v37 = vshrl.u32 %v18086_v49, 16  ;;  %v2271_v5 = vshrl.u32 %v18089_v61, 16 }
  0xa7   : > { %15259 = vmatpush3.bf16.msra.mxu1 %v16758_v40  ;;  %15208 = vmatprep.subr.bf16.mxu0 %v16759_v46  ;;  %22242 = vst [vmem:[#allocation23_spill] sm:$0xff] %v18105_v51  ;;  %v2250_v40 = vor.u32 %v2249_v14, %v2246_v35  ;;  %v18120_v26 = vsel %vm2615_vm3, %v2637_v4, %v2639_v41  ;;  %v2265_v35 = vshll.u32 %v18086_v49, 16  ;;  %v2274_v22 = vshll.u32 %v18089_v61, 16 }
  0xa8   : > { %15121 = vmatmul.mubr.bf16.gmra.mxu0 %v17796_v34  ;;  %15260 = vmatprep.subr.bf16.mxu1 %v16762_v1  ;;  %v18117_v34 = vsel %vm2615_vm3, %v2635_v36, %v2637_v4  ;;  %22244 = vst [vmem:[#allocation25_spill] sm:$0xff] %v18120_v26  ;;  %v2264_v14 = vrot.slane %v2262_v37, 1  ;;  %v18130_v36 = vld [vmem:[%s17629_s20 + $0x88] sm:$0xff]   ;;  %v16768_v4 = vld [vmem:[%s22166_s1 + $0x158] sm:$0xff]   ;;  %v16769_v37 = vld [vmem:[%s22166_s1 + $0x110] sm:$0xff]  }
  0xa9   : > { %15173 = vmatmul.mubr.bf16.gmra.mxu1 %v17948_v10  ;;  %15124 = vmatprep.mubr.bf16.mxu0 %v17814_v0  ;;  %22243 = vst [vmem:[#allocation24_spill] sm:$0xff] %v18117_v34  ;;  %v18126_v0 = vsel %vm2144_vm2, %v2241_v48, %v2250_v40  ;;  %v2259_v10 = vor.u32 %v2258_v59, %v2255_v6  ;;  %v2267_v26 = vrot.slane %v2265_v35, 2  ;;  %v2273_v34 = vrot.slane %v2271_v5, 1 }
  0xaa   : > { %15176 = vmatprep.mubr.bf16.mxu1 %v17951_v53  ;;  %15209 = vmatpush3.bf16.msra.mxu0 %v16759_v46  ;;  %22245 = vst [vmem:[#allocation26_spill] sm:$0xff] %v18126_v0  ;;  %v2641_v53 = vrot.slane %v18086_v49, 2  ;;  %v2643_v46 = vrot.slane %v18089_v61, 2  ;;  %v2276_v6 = vrot.slane %v2274_v22, 2  ;;  %v2283_v59 = vshll.u32 %v18114_v44, 16  ;;  %v18156_v22 = vld [vmem:[%s17629_s20 + $0x90] sm:$0xff]  }
  0xab   : > { %15261 = vmatpush3.bf16.msra.mxu1 %v16762_v1  ;;  %15210 = vmatprep.subr.bf16.mxu0 %v16763_v29  ;;  %v18138_v48 = vsel %vm2144_vm2, %v2250_v40, %v2259_v10  ;;  %v2280_v1 = vshrl.u32 %v18114_v44, 16  ;;  %v2268_v35 = vor.u32 %v2267_v26, %v2264_v14  ;;  %v2289_v51 = vshrl.u32 %v18130_v36, 16  ;;  %v16770_v40 = vld [vmem:[%s22166_s1 + $0x150] sm:$0xff]  }
  0xac   : > { %15262 = vmatprep.subr.bf16.mxu1 %v16764_v15  ;;  %22246 = vst [vmem:[#allocation27_spill] sm:$0xff] %v18138_v48  ;;  %v18146_v5 = vsel %vm2615_vm3, %v2639_v41, %v2641_v53  ;;  %v18149_v0 = vsel %vm2615_vm3, %v2641_v53, %v2643_v46  ;;  %v2277_v48 = vor.u32 %v2276_v6, %v2273_v34  ;;  %v2285_v60 = vrot.slane %v2283_v59, 2 }
  0xad   : > { %22247 = vst [vmem:[#allocation28_spill] sm:$0xff] %v18149_v0  ;;  %v2282_v42 = vrot.slane %v2280_v1, 1  ;;  %v2292_v26 = vshll.u32 %v18130_v36, 16  ;;  %v18160_v41 = vsel %vm2144_vm2, %v2259_v10, %v2268_v35  ;;  %v2291_v14 = vrot.slane %v2289_v51, 1 }
  0xae   : > { %15211 = vmatpush3.bf16.msra.mxu0 %v16763_v29  ;;  %v2645_v53 = vrot.slane %v18114_v44, 2  ;;  %v2647_v29 = vrot.slane %v18130_v36, 2  ;;  %v18166_v0 = vsel %vm2144_vm2, %v2268_v35, %v2277_v48  ;;  %v2298_v1 = vshrl.u32 %v18156_v22, 16 }
  0xaf   : > { %15263 = vmatpush3.bf16.msra.mxu1 %v16764_v15  ;;  %15212 = vmatprep.subr.bf16.mxu0 %v16765_v50  ;;  %v2286_v34 = vor.u32 %v2285_v60, %v2282_v42  ;;  %v2294_v6 = vrot.slane %v2292_v26, 2  ;;  %v1822_v10 = vrot.slane %v18003_v57, 1  ;;  %v22188_v35 = vrot.slane %v18156_v22, 2 }
  0xb0   : > { %15125 = vmatmul.mubr.bf16.gmra.mxu0 %v17822_v7  ;;  %15264 = vmatprep.subr.bf16.mxu1 %v16768_v4  ;;  %v18172_v15 = vsel %vm2615_vm3, %v2643_v46, %v2645_v53  ;;  %v18175_v51 = vsel %vm2615_vm3, %v2645_v53, %v2647_v29  ;;  %v2301_v7 = vshll.u32 %v18156_v22, 16  ;;  %v16771_v46 = vld [vmem:[%s22166_s1 + $0x108] sm:$0xff]  }
  0xb1   : > { %15177 = vmatmul.mubr.bf16.gmra.mxu1 %v17954_v13  ;;  %15128 = vmatprep.mubr.bf16.mxu0 %v17825_v8  ;;  %v18181_v60 = vsel %vm2144_vm2, %v2277_v48, %v2286_v34  ;;  %v2295_v42 = vor.u32 %v2294_v6, %v2291_v14  ;;  %v2300_v13 = vrot.slane %v2298_v1, 1  ;;  %v1824_v8 = vrot.slane %v18008_v17, 1  ;;  %v16775_v14 = vld [vmem:[%s22166_s1 + $0x100] sm:$0xff]   ;;  %v2932_v6 = vld [vmem:[%s17629_s20 + $0x10] sm:$0xc] }
  0xb2   : > { %15180 = vmatprep.mubr.bf16.mxu1 %v17961_v63  ;;  %15213 = vmatpush3.bf16.msra.mxu0 %v16765_v50  ;;  %v2303_v59 = vrot.slane %v2301_v7, 2  ;;  %v16774_v63 = vld [vmem:[%s22166_s1 + $0x148] sm:$0xff]   ;;  %v18199_v17 = vsel %vm2615_vm3, %v2647_v29, %v22188_v35  ;;  %v18227_v29 = vld [vmem:[%s22166_s1 + $0x1f8] sm:$0xff]   ;;  %v1832_v1 = vrot.slane %v18086_v49, 1  ;;  %v18242_v7 = vld [vmem:[%s17629_s20 + $0x14] sm:$0xf] }
  0xb3   : > { %15265 = vmatpush3.bf16.msra.mxu1 %v16768_v4  ;;  %15214 = vmatprep.subr.bf16.mxu0 %v16769_v37  ;;  %v18192_v57 = vsel %vm2144_vm2, %v2286_v34, %v2295_v42  ;;  %v22248_v4 = vrot.slane %v17930_v32, 1  ;;  %v1825_v26 = vsel %vm1343_vm1, %v1822_v10, %v1824_v8  ;;  %v16776_v32 = vld [vmem:[%s22166_s1 + $0x140] sm:$0xff]   ;;  %v18237_v34 = vld [vmem:[%s17629_s20 + $0x98] ss:$0 sps:$4 sm:$0x33]  }
  0xb4   : > { %15266 = vmatprep.subr.bf16.mxu1 %v16770_v40  ;;  %v18194_v50 = vor.u32 %v2303_v59, %v2300_v13  ;;  %v2307_v13 = vshrl.u32 %v18237_v34, 16 }
  0xb5   : > { %v1823_v48 = vsel %vm1343_vm1, %v22248_v4, %v1822_v10  ;;  %v18245_v10 = vld [vmem:[%s17629_s20 + $0x98] ss:$0 sps:$4 sm:$0x11]   ;;  %v18268_v4 = vld [vmem:[%s17629_s20 + $0x20] sm:$0xff]  }
  0xb6   : > { %15215 = vmatpush3.bf16.msra.mxu0 %v16769_v37  ;;  %v18210_v53 = vsel %vm2144_vm2, %v2295_v42, %v18194_v50  ;;  %v1826_v37 = vrot.slane %v18016_v21, 1  ;;  %v1836_v42 = vrot.slane %v18114_v44, 1  ;;  %v1842_v44 = vrot.slane %v18245_v10, 1 }
  0xb7   : > { %15267 = vmatpush3.bf16.msra.mxu1 %v16770_v40  ;;  %15216 = vmatprep.subr.bf16.mxu0 %v16771_v46  ;;  %v18221_v40 = vld [vmem:[%s22166_s1 + $0x1b8] sm:$0xff]   ;;  %v3435_v10 = vshrl.u32 %v18268_v4, 16 }
  0xb8   : > { %15129 = vmatmul.mubr.bf16.gmra.mxu0 %v17828_v9  ;;  %15268 = vmatprep.subr.bf16.mxu1 %v16774_v63  ;;  %v1828_v9 = vrot.slane %v18039_v3, 1  ;;  %v1830_v3 = vrot.slane %v18048_v38, 1  ;;  %v1834_v38 = vrot.slane %v18089_v61, 1  ;;  %v1840_v61 = vrot.slane %v18156_v22, 1 }
  0xb9   : > { %15181 = vmatmul.mubr.bf16.gmra.mxu1 %v1823_v48  ;;  %15132 = vmatprep.mubr.bf16.mxu0 %v17835_v18  ;;  %v1827_v18 = vsel %vm1343_vm1, %v1824_v8, %v1826_v37  ;;  %v18253_v8 = vcombine.low %v2932_v6, %v18242_v7 }
  0xba   : > { %15184 = vmatprep.mubr.bf16.mxu1 %v1825_v26  ;;  %15217 = vmatpush3.bf16.msra.mxu0 %v16771_v46  ;;  %v1829_v21 = vsel %vm1343_vm1, %v1826_v37, %v1828_v9  ;;  %v1833_v49 = vsel %vm1343_vm1, %v1830_v3, %v1832_v1  ;;  %v2310_v46 = vshll.u32 %v18237_v34, 16  ;;  %v18274_v26 = vld [vmem:[%s17629_s20 + $0x28] sm:$0xff]   ;;  %v1835_v37 = vsel %vm1343_vm1, %v1832_v1, %v1834_v38  ;;  %v18290_v1 = vld [vmem:[%s17629_s20 + $0x30] sm:$0xff]  }
  0xbb   : > { %15269 = vmatpush3.bf16.msra.mxu1 %v16774_v63  ;;  %15218 = vmatprep.subr.bf16.mxu0 %v16775_v14  ;;  %v3418_v59 = vshrl.u32 %v18253_v8, 16  ;;  %v18265_v63 = vrot.slane %v2307_v13, 1  ;;  %22249 = vst [vmem:[#allocation29_spill] sm:$0xff] %v18274_v26  ;;  %22250 = vst [vmem:[#allocation30_spill] sm:$0xff] %v18290_v1  ;;  %v3444_v13 = vshrl.u32 %v18274_v26, 16 }
  0xbc   : > { %15270 = vmatprep.subr.bf16.mxu1 %v16776_v32  ;;  %v18270_v48 = vrot.slane %v2310_v46, 2  ;;  %v18300_v46 = vld [vmem:[%s17629_s20 + $0x38] sm:$0xff]  }
  0xbd   : > { %22251 = vst [vmem:[#allocation31_spill] sm:$0xff] %v18300_v46 }
  0xbe   : > { %15219 = vmatpush3.bf16.msra.mxu0 %v16775_v14 }
  0xbf   : > { %15271 = vmatpush3.bf16.msra.mxu1 %v16776_v32  ;;  %15308 = vmatprep.subr.bf16.mxu0 %v18221_v40  ;;  %v18307_v32 = vrot.slane %v3435_v10, 2  ;;  %v3462_v10 = vshrl.u32 %v18300_v46, 16 }
  0xc0   : > { %15133 = vmatmul.mubr.bf16.gmra.mxu0 %v17840_v20  ;;  %15360 = vmatprep.subr.bf16.mxu1 %v18227_v29  ;;  %v1831_v20 = vsel %vm1343_vm1, %v1828_v9, %v1830_v3  ;;  %v18280_v9 = vrot.slane %v3418_v59, 2  ;;  %v1837_v3 = vsel %vm1343_vm1, %v1834_v38, %v1836_v42  ;;  %v3447_v38 = vshll.u32 %v18274_v26, 16 }
  0xc1   : > { %15185 = vmatmul.mubr.bf16.gmra.mxu1 %v1827_v18  ;;  %15136 = vmatprep.mubr.bf16.mxu0 %v17856_v30  ;;  %v1838_v30 = vrot.slane %v18130_v36, 1  ;;  %v18262_v36 = vld [vmem:[%s17629_s20 + $0x18] sm:$0xff]   ;;  %v3421_v18 = vshll.u32 %v18253_v8, 16  ;;  %v3453_v59 = vshrl.u32 %v18290_v1, 16 }
  0xc2   : > { %15188 = vmatprep.mubr.bf16.mxu1 %v1829_v21  ;;  %v3426_v21 = vshrl.u32 %v18262_v36, 16  ;;  %v3429_v6 = vshll.u32 %v18262_v36, 16 }
  0xc3   : > { %v1841_v14 = vsel %vm1343_vm1, %v1838_v30, %v1840_v61 }
  0xc8   : > { %15137 = vmatmul.mubr.bf16.gmra.mxu0 %v17859_v31  ;;  %v1843_v31 = vsel %vm1343_vm1, %v1840_v61, %v1842_v44  ;;  %v18359_v44 = vld [vmem:[%s17629_s20 + $0x60] sm:$0xff]  }
  0xc9   : > { %15189 = vmatmul.mubr.bf16.gmra.mxu1 %v1831_v20  ;;  %15140 = vmatprep.mubr.bf16.mxu0 %v17876_v43  ;;  %v3438_v20 = vshll.u32 %v18268_v4, 16  ;;  %22260 = vst [vmem:[#allocation40_spill] sm:$0xff] %v18359_v44 }
  0xca   : > { %15192 = vmatprep.mubr.bf16.mxu1 %v1833_v49  ;;  %v18294_v49 = vrot.slane %v3421_v18, 3  ;;  %v18311_v18 = vrot.slane %v3444_v13, 2  ;;  %v18326_v13 = vld [vmem:[%s17629_s20 + $0x48] sm:$0xff]  }
  0xcb   : > { %v18309_v43 = vrot.slane %v3438_v20, 3  ;;  %v3465_v20 = vshll.u32 %v18300_v46, 16  ;;  %22253 = vst [vmem:[#allocation33_spill] sm:$0xff] %v18326_v13 }
  0xd0   : > { %15141 = vmatmul.mubr.bf16.gmra.mxu0 %v17885_v52  ;;  %v18297_v52 = vrot.slane %v3426_v21, 2  ;;  %v18314_v21 = vld [vmem:[%s17629_s20 + $0x40] sm:$0xff]  }
  0xd1   : > { %15193 = vmatmul.mubr.bf16.gmra.mxu1 %v1835_v37  ;;  %15144 = vmatprep.mubr.bf16.mxu0 %v17894_v24  ;;  %v18302_v24 = vrot.slane %v3429_v6, 3  ;;  %22252 = vst [vmem:[#allocation32_spill] sm:$0xff] %v18314_v21  ;;  %v18317_v6 = vrot.slane %v3447_v38, 3  ;;  %v18331_v37 = vld [vmem:[%s17629_s20 + $0x50] sm:$0xff]   ;;  %v3483_v38 = vshll.u32 %v18326_v13, 16 }
  0xd2   : > { %15196 = vmatprep.mubr.bf16.mxu1 %v1837_v3  ;;  %v1839_v3 = vsel %vm1343_vm1, %v1836_v42, %v1838_v30  ;;  %v3456_v42 = vshll.u32 %v18290_v1, 16  ;;  %22254 = vst [vmem:[#allocation34_spill] sm:$0xff] %v18331_v37  ;;  %v18342_v1 = vrot.slane %v3465_v20, 3  ;;  %v3480_v30 = vshrl.u32 %v18326_v13, 16  ;;  %v18385_v20 = vld [vmem:[%s17629_s20 + $0x78] sm:$0xff]  }
  0xd3   : > { %v3489_v46 = vshrl.u32 %v18331_v37, 16  ;;  %v3534_v13 = vshrl.u32 %v18385_v20, 16 }
  0xd4   : > { %v18337_v35 = vrot.slane %v3456_v42, 3  ;;  %22256 = vst [vmem:[#allocation36_spill] sm:$0xff] %v18342_v1  ;;  %v18363_v1 = vrot.slane %v3480_v30, 2  ;;  %v3507_v30 = vshrl.u32 %v18359_v44, 16 }
  0xd6   : > { %22261 = vst [vmem:[#allocation41_spill] sm:$0xff] %v18363_v1  ;;  %v18395_v1 = vld [vmem:[%s17629_s20 + $0x80] sm:$0xff]  }
  0xd8   : > { %15145 = vmatmul.mubr.bf16.gmra.mxu0 %v17901_v62  ;;  %v3471_v62 = vshrl.u32 %v18314_v21, 16 }
  0xd9   : > { %15197 = vmatmul.mubr.bf16.gmra.mxu1 %v1839_v3  ;;  %15148 = vmatprep.mubr.bf16.mxu0 %v17907_v2  ;;  %v3474_v2 = vshll.u32 %v18314_v21, 16  ;;  %v18335_v3 = vrot.slane %v3453_v59, 2  ;;  %v3492_v21 = vshll.u32 %v18331_v37, 16  ;;  %v18349_v59 = vld [vmem:[%s17629_s20 + $0x58] sm:$0xff]  }
  0xda   : > { %15200 = vmatprep.mubr.bf16.mxu1 %v1841_v14  ;;  %v18339_v14 = vrot.slane %v3462_v10, 2  ;;  %22257 = vst [vmem:[#allocation37_spill] sm:$0xff] %v18349_v59  ;;  %v18352_v42 = vrot.slane %v3471_v62, 2  ;;  %v18370_v62 = vrot.slane %v3489_v46, 2  ;;  %v3501_v61 = vshll.u32 %v18349_v59, 16  ;;  %v16781_v46 = vld [vmem:[%s22166_s1 + $0x1f0] sm:$0xff]  }
  0xdb   : > { %v18354_v10 = vrot.slane %v3474_v2, 3  ;;  %v3498_v2 = vshrl.u32 %v18349_v59, 16 }
  0xdc   : > { %22255 = vst [vmem:[#allocation35_spill] sm:$0xff] %v18339_v14  ;;  %22258 = vst [vmem:[#allocation38_spill] sm:$0xff] %v18352_v42  ;;  %v18365_v14 = vrot.slane %v3483_v38, 3  ;;  %v3510_v38 = vshll.u32 %v18359_v44, 16  ;;  %v18407_v37 = vrot.slane %v3501_v61, 3  ;;  %v3543_v61 = vshrl.u32 %v18395_v1, 16 }
  0xdd   : > { %22259 = vst [vmem:[#allocation39_spill] sm:$0xff] %v18354_v10  ;;  %22264 = vst [vmem:[#allocation44_spill] sm:$0xff] %v18370_v62  ;;  %v18405_v59 = vrot.slane %v3498_v2, 2  ;;  %v3546_v44 = vshll.u32 %v18395_v1, 16  ;;  %v18451_v2 = vld [vmem:[%s17629_s20 + $0x90] sm:$0xff]  }
  0xde   : > { %22262 = vst [vmem:[#allocation42_spill] sm:$0xff] %v18365_v14  ;;  %22267 = vst [vmem:[#allocation47_spill] sm:$0xff] %v18451_v2 }
  0xe0   : > { %15149 = vmatmul.mubr.bf16.gmra.mxu0 %v17922_v12  ;;  %v18368_v12 = vld [vmem:[%s17629_s20 + $0x68] sm:$0xff]  }
  0xe1   : > { %15201 = vmatmul.mubr.bf16.gmra.mxu1 %v1843_v31  ;;  %15220 = vmatprep.mubr.bf16.mxu0 %v17972_v23  ;;  %22263 = vst [vmem:[#allocation43_spill] sm:$0xff] %v18368_v12  ;;  %v18372_v31 = vrot.slane %v3492_v21, 3  ;;  %v18375_v23 = vld [vmem:[%s17629_s20 + $0x70] sm:$0xff]   ;;  %v3519_v62 = vshll.u32 %v18368_v12, 16  ;;  %v16782_v21 = vld [vmem:[%s22166_s1 + $0x1a8] sm:$0xff]  }
  0xe2   : > { %15272 = vmatprep.mubr.bf16.mxu1 %v17980_v39  ;;  %22266 = vst [vmem:[#allocation46_spill] sm:$0xff] %v18375_v23  ;;  %v16780_v39 = vld [vmem:[%s22166_s1 + $0x1b0] sm:$0xff]   ;;  %v3525_v14 = vshrl.u32 %v18375_v23, 16  ;;  %v3528_v10 = vshll.u32 %v18375_v23, 16  ;;  %v18448_v23 = vrot.slane %v3543_v61, 2 }
  0xe3   : > { %22265 = vst [vmem:[#allocation45_spill] sm:$0xff] %v18372_v31  ;;  %v3516_v31 = vshrl.u32 %v18368_v12, 16  ;;  %v18436_v12 = vrot.slane %v3534_v13, 2  ;;  %v16786_v13 = vld [vmem:[%s22166_s1 + $0x198] sm:$0xff]   ;;  %v16789_v61 = vld [vmem:[%s22166_s1 + $0x1d0] sm:$0xff]  }
  0xe5   : > { %v18419_v42 = vrot.slane %v3516_v31, 2  ;;  %v16784_v31 = vld [vmem:[%s22166_s1 + $0x1a0] sm:$0xff]  }
  0xe8   : > { %15221 = vmatmul.mubr.bf16.vlgmr.msra.gmra.mxu0 %v17985_v16  ;;  %v18412_v16 = vrot.slane %v3507_v30, 2  ;;  %v18426_v30 = vrot.slane %v3519_v62, 3  ;;  %v16785_v62 = vld [vmem:[%s22166_s1 + $0x1e0] sm:$0xff]  }
  0xe9   : > { %15273 = vmatmul.mubr.bf16.vlgmr.msra.gmra.mxu1 %v17975_v27  ;;  %15224 = vmatprep.mubr.bf16.mxu0 %v17999_v58  ;;  %v18414_v27 = vrot.slane %v3510_v38, 3  ;;  %v3537_v58 = vshll.u32 %v18385_v20, 16  ;;  %v18428_v38 = vrot.slane %v3525_v14, 2  ;;  %v22278_v14 = vld [vmem:[#allocation28_spill] sm:$0xff] }
  0xea   : > { %15276 = vmatprep.mubr.bf16.mxu1 %v17991_v56  ;;  %15309 = vmatpush3.bf16.msra.mxu0 %v18221_v40  ;;  %v16783_v56 = vld [vmem:[%s22166_s1 + $0x1e8] sm:$0xff]  }
  0xeb   : > { %15361 = vmatpush3.bf16.msra.mxu1 %v18227_v29  ;;  %15310 = vmatprep.subr.bf16.mxu0 %v16780_v39  ;;  %v18430_v29 = vrot.slane %v3528_v10, 3  ;;  %v18443_v40 = vrot.slane %v3537_v58, 3  ;;  %v18446_v10 = vld [vmem:[%s17629_s20 + $0x88] sm:$0xff]   ;;  %v3564_v58 = vshll.u32 %v18451_v2, 16 }
  0xec   : > { %15362 = vmatprep.subr.bf16.mxu1 %v16781_v46 }
  0xee   : > { %15311 = vmatpush3.bf16.msra.mxu0 %v16780_v39  ;;  %v16787_v39 = vld [vmem:[%s22166_s1 + $0x1d8] sm:$0xff]  }
  0xef   : > { %15363 = vmatpush3.bf16.msra.mxu1 %v16781_v46  ;;  %15312 = vmatprep.subr.bf16.mxu0 %v16782_v21  ;;  %v3552_v46 = vshrl.u32 %v18446_v10, 16 }
  0xf0   : > { %15225 = vmatmul.mubr.bf16.gmra.mxu0 %v18011_v19  ;;  %15364 = vmatprep.subr.bf16.mxu1 %v16783_v56  ;;  %v3555_v19 = vshll.u32 %v18446_v10, 16 }
  0xf1   : > { %15277 = vmatmul.mubr.bf16.gmra.mxu1 %v17994_v25  ;;  %15228 = vmatprep.mubr.bf16.mxu0 %v18033_v45  ;;  %v18465_v25 = vrot.slane %v3546_v44, 3  ;;  %v3561_v45 = vshrl.u32 %v18451_v2, 16  ;;  %v3866_v2 = vld [vmem:[%s17629_s20 + $0x10] sm:$0x8] }
  0xf2   : > { %15280 = vmatprep.mubr.bf16.mxu1 %v18022_v11  ;;  %15313 = vmatpush3.bf16.msra.mxu0 %v16782_v21  ;;  %v16788_v11 = vld [vmem:[%s22166_s1 + $0x190] sm:$0xff]   ;;  %v18478_v44 = vrot.slane %v3555_v19, 3  ;;  %v18508_v19 = vld [vmem:[%s22166_s1 + $0x238] sm:$0xff]  }
  0xf3   : > { %15365 = vmatpush3.bf16.msra.mxu1 %v16783_v56  ;;  %15314 = vmatprep.subr.bf16.mxu0 %v16784_v31  ;;  %v18476_v56 = vrot.slane %v3552_v46, 2  ;;  %v22270_v46 = vld [vmem:[#allocation22_spill] sm:$0xff] }
  0xf4   : > { %15366 = vmatprep.subr.bf16.mxu1 %v16785_v62 }
  0xf6   : > { %15315 = vmatpush3.bf16.msra.mxu0 %v16784_v31  ;;  %v16791_v31 = vld [vmem:[%s22166_s1 + $0x188] sm:$0xff]  }
  0xf7   : > { %15367 = vmatpush3.bf16.msra.mxu1 %v16785_v62  ;;  %15316 = vmatprep.subr.bf16.mxu0 %v16786_v13  ;;  %v16792_v62 = vld [vmem:[%s22166_s1 + $0x1c8] sm:$0xff]  }
  0xf8   : > { %15229 = vmatmul.mubr.bf16.gmra.mxu0 %v18042_v47  ;;  %15368 = vmatprep.subr.bf16.mxu1 %v16787_v39  ;;  %v22274_v47 = vld [vmem:[#allocation26_spill] sm:$0xff] }
  0xf9   : > { %15281 = vmatmul.mubr.bf16.gmra.mxu1 %v18025_v33  ;;  %15232 = vmatprep.mubr.bf16.mxu0 %v18064_v54  ;;  %v16793_v33 = vld [vmem:[%s22166_s1 + $0x180] sm:$0xff]  }
  0xfa   : > { %15284 = vmatprep.mubr.bf16.mxu1 %v18054_v28  ;;  %15317 = vmatpush3.bf16.msra.mxu0 %v16786_v13  ;;  %v16794_v54 = vld [vmem:[%s22166_s1 + $0x1c0] sm:$0xff]   ;;  %v18497_v28 = vrot.slane %v3561_v45, 2  ;;  %v18501_v13 = vld [vmem:[%s17629_s20 + $0x98] sm:$0xff]  }
  0xfb   : > { %15369 = vmatpush3.bf16.msra.mxu1 %v16787_v39  ;;  %15318 = vmatprep.subr.bf16.mxu0 %v16788_v11  ;;  %22268 = vst [vmem:[#allocation48_spill] sm:$0xff] %v18501_v13  ;;  %v22269_v39 = vld [vmem:[#allocation19_spill] sm:$0xff]  ;;  %v3570_v45 = vshrl.u32 %v18501_v13, 16 }
  0xfc   : > { %15370 = vmatprep.subr.bf16.mxu1 %v16789_v61 }
  0xfd   : > { %v18526_v21 = vrot.slane %v3570_v45, 2 }
  0xfe   : > { %15319 = vmatpush3.bf16.msra.mxu0 %v16788_v11  ;;  %v22271_v11 = vld [vmem:[#allocation20_spill] sm:$0xff] }
  0xff   : > { %15371 = vmatpush3.bf16.msra.mxu1 %v16789_v61  ;;  %15320 = vmatprep.subr.bf16.mxu0 %v16791_v31  ;;  %v22272_v61 = vld [vmem:[#allocation23_spill] sm:$0xff] }
 0x100   : > { %15233 = vmatmul.mubr.bf16.gmra.mxu0 %v18074_v55  ;;  %15372 = vmatprep.subr.bf16.mxu1 %v16792_v62  ;;  %v18511_v55 = vrot.slane %v3564_v58, 3 }
 0x101   : > { %15285 = vmatmul.mubr.bf16.gmra.mxu1 %v22269_v39  ;;  %15236 = vmatprep.mubr.bf16.mxu0 %v22270_v46  ;;  %v16821_v39 = vld [vmem:[%s17629_s20 + $0xa0] ss:$0 sps:$4 sm:$0x77]   ;;  %v22273_v46 = vld [vmem:[#allocation21_spill] sm:$0xff] }
 0x102   : > { %15288 = vmatprep.mubr.bf16.mxu1 %v22271_v11  ;;  %15321 = vmatpush3.bf16.msra.mxu0 %v16791_v31  ;;  %v22275_v31 = vld [vmem:[#allocation24_spill] sm:$0xff]  ;;  %v3579_v58 = vshrl.u32 %v16821_v39, 16  ;;  %v22276_v11 = vld [vmem:[#allocation27_spill] sm:$0xff] }
 0x103   : > { %15373 = vmatpush3.bf16.msra.mxu1 %v16792_v62  ;;  %15322 = vmatprep.subr.bf16.mxu0 %v16793_v33  ;;  %v3573_v62 = vshll.u32 %v18501_v13, 16 }
 0x104   : > { %15374 = vmatprep.subr.bf16.mxu1 %v16794_v54 }
 0x106   : > { %15323 = vmatpush3.bf16.msra.mxu0 %v16793_v33  ;;  %v22277_v33 = vld [vmem:[#allocation25_spill] sm:$0xff] }
 0x107   : > { %15375 = vmatpush3.bf16.msra.mxu1 %v16794_v54  ;;  %15412 = vmatprep.subr.bf16.mxu0 %v18508_v19  ;;  %v3582_v54 = vshll.u32 %v16821_v39, 16 }
 0x108   : > { %15237 = vmatmul.mubr.bf16.gmra.mxu0 %v22272_v61 }
 0x109   : > { %15289 = vmatmul.mubr.bf16.gmra.mxu1 %v22273_v46  ;;  %15240 = vmatprep.mubr.bf16.mxu0 %v22274_v47  ;;  %v18529_v46 = vld [vmem:[%s17629_s20 + $0xa0] ss:$0 sps:$4 sm:$0x33]  }
 0x10a   : > { %15292 = vmatprep.mubr.bf16.mxu1 %v22275_v31 }
 0x110   : > { %15241 = vmatmul.mubr.bf16.gmra.mxu0 %v22276_v11 }
 0x111   : > { %15293 = vmatmul.mubr.bf16.gmra.mxu1 %v22277_v33  ;;  %15244 = vmatprep.mubr.bf16.mxu0 %v18160_v41 }
 0x112   : > { %15296 = vmatprep.mubr.bf16.mxu1 %v18146_v5 }
 0x118   : > { %v15014_v47 = vpop.f32.mrf.mxu0  ;;  %15245 = vmatmul.mubr.bf16.gmra.mxu0 %v18166_v0  ;;  %v18540_v0 = vrot.slane %v3573_v62, 3 }
 0x119   : > { %v15066_v31 = vpop.f32.mrf.mxu1  ;;  %15297 = vmatmul.mubr.bf16.gmra.mxu1 %v22278_v14  ;;  %15248 = vmatprep.mubr.bf16.mxu0 %v18181_v60 }
 0x11a   : > { %v18534_v11 = vadd.f32 %v15066_v31, %v15014_v47  ;;  %v936_v41 = vpop.f32.mrf.mxu0  ;;  %15300 = vmatprep.mubr.bf16.mxu1 %v18172_v15 }
 0x11b   : > { %v1179_v5 = vpop.f32.mrf.mxu1 }
 0x11c   : > { %v18537_v39 = vadd.f32 %v1179_v5, %v936_v41  ;;  %v15015_v45 = vpop.f32.mrf.mxu0  ;;  %v2313_v41 = vor.u32 %v18270_v48, %v18265_v63  ;;  %v22279_v48 = vrot.slane %v18237_v34, 2 }
 0x11d   : > { %v15067_v33 = vpop.f32.mrf.mxu1 }
 0x11e   : > { %v18542_v13 = vadd.f32 %v15067_v33, %v15015_v45  ;;  %v939_v14 = vpop.f32.mrf.mxu0  ;;  %v13082_v45 = vcombine.low %v3866_v2, %v18242_v7  ;;  %v2314_v63 = vsel %vm2144_vm2, %v18194_v50, %v2313_v41  ;;  %v18569_v2 = vrot.slane %v3579_v58, 2 }
 0x11f   : > { %v1182_v60 = vpop.f32.mrf.mxu1 }
 0x120   : > { %v18545_v47 = vadd.f32 %v1182_v60, %v939_v14  ;;  %v15018_v31 = vpop.f32.mrf.mxu0  ;;  %15249 = vmatmul.mubr.bf16.gmra.mxu0 %v18192_v57  ;;  %v3424_v14 = vor.u32 %v18294_v49, %v18280_v9  ;;  %v3432_v57 = vor.u32 %v18302_v24, %v18297_v52  ;;  %v22281_v52 = vrot.slane %v18262_v36, 2 }
 0x121   : > { %v15070_v15 = vpop.f32.mrf.mxu1  ;;  %15301 = vmatmul.mubr.bf16.gmra.mxu1 %v18175_v51  ;;  %15252 = vmatprep.mubr.bf16.mxu0 %v18210_v53  ;;  %v22282_v24 = vrot.slane %v18253_v8, 2  ;;  %v18580_v50 = vrot.slane %v13082_v45, 3  ;;  %v3441_v45 = vor.u32 %v18309_v43, %v18307_v32  ;;  %v16809_v32 = vld [vmem:[%s22166_s1 + $0x230] sm:$0xff]  }
 0x122   : > { %v18552_v62 = vadd.f32 %v15070_v15, %v15018_v31  ;;  %v952_v5 = vpop.f32.mrf.mxu0  ;;  %15304 = vmatprep.mubr.bf16.mxu1 %v18199_v17  ;;  %v22280_v17 = vrot.slane %v18156_v22, 2  ;;  %v18571_v31 = vrot.slane %v3582_v54, 3  ;;  %v3433_v41 = vsel %vm3416_vm4, %v3424_v14, %v3432_v57 }
 0x123   : > { %v1195_v33 = vpop.f32.mrf.mxu1  ;;  %v3081_v15 = vsel %vm2615_vm3, %v22282_v24, %v22281_v52 }
 0x124   : > { %v18560_v51 = vadd.f32 %v1195_v33, %v952_v5  ;;  %v15019_v53 = vpop.f32.mrf.mxu0  ;;  %v2652_v7 = vsel %vm2615_vm3, %v22280_v17, %v22279_v48 }
 0x125   : > { %v15071_v60 = vpop.f32.mrf.mxu1 }
 0x126   : > { %v18573_v9 = vadd.f32 %v15071_v60, %v15019_v53  ;;  %v955_v49 = vpop.f32.mrf.mxu0  ;;  %v3450_v60 = vor.u32 %v18317_v6, %v18311_v18  ;;  %v18608_v18 = vld [vmem:[%s17629_s20 + $0x20] sm:$0xff]  }
 0x127   : > { %v1198_v22 = vpop.f32.mrf.mxu1 }
 0x128   : > { %v18584_v58 = vadd.f32 %v1198_v22, %v955_v49  ;;  %v15022_v54 = vpop.f32.mrf.mxu0  ;;  %15253 = vmatmul.mubr.bf16.gmra.mxu0 %v2314_v63  ;;  %v22283_v63 = vrot.slane %v18268_v4, 2  ;;  %v22288_v4 = vld [vmem:[#allocation31_spill] sm:$0xff] }
 0x129   : > { %v15074_v5 = vpop.f32.mrf.mxu1  ;;  %15305 = vmatmul.mubr.bf16.gmra.mxu1 %v2652_v7  ;;  %15324 = vmatprep.mubr.bf16.mxu0 %v3081_v15  ;;  %v22284_v7 = vmov %v22281_v52  ;;  %v22285_v52 = vrot.slane %v18274_v26, 2 }
 0x12a   : > { %v18586_v33 = vadd.f32 %v15074_v5, %v15022_v54  ;;  %v968_v8 = vpop.f32.mrf.mxu0  ;;  %15376 = vmatprep.mubr.bf16.mxu1 %v3433_v41  ;;  %v3083_v49 = vsel %vm2615_vm3, %v22284_v7, %v22283_v63  ;;  %v22286_v24 = vmov %v22283_v63  ;;  %v3442_v54 = vsel %vm3416_vm4, %v3432_v57, %v3441_v45  ;;  %v22287_v5 = vld [vmem:[#allocation30_spill] sm:$0xff] }
 0x12b   : > { %v1211_v53 = vpop.f32.mrf.mxu1  ;;  %v3085_v43 = vsel %vm2615_vm3, %v22286_v24, %v22285_v52  ;;  %v3451_v7 = vsel %vm3416_vm4, %v3441_v45, %v3450_v60  ;;  %v22294_v15 = vrot.slane %v22287_v5, 2  ;;  %v22304_v5 = vld [vmem:[#allocation39_spill] sm:$0xff] }
 0x12c   : > { %v18592_v14 = vadd.f32 %v1211_v53, %v968_v8  ;;  %v15023_v48 = vpop.f32.mrf.mxu0  ;;  %v3459_v53 = vor.u32 %v18337_v35, %v18335_v3 }
 0x12d   : > { %v15075_v17 = vpop.f32.mrf.mxu1  ;;  %v22297_v35 = vmov %v22294_v15 }
 0x12e   : > { %v18612_v22 = vadd.f32 %v15075_v17, %v15023_v48  ;;  %v971_v41 = vpop.f32.mrf.mxu0  ;;  %v16812_v48 = vld [vmem:[%s22166_s1 + $0x228] sm:$0xff]  }
 0x12f   : > { %v1214_v63 = vpop.f32.mrf.mxu1 }
 0x130   : > { %v18618_v52 = vadd.f32 %v1214_v63, %v971_v41  ;;  %v15026_v24 = vpop.f32.mrf.mxu0  ;;  %15325 = vmatmul.mubr.bf16.vlgmr.msra.gmra.mxu0 %v3083_v49  ;;  %v22291_v41 = vld [vmem:[#allocation35_spill] sm:$0xff]  ;;  %v22292_v63 = vld [vmem:[#allocation36_spill] sm:$0xff] }
 0x131   : > { %v15078_v34 = vpop.f32.mrf.mxu1  ;;  %15377 = vmatmul.mubr.bf16.vlgmr.msra.gmra.mxu1 %v3442_v54  ;;  %15328 = vmatprep.mubr.bf16.mxu0 %v3085_v43  ;;  %v3468_v49 = vor.u32 %v22292_v63, %v22291_v41  ;;  %v22299_v41 = vld [vmem:[#allocation33_spill] sm:$0xff] }
 0x132   : > { %22289 = vst [vmem:[#allocation19_spill] sm:$0xff] %v18618_v52  ;;  %v18623_v17 = vadd.f32 %v15078_v34, %v15026_v24  ;;  %v984_v57 = vpop.f32.mrf.mxu0  ;;  %15380 = vmatprep.mubr.bf16.mxu1 %v3451_v7  ;;  %15413 = vmatpush3.bf16.msra.mxu0 %v18508_v19  ;;  %v22295_v34 = vrot.slane %v18274_v26, 2  ;;  %v22296_v24 = vrot.slane %v22288_v4, 2  ;;  %v16813_v19 = vld [vmem:[%s22166_s1 + $0x220] sm:$0xff]  }
 0x133   : > { %v1227_v45 = vpop.f32.mrf.mxu1  ;;  %15414 = vmatprep.subr.bf16.mxu0 %v16809_v32 }
 0x134   : > { %22290 = vst [vmem:[#allocation22_spill] sm:$0xff] %v18623_v17  ;;  %v18630_v54 = vadd.f32 %v1227_v45, %v984_v57  ;;  %v15027_v43 = vpop.f32.mrf.mxu0  ;;  %v3087_v7 = vsel %vm2615_vm3, %v22295_v34, %v22294_v15  ;;  %v3089_v3 = vsel %vm2615_vm3, %v22297_v35, %v22296_v24  ;;  %v22298_v57 = vld [vmem:[#allocation32_spill] sm:$0xff]  ;;  %v22300_v15 = vld [vmem:[#allocation34_spill] sm:$0xff]  ;;  %v22301_v17 = vld [vmem:[#allocation37_spill] sm:$0xff]  ;;  %v3469_v24 = vsel %vm3416_vm4, %v3459_v53, %v3468_v49 }
 0x135   : > { %v15079_v8 = vpop.f32.mrf.mxu1 }
 0x136   : > { %22293 = vst [vmem:[#allocation20_spill] sm:$0xff] %v18630_v54  ;;  %v18647_v6 = vadd.f32 %v15079_v8, %v15027_v43  ;;  %v987_v61 = vpop.f32.mrf.mxu0  ;;  %v3460_v54 = vsel %vm3416_vm4, %v3450_v60, %v3459_v53  ;;  %15415 = vmatpush3.bf16.msra.mxu0 %v16809_v32  ;;  %v16816_v60 = vld [vmem:[%s22166_s1 + $0x218] sm:$0xff]   ;;  %v22303_v43 = vld [vmem:[#allocation38_spill] sm:$0xff] }
 0x137   : > { %v1230_v52 = vpop.f32.mrf.mxu1  ;;  %15416 = vmatprep.subr.bf16.mxu0 %v16812_v48  ;;  %v3477_v34 = vor.u32 %v22304_v5, %v22303_v43  ;;  %v16817_v5 = vld [vmem:[%s22166_s1 + $0x210] sm:$0xff]  }
 0x138   : > { %v18653_v35 = vadd.f32 %v1230_v52, %v987_v61  ;;  %v15030_v26 = vpop.f32.mrf.mxu0  ;;  %15329 = vmatmul.mubr.bf16.gmra.mxu0 %v3087_v7  ;;  %v22305_v61 = vld [vmem:[#allocation41_spill] sm:$0xff]  ;;  %v22306_v52 = vld [vmem:[#allocation42_spill] sm:$0xff] }
 0x139   : > { %v15082_v45 = vpop.f32.mrf.mxu1  ;;  %15381 = vmatmul.mubr.bf16.gmra.mxu1 %v3460_v54  ;;  %15332 = vmatprep.mubr.bf16.mxu0 %v3089_v3  ;;  %v3486_v63 = vor.u32 %v22306_v52, %v22305_v61  ;;  %v3478_v43 = vsel %vm3416_vm4, %v3468_v49, %v3477_v34  ;;  %v16820_v49 = vld [vmem:[%s22166_s1 + $0x208] sm:$0xff]  }
 0x13a   : > { %22302 = vst [vmem:[#allocation23_spill] sm:$0xff] %v18653_v35  ;;  %v18658_v32 = vadd.f32 %v15082_v45, %v15030_v26  ;;  %v1000_v8 = vpop.f32.mrf.mxu0  ;;  %15384 = vmatprep.mubr.bf16.mxu1 %v3469_v24  ;;  %15417 = vmatpush3.bf16.msra.mxu0 %v16812_v48  ;;  %v22308_v35 = vrot.slane %v22298_v57, 2  ;;  %v22309_v26 = vrot.slane %v22288_v4, 2 }
 0x13b   : > { %v1243_v53 = vpop.f32.mrf.mxu1  ;;  %15418 = vmatprep.subr.bf16.mxu0 %v16813_v19 }
 0x13c   : > { %v18664_v7 = vadd.f32 %v1243_v53, %v1000_v8  ;;  %v15031_v54 = vpop.f32.mrf.mxu0  ;;  %v3091_v45 = vsel %vm2615_vm3, %v22309_v26, %v22308_v35  ;;  %v22310_v8 = vrot.slane %v22299_v41, 2  ;;  %v22311_v53 = vmov %v22308_v35 }
 0x13d   : > { %v15083_v3 = vpop.f32.mrf.mxu1 }
 0x13e   : > { %22307 = vst [vmem:[#allocation21_spill] sm:$0xff] %v18664_v7  ;;  %v18674_v48 = vadd.f32 %v15083_v3, %v15031_v54  ;;  %v1003_v24 = vpop.f32.mrf.mxu0  ;;  %v3093_v61 = vsel %vm2615_vm3, %v22311_v53, %v22310_v8  ;;  %15419 = vmatpush3.bf16.msra.mxu0 %v16813_v19  ;;  %v3487_v7 = vsel %vm3416_vm4, %v3477_v34, %v3486_v63  ;;  %v22312_v19 = vld [vmem:[#allocation44_spill] sm:$0xff]  ;;  %v22313_v8 = vld [vmem:[#allocation45_spill] sm:$0xff] }
 0x13f   : > { %v1246_v52 = vpop.f32.mrf.mxu1  ;;  %15420 = vmatprep.subr.bf16.mxu0 %v16816_v60  ;;  %v3495_v53 = vor.u32 %v22313_v8, %v22312_v19 }
 0x140   : > { %v18683_v35 = vadd.f32 %v1246_v52, %v1003_v24  ;;  %v15034_v26 = vpop.f32.mrf.mxu0  ;;  %15333 = vmatmul.mubr.bf16.gmra.mxu0 %v3091_v45  ;;  %v3504_v24 = vor.u32 %v18407_v37, %v18405_v59  ;;  %v22315_v52 = vrot.slane %v22300_v15, 2  ;;  %v22317_v59 = vrot.slane %v22301_v17, 2 }
 0x141   : > { %v15086_v54 = vpop.f32.mrf.mxu1  ;;  %15385 = vmatmul.mubr.bf16.gmra.mxu1 %v3478_v43  ;;  %15336 = vmatprep.mubr.bf16.mxu0 %v3093_v61  ;;  %v3496_v37 = vsel %vm3416_vm4, %v3486_v63, %v3495_v53  ;;  %v3513_v15 = vor.u32 %v18414_v27, %v18412_v16  ;;  %v22323_v27 = vld [vmem:[#allocation43_spill] sm:$0xff] }
 0x142   : > { %v18688_v3 = vadd.f32 %v15086_v54, %v15034_v26  ;;  %v1016_v57 = vpop.f32.mrf.mxu0  ;;  %15388 = vmatprep.mubr.bf16.mxu1 %v3487_v7  ;;  %15421 = vmatpush3.bf16.msra.mxu0 %v16816_v60  ;;  %v22316_v26 = vrot.slane %v22299_v41, 2  ;;  %v16822_v7 = vld [vmem:[%s22166_s1 + $0x200] sm:$0xff]  }
 0x143   : > { %v1259_v34 = vpop.f32.mrf.mxu1  ;;  %15422 = vmatprep.subr.bf16.mxu0 %v16817_v5  ;;  %v3514_v16 = vsel %vm3416_vm4, %v3504_v24, %v3513_v15 }
 0x144   : > { %v18694_v45 = vadd.f32 %v1259_v34, %v1016_v57  ;;  %v15035_v43 = vpop.f32.mrf.mxu0  ;;  %v3095_v54 = vsel %vm2615_vm3, %v22316_v26, %v22315_v52  ;;  %v22318_v57 = vmov %v22315_v52 }
 0x145   : > { %v15087_v61 = vpop.f32.mrf.mxu1  ;;  %v3097_v8 = vsel %vm2615_vm3, %v22318_v57, %v22317_v59  ;;  %v22320_v57 = vld [vmem:[#allocation40_spill] sm:$0xff] }
 0x146   : > { %22314 = vst [vmem:[#allocation26_spill] sm:$0xff] %v18694_v45  ;;  %v18704_v60 = vadd.f32 %v15087_v61, %v15035_v43  ;;  %v1019_v19 = vpop.f32.mrf.mxu0  ;;  %15423 = vmatpush3.bf16.msra.mxu0 %v16817_v5  ;;  %v3505_v45 = vsel %vm3416_vm4, %v3495_v53, %v3504_v24  ;;  %v3522_v53 = vor.u32 %v18426_v30, %v18419_v42 }
 0x147   : > { %v1262_v34 = vpop.f32.mrf.mxu1  ;;  %15424 = vmatprep.subr.bf16.mxu0 %v16820_v49 }
 0x148   : > { %v18713_v52 = vadd.f32 %v1262_v34, %v1019_v19  ;;  %v15038_v26 = vpop.f32.mrf.mxu0  ;;  %15337 = vmatmul.mubr.bf16.gmra.mxu0 %v3095_v54 }
 0x149   : > { %v15090_v43 = vpop.f32.mrf.mxu1  ;;  %15389 = vmatmul.mubr.bf16.gmra.mxu1 %v3496_v37  ;;  %15340 = vmatprep.mubr.bf16.mxu0 %v3097_v8  ;;  %v22321_v37 = vrot.slane %v22320_v57, 2  ;;  %v22322_v8 = vrot.slane %v22301_v17, 2 }
 0x14a   : > { %v18715_v61 = vadd.f32 %v15090_v43, %v15038_v26  ;;  %v1032_v63 = vpop.f32.mrf.mxu0  ;;  %15392 = vmatprep.mubr.bf16.mxu1 %v3505_v45  ;;  %15425 = vmatpush3.bf16.msra.mxu0 %v16820_v49  ;;  %v22324_v49 = vrot.slane %v22323_v27, 2 }
 0x14b   : > { %v1275_v5 = vpop.f32.mrf.mxu1  ;;  %15426 = vmatprep.subr.bf16.mxu0 %v16822_v7  ;;  %v3099_v34 = vsel %vm2615_vm3, %v22322_v8, %v22321_v37  ;;  %v22325_v42 = vmov %v22321_v37 }
 0x14c   : > { %v18721_v19 = vadd.f32 %v1275_v5, %v1032_v63  ;;  %v15039_v59 = vpop.f32.mrf.mxu0  ;;  %v3101_v30 = vsel %vm2615_vm3, %v22325_v42, %v22324_v49  ;;  %v3523_v63 = vsel %vm3416_vm4, %v3513_v15, %v3522_v53  ;;  %v22326_v49 = vld [vmem:[#allocation46_spill] sm:$0xff] }
 0x14d   : > { %v15091_v54 = vpop.f32.mrf.mxu1 }
 0x14e   : > { %22319 = vst [vmem:[#allocation24_spill] sm:$0xff] %v18721_v19  ;;  %v18728_v45 = vadd.f32 %v15091_v54, %v15039_v59  ;;  %v1035_v26 = vpop.f32.mrf.mxu0  ;;  %15427 = vmatpush3.bf16.msra.mxu0 %v16822_v7  ;;  %v3531_v54 = vor.u32 %v18430_v29, %v18428_v38  ;;  %v3540_v7 = vor.u32 %v18443_v40, %v18436_v12  ;;  %v22329_v38 = vrot.slane %v18385_v20, 2 }
 0x14f   : > { %v1278_v43 = vpop.f32.mrf.mxu1 }
 0x150   : > { %v18737_v5 = vadd.f32 %v1278_v43, %v1035_v26  ;;  %v15042_v19 = vpop.f32.mrf.mxu0  ;;  %15341 = vmatmul.mubr.bf16.gmra.mxu0 %v3099_v34  ;;  %v22327_v34 = vrot.slane %v22326_v49, 2  ;;  %v3532_v43 = vsel %vm3416_vm4, %v3522_v53, %v3531_v54  ;;  %v3549_v53 = vor.u32 %v18465_v25, %v18448_v23 }
 0x151   : > { %v15094_v37 = vpop.f32.mrf.mxu1  ;;  %15393 = vmatmul.mubr.bf16.gmra.mxu1 %v3514_v16  ;;  %15344 = vmatprep.mubr.bf16.mxu0 %v3101_v30  ;;  %v22328_v16 = vrot.slane %v22323_v27, 2  ;;  %v3558_v49 = vor.u32 %v18478_v44, %v18476_v56  ;;  %v22334_v25 = vrot.slane %v18446_v10, 2 }
 0x152   : > { %v18739_v59 = vadd.f32 %v15094_v37, %v15042_v19  ;;  %v1048_v24 = vpop.f32.mrf.mxu0  ;;  %15396 = vmatprep.mubr.bf16.mxu1 %v3523_v63  ;;  %v22330_v29 = vmov %v22327_v34  ;;  %v3541_v63 = vsel %vm3416_vm4, %v3531_v54, %v3540_v7  ;;  %v3550_v23 = vsel %vm3416_vm4, %v3540_v7, %v3549_v53 }
 0x153   : > { %v1291_v57 = vpop.f32.mrf.mxu1  ;;  %v3103_v19 = vsel %vm2615_vm3, %v22328_v16, %v22327_v34  ;;  %v3105_v12 = vsel %vm2615_vm3, %v22330_v29, %v22329_v38  ;;  %v3567_v7 = vor.u32 %v18511_v55, %v18497_v28 }
 0x154   : > { %v18745_v8 = vadd.f32 %v1291_v57, %v1048_v24  ;;  %v15043_v15 = vpop.f32.mrf.mxu0 }
 0x155   : > { %v15095_v26 = vpop.f32.mrf.mxu1 }
 0x156   : > { %v18752_v42 = vadd.f32 %v15095_v26, %v15043_v15  ;;  %v1051_v30 = vpop.f32.mrf.mxu0 }
 0x157   : > { %v1294_v40 = vpop.f32.mrf.mxu1 }
 0x158   : > { %v18761_v37 = vadd.f32 %v1294_v40, %v1051_v30  ;;  %v15046_v24 = vpop.f32.mrf.mxu0  ;;  %15345 = vmatmul.mubr.bf16.gmra.mxu0 %v3103_v19  ;;  %v22331_v19 = vrot.slane %v18395_v1, 2  ;;  %v22332_v30 = vmov %v22329_v38  ;;  %v3559_v40 = vsel %vm3416_vm4, %v3549_v53, %v3558_v49 }
 0x159   : > { %v15098_v27 = vpop.f32.mrf.mxu1  ;;  %15397 = vmatmul.mubr.bf16.gmra.mxu1 %v3532_v43  ;;  %15348 = vmatprep.mubr.bf16.mxu0 %v3105_v12  ;;  %v3576_v53 = vor.u32 %v18540_v0, %v18526_v21 }
 0x15a   : > { %v18763_v57 = vadd.f32 %v15098_v27, %v15046_v24  ;;  %v1064_v15 = vpop.f32.mrf.mxu0  ;;  %15400 = vmatprep.mubr.bf16.mxu1 %v3541_v63  ;;  %v3107_v43 = vsel %vm2615_vm3, %v22332_v30, %v22331_v19  ;;  %v22335_v56 = vmov %v22331_v19  ;;  %v22337_v30 = vld [vmem:[#allocation47_spill] sm:$0xff] }
 0x15b   : > { %v1307_v26 = vpop.f32.mrf.mxu1  ;;  %v3109_v44 = vsel %vm2615_vm3, %v22335_v56, %v22334_v25  ;;  %v3577_v10 = vsel %vm3416_vm4, %v3567_v7, %v3576_v53 }
 0x15c   : > { %v18769_v34 = vadd.f32 %v1307_v26, %v1064_v15  ;;  %v15047_v54 = vpop.f32.mrf.mxu0 }
 0x15d   : > { %v15099_v16 = vpop.f32.mrf.mxu1 }
 0x15e   : > { %v18776_v38 = vadd.f32 %v15099_v16, %v15047_v54  ;;  %v18778_v29 = vpop.f32.mrf.mxu0 }
 0x15f   : > { %22333 = vst [vmem:[#allocation27_spill] sm:$0xff] %v18778_v29  ;;  %v18786_v12 = vpop.f32.mrf.mxu1 }
 0x160   : > { %22336 = vst [vmem:[#allocation25_spill] sm:$0xff] %v18786_v12  ;;  %v15118_v63 = vpop.f32.mrf.mxu0  ;;  %15349 = vmatmul.mubr.bf16.gmra.mxu0 %v3107_v43  ;;  %v22338_v43 = vrot.slane %v22337_v30, 2 }
 0x161   : > { %v1626_v20 = vadd.f32 %v15118_v63, %v18534_v11  ;;  %v15170_v24 = vpop.f32.mrf.mxu1  ;;  %15401 = vmatmul.mubr.bf16.gmra.mxu1 %v3550_v23  ;;  %15352 = vmatprep.mubr.bf16.mxu0 %v3109_v44  ;;  %v22339_v23 = vmov %v22334_v25  ;;  %v22340_v25 = vld [vmem:[#allocation48_spill] sm:$0xff] }
 0x162   : > { %v1481_v27 = vpop.f32.mrf.mxu0  ;;  %15404 = vmatprep.mubr.bf16.mxu1 %v3559_v40  ;;  %v3111_v28 = vsel %vm2615_vm3, %v22339_v23, %v22338_v43  ;;  %v22341_v56 = vrot.slane %v22340_v25, 2  ;;  %v22342_v21 = vmov %v22338_v43 }
 0x163   : > { %v1624_v1 = vadd.f32 %v1481_v27, %v18537_v39  ;;  %v18793_v15 = vadd.f32 %v15170_v24, %v1626_v20  ;;  %v1944_v26 = vpop.f32.mrf.mxu1  ;;  %v3568_v39 = vsel %vm3416_vm4, %v3558_v49, %v3567_v7  ;;  %v3585_v27 = vor.u32 %v18571_v31, %v18569_v2 }
 0x164   : > { %v15119_v54 = vpop.f32.mrf.mxu0  ;;  %v3113_v0 = vsel %vm2615_vm3, %v22342_v21, %v22341_v56  ;;  %v22344_v30 = vmov %v22341_v56 }
 0x165   : > { %v1627_v11 = vadd.f32 %v15119_v54, %v18542_v13  ;;  %v18798_v16 = vadd.f32 %v1944_v26, %v1624_v1  ;;  %v15171_v19 = vpop.f32.mrf.mxu1  ;;  %v3586_v2 = vsel %vm3416_vm4, %v3576_v53, %v3585_v27  ;;  %v22348_v27 = vld [vmem:[#allocation29_spill] sm:$0xff] }
 0x166   : > { %v1484_v55 = vpop.f32.mrf.mxu0 }
 0x167   : > { %v18812_v13 = vadd.f32 %v1484_v55, %v18545_v47  ;;  %v18814_v44 = vadd.f32 %v15171_v19, %v1627_v11  ;;  %v18816_v40 = vpop.f32.mrf.mxu1 }
 0x168   : > { %v15122_v63 = vpop.f32.mrf.mxu0  ;;  %15353 = vmatmul.mubr.bf16.gmra.mxu0 %v3111_v28 }
 0x169   : > { %v1630_v20 = vadd.f32 %v15122_v63, %v18552_v62  ;;  %v15174_v49 = vpop.f32.mrf.mxu1  ;;  %15405 = vmatmul.mubr.bf16.gmra.mxu1 %v3568_v39  ;;  %15356 = vmatprep.mubr.bf16.mxu0 %v3113_v0  ;;  %v22343_v62 = vrot.slane %v18529_v46, 2 }
 0x16a   : > { %v1497_v24 = vpop.f32.mrf.mxu0  ;;  %15408 = vmatprep.mubr.bf16.mxu1 %v3577_v10 }
 0x16b   : > { %v1628_v47 = vadd.f32 %v1497_v24, %v18560_v51  ;;  %v18823_v1 = vadd.f32 %v15174_v49, %v1630_v20  ;;  %v1960_v26 = vpop.f32.mrf.mxu1  ;;  %v3115_v43 = vsel %vm2615_vm3, %v22344_v30, %v22343_v62  ;;  %v22345_v51 = vrot.slane %v18262_v36, 3  ;;  %v22352_v30 = vld [vmem:[#allocation22_spill] sm:$0xff] }
 0x16c   : > { %v15123_v54 = vpop.f32.mrf.mxu0  ;;  %v22346_v20 = vrot.slane %v18608_v18, 3 }
 0x16d   : > { %v1631_v7 = vadd.f32 %v15123_v54, %v18573_v9  ;;  %v18826_v11 = vadd.f32 %v1960_v26, %v1628_v47  ;;  %v15175_v19 = vpop.f32.mrf.mxu1  ;;  %v3890_v31 = vsel %vm3887_vm5, %v18580_v50, %v22345_v51  ;;  %v22347_v49 = vmov %v22345_v51  ;;  %v22351_v54 = vld [vmem:[#allocation19_spill] sm:$0xff] }
 0x16e   : > { %v1500_v23 = vpop.f32.mrf.mxu0  ;;  %v22349_v47 = vrot.slane %v22348_v27, 3 }
 0x16f   : > { %v18839_v28 = vadd.f32 %v1500_v23, %v18584_v58  ;;  %v18841_v9 = vadd.f32 %v15175_v19, %v1631_v7  ;;  %v18843_v55 = vpop.f32.mrf.mxu1 }
 0x170   : > { %v15126_v46 = vpop.f32.mrf.mxu0  ;;  %15357 = vmatmul.mubr.bf16.gmra.mxu0 %v3115_v43 }
 0x171   : > { %v1634_v39 = vadd.f32 %v15126_v46, %v18586_v33  ;;  %v15178_v25 = vpop.f32.mrf.mxu1  ;;  %15409 = vmatmul.mubr.bf16.gmra.mxu1 %v3586_v2  ;;  %15428 = vmatprep.mubr.bf16.mxu0 %v3890_v31  ;;  %v3892_v33 = vsel %vm3887_vm5, %v22347_v49, %v22346_v20  ;;  %v22353_v2 = vld [vmem:[#allocation20_spill] sm:$0xff] }
 0x172   : > { %v1513_v53 = vpop.f32.mrf.mxu0 }
 0x173   : > { %v1632_v56 = vadd.f32 %v1513_v53, %v18592_v14  ;;  %v18847_v21 = vadd.f32 %v15178_v25, %v1634_v39  ;;  %v1976_v50 = vpop.f32.mrf.mxu1  ;;  %v22350_v14 = vmov %v22346_v20  ;;  %v22357_v20 = vrot.slane %v22288_v4, 3 }
 0x174   : > { %v15127_v0 = vpop.f32.mrf.mxu0  ;;  %v3894_v26 = vsel %vm3887_vm5, %v22350_v14, %v22349_v47 }
 0x175   : > { %v1635_v58 = vadd.f32 %v15127_v0, %v18612_v22  ;;  %v18850_v10 = vadd.f32 %v1976_v50, %v1632_v56  ;;  %v15179_v63 = vpop.f32.mrf.mxu1  ;;  %v22354_v56 = vld [vmem:[#allocation30_spill] sm:$0xff]  ;;  %v22356_v0 = vmov %v22349_v47 }
 0x176   : > { %v1516_v24 = vpop.f32.mrf.mxu0  ;;  %v22355_v50 = vrot.slane %v22354_v56, 3  ;;  %v22363_v56 = vmov %v22357_v20 }
 0x177   : > { %v18863_v7 = vadd.f32 %v1516_v24, %v22351_v54  ;;  %v18865_v22 = vadd.f32 %v15179_v63, %v1635_v58  ;;  %v18867_v19 = vpop.f32.mrf.mxu1  ;;  %v22359_v24 = vld [vmem:[#allocation23_spill] sm:$0xff] }
 0x178   : > { %v15130_v62 = vpop.f32.mrf.mxu0  ;;  %15429 = vmatmul.mubr.bf16.vlgmr.msra.gmra.mxu0 %v3892_v33  ;;  %v3896_v58 = vsel %vm3887_vm5, %v22356_v0, %v22355_v50  ;;  %v22358_v49 = vmov %v22355_v50  ;;  %v22364_v0 = vrot.slane %v22299_v41, 3 }
 0x179   : > { %v1638_v36 = vadd.f32 %v15130_v62, %v22352_v30  ;;  %v15182_v43 = vpop.f32.mrf.mxu1  ;;  %15432 = vmatprep.mubr.bf16.mxu0 %v3894_v26  ;;  %v3898_v33 = vsel %vm3887_vm5, %v22358_v49, %v22357_v20  ;;  %v22360_v30 = vld [vmem:[#allocation21_spill] sm:$0xff] }
 0x17a   : > { %v1529_v23 = vpop.f32.mrf.mxu0 }
 0x17b   : > { %v1636_v51 = vadd.f32 %v1529_v23, %v22353_v2  ;;  %v18871_v31 = vadd.f32 %v15182_v43, %v1638_v36  ;;  %v1992_v18 = vpop.f32.mrf.mxu1 }
 0x17c   : > { %v15131_v46 = vpop.f32.mrf.mxu0 }
 0x17d   : > { %v1639_v39 = vadd.f32 %v15131_v46, %v18647_v6  ;;  %v18874_v25 = vadd.f32 %v1992_v18, %v1636_v51  ;;  %v15183_v53 = vpop.f32.mrf.mxu1 }
 0x17e   : > { %v1532_v63 = vpop.f32.mrf.mxu0 }
 0x17f   : > { %v18887_v47 = vadd.f32 %v1532_v63, %v22359_v24  ;;  %v18889_v6 = vadd.f32 %v15183_v53, %v1639_v39  ;;  %v18891_v14 = vpop.f32.mrf.mxu1  ;;  %v22361_v39 = vld [vmem:[#allocation32_spill] sm:$0xff] }
 0x180   : > { %v15134_v26 = vpop.f32.mrf.mxu0  ;;  %15433 = vmatmul.mubr.bf16.gmra.mxu0 %v3896_v58  ;;  %v22362_v53 = vrot.slane %v22361_v39, 3 }
 0x181   : > { %v1642_v27 = vadd.f32 %v15134_v26, %v18658_v32  ;;  %v15186_v54 = vpop.f32.mrf.mxu1  ;;  %15436 = vmatprep.mubr.bf16.mxu0 %v3898_v33 }
 0x182   : > { %v1545_v62 = vpop.f32.mrf.mxu0  ;;  %v3900_v32 = vsel %vm3887_vm5, %v22363_v56, %v22362_v53  ;;  %v22365_v58 = vmov %v22362_v53  ;;  %v22372_v56 = vrot.slane %v22301_v17, 3 }
 0x183   : > { %v1640_v36 = vadd.f32 %v1545_v62, %v22360_v30  ;;  %v18895_v43 = vadd.f32 %v15186_v54, %v1642_v27  ;;  %v2008_v23 = vpop.f32.mrf.mxu1  ;;  %v3902_v63 = vsel %vm3887_vm5, %v22365_v58, %v22364_v0  ;;  %v22368_v27 = vld [vmem:[#allocation26_spill] sm:$0xff] }
 0x184   : > { %v15135_v2 = vpop.f32.mrf.mxu0 }
 0x185   : > { %v1643_v51 = vadd.f32 %v15135_v2, %v18674_v48  ;;  %v18898_v18 = vadd.f32 %v2008_v23, %v1640_v36  ;;  %v15187_v46 = vpop.f32.mrf.mxu1 }
 0x186   : > { %v1548_v50 = vpop.f32.mrf.mxu0 }
 0x187   : > { %v18911_v20 = vadd.f32 %v1548_v50, %v18683_v35  ;;  %v18913_v48 = vadd.f32 %v15187_v46, %v1643_v51  ;;  %v18915_v49 = vpop.f32.mrf.mxu1  ;;  %v22369_v51 = vld [vmem:[#allocation34_spill] sm:$0xff] }
 0x188   : > { %22367 = vst [vmem:[#allocation31_spill] sm:$0xff] %v18915_v49  ;;  %v15138_v33 = vpop.f32.mrf.mxu0  ;;  %15437 = vmatmul.mubr.bf16.gmra.mxu0 %v3900_v32  ;;  %v22370_v46 = vrot.slane %v22369_v51, 3 }
 0x189   : > { %22366 = vst [vmem:[#allocation28_spill] sm:$0xff] %v18911_v20  ;;  %v1646_v4 = vadd.f32 %v15138_v33, %v18688_v3  ;;  %v15190_v24 = vpop.f32.mrf.mxu1  ;;  %15440 = vmatprep.mubr.bf16.mxu0 %v3902_v63  ;;  %v22371_v3 = vmov %v22364_v0 }
 0x18a   : > { %v1561_v26 = vpop.f32.mrf.mxu0  ;;  %v3904_v39 = vsel %vm3887_vm5, %v22371_v3, %v22370_v46  ;;  %v22373_v32 = vmov %v22370_v46  ;;  %v22377_v3 = vmov %v22372_v56 }
 0x18b   : > { %v1644_v54 = vadd.f32 %v1561_v26, %v22368_v27  ;;  %v18919_v62 = vadd.f32 %v15190_v24, %v1646_v4  ;;  %v2024_v30 = vpop.f32.mrf.mxu1  ;;  %v3906_v50 = vsel %vm3887_vm5, %v22373_v32, %v22372_v56  ;;  %v17261_v4 = vld [vmem:[%s17629_s20 + $0x60] sm:$0xff]   ;;  %v17262_v27 = vld [vmem:[%s17629_s20 + $0x68] sm:$0xff]  }
 0x18c   : > { %v15139_v36 = vpop.f32.mrf.mxu0  ;;  %v3907_v24 = vrot.slane %v17261_v4, 3  ;;  %v17263_v4 = vld [vmem:[%s17629_s20 + $0x70] sm:$0xff]  }
 0x18d   : > { %v1647_v35 = vadd.f32 %v15139_v36, %v18704_v60  ;;  %v18922_v23 = vadd.f32 %v2024_v30, %v1644_v54  ;;  %v15191_v2 = vpop.f32.mrf.mxu1  ;;  %v3909_v54 = vrot.slane %v17262_v27, 3  ;;  %v22376_v30 = vld [vmem:[#allocation24_spill] sm:$0xff]  ;;  %v3911_v17 = vrot.slane %v17263_v4, 3 }
 0x18e   : > { %v1564_v53 = vpop.f32.mrf.mxu0  ;;  %v17264_v27 = vld [vmem:[%s17629_s20 + $0x78] sm:$0xff]  }
 0x18f   : > { %v18935_v0 = vadd.f32 %v1564_v53, %v18713_v52  ;;  %v18937_v60 = vadd.f32 %v15191_v2, %v1647_v35  ;;  %v18939_v58 = vpop.f32.mrf.mxu1  ;;  %v3910_v56 = vsel %vm3887_vm5, %v3907_v24, %v3909_v54 }
 0x190   : > { %22375 = vst [vmem:[#allocation36_spill] sm:$0xff] %v18939_v58  ;;  %v15142_v63 = vpop.f32.mrf.mxu0  ;;  %15441 = vmatmul.mubr.bf16.gmra.mxu0 %v3904_v39  ;;  %v3908_v39 = vsel %vm3887_vm5, %v22377_v3, %v3907_v24 }
 0x191   : > { %22374 = vst [vmem:[#allocation35_spill] sm:$0xff] %v18935_v0  ;;  %v1650_v41 = vadd.f32 %v15142_v63, %v18715_v61  ;;  %v15194_v33 = vpop.f32.mrf.mxu1  ;;  %15444 = vmatprep.mubr.bf16.mxu0 %v3906_v50 }
 0x192   : > { %v1577_v26 = vpop.f32.mrf.mxu0 }
 0x193   : > { %v1648_v36 = vadd.f32 %v1577_v26, %v22376_v30  ;;  %v18945_v51 = vadd.f32 %v15194_v33, %v1650_v41  ;;  %v2040_v52 = vpop.f32.mrf.mxu1  ;;  %v3913_v30 = vrot.slane %v17264_v27, 3 }
 0x194   : > { %v15143_v35 = vpop.f32.mrf.mxu0 }
 0x195   : > { %v1651_v2 = vadd.f32 %v15143_v35, %v18728_v45  ;;  %v18948_v46 = vadd.f32 %v2040_v52, %v1648_v36  ;;  %v15195_v61 = vpop.f32.mrf.mxu1 }
 0x196   : > { %v1580_v53 = vpop.f32.mrf.mxu0 }
 0x197   : > { %v18955_v32 = vadd.f32 %v1580_v53, %v18737_v5  ;;  %v18957_v50 = vadd.f32 %v15195_v61, %v1651_v2  ;;  %v18959_v63 = vpop.f32.mrf.mxu1  ;;  %v3912_v61 = vsel %vm3887_vm5, %v3909_v54, %v3911_v17  ;;  %v17266_v54 = vld [vmem:[%s17629_s20 + $0x88] sm:$0xff]  }
 0x198   : > { %22379 = vst [vmem:[#allocation37_spill] sm:$0xff] %v18959_v63  ;;  %v15146_v41 = vpop.f32.mrf.mxu0  ;;  %15445 = vmatmul.mubr.bf16.gmra.mxu0 %v3908_v39  ;;  %v3914_v39 = vsel %vm3887_vm5, %v3911_v17, %v3913_v30  ;;  %v3917_v27 = vrot.slane %v17266_v54, 3  ;;  %v17268_v54 = vld [vmem:[%s17629_s20 + $0x98] sm:$0xff]  }
 0x199   : > { %22378 = vst [vmem:[#allocation33_spill] sm:$0xff] %v18955_v32  ;;  %v1654_v45 = vadd.f32 %v15146_v41, %v18739_v59  ;;  %v15198_v33 = vpop.f32.mrf.mxu1  ;;  %15448 = vmatprep.mubr.bf16.mxu0 %v3910_v56 }
 0x19a   : > { %v1593_v26 = vpop.f32.mrf.mxu0 }
 0x19b   : > { %v1652_v24 = vadd.f32 %v1593_v26, %v18745_v8  ;;  %v18965_v36 = vadd.f32 %v15198_v33, %v1654_v45  ;;  %v2056_v5 = vpop.f32.mrf.mxu1  ;;  %v17265_v33 = vld [vmem:[%s17629_s20 + $0x80] sm:$0xff]  }
 0x19c   : > { %v15147_v52 = vpop.f32.mrf.mxu0  ;;  %v3915_v4 = vrot.slane %v17265_v33, 3 }
 0x19d   : > { %v1655_v35 = vadd.f32 %v15147_v52, %v18752_v42  ;;  %v18968_v2 = vadd.f32 %v2056_v5, %v1652_v24  ;;  %v15199_v59 = vpop.f32.mrf.mxu1 }
 0x19e   : > { %v1596_v3 = vpop.f32.mrf.mxu0 }
 0x19f   : > { %v18973_v53 = vadd.f32 %v1596_v3, %v18761_v37  ;;  %v18975_v8 = vadd.f32 %v15199_v59, %v1655_v35  ;;  %v18977_v56 = vpop.f32.mrf.mxu1  ;;  %v3916_v59 = vsel %vm3887_vm5, %v3913_v30, %v3915_v4  ;;  %v3918_v3 = vsel %vm3887_vm5, %v3915_v4, %v3917_v27 }
 0x1a0   : > { %22381 = vst [vmem:[#allocation39_spill] sm:$0xff] %v18977_v56  ;;  %v15150_v41 = vpop.f32.mrf.mxu0  ;;  %15449 = vmatmul.mubr.bf16.gmra.mxu0 %v3912_v61 }
 0x1a1   : > { %22380 = vst [vmem:[#allocation38_spill] sm:$0xff] %v18973_v53  ;;  %v1658_v42 = vadd.f32 %v15150_v41, %v18763_v57  ;;  %v15202_v45 = vpop.f32.mrf.mxu1  ;;  %15452 = vmatprep.mubr.bf16.mxu0 %v3914_v39 }
 0x1a2   : > { %v1609_v26 = vpop.f32.mrf.mxu0 }
 0x1a3   : > { %v1656_v17 = vadd.f32 %v1609_v26, %v18769_v34  ;;  %v18983_v24 = vadd.f32 %v15202_v45, %v1658_v42  ;;  %v2072_v37 = vpop.f32.mrf.mxu1 }
 0x1a4   : > { %v15151_v5 = vpop.f32.mrf.mxu0 }
 0x1a5   : > { %v1659_v52 = vadd.f32 %v15151_v5, %v18776_v38  ;;  %v18986_v35 = vadd.f32 %v2072_v37, %v1656_v17  ;;  %v15203_v57 = vpop.f32.mrf.mxu1  ;;  %v17267_v38 = vld [vmem:[%s17629_s20 + $0x90] sm:$0xff]   ;;  %v3921_v17 = vrot.slane %v17268_v54, 3 }
 0x1a6   : > { %v18989_v61 = vpop.f32.mrf.mxu0  ;;  %v3919_v33 = vrot.slane %v17267_v38, 3 }
 0x1a7   : > { %22382 = vst [vmem:[#allocation41_spill] sm:$0xff] %v18989_v61  ;;  %v18992_v39 = vadd.f32 %v15203_v57, %v1659_v52  ;;  %v18994_v34 = vpop.f32.mrf.mxu1 }
 0x1a8   : > { %22383 = vst [vmem:[#allocation42_spill] sm:$0xff] %v18994_v34  ;;  %v15222_v41 = vpop.f32.mrf.mxu0  ;;  %15453 = vmatmul.mubr.bf16.gmra.mxu0 %v3916_v59 }
 0x1a9   : > { %v2560_v42 = vadd.f32 %v15222_v41, %v18793_v15  ;;  %v15274_v45 = vpop.f32.mrf.mxu1  ;;  %15456 = vmatprep.mubr.bf16.mxu0 %v3918_v3  ;;  %v3920_v15 = vsel %vm3887_vm5, %v3917_v27, %v3919_v33  ;;  %v3922_v41 = vsel %vm3887_vm5, %v3919_v33, %v3921_v17 }
 0x1aa   : > { %v2415_v26 = vpop.f32.mrf.mxu0 }
 0x1ab   : > { %v2558_v30 = vadd.f32 %v2415_v26, %v18798_v16  ;;  %v19000_v37 = vadd.f32 %v15274_v45, %v2560_v42  ;;  %v2753_v4 = vpop.f32.mrf.mxu1 }
 0x1ac   : > { %v15223_v5 = vpop.f32.mrf.mxu0 }
 0x1ad   : > { %v2561_v52 = vadd.f32 %v15223_v5, %v18814_v44  ;;  %v19003_v57 = vadd.f32 %v2753_v4, %v2558_v30  ;;  %v15275_v59 = vpop.f32.mrf.mxu1  ;;  %v17269_v44 = vld [vmem:[%s17629_s20 + $0xa0] ss:$0 sps:$4 sm:$0x77]   ;;  %s22123_s20 = scalar_lea.hbm %s22180_s15, %s14045_s17 }
 0x1ae   : > { %v19006_v3 = vpop.f32.mrf.mxu0  ;;  %v3923_v26 = vrot.slane %v17269_v44, 3 }
 0x1af   : > { %v19009_v38 = vadd.f32 %v15275_v59, %v2561_v52  ;;  %v19011_v54 = vpop.f32.mrf.mxu1 }
 0x1b0   : > { %v15226_v16 = vpop.f32.mrf.mxu0  ;;  %15457 = vmatmul.mubr.bf16.gmra.mxu0 %v3920_v15  ;;  %v3924_v15 = vsel %vm3887_vm5, %v3921_v17, %v3923_v26 }
 0x1b1   : > { %v2564_v42 = vadd.f32 %v15226_v16, %v18823_v1  ;;  %v15278_v45 = vpop.f32.mrf.mxu1  ;;  %15460 = vmatprep.mubr.bf16.mxu0 %v3922_v41 }
 0x1b2   : > { %v2431_v30 = vpop.f32.mrf.mxu0 }
 0x1b3   : > { %v2562_v4 = vadd.f32 %v2431_v30, %v18826_v11  ;;  %v19016_v27 = vadd.f32 %v15278_v45, %v2564_v42  ;;  %v2769_v5 = vpop.f32.mrf.mxu1 }
 0x1b4   : > { %v15227_v34 = vpop.f32.mrf.mxu0 }
 0x1b5   : > { %v2565_v33 = vadd.f32 %v15227_v34, %v18841_v9  ;;  %v19019_v52 = vadd.f32 %v2769_v5, %v2562_v4  ;;  %v15279_v59 = vpop.f32.mrf.mxu1 }
 0x1b6   : > { %v19022_v61 = vpop.f32.mrf.mxu0 }
 0x1b7   : > { %v19024_v1 = vadd.f32 %v15279_v59, %v2565_v33  ;;  %v19026_v41 = vpop.f32.mrf.mxu1 }
 0x1b8   : > { %v15230_v16 = vpop.f32.mrf.mxu0  ;;  %15461 = vmatmul.mubr.bf16.gmra.mxu0 %v3924_v15 }
 0x1b9   : > { %v2568_v11 = vadd.f32 %v15230_v16, %v18847_v21  ;;  %v15282_v42 = vpop.f32.mrf.mxu1 }
 0x1ba   : > { %v2447_v45 = vpop.f32.mrf.mxu0 }
 0x1bb   : > { %v2566_v44 = vadd.f32 %v2447_v45, %v18850_v10  ;;  %v19030_v9 = vadd.f32 %v15282_v42, %v2568_v11  ;;  %v2785_v34 = vpop.f32.mrf.mxu1 }
 0x1bc   : > { %v15231_v30 = vpop.f32.mrf.mxu0 }
 0x1bd   : > { %v2569_v17 = vadd.f32 %v15231_v30, %v18865_v22  ;;  %v19033_v26 = vadd.f32 %v2785_v34, %v2566_v44  ;;  %v15283_v4 = vpop.f32.mrf.mxu1 }
 0x1be   : > { %v19035_v5 = vpop.f32.mrf.mxu0 }
 0x1bf   : > { %v19037_v33 = vadd.f32 %v15283_v4, %v2569_v17  ;;  %v19039_v59 = vpop.f32.mrf.mxu1 }
 0x1c0   : > { %v15234_v21 = vpop.f32.mrf.mxu0 }
 0x1c1   : > { %v2572_v15 = vadd.f32 %v15234_v21, %v18871_v31  ;;  %v15286_v16 = vpop.f32.mrf.mxu1 }
 0x1c2   : > { %v2463_v10 = vpop.f32.mrf.mxu0 }
 0x1c3   : > { %v2570_v11 = vadd.f32 %v2463_v10, %v18874_v25  ;;  %v19043_v42 = vadd.f32 %v15286_v16, %v2572_v15  ;;  %v2801_v45 = vpop.f32.mrf.mxu1 }
 0x1c4   : > { %v15235_v22 = vpop.f32.mrf.mxu0 }
 0x1c5   : > { %v2573_v44 = vadd.f32 %v15235_v22, %v18889_v6  ;;  %v19046_v34 = vadd.f32 %v2801_v45, %v2570_v11  ;;  %v15287_v30 = vpop.f32.mrf.mxu1 }
 0x1c6   : > { %v19048_v17 = vpop.f32.mrf.mxu0 }
 0x1c7   : > { %v19050_v4 = vadd.f32 %v15287_v30, %v2573_v44  ;;  %v19052_v12 = vpop.f32.mrf.mxu1 }
 0x1c8   : > { %v15238_v31 = vpop.f32.mrf.mxu0 }
 0x1c9   : > { %v2576_v21 = vadd.f32 %v15238_v31, %v18895_v43  ;;  %v15290_v29 = vpop.f32.mrf.mxu1 }
 0x1ca   : > { %v2479_v25 = vpop.f32.mrf.mxu0 }
 0x1cb   : > { %v2574_v15 = vadd.f32 %v2479_v25, %v18898_v18  ;;  %v19056_v16 = vadd.f32 %v15290_v29, %v2576_v21  ;;  %v2817_v10 = vpop.f32.mrf.mxu1 }
 0x1cc   : > { %v15239_v6 = vpop.f32.mrf.mxu0 }
 0x1cd   : > { %v2577_v11 = vadd.f32 %v15239_v6, %v18913_v48  ;;  %v19059_v45 = vadd.f32 %v2817_v10, %v2574_v15  ;;  %v15291_v22 = vpop.f32.mrf.mxu1 }
 0x1ce   : > { %v19061_v44 = vpop.f32.mrf.mxu0 }
 0x1cf   : > { %22384 = vst [vmem:[#allocation44_spill] sm:$0xff] %v19061_v44  ;;  %v19063_v30 = vadd.f32 %v15291_v22, %v2577_v11  ;;  %v19065_v56 = vpop.f32.mrf.mxu1 }
 0x1d0   : > { %22385 = vst [vmem:[#allocation45_spill] sm:$0xff] %v19065_v56  ;;  %v15242_v43 = vpop.f32.mrf.mxu0 }
 0x1d1   : > { %v2580_v31 = vadd.f32 %v15242_v43, %v18919_v62  ;;  %v15294_v53 = vpop.f32.mrf.mxu1 }
 0x1d2   : > { %v2495_v18 = vpop.f32.mrf.mxu0 }
 0x1d3   : > { %v2578_v29 = vadd.f32 %v2495_v18, %v18922_v23  ;;  %v19069_v21 = vadd.f32 %v15294_v53, %v2580_v31  ;;  %v2833_v25 = vpop.f32.mrf.mxu1 }
 0x1d4   : > { %v15243_v48 = vpop.f32.mrf.mxu0 }
 0x1d5   : > { %v2581_v15 = vadd.f32 %v15243_v48, %v18937_v60  ;;  %v19072_v10 = vadd.f32 %v2833_v25, %v2578_v29  ;;  %v15295_v6 = vpop.f32.mrf.mxu1 }
 0x1d6   : > { %v19074_v11 = vpop.f32.mrf.mxu0 }
 0x1d7   : > { %22386 = vst [vmem:[#allocation40_spill] sm:$0xff] %v19074_v11  ;;  %v19076_v22 = vadd.f32 %v15295_v6, %v2581_v15  ;;  %v19078_v63 = vpop.f32.mrf.mxu1  ;;  %v22216_v15 = vmov 0  }
 0x1d8   : > { %22387 = vst [vmem:[#allocation43_spill] sm:$0xff] %v19078_v63  ;;  %v15246_v62 = vpop.f32.mrf.mxu0  ;;  %4757 = vmatprep.subr.bf16.mxu1 %v22216_v15 }
 0x1d9   : > { %v2584_v43 = vadd.f32 %v15246_v62, %v18945_v51  ;;  %v15298_v32 = vpop.f32.mrf.mxu1 }
 0x1da   : > { %v2511_v23 = vpop.f32.mrf.mxu0 }
 0x1db   : > { %v2582_v53 = vadd.f32 %v2511_v23, %v18948_v46  ;;  %v19082_v31 = vadd.f32 %v15298_v32, %v2584_v43  ;;  %v2849_v18 = vpop.f32.mrf.mxu1 }
 0x1dc   : > { %v15247_v60 = vpop.f32.mrf.mxu0 }
 0x1dd   : > { %v2585_v29 = vadd.f32 %v15247_v60, %v18957_v50  ;;  %v19085_v25 = vadd.f32 %v2849_v18, %v2582_v53  ;;  %v15299_v48 = vpop.f32.mrf.mxu1 }
 0x1de   : > { %v19088_v6 = vpop.f32.mrf.mxu0 }
 0x1df   : > { %22388 = vst [vmem:[#allocation46_spill] sm:$0xff] %v19088_v6  ;;  %v19090_v63 = vadd.f32 %v15299_v48, %v2585_v29  ;;  %v19092_v51 = vpop.f32.mrf.mxu1 }
 0x1e0   : > { %22389 = vst [vmem:[#allocation47_spill] sm:$0xff] %v19092_v51  ;;  %v15250_v62 = vpop.f32.mrf.mxu0 }
 0x1e1   : > { %v2588_v46 = vadd.f32 %v15250_v62, %v18965_v36  ;;  %v15302_v32 = vpop.f32.mrf.mxu1 }
 0x1e2   : > { %v2527_v43 = vpop.f32.mrf.mxu0 }
 0x1e3   : > { %v2586_v23 = vadd.f32 %v2527_v43, %v18968_v2  ;;  %v19096_v50 = vadd.f32 %v15302_v32, %v2588_v46  ;;  %v2865_v53 = vpop.f32.mrf.mxu1 }
 0x1e4   : > { %v15251_v18 = vpop.f32.mrf.mxu0 }
 0x1e5   : > { %v2589_v60 = vadd.f32 %v15251_v18, %v18975_v8  ;;  %v19099_v15 = vadd.f32 %v2865_v53, %v2586_v23  ;;  %v15303_v6 = vpop.f32.mrf.mxu1 }
 0x1e6   : > { %v19101_v29 = vpop.f32.mrf.mxu0 }
 0x1e7   : > { %22390 = vst [vmem:[#allocation48_spill] sm:$0xff] %v19101_v29  ;;  %v19103_v48 = vadd.f32 %v15303_v6, %v2589_v60  ;;  %v19105_v51 = vpop.f32.mrf.mxu1 }
 0x1e8   : > { %22391 = vst [vmem:[#allocation29_spill] sm:$0xff] %v19105_v51  ;;  %v15254_v36 = vpop.f32.mrf.mxu0 }
 0x1e9   : > { %v2592_v62 = vadd.f32 %v15254_v36, %v18983_v24  ;;  %v15306_v11 = vpop.f32.mrf.mxu1 }
 0x1ea   : > { %v2543_v2 = vpop.f32.mrf.mxu0 }
 0x1eb   : > { %v2590_v46 = vadd.f32 %v2543_v2, %v18986_v35  ;;  %v19109_v32 = vadd.f32 %v15306_v11, %v2592_v62  ;;  %v2881_v43 = vpop.f32.mrf.mxu1 }
 0x1ec   : > { %v15255_v8 = vpop.f32.mrf.mxu0 }
 0x1ed   : > { %v2593_v23 = vadd.f32 %v15255_v8, %v18992_v39  ;;  %v19112_v53 = vadd.f32 %v2881_v43, %v2590_v46  ;;  %v15307_v18 = vpop.f32.mrf.mxu1 }
 0x1ee   : > { %v19114_v6 = vpop.f32.mrf.mxu0 }
 0x1ef   : > { %22392 = vst [vmem:[#allocation19_spill] sm:$0xff] %v19114_v6  ;;  %v19116_v60 = vadd.f32 %v15307_v18, %v2593_v23  ;;  %v19118_v51 = vpop.f32.mrf.mxu1 }
 0x1f0   : > { %22393 = vst [vmem:[#allocation22_spill] sm:$0xff] %v19118_v51  ;;  %v15326_v24 = vpop.f32.mrf.mxu0 }
 0x1f1   : > { %v19121_v36 = vadd.f32 %v15326_v24, %v19000_v37  ;;  %v19123_v35 = vpop.f32.mrf.mxu1 }
 0x1f2   : > { %v3216_v11 = vpop.f32.mrf.mxu0 }
 0x1f3   : > { %v19126_v62 = vadd.f32 %v3216_v11, %v19003_v57  ;;  %v19128_v39 = vpop.f32.mrf.mxu1 }
 0x1f4   : > { %v15327_v2 = vpop.f32.mrf.mxu0 }
 0x1f5   : > { %v19131_v46 = vadd.f32 %v15327_v2, %v19009_v38  ;;  %v19135_v8 = vpop.f32.mrf.mxu1 }
 0x1f6   : > { %v19133_v43 = vpop.f32.mrf.mxu0 }
 0x1f7   : > { %v19140_v18 = vpop.f32.mrf.mxu1 }
 0x1f8   : > { %v15330_v23 = vpop.f32.mrf.mxu0 }
 0x1f9   : > { %v19138_v37 = vadd.f32 %v15330_v23, %v19016_v27  ;;  %v19148_v38 = vpop.f32.mrf.mxu1 }
 0x1fa   : > { %v3232_v24 = vpop.f32.mrf.mxu0 }
 0x1fb   : > { %v19143_v57 = vadd.f32 %v3232_v24, %v19019_v52  ;;  %v19155_v27 = vpop.f32.mrf.mxu1 }
 0x1fc   : > { %v15331_v11 = vpop.f32.mrf.mxu0 }
 0x1fd   : > { %v19146_v51 = vadd.f32 %v15331_v11, %v19024_v1  ;;  %v22218_v1 = vmov 0.0   ;;  %v19164_v11 = vpop.f32.mrf.mxu1 }
 0x1fe   : > { %v19150_v2 = vpop.f32.mrf.mxu0  ;;  %15464 = vmatprep.subr.bf16.mxu0 %v22218_v1 }
 0x200   : > { %v15334_v6 = vpop.f32.mrf.mxu0 }
 0x201   : > { %v19153_v29 = vadd.f32 %v15334_v6, %v19030_v9  ;;  %v19171_v6 = vpop.f32.mrf.mxu1 }
 0x202   : > { %v3248_v23 = vpop.f32.mrf.mxu0 }
 0x203   : > { %v19158_v58 = vadd.f32 %v3248_v23, %v19033_v26 }
 0x204   : > { %v15335_v52 = vpop.f32.mrf.mxu0 }
 0x205   : > { %v19161_v24 = vadd.f32 %v15335_v52, %v19037_v33  ;;  %v19179_v52 = vpop.f32.mrf.mxu1 }
 0x206   : > { %v19166_v0 = vpop.f32.mrf.mxu0 }
 0x208   : > { %v15338_v56 = vpop.f32.mrf.mxu0 }
 0x209   : > { %v19169_v9 = vadd.f32 %v15338_v56, %v19043_v42  ;;  %v19186_v56 = vpop.f32.mrf.mxu1 }
 0x20a   : > { %v3264_v44 = vpop.f32.mrf.mxu0 }
 0x20b   : > { %22394 = vst [vmem:[#allocation20_spill] sm:$0xff] %v19169_v9  ;;  %v19174_v26 = vadd.f32 %v3264_v44, %v19046_v34 }
 0x20c   : > { %v15339_v23 = vpop.f32.mrf.mxu0 }
 0x20d   : > { %v19177_v33 = vadd.f32 %v15339_v23, %v19050_v4  ;;  %v19194_v4 = vpop.f32.mrf.mxu1 }
 0x20e   : > { %v19181_v1 = vpop.f32.mrf.mxu0 }
 0x20f   : > { %22395 = vst [vmem:[#allocation30_spill] sm:$0xff] %v19177_v33  ;;  %22396 = vst [vmem:[#allocation23_spill] sm:$0xff] %v19181_v1  ;;  %v22401_v33 = vmov 0.0   ;;  %v19203_v1 = vpop.f32.mrf.mxu1 }
 0x210   : > { %v15342_v49 = vpop.f32.mrf.mxu0  ;;  %15468 = vmatprep.mubr.msk.bf16.mxu0 %vm17421_vm6, %v22401_v33 }
 0x211   : > { %v19184_v20 = vadd.f32 %v15342_v49, %v19056_v16 }
 0x212   : > { %v3280_v42 = vpop.f32.mrf.mxu0 }
 0x213   : > { %22397 = vst [vmem:[#allocation21_spill] sm:$0xff] %v19184_v20  ;;  %v19189_v9 = vadd.f32 %v3280_v42, %v19059_v45  ;;  %v16826_v20 = vld [vmem:[#allocation5 + $0x4] ss:$12 sps:$4 sm:$0xff]  }
 0x214   : > { %v15343_v34 = vpop.f32.mrf.mxu0  ;;  %4789 = vmatprep.mubr.bf16.mxu1 %v16826_v20 }
 0x215   : > { %22398 = vst [vmem:[#allocation32_spill] sm:$0xff] %v19189_v9  ;;  %v19192_v44 = vadd.f32 %v15343_v34, %v19063_v30 }
 0x216   : > { %v19196_v23 = vpop.f32.mrf.mxu0 }
 0x217   : > { %22399 = vst [vmem:[#allocation26_spill] sm:$0xff] %v19192_v44  ;;  %22400 = vst [vmem:[#allocation34_spill] sm:$0xff] %v19196_v23  ;;  %v19211_v44 = vpop.f32.mrf.mxu1 }
 0x218   : > { %v15346_v49 = vpop.f32.mrf.mxu0 }
 0x219   : > { %v19201_v16 = vadd.f32 %v15346_v49, %v19069_v21  ;;  %v19218_v49 = vpop.f32.mrf.mxu1 }
 0x21a   : > { %v3296_v45 = vpop.f32.mrf.mxu0 }
 0x21b   : > { %22402 = vst [vmem:[#allocation24_spill] sm:$0xff] %v19201_v16  ;;  %v19206_v42 = vadd.f32 %v3296_v45, %v19072_v10 }
 0x21c   : > { %v15347_v30 = vpop.f32.mrf.mxu0 }
 0x21d   : > { %v19209_v34 = vadd.f32 %v15347_v30, %v19076_v22  ;;  %v19226_v22 = vpop.f32.mrf.mxu1 }
 0x21e   : > { %v19213_v23 = vpop.f32.mrf.mxu0 }
 0x21f   : > { %22403 = vst [vmem:[#allocation49_spill] sm:$0xff] %v19209_v34 }
 0x220   : > { %v15350_v33 = vpop.f32.mrf.mxu0 }
 0x221   : > { %v19216_v21 = vadd.f32 %v15350_v33, %v19082_v31  ;;  %v19233_v31 = vpop.f32.mrf.mxu1 }
 0x222   : > { %v3312_v16 = vpop.f32.mrf.mxu0 }
 0x223   : > { %22404 = vst [vmem:[#allocation50_spill] sm:$0xff] %v19216_v21  ;;  %v19221_v9 = vadd.f32 %v3312_v16, %v19085_v25 }
 0x224   : > { %v15351_v10 = vpop.f32.mrf.mxu0 }
 0x225   : > { %v19224_v20 = vadd.f32 %v15351_v10, %v19090_v63  ;;  %v19241_v63 = vpop.f32.mrf.mxu1 }
 0x226   : > { %v19228_v45 = vpop.f32.mrf.mxu0 }
 0x227   : > { %22405 = vst [vmem:[#allocation51_spill] sm:$0xff] %v19224_v20  ;;  %22406 = vst [vmem:[#allocation52_spill] sm:$0xff] %v19228_v45  ;;  %v2088_v45 = vadd.f32 %v18816_v40, %v18812_v13  ;;  %v3832_v40 = vadd.f32 %v19123_v35, %v19121_v36 }
 0x228   : > { %v15354_v30 = vpop.f32.mrf.mxu0 }
 0x229   : > { %v19231_v34 = vadd.f32 %v15354_v30, %v19096_v50  ;;  %v19250_v30 = vpop.f32.mrf.mxu1 }
 0x22a   : > { %v3328_v33 = vpop.f32.mrf.mxu0 }
 0x22b   : > { %22407 = vst [vmem:[#allocation53_spill] sm:$0xff] %v19231_v34  ;;  %v19236_v21 = vadd.f32 %v3328_v33, %v19099_v15  ;;  %v2559_v15 = vadd.f32 %v19006_v3, %v2088_v45 }
 0x22c   : > { %v15355_v25 = vpop.f32.mrf.mxu0 }
 0x22d   : > { %v19239_v16 = vadd.f32 %v15355_v25, %v19103_v48  ;;  %v2897_v13 = vadd.f32 %v19011_v54, %v2559_v15  ;;  %v19277_v54 = vld [vmem:[%s22167_s2] ss:$0 sm:$0xff] }
 0x22e   : > { %v19243_v10 = vpop.f32.mrf.mxu0 }
 0x22f   : > { %22408 = vst [vmem:[#allocation54_spill] sm:$0xff] %v19239_v16  ;;  %22409 = vst [vmem:[#allocation55_spill] sm:$0xff] %v19243_v10  ;;  %v19259_v16 = vpop.f32.mrf.mxu1 }
 0x230   : > { %v15358_v20 = vpop.f32.mrf.mxu0 }
 0x231   : > { %v19248_v50 = vadd.f32 %v15358_v20, %v19109_v32  ;;  %v2092_v32 = vadd.f32 %v18843_v55, %v18839_v28  ;;  %v19272_v45 = vpop.f32.mrf.mxu1  ;;  %v3833_v28 = vadd.f32 %v19135_v8, %v19131_v46  ;;  %v2096_v8 = vadd.f32 %v18867_v19, %v18863_v7 }
 0x232   : > { %v3344_v34 = vpop.f32.mrf.mxu0 }
 0x233   : > { %v19254_v33 = vadd.f32 %v3344_v34, %v19112_v53  ;;  %v3830_v53 = vadd.f32 %v19128_v39, %v19126_v62  ;;  %v3360_v34 = vadd.f32 %v19133_v43, %v2897_v13  ;;  %v2563_v20 = vadd.f32 %v19022_v61, %v2092_v32  ;;  %v19284_v15 = vpop.f32.mrf.mxu1 }
 0x234   : > { %v15359_v48 = vpop.f32.mrf.mxu0  ;;  %v3836_v13 = vadd.f32 %v19148_v38, %v19138_v37  ;;  %v2567_v37 = vadd.f32 %v19035_v5, %v2096_v8  ;;  %v3837_v38 = vadd.f32 %v19164_v11, %v19146_v51  ;;  %v3840_v11 = vadd.f32 %v19179_v52, %v19153_v29 }
 0x235   : > { %v19257_v25 = vadd.f32 %v15359_v48, %v19116_v60  ;;  %v3831_v62 = vadd.f32 %v19140_v18, %v3360_v34  ;;  %v2901_v61 = vadd.f32 %v19026_v41, %v2563_v20  ;;  %v3834_v18 = vadd.f32 %v19155_v27, %v19143_v57 }
 0x236   : > { %v19261_v10 = vpop.f32.mrf.mxu0  ;;  %v2905_v5 = vadd.f32 %v19039_v59, %v2567_v37  ;;  %v3841_v52 = vadd.f32 %v19194_v4, %v19161_v24  ;;  %v22410_v4 = vld [vmem:[#allocation20_spill] sm:$0xff] }
 0x238   : > { %v15430_v3 = vpop.f32.mrf.mxu0 }
 0x239   : > { %v4170_v60 = vadd.f32 %v15430_v3, %v3832_v40  ;;  %v3364_v3 = vadd.f32 %v19150_v2, %v2901_v61 }
 0x23a   : > { %v4025_v36 = vpop.f32.mrf.mxu0 }
 0x23b   : > { %v4168_v55 = vadd.f32 %v4025_v36, %v3830_v53  ;;  %v4213_v39 = vadd.f32 %v19277_v54, %v4170_v60  ;;  %v19299_v36 = vpop.f32.mrf.mxu1 }
 0x23c   : > { %v15431_v35 = vpop.f32.mrf.mxu0 }
 0x23d   : > { %v4171_v43 = vadd.f32 %v15431_v35, %v3833_v28  ;;  %v4211_v40 = vadd.f32 %v19277_v54, %v4168_v55  ;;  %v4249_v53 = vmax.f32 %v4213_v39, 0.0  ;;  %v3835_v55 = vadd.f32 %v19171_v6, %v3364_v3 }
 0x23e   : > { %v4028_v48 = vpop.f32.mrf.mxu0  ;;  %v2100_v6 = vadd.f32 %v18891_v14, %v18887_v47 }
 0x23f   : > { %v4214_v32 = vadd.f32 %v19277_v54, %v4171_v43  ;;  %v4169_v46 = vadd.f32 %v4028_v48, %v3831_v62  ;;  %v4247_v7 = vmax.f32 %v4211_v40, 0.0  ;;  %v19308_v43 = vpop.f32.mrf.mxu1  ;;  %v3838_v40 = vadd.f32 %v19186_v56, %v19158_v58 }
 0x240   : > { %v15434_v41 = vpop.f32.mrf.mxu0  ;;  %v2571_v29 = vadd.f32 %v19048_v17, %v2100_v6  ;;  %v22415_v6 = vld [vmem:[#allocation30_spill] sm:$0xff] }
 0x241   : > { %v4250_v34 = vmax.f32 %v4214_v32, 0.0  ;;  %v4212_v60 = vadd.f32 %v19277_v54, %v4169_v46  ;;  %v4174_v20 = vadd.f32 %v15434_v41, %v3836_v13  ;;  %v3368_v32 = vadd.f32 %v19166_v0, %v2905_v5  ;;  %v19323_v41 = vpop.f32.mrf.mxu1 }
 0x242   : > { %v4041_v28 = vpop.f32.mrf.mxu0  ;;  %v2909_v17 = vadd.f32 %v19052_v12, %v2571_v29 }
 0x243   : > { %v19301_v19 = vpack.c.bf16 %v4250_v34, %v4249_v53  ;;  %v4248_v57 = vmax.f32 %v4212_v60, 0.0  ;;  %v4172_v27 = vadd.f32 %v4041_v28, %v3834_v18  ;;  %v4217_v62 = vadd.f32 %v19277_v54, %v4174_v20 }
 0x244   : > { %v15435_v2 = vpop.f32.mrf.mxu0  ;;  %v3839_v34 = vadd.f32 %v19203_v1, %v3368_v32  ;;  %v3844_v28 = vadd.f32 %v19211_v44, %v22410_v4  ;;  %v22412_v1 = vld [vmem:[#allocation31_spill] sm:$0xff]  ;;  %v22414_v44 = vld [vmem:[#allocation44_spill] sm:$0xff] }
 0x245   : > { %v19304_v35 = vpack.c.bf16 %v4248_v57, %v4247_v7  ;;  %v4175_v39 = vadd.f32 %v15435_v2, %v3837_v38  ;;  %v4215_v61 = vadd.f32 %v19277_v54, %v4172_v27  ;;  %v4253_v46 = vmax.f32 %v4217_v62, 0.0  ;;  %v19332_v38 = vpop.f32.mrf.mxu1  ;;  %v22411_v2 = vld [vmem:[#allocation28_spill] sm:$0xff] }
 0x246   : > { %v4044_v51 = vpop.f32.mrf.mxu0  ;;  %v3842_v62 = vadd.f32 %v19218_v49, %v19174_v26 }
 0x247   : > { %v4218_v48 = vadd.f32 %v19277_v54, %v4175_v39  ;;  %v4173_v13 = vadd.f32 %v4044_v51, %v3835_v55  ;;  %v4251_v47 = vmax.f32 %v4215_v61, 0.0  ;;  %v2104_v55 = vadd.f32 %v22412_v1, %v22411_v2  ;;  %v22413_v39 = vld [vmem:[#allocation23_spill] sm:$0xff]  ;;  %v19347_v32 = vpop.f32.mrf.mxu1 }
 0x248   : > { %v15438_v59 = vpop.f32.mrf.mxu0  ;;  %v3372_v5 = vadd.f32 %v22413_v39, %v2909_v17 }
 0x249   : > { %v4254_v8 = vmax.f32 %v4218_v48, 0.0  ;;  %v4216_v18 = vadd.f32 %v19277_v54, %v4173_v13  ;;  %v4178_v3 = vadd.f32 %v15438_v59, %v3840_v11  ;;  %v2575_v13 = vadd.f32 %v22414_v44, %v2104_v55 }
 0x24a   : > { %v4057_v53 = vpop.f32.mrf.mxu0 }
 0x24b   : > { %v19325_v14 = vpack.c.bf16 %v4254_v8, %v4253_v46  ;;  %v4252_v58 = vmax.f32 %v4216_v18, 0.0  ;;  %v4176_v56 = vadd.f32 %v4057_v53, %v3838_v40  ;;  %v4221_v20 = vadd.f32 %v19277_v54, %v4178_v3 }
 0x24c   : > { %v15439_v0 = vpop.f32.mrf.mxu0  ;;  %v3845_v40 = vadd.f32 %v19226_v22, %v22415_v6  ;;  %v3843_v3 = vadd.f32 %v19233_v31, %v3372_v5  ;;  %v22419_v31 = vld [vmem:[#allocation36_spill] sm:$0xff] }
 0x24d   : > { %v19328_v60 = vpack.c.bf16 %v4252_v58, %v4251_v47  ;;  %v4179_v37 = vadd.f32 %v15439_v0, %v3841_v52  ;;  %v4219_v7 = vadd.f32 %v19277_v54, %v4176_v56  ;;  %v4257_v51 = vmax.f32 %v4221_v20, 0.0  ;;  %v22416_v47 = vld [vmem:[#allocation45_spill] sm:$0xff]  ;;  %v19356_v56 = vpop.f32.mrf.mxu1 }
 0x24e   : > { %v4060_v24 = vpop.f32.mrf.mxu0  ;;  %v2913_v58 = vadd.f32 %v22416_v47, %v2575_v13  ;;  %v22417_v0 = vld [vmem:[#allocation21_spill] sm:$0xff] }
 0x24f   : > { %v4222_v57 = vadd.f32 %v19277_v54, %v4179_v37  ;;  %v4177_v27 = vadd.f32 %v4060_v24, %v3839_v34  ;;  %v4255_v46 = vmax.f32 %v4219_v7, 0.0  ;;  %v3848_v34 = vadd.f32 %v19241_v63, %v22417_v0  ;;  %v22418_v24 = vld [vmem:[#allocation35_spill] sm:$0xff]  ;;  %v22422_v63 = vld [vmem:[#allocation40_spill] sm:$0xff]  ;;  %v22427_v0 = vld [vmem:[#allocation33_spill] sm:$0xff] }
 0x250   : > { %v15442_v12 = vpop.f32.mrf.mxu0  ;;  %v2108_v4 = vadd.f32 %v22419_v31, %v22418_v24 }
 0x251   : > { %v4258_v11 = vmax.f32 %v4222_v57, 0.0  ;;  %v4220_v61 = vadd.f32 %v19277_v54, %v4177_v27  ;;  %v4182_v48 = vadd.f32 %v15442_v12, %v3844_v28  ;;  %v22420_v28 = vld [vmem:[#allocation32_spill] sm:$0xff]  ;;  %v22421_v57 = vld [vmem:[#allocation34_spill] sm:$0xff] }
 0x252   : > { %v4073_v59 = vpop.f32.mrf.mxu0  ;;  %v3846_v7 = vadd.f32 %v19250_v30, %v22420_v28  ;;  %v3376_v27 = vadd.f32 %v22421_v57, %v2913_v58  ;;  %v2579_v5 = vadd.f32 %v22422_v63, %v2108_v4  ;;  %v22423_v12 = vld [vmem:[#allocation26_spill] sm:$0xff] }
 0x253   : > { %v19349_v8 = vpack.c.bf16 %v4258_v11, %v4257_v51  ;;  %v4256_v26 = vmax.f32 %v4220_v61, 0.0  ;;  %v4180_v49 = vadd.f32 %v4073_v59, %v3842_v62  ;;  %v4225_v52 = vadd.f32 %v19277_v54, %v4182_v48  ;;  %v19371_v11 = vpop.f32.mrf.mxu1 }
 0x254   : > { %v15443_v18 = vpop.f32.mrf.mxu0  ;;  %v3849_v51 = vadd.f32 %v19259_v16, %v22423_v12 }
 0x255   : > { %v19352_v29 = vpack.c.bf16 %v4256_v26, %v4255_v46  ;;  %v4183_v53 = vadd.f32 %v15443_v18, %v3845_v40  ;;  %v4223_v20 = vadd.f32 %v19277_v54, %v4180_v49  ;;  %v4261_v1 = vmax.f32 %v4225_v52, 0.0  ;;  %v22424_v49 = vld [vmem:[#allocation43_spill] sm:$0xff] }
 0x256   : > { %v4076_v22 = vpop.f32.mrf.mxu0  ;;  %v3847_v40 = vadd.f32 %v19272_v45, %v3376_v27  ;;  %v2917_v18 = vadd.f32 %v22424_v49, %v2579_v5  ;;  %v22425_v52 = vmov 0   ;;  %v22430_v27 = vld [vmem:[#allocation49_spill] sm:$0xff]  ;;  %v22435_v49 = vld [vmem:[#allocation52_spill] sm:$0xff] }
 0x257   : > { %v4226_v37 = vadd.f32 %v19277_v54, %v4183_v53  ;;  %v4181_v17 = vadd.f32 %v4076_v22, %v3843_v3  ;;  %v4259_v48 = vmax.f32 %v4223_v20, 0.0  ;;  %v19376_v3 = vpop.f32.mrf.mxu1  ;;  %v22426_v53 = vld [vmem:[#allocation24_spill] sm:$0xff] }
 0x258   : > { %v15446_v2 = vpop.f32.mrf.mxu0  ;;  %v3852_v47 = vadd.f32 %v19284_v15, %v22426_v53  ;;  %v22429_v15 = vld [vmem:[#allocation46_spill] sm:$0xff] }
 0x259   : > { %v4262_v55 = vmax.f32 %v4226_v37, 0.0  ;;  %v4224_v62 = vadd.f32 %v19277_v54, %v4181_v17  ;;  %v4186_v39 = vadd.f32 %v15446_v2, %v3848_v34  ;;  %v22428_v34 = vld [vmem:[#allocation37_spill] sm:$0xff]  ;;  %v3850_v37 = vadd.f32 %v19299_v36, %v19206_v42 }
 0x25a   : > { %v4089_v61 = vpop.f32.mrf.mxu0  ;;  %v2112_v20 = vadd.f32 %v22428_v34, %v22427_v0  ;;  %v3380_v17 = vadd.f32 %v19213_v23, %v2917_v18  ;;  %v3853_v2 = vadd.f32 %v19308_v43, %v22430_v27  ;;  %v22431_v43 = vld [vmem:[#allocation47_spill] sm:$0xff]  ;;  %v22438_v34 = vld [vmem:[#allocation48_spill] sm:$0xff] }
 0x25b   : > { %v4372_v44 = vpack.c.bf16 %v4262_v55, %v4261_v1  ;;  %v4260_v13 = vmax.f32 %v4224_v62, 0.0  ;;  %v4184_v30 = vadd.f32 %v4089_v61, %v3846_v7  ;;  %v4229_v46 = vadd.f32 %v19277_v54, %v4186_v39  ;;  %v3799_v1 = vpop.f32.mrf.mxu1 }
 0x25c   : > { %v15447_v6 = vpop.f32.mrf.mxu0  ;;  %v2583_v57 = vadd.f32 %v22429_v15, %v2112_v20  ;;  %v3851_v63 = vadd.f32 %v19323_v41, %v3380_v17 }
 0x25d   : > { %v4371_v59 = vpack.c.bf16 %v4260_v13, %v4259_v48  ;;  %v4187_v26 = vadd.f32 %v15447_v6, %v3849_v51  ;;  %4758 = vmatpush1.bf16.msra.mxu1 %v4372_v44  ;;  %v4227_v58 = vadd.f32 %v19277_v54, %v4184_v30  ;;  %v4265_v31 = vmax.f32 %v4229_v46, 0.0  ;;  %v15407_v48 = vpop.f32.mrf.mxu1  ;;  %v22432_v13 = vld [vmem:[#allocation50_spill] sm:$0xff]  ;;  %v22434_v46 = vld [vmem:[#allocation39_spill] sm:$0xff] }
 0x25e   : > { %v4092_v16 = vpop.f32.mrf.mxu0  ;;  %4759 = vmatprep.subr.bf16.mxu1 %v22425_v52  ;;  %v2921_v61 = vadd.f32 %v22431_v43, %v2583_v57  ;;  %v3856_v30 = vadd.f32 %v19332_v38, %v22432_v13  ;;  %v22436_v38 = vld [vmem:[#allocation27_spill] sm:$0xff]  ;;  %v22443_v43 = vld [vmem:[#allocation42_spill] sm:$0xff] }
 0x25f   : > { %v4230_v22 = vadd.f32 %v19277_v54, %v4187_v26  ;;  %v4185_v45 = vadd.f32 %v4092_v16, %v3847_v40  ;;  %v4263_v62 = vmax.f32 %v4227_v58, 0.0  ;;  %v22444_v13 = vld [vmem:[#allocation55_spill] sm:$0xff] }
 0x260   : > { %v15450_v24 = vpop.f32.mrf.mxu0  ;;  %v3384_v18 = vadd.f32 %v22435_v49, %v2921_v61 }
 0x261   : > { %v4266_v4 = vmax.f32 %v4230_v22, 0.0  ;;  %v4228_v28 = vadd.f32 %v19277_v54, %v4185_v45  ;;  %v4190_v7 = vadd.f32 %v15450_v24, %v3852_v47  ;;  %4760 = vmatpush1.bf16.msra.mxu1 %v4371_v59  ;;  %v22433_v59 = vld [vmem:[#allocation38_spill] sm:$0xff]  ;;  %v22437_v45 = vld [vmem:[#allocation25_spill] sm:$0xff]  ;;  %v3802_v24 = vpop.f32.mrf.mxu1 }
 0x262   : > { %v4105_v55 = vpop.f32.mrf.mxu0  ;;  %4761 = vmatprep.subr.bf16.mxu1 %v22425_v52  ;;  %v2116_v26 = vadd.f32 %v22434_v46, %v22433_v59  ;;  %v1311_v0 = vadd.f32 %v22437_v45, %v22436_v38  ;;  %v3855_v57 = vadd.f32 %v19371_v11, %v3384_v18 }
 0x263   : > { %v19393_v42 = vpack.c.bf16 %v4266_v4, %v4265_v31  ;;  %v4264_v23 = vmax.f32 %v4228_v28, 0.0  ;;  %v4188_v36 = vadd.f32 %v4105_v55, %v3850_v37  ;;  %v4233_v12 = vadd.f32 %v19277_v54, %v4190_v7  ;;  %v22439_v37 = vld [vmem:[#allocation51_spill] sm:$0xff]  ;;  %v22440_v7 = vld [vmem:[#allocation41_spill] sm:$0xff] }
 0x264   : > { %v15451_v39 = vpop.f32.mrf.mxu0  ;;  %v2587_v20 = vadd.f32 %v22438_v34, %v2116_v26  ;;  %v3857_v17 = vadd.f32 %v19356_v56, %v22439_v37  ;;  %v1657_v15 = vadd.f32 %v22440_v7, %v1311_v0  ;;  %v22441_v56 = vld [vmem:[#allocation29_spill] sm:$0xff]  ;;  %v22446_v26 = vld [vmem:[#allocation54_spill] sm:$0xff] }
 0x265   : > { %v19396_v5 = vpack.c.bf16 %v4264_v23, %v4263_v62  ;;  %v4191_v51 = vadd.f32 %v15451_v39, %v3853_v2  ;;  %4762 = vmatpush1.bf16.msra.mxu1 %v19349_v8  ;;  %v4231_v6 = vadd.f32 %v19277_v54, %v4188_v36  ;;  %v3854_v8 = vadd.f32 %v19347_v32, %v19221_v9  ;;  %v15410_v23 = vpop.f32.mrf.mxu1  ;;  %v22442_v39 = vld [vmem:[#allocation53_spill] sm:$0xff] }
 0x266   : > { %v4108_v44 = vpop.f32.mrf.mxu0  ;;  %4763 = vmatprep.subr.bf16.mxu1 %v22425_v52  ;;  %v4269_v53 = vmax.f32 %v4233_v12, 0.0  ;;  %v2925_v62 = vadd.f32 %v22441_v56, %v2587_v20  ;;  %v2120_v61 = vadd.f32 %v22443_v43, %v1657_v15  ;;  %v3864_v20 = vadd.f32 %v15410_v23, %v19248_v50 }
 0x267   : > { %v4234_v41 = vadd.f32 %v19277_v54, %v4191_v51  ;;  %v4189_v40 = vadd.f32 %v4108_v44, %v3851_v63  ;;  %v4267_v32 = vmax.f32 %v4231_v6, 0.0  ;;  %v3860_v63 = vadd.f32 %v19376_v3, %v22442_v39  ;;  %v22445_v3 = vld [vmem:[#allocation19_spill] sm:$0xff]  ;;  %v3815_v49 = vpop.f32.mrf.mxu1 }
 0x268   : > { %v15454_v16 = vpop.f32.mrf.mxu0  ;;  %v3858_v44 = vadd.f32 %v3799_v1, %v19236_v21  ;;  %v2591_v46 = vadd.f32 %v22445_v3, %v2120_v61  ;;  %v16838_v3 = vld [vmem:[#allocation5 + $0x4c] ss:$12 sps:$4 sm:$0xff]  }
 0x269   : > { %v4270_v47 = vmax.f32 %v4234_v41, 0.0  ;;  %v4232_v58 = vadd.f32 %v19277_v54, %v4189_v40  ;;  %v4194_v22 = vadd.f32 %v15454_v16, %v3856_v30  ;;  %4764 = vmatpush1.bf16.msra.mxu1 %v19352_v29  ;;  %v15411_v34 = vpop.f32.mrf.mxu1 }
 0x26a   : > { %v4121_v9 = vpop.f32.mrf.mxu0  ;;  %4765 = vmatprep.subr.bf16.mxu1 %v22425_v52 }
 0x26b   : > { %v19419_v31 = vpack.c.bf16 %v4270_v47, %v4269_v53  ;;  %v4268_v4 = vmax.f32 %v4232_v58, 0.0  ;;  %v4192_v28 = vadd.f32 %v4121_v9, %v3854_v8  ;;  %v4237_v2 = vadd.f32 %v19277_v54, %v4194_v22  ;;  %v3818_v50 = vpop.f32.mrf.mxu1 }
 0x26c   : > { %v15455_v29 = vpop.f32.mrf.mxu0  ;;  %v3861_v8 = vadd.f32 %v15407_v48, %v22446_v26  ;;  %v16847_v26 = vld [vmem:[#allocation5 + $0x80] ss:$12 sps:$4 sm:$0xff]  }
 0x26d   : > { %v19423_v27 = vpack.c.bf16 %v4268_v4, %v4267_v32  ;;  %v4195_v55 = vadd.f32 %v15455_v29, %v3857_v17  ;;  %4766 = vmatpush1.bf16.msra.mxu1 %v19325_v14  ;;  %v4235_v12 = vadd.f32 %v19277_v54, %v4192_v28  ;;  %v3388_v14 = vadd.f32 %v22444_v13, %v2925_v62 }
 0x26e   : > { %v4124_v36 = vpop.f32.mrf.mxu0  ;;  %4767 = vmatprep.subr.bf16.mxu1 %v22425_v52  ;;  %v4273_v6 = vmax.f32 %v4237_v2, 0.0  ;;  %v3865_v29 = vadd.f32 %v15411_v34, %v19257_v25  ;;  %v16863_v34 = vld [vmem:[#allocation5 + $0xe0] ss:$12 sps:$4 sm:$0xff]  }
 0x26f   : > { %v4238_v11 = vadd.f32 %v19277_v54, %v4195_v55  ;;  %v4193_v51 = vadd.f32 %v4124_v36, %v3855_v57  ;;  %v4271_v16 = vmax.f32 %v4235_v12, 0.0  ;;  %v3859_v58 = vadd.f32 %v3802_v24, %v3388_v14 }
 0x270   : > { %v15458_v30 = vpop.f32.mrf.mxu0  ;;  %v3862_v24 = vadd.f32 %v3815_v49, %v19254_v33  ;;  %v16904_v49 = vld [vmem:[%s22169_s4 + $0x78] sm:$0xff]  }
 0x271   : > { %v4274_v41 = vmax.f32 %v4238_v11, 0.0  ;;  %v4236_v40 = vadd.f32 %v19277_v54, %v4193_v51  ;;  %v4198_v59 = vadd.f32 %v15458_v30, %v3860_v63  ;;  %4768 = vmatpush1.bf16.msra.mxu1 %v19328_v60  ;;  %v22447_v60 = vld [vmem:[#allocation22_spill] sm:$0xff]  ;;  %v22448_v30 = vmov 0.0  }
 0x272   : > { %v4137_v18 = vpop.f32.mrf.mxu0  ;;  %4769 = vmatprep.subr.bf16.mxu1 %v22425_v52  ;;  %v2929_v0 = vadd.f32 %v22447_v60, %v2591_v46  ;;  %v16836_v46 = vld [vmem:[#allocation5 + $0x48] ss:$12 sps:$4 sm:$0xff]   ;;  %v16854_v60 = vld [vmem:[#allocation5 + $0xac] ss:$12 sps:$4 sm:$0xff]  }
 0x273   : > { %v4378_v21 = vpack.c.bf16 %v4274_v41, %v4273_v6  ;;  %v4272_v1 = vmax.f32 %v4236_v40, 0.0  ;;  %v4196_v53 = vadd.f32 %v4137_v18, %v3858_v44  ;;  %v4241_v38 = vadd.f32 %v19277_v54, %v4198_v59  ;;  %v16827_v6 = vld [vmem:[#allocation5 + $0x8] ss:$12 sps:$4 sm:$0xff]   ;;  %v16835_v41 = vld [vmem:[#allocation5 + $0x38] ss:$12 sps:$4 sm:$0xff]   ;;  %v16905_v18 = vld [vmem:[%s22169_s4 + $0x38] sm:$0xff]  }
 0x274   : > { %v15459_v47 = vpop.f32.mrf.mxu0  ;;  %v3392_v32 = vadd.f32 %v19261_v10, %v2929_v0  ;;  %v16830_v40 = vld [vmem:[#allocation5 + $0x1c] ss:$12 sps:$4 sm:$0xff]  }
 0x275   : > { %v4377_v22 = vpack.c.bf16 %v4272_v1, %v4271_v16  ;;  %v4199_v45 = vadd.f32 %v15459_v47, %v3861_v8  ;;  %4770 = vmatpush1.bf16.msra.mxu1 %v19301_v19  ;;  %v4239_v37 = vadd.f32 %v19277_v54, %v4196_v53  ;;  %v4277_v28 = vmax.f32 %v4241_v38, 0.0  ;;  %v16839_v59 = vld [vmem:[#allocation5 + $0x50] ss:$12 sps:$4 sm:$0xff]   ;;  %v16906_v16 = vld [vmem:[%s22169_s4 + $0x30] sm:$0xff]  }
 0x276   : > { %v4140_v48 = vpop.f32.mrf.mxu0  ;;  %4771 = vmatprep.subr.bf16.mxu1 %v22425_v52  ;;  %v3863_v10 = vadd.f32 %v3818_v50, %v3392_v32  ;;  %v16842_v8 = vld [vmem:[#allocation5 + $0x64] ss:$12 sps:$4 sm:$0xff]   ;;  %v16846_v53 = vld [vmem:[#allocation5 + $0x7c] ss:$12 sps:$4 sm:$0xff]   ;;  %v16870_v50 = vld [vmem:[#allocation5 + $0x10c] ss:$12 sps:$4 sm:$0xff]  }
 0x277   : > { %v4242_v17 = vadd.f32 %v19277_v54, %v4199_v45  ;;  %v4197_v9 = vadd.f32 %v4140_v48, %v3859_v58  ;;  %v4275_v2 = vmax.f32 %v4239_v37, 0.0  ;;  %v16851_v1 = vld [vmem:[#allocation5 + $0x98] ss:$12 sps:$4 sm:$0xff]   ;;  %v16855_v58 = vld [vmem:[#allocation5 + $0xb0] ss:$12 sps:$4 sm:$0xff]  }
 0x278   : > { %v15462_v4 = vpop.f32.mrf.mxu0  ;;  %v16844_v47 = vld [vmem:[#allocation5 + $0x78] ss:$12 sps:$4 sm:$0xff]   ;;  %v16848_v38 = vld [vmem:[#allocation5 + $0x90] ss:$12 sps:$4 sm:$0xff]   ;;  %v16859_v45 = vld [vmem:[#allocation5 + $0xc8] ss:$12 sps:$4 sm:$0xff]  }
 0x279   : > { %v4278_v19 = vmax.f32 %v4242_v17, 0.0  ;;  %v4240_v7 = vadd.f32 %v19277_v54, %v4197_v9  ;;  %v4202_v15 = vadd.f32 %v15462_v4, %v3864_v20  ;;  %4772 = vmatpush1.bf16.msra.mxu1 %v19304_v35  ;;  %v16852_v0 = vld [vmem:[#allocation5 + $0xa8] ss:$12 sps:$4 sm:$0xff]   ;;  %v16858_v48 = vld [vmem:[#allocation5 + $0xc4] ss:$12 sps:$4 sm:$0xff]   ;;  %v16907_v9 = vld [vmem:[%s22169_s4 + $0x28] sm:$0xff]  }
 0x27a   : > { %v4153_v57 = vpop.f32.mrf.mxu0  ;;  %4773 = vmatprep.subr.bf16.mxu1 %v22425_v52  ;;  %v16856_v20 = vld [vmem:[#allocation5 + $0xc0] ss:$12 sps:$4 sm:$0xff]   ;;  %v16867_v37 = vld [vmem:[#allocation5 + $0xf8] ss:$12 sps:$4 sm:$0xff]   ;;  %v16862_v17 = vld [vmem:[#allocation5 + $0xdc] ss:$12 sps:$4 sm:$0xff]  }
 0x27b   : > { %v4380_v55 = vpack.c.bf16 %v4278_v19, %v4277_v28  ;;  %v4276_v56 = vmax.f32 %v4240_v7, 0.0  ;;  %v4200_v33 = vadd.f32 %v4153_v57, %v3862_v24  ;;  %v4245_v36 = vadd.f32 %v19277_v54, %v4202_v15  ;;  %v16860_v24 = vld [vmem:[#allocation5 + $0xd8] ss:$12 sps:$4 sm:$0xff]   ;;  %v16871_v32 = vld [vmem:[#allocation5 + $0x110] ss:$12 sps:$4 sm:$0xff]  }
 0x27c   : > { %v15463_v62 = vpop.f32.mrf.mxu0  ;;  %v16866_v4 = vld [vmem:[#allocation5 + $0xf4] ss:$12 sps:$4 sm:$0xff]   ;;  %v16908_v19 = vld [vmem:[%s22169_s4 + $0x70] sm:$0xff]   ;;  %v16910_v7 = vld [vmem:[%s22169_s4 + $0x18] sm:$0xff]  }
 0x27d   : > { %v4379_v23 = vpack.c.bf16 %v4276_v56, %v4275_v2  ;;  %v4203_v39 = vadd.f32 %v15463_v62, %v3865_v29  ;;  %4774 = vmatpush2.bf16.msra.mxu1 %v4380_v55  ;;  %v4243_v25 = vadd.f32 %v19277_v54, %v4200_v33  ;;  %v4281_v11 = vmax.f32 %v4245_v36, 0.0  ;;  %v16909_v28 = vld [vmem:[%s22169_s4 + $0x20] sm:$0xff]   ;;  %v16864_v15 = vld [vmem:[#allocation5 + $0xf0] ss:$12 sps:$4 sm:$0xff]   ;;  %v16911_v57 = vld [vmem:[%s22169_s4 + $0x10] sm:$0xff]  }
 0x27e   : > { %v4156_v63 = vpop.f32.mrf.mxu0  ;;  %4775 = vmatprep.subr.bf16.mxu1 %v22425_v52  ;;  %v16875_v29 = vld [vmem:[#allocation5 + $0x128] ss:$12 sps:$4 sm:$0xff]   ;;  %v16912_v2 = vld [vmem:[%s22169_s4 + $0x68] sm:$0xff]   ;;  %v16919_v36 = vld [vmem:[%s22169_s4 + $0x58] sm:$0xff]  }
 0x27f   : > { %v4246_v35 = vadd.f32 %v19277_v54, %v4203_v39  ;;  %v4201_v12 = vadd.f32 %v4156_v63, %v3863_v10  ;;  %v4279_v61 = vmax.f32 %v4243_v25, 0.0  ;;  %v16914_v55 = vld [vmem:[%s22169_s4 + $0x8] sm:$0xff]   ;;  %v16915_v56 = vld [vmem:[%s22169_s4 + $0x60] sm:$0xff]   ;;  %v16874_v10 = vld [vmem:[#allocation5 + $0x124] ss:$12 sps:$4 sm:$0xff]  }
 0x280   : > { %v16868_v33 = vld [vmem:[#allocation5 + $0x108] ss:$12 sps:$4 sm:$0xff]   ;;  %v16879_v62 = vld [vmem:[#allocation5 + $0x140] ss:$12 sps:$4 sm:$0xff]   ;;  %v16883_v25 = vld [vmem:[#allocation5 + $0x158] ss:$12 sps:$4 sm:$0xff]  }
 0x281   : > { %v4282_v51 = vmax.f32 %v4246_v35, 0.0  ;;  %v4244_v43 = vadd.f32 %v19277_v54, %v4201_v12  ;;  %4776 = vmatpush2.bf16.msra.mxu1 %v4379_v23  ;;  %v16831_v54 = vld [vmem:[#allocation5 + $0x20] ss:$12 sps:$4 sm:$0xff]   ;;  %v16916_v23 = vld [vmem:[%s22169_s4] sm:$0xff]   ;;  %v16921_v39 = vld [vmem:[%s22169_s4 + $0x50] sm:$0xff]  }
 0x282   : > { %4777 = vmatprep.subr.bf16.mxu1 %v22425_v52  ;;  %v16872_v63 = vld [vmem:[#allocation5 + $0x120] ss:$12 sps:$4 sm:$0xff]   ;;  %v16878_v35 = vld [vmem:[#allocation5 + $0x13c] ss:$12 sps:$4 sm:$0xff]  }
 0x283   : > { %v4382_v44 = vpack.c.bf16 %v4282_v51, %v4281_v11  ;;  %v4280_v13 = vmax.f32 %v4244_v43, 0.0  ;;  %v16924_v12 = vld [vmem:[%s22169_s4 + $0x48] sm:$0xff]   ;;  %v16925_v11 = vld [vmem:[%s22169_s4 + $0x40] sm:$0xff]  }
 0x284   : > { %v16876_v51 = vld [vmem:[#allocation5 + $0x138] ss:$12 sps:$4 sm:$0xff]   ;;  %v16887_v43 = vld [vmem:[#allocation5 + $0x170] ss:$12 sps:$4 sm:$0xff]  }
 0x285   : > { %v4381_v14 = vpack.c.bf16 %v4280_v13, %v4279_v61  ;;  %4778 = vmatpush2.bf16.msra.mxu1 %v4378_v21  ;;  %15465 = vmatpush3.bf16.msra.mxu0 %v4382_v44  ;;  %v16840_v21 = vld [vmem:[#allocation5 + $0x60] ss:$12 sps:$4 sm:$0xff]   ;;  %v16880_v44 = vld [vmem:[#allocation5 + $0x150] ss:$12 sps:$4 sm:$0xff]   ;;  %v16891_v13 = vld [vmem:[#allocation5 + $0x188] ss:$12 sps:$4 sm:$0xff]  }
 0x286   : > { %4779 = vmatprep.subr.bf16.mxu1 %v22425_v52  ;;  %15466 = vmatprep.subr.bf16.mxu0 %v22448_v30  ;;  %v16882_v61 = vld [vmem:[#allocation5 + $0x154] ss:$12 sps:$4 sm:$0xff]  }
 0x289   : > { %4780 = vmatpush2.bf16.msra.mxu1 %v4377_v22  ;;  %15467 = vmatpush3.bf16.msra.mxu0 %v4381_v14  ;;  %v16850_v22 = vld [vmem:[#allocation5 + $0x94] ss:$12 sps:$4 sm:$0xff]   ;;  %v16886_v14 = vld [vmem:[#allocation5 + $0x16c] ss:$12 sps:$4 sm:$0xff]  }
 0x28a   : > { %4781 = vmatprep.subr.bf16.mxu1 %v22425_v52  ;;  %15604 = vmatprep.subr.bf16.mxu0 %v16905_v18 }
 0x28c   : > { %15469 = vmatmul.mubr.msk.bf16.vlgmr.msra.gmra.mxu0 %vm4693_vm7, %v16827_v6  ;;  %v16884_v6 = vld [vmem:[#allocation5 + $0x168] ss:$12 sps:$4 sm:$0xff]  }
 0x28d   : > { %4782 = vmatpush2.bf16.msra.mxu1 %v19419_v31  ;;  %15472 = vmatprep.mubr.msk.bf16.mxu0 %vm17421_vm6, %v22448_v30  ;;  %v16824_v31 = vld [vmem:[#allocation5] ss:$12 sps:$4 sm:$0xff]  }
 0x28e   : > { %4783 = vmatprep.subr.bf16.mxu1 %v22425_v52  ;;  %15605 = vmatpush3.bf16.msra.mxu0 %v16905_v18 }
 0x28f   : > { %15606 = vmatprep.subr.bf16.mxu0 %v16906_v16 }
 0x291   : > { %4784 = vmatpush2.bf16.msra.mxu1 %v19423_v27  ;;  %v16828_v27 = vld [vmem:[#allocation5 + $0x18] ss:$12 sps:$4 sm:$0xff]  }
 0x292   : > { %4785 = vmatprep.subr.bf16.mxu1 %v22425_v52  ;;  %15607 = vmatpush3.bf16.msra.mxu0 %v16906_v16 }
 0x293   : > { %15608 = vmatprep.subr.bf16.mxu0 %v16907_v9 }
 0x294   : > { %15473 = vmatmul.mubr.msk.bf16.gmra.mxu0 %vm4693_vm7, %v16831_v54  ;;  %v16895_v54 = vld [vmem:[#allocation5 + $0x1a0] ss:$12 sps:$4 sm:$0xff]  }
 0x295   : > { %4786 = vmatpush2.bf16.msra.mxu1 %v19393_v42  ;;  %15476 = vmatprep.mubr.msk.bf16.mxu0 %vm17421_vm6, %v22448_v30  ;;  %v16834_v42 = vld [vmem:[#allocation5 + $0x34] ss:$12 sps:$4 sm:$0xff]  }
 0x296   : > { %4787 = vmatprep.subr.bf16.mxu1 %v22425_v52  ;;  %v16832_v52 = vld [vmem:[#allocation5 + $0x30] ss:$12 sps:$4 sm:$0xff]   ;;  %15609 = vmatpush3.bf16.msra.mxu0 %v16907_v9 }
 0x297   : > { %15610 = vmatprep.subr.bf16.mxu0 %v16909_v28 }
 0x299   : > { %4788 = vmatpush2.bf16.msra.mxu1 %v19396_v5  ;;  %v16843_v5 = vld [vmem:[#allocation5 + $0x68] ss:$12 sps:$4 sm:$0xff]  }
 0x29a   : > { %15552 = vmatprep.subr.bf16.mxu1 %v16904_v49  ;;  %15611 = vmatpush3.bf16.msra.mxu0 %v16909_v28 }
 0x29b   : > { %15612 = vmatprep.subr.bf16.mxu0 %v16910_v7 }
 0x29c   : > { %4790 = vmatmul.mubr.bf16.vlgmr.msra.gmra.mxu1 %v16824_v31  ;;  %15477 = vmatmul.mubr.msk.bf16.gmra.mxu0 %vm4693_vm7, %v16835_v41  ;;  %v16890_v31 = vld [vmem:[#allocation5 + $0x184] ss:$12 sps:$4 sm:$0xff]   ;;  %v16888_v41 = vld [vmem:[#allocation5 + $0x180] ss:$12 sps:$4 sm:$0xff]  }
 0x29d   : > { %4797 = vmatprep.mubr.bf16.mxu1 %v16830_v40  ;;  %15480 = vmatprep.mubr.msk.bf16.mxu0 %vm17421_vm6, %v22448_v30  ;;  %v16899_v40 = vld [vmem:[#allocation5 + $0x1b8] ss:$12 sps:$4 sm:$0xff]  }
 0x29e   : > { %15553 = vmatpush3.bf16.msra.mxu1 %v16904_v49  ;;  %15613 = vmatpush3.bf16.msra.mxu0 %v16910_v7 }
 0x29f   : > { %15554 = vmatprep.subr.bf16.mxu1 %v16908_v19  ;;  %15614 = vmatprep.subr.bf16.mxu0 %v16911_v57 }
 0x2a2   : > { %15555 = vmatpush3.bf16.msra.mxu1 %v16908_v19  ;;  %15615 = vmatpush3.bf16.msra.mxu0 %v16911_v57 }
 0x2a3   : > { %15556 = vmatprep.subr.bf16.mxu1 %v16912_v2  ;;  %15616 = vmatprep.subr.bf16.mxu0 %v16914_v55 }
 0x2a4   : > { %4798 = vmatmul.mubr.bf16.gmra.mxu1 %v16828_v27  ;;  %15481 = vmatmul.mubr.msk.bf16.gmra.mxu0 %vm4693_vm7, %v16839_v59  ;;  %v16894_v27 = vld [vmem:[#allocation5 + $0x19c] ss:$12 sps:$4 sm:$0xff]   ;;  %v16892_v59 = vld [vmem:[#allocation5 + $0x198] ss:$12 sps:$4 sm:$0xff]  }
 0x2a5   : > { %4805 = vmatprep.mubr.bf16.mxu1 %v16834_v42  ;;  %15484 = vmatprep.mubr.msk.bf16.mxu0 %vm17421_vm6, %v22448_v30  ;;  %v16903_v42 = vld [vmem:[#allocation5 + $0x1d0] ss:$12 sps:$4 sm:$0xff]  }
 0x2a6   : > { %15557 = vmatpush3.bf16.msra.mxu1 %v16912_v2  ;;  %15617 = vmatpush3.bf16.msra.mxu0 %v16914_v55 }
 0x2a7   : > { %15558 = vmatprep.subr.bf16.mxu1 %v16915_v56  ;;  %15618 = vmatprep.subr.bf16.mxu0 %v16916_v23 }
 0x2aa   : > { %15559 = vmatpush3.bf16.msra.mxu1 %v16915_v56  ;;  %15619 = vmatpush3.bf16.msra.mxu0 %v16916_v23 }
 0x2ab   : > { %15560 = vmatprep.subr.bf16.mxu1 %v16919_v36 }
 0x2ac   : > { %4806 = vmatmul.mubr.bf16.gmra.mxu1 %v16832_v52  ;;  %15485 = vmatmul.mubr.msk.bf16.gmra.mxu0 %vm4693_vm7, %v16843_v5  ;;  %v16898_v52 = vld [vmem:[#allocation5 + $0x1b4] ss:$12 sps:$4 sm:$0xff]   ;;  %v16896_v5 = vld [vmem:[#allocation5 + $0x1b0] ss:$12 sps:$4 sm:$0xff]  }
 0x2ad   : > { %4813 = vmatprep.mubr.bf16.mxu1 %v16838_v3  ;;  %15488 = vmatprep.mubr.msk.bf16.mxu0 %vm17421_vm6, %v22448_v30  ;;  %v16913_v3 = vld [vmem:[#allocation5 + $0x1e8] ss:$0 sps:$4 sm:$0x77]  }
 0x2ae   : > { %15561 = vmatpush3.bf16.msra.mxu1 %v16919_v36 }
 0x2af   : > { %15562 = vmatprep.subr.bf16.mxu1 %v16921_v39 }
 0x2b2   : > { %15563 = vmatpush3.bf16.msra.mxu1 %v16921_v39 }
 0x2b3   : > { %15564 = vmatprep.subr.bf16.mxu1 %v16924_v12 }
 0x2b4   : > { %4814 = vmatmul.mubr.bf16.gmra.mxu1 %v16836_v46  ;;  %15489 = vmatmul.mubr.msk.bf16.gmra.mxu0 %vm4693_vm7, %v16847_v26  ;;  %v16902_v46 = vld [vmem:[#allocation5 + $0x1cc] ss:$12 sps:$4 sm:$0xff]   ;;  %v4363_v26 = vld [vmem:[#allocation5 + $0x1e0] sm:$0x77] }
 0x2b5   : > { %4821 = vmatprep.mubr.bf16.mxu1 %v16842_v8  ;;  %15492 = vmatprep.mubr.msk.bf16.mxu0 %vm17421_vm6, %v22448_v30  ;;  %v16900_v8 = vld [vmem:[#allocation5 + $0x1c8] ss:$12 sps:$4 sm:$0xff]   ;;  %v13153_v49 = vcombine.high %v4363_v26, %v4363_v26  ;;  %v13152_v18 = vcombine.low %v4363_v26, %v4363_v26 }
 0x2b6   : > { %15565 = vmatpush3.bf16.msra.mxu1 %v16924_v12 }
 0x2b7   : > { %15566 = vmatprep.subr.bf16.mxu1 %v16925_v11 }
 0x2ba   : > { %15567 = vmatpush3.bf16.msra.mxu1 %v16925_v11 }
 0x2bc   : > { %4822 = vmatmul.mubr.bf16.gmra.mxu1 %v16840_v21  ;;  %15493 = vmatmul.mubr.msk.bf16.gmra.mxu0 %vm4693_vm7, %v16851_v1 }
 0x2bd   : > { %4829 = vmatprep.mubr.bf16.mxu1 %v16846_v53  ;;  %15496 = vmatprep.mubr.msk.bf16.mxu0 %vm17421_vm6, %v22448_v30 }
 0x2c4   : > { %4830 = vmatmul.mubr.bf16.gmra.mxu1 %v16844_v47  ;;  %15497 = vmatmul.mubr.msk.bf16.gmra.mxu0 %vm4693_vm7, %v16855_v58 }
 0x2c5   : > { %4837 = vmatprep.mubr.bf16.mxu1 %v16850_v22  ;;  %15500 = vmatprep.mubr.msk.bf16.mxu0 %vm17421_vm6, %v22448_v30 }
 0x2cc   : > { %4838 = vmatmul.mubr.bf16.gmra.mxu1 %v16848_v38  ;;  %15501 = vmatmul.mubr.msk.bf16.gmra.mxu0 %vm4693_vm7, %v16859_v45 }
 0x2cd   : > { %4845 = vmatprep.mubr.bf16.mxu1 %v16854_v60  ;;  %15504 = vmatprep.mubr.msk.bf16.mxu0 %vm17421_vm6, %v22448_v30 }
 0x2d4   : > { %4846 = vmatmul.mubr.bf16.gmra.mxu1 %v16852_v0  ;;  %15505 = vmatmul.mubr.msk.bf16.gmra.mxu0 %vm4693_vm7, %v16863_v34  ;;  %v16938_v0 = vld [vmem:[%s22169_s4 + $0xf8] sm:$0xff]  }
 0x2d5   : > { %4853 = vmatprep.mubr.bf16.mxu1 %v16858_v48  ;;  %15508 = vmatprep.mubr.msk.bf16.mxu0 %vm17421_vm6, %v22448_v30 }
 0x2d6   : > { %15708 = vmatprep.subr.bf16.mxu0 %v16938_v0 }
 0x2dc   : > { %4854 = vmatmul.mubr.bf16.gmra.mxu1 %v16856_v20  ;;  %15509 = vmatmul.mubr.msk.bf16.gmra.mxu0 %vm4693_vm7, %v16867_v37 }
 0x2dd   : > { %4861 = vmatprep.mubr.bf16.mxu1 %v16862_v17  ;;  %15512 = vmatprep.mubr.msk.bf16.mxu0 %vm17421_vm6, %v22448_v30 }
 0x2e4   : > { %4862 = vmatmul.mubr.bf16.gmra.mxu1 %v16860_v24  ;;  %15513 = vmatmul.mubr.msk.bf16.gmra.mxu0 %vm4693_vm7, %v16871_v32 }
 0x2e5   : > { %4869 = vmatprep.mubr.bf16.mxu1 %v16866_v4  ;;  %15516 = vmatprep.mubr.msk.bf16.mxu0 %vm17421_vm6, %v22448_v30 }
 0x2ec   : > { %4870 = vmatmul.mubr.bf16.gmra.mxu1 %v16864_v15  ;;  %15517 = vmatmul.mubr.msk.bf16.gmra.mxu0 %vm4693_vm7, %v16875_v29 }
 0x2ed   : > { %4877 = vmatprep.mubr.bf16.mxu1 %v16870_v50  ;;  %15520 = vmatprep.mubr.msk.bf16.mxu0 %vm17421_vm6, %v22448_v30 }
 0x2f4   : > { %4878 = vmatmul.mubr.bf16.gmra.mxu1 %v16868_v33  ;;  %15521 = vmatmul.mubr.msk.bf16.gmra.mxu0 %vm4693_vm7, %v16879_v62  ;;  %v19585_v33 = vld [vmem:[%s22169_s4 + $0xb8] sm:$0xff]  }
 0x2f5   : > { %4885 = vmatprep.mubr.bf16.mxu1 %v16874_v10  ;;  %15524 = vmatprep.mubr.msk.bf16.mxu0 %vm17421_vm6, %v22448_v30 }
 0x2f6   : > { %15656 = vmatprep.subr.bf16.mxu1 %v19585_v33 }
 0x2fc   : > { %4886 = vmatmul.mubr.bf16.gmra.mxu1 %v16872_v63  ;;  %15525 = vmatmul.mubr.msk.bf16.gmra.mxu0 %vm4693_vm7, %v16883_v25 }
 0x2fd   : > { %4893 = vmatprep.mubr.bf16.mxu1 %v16878_v35  ;;  %15528 = vmatprep.mubr.msk.bf16.mxu0 %vm17421_vm6, %v22448_v30 }
 0x304   : > { %4894 = vmatmul.mubr.bf16.gmra.mxu1 %v16876_v51  ;;  %15529 = vmatmul.mubr.msk.bf16.gmra.mxu0 %vm4693_vm7, %v16887_v43 }
 0x305   : > { %4901 = vmatprep.mubr.bf16.mxu1 %v16882_v61  ;;  %15532 = vmatprep.mubr.msk.bf16.mxu0 %vm17421_vm6, %v22448_v30 }
 0x30c   : > { %4902 = vmatmul.mubr.bf16.gmra.mxu1 %v16880_v44  ;;  %15533 = vmatmul.mubr.msk.bf16.gmra.mxu0 %vm4693_vm7, %v16891_v13 }
 0x30d   : > { %4909 = vmatprep.mubr.bf16.mxu1 %v16886_v14  ;;  %15536 = vmatprep.mubr.msk.bf16.mxu0 %vm17421_vm6, %v22448_v30 }
 0x314   : > { %4910 = vmatmul.mubr.bf16.gmra.mxu1 %v16884_v6  ;;  %15537 = vmatmul.mubr.msk.bf16.gmra.mxu0 %vm4693_vm7, %v16895_v54 }
 0x315   : > { %4917 = vmatprep.mubr.bf16.mxu1 %v16890_v31  ;;  %15540 = vmatprep.mubr.msk.bf16.mxu0 %vm17421_vm6, %v22448_v30  ;;  %v16940_v31 = vld [vmem:[%s22169_s4 + $0xf0] sm:$0xff]  }
 0x31c   : > { %4918 = vmatmul.mubr.bf16.gmra.mxu1 %v16888_v41  ;;  %15541 = vmatmul.mubr.msk.bf16.gmra.mxu0 %vm4693_vm7, %v16899_v40 }
 0x31d   : > { %4925 = vmatprep.mubr.bf16.mxu1 %v16894_v27  ;;  %15544 = vmatprep.mubr.msk.bf16.mxu0 %vm17421_vm6, %v22448_v30 }
 0x324   : > { %4926 = vmatmul.mubr.bf16.gmra.mxu1 %v16892_v59  ;;  %15545 = vmatmul.mubr.msk.bf16.gmra.mxu0 %vm4693_vm7, %v16903_v42 }
 0x325   : > { %4933 = vmatprep.mubr.bf16.mxu1 %v16898_v52  ;;  %15548 = vmatprep.mubr.msk.bf16.mxu0 %vm17421_vm6, %v22448_v30 }
 0x32c   : > { %4934 = vmatmul.mubr.bf16.gmra.mxu1 %v16896_v5  ;;  %15549 = vmatmul.mubr.msk.bf16.gmra.mxu0 %vm4693_vm7, %v16913_v3 }
 0x32d   : > { %4941 = vmatprep.mubr.bf16.mxu1 %v16902_v46 }
 0x334   : > { %4942 = vmatmul.mubr.bf16.gmra.mxu1 %v16900_v8 }
 0x335   : > { %4949 = vmatprep.mubr.bf16.mxu1 %v13153_v49 }
 0x33c   : > { %4950 = vmatmul.mubr.bf16.gmra.mxu1 %v13152_v18 }
 0x34c   : > { %v4991_v16 = vpop.f32.mrf.mxu0 }
 0x34e   : > { %v15470_v21 = vpop.f32.mrf.mxu0 }
 0x350   : > { %v4994_v1 = vpop.f32.mrf.mxu0 }
 0x352   : > { %v15471_v53 = vpop.f32.mrf.mxu0 }
 0x354   : > { %v4999_v47 = vpop.f32.mrf.mxu0 }
 0x356   : > { %v15474_v58 = vpop.f32.mrf.mxu0 }
 0x357   : > { %v16942_v58 = vld [vmem:[%s22169_s4 + $0xe8] sm:$0xff]  }
 0x358   : > { %v5002_v22 = vpop.f32.mrf.mxu0 }
 0x35a   : > { %v15475_v38 = vpop.f32.mrf.mxu0 }
 0x35c   : > { %v4791_v45 = vpop.f32.mrf.mxu1  ;;  %v5007_v60 = vpop.f32.mrf.mxu0 }
 0x35d   : > { %v4992_v17 = vadd.f32 %v4991_v16, %v4791_v45 }
 0x35e   : > { %v4793_v34 = vpop.f32.mrf.mxu1  ;;  %v15478_v48 = vpop.f32.mrf.mxu0 }
 0x360   : > { %v4794_v20 = vpop.f32.mrf.mxu1  ;;  %v5010_v37 = vpop.f32.mrf.mxu0 }
 0x361   : > { %v4995_v9 = vadd.f32 %v4994_v1, %v4794_v20 }
 0x362   : > { %v4796_v24 = vpop.f32.mrf.mxu1  ;;  %v15479_v32 = vpop.f32.mrf.mxu0 }
 0x363   : > { %v14049_v4 = vpack.c.bf16 %v4995_v9, %v4992_v17 }
 0x364   : > { %v4799_v28 = vpop.f32.mrf.mxu1  ;;  %v5015_v19 = vpop.f32.mrf.mxu0 }
 0x365   : > { %14050 = vst [vmem:[#allocation2] sm:$0xff] %v14049_v4   ;;  %v5000_v57 = vadd.f32 %v4999_v47, %v4799_v28 }
 0x366   : > { %v4801_v7 = vpop.f32.mrf.mxu1  ;;  %v15482_v15 = vpop.f32.mrf.mxu0 }
 0x368   : > { %v4802_v29 = vpop.f32.mrf.mxu1  ;;  %v5018_v50 = vpop.f32.mrf.mxu0 }
 0x369   : > { %v5003_v2 = vadd.f32 %v5002_v22, %v4802_v29 }
 0x36a   : > { %v4804_v55 = vpop.f32.mrf.mxu1  ;;  %v15483_v56 = vpop.f32.mrf.mxu0 }
 0x36b   : > { %v14054_v62 = vpack.c.bf16 %v5003_v2, %v5000_v57 }
 0x36c   : > { %v4807_v10 = vpop.f32.mrf.mxu1  ;;  %v5363_v23 = vld [vmem:[#allocation2] sm:$0xf]  ;;  %v5364_v36 = vld [vmem:[#allocation2 + $0x4] sm:$0xf]  ;;  %v19587_v39 = vpop.f32.mrf.mxu0 }
 0x36d   : > { %14186 = vst [vmem:[#allocation2 + $0x8] sm:$0xff] %v14054_v62   ;;  %v13233_v63 = vcombine.low %v5363_v23, %v5364_v36  ;;  %v6160_v12 = vld [vmem:[#allocation2] sm:$0xe]  ;;  %v5008_v61 = vadd.f32 %v5007_v60, %v4807_v10 }
 0x36e   : > { %v4809_v25 = vpop.f32.mrf.mxu1  ;;  %v15486_v35 = vpop.f32.mrf.mxu0  ;;  %v13284_v14 = vcombine.low %v6160_v12, %v5364_v36 }
 0x36f   : > { %15620 = vmatprep.mubr.bf16.mxu0 %v13233_v63  ;;  %v5529_v51 = vshll.u32 %v13233_v63, 16  ;;  %v5527_v3 = vshrl.u32 %v13233_v63, 16  ;;  %v16945_v63 = vld [vmem:[%s22169_s4 + $0xd8] sm:$0xff]  }
 0x370   : > { %v4810_v11 = vpop.f32.mrf.mxu1  ;;  %v19590_v43 = vpop.f32.mrf.mxu0  ;;  %v6181_v8 = vrot.slane %v13284_v14, 1 }
 0x371   : > { %v5011_v44 = vadd.f32 %v5010_v37, %v4810_v11  ;;  %v5531_v27 = vrot.slane %v5529_v51, 1  ;;  %v16943_v37 = vld [vmem:[%s22169_s4 + $0xe0] sm:$0xff]  }
 0x372   : > { %v4812_v13 = vpop.f32.mrf.mxu1  ;;  %v15487_v6 = vpop.f32.mrf.mxu0 }
 0x373   : > { %v14059_v54 = vpack.c.bf16 %v5011_v44, %v5008_v61  ;;  %v5532_v1 = vor.u32 %v5531_v27, %v5527_v3  ;;  %v16946_v61 = vld [vmem:[%s22169_s4 + $0xb0] sm:$0xff]  }
 0x374   : > { %v4815_v41 = vpop.f32.mrf.mxu1  ;;  %v16920_v40 = vld [vmem:[#allocation2 + $0x8] sm:$0xff]   ;;  %v19595_v59 = vpop.f32.mrf.mxu0 }
 0x375   : > { %14187 = vst [vmem:[#allocation2 + $0x10] sm:$0xff] %v14059_v54   ;;  %v6497_v42 = vld [vmem:[#allocation2 + $0x8] sm:$0xe]  ;;  %v6498_v52 = vld [vmem:[#allocation2 + $0xc] sm:$0xf]  ;;  %15621 = vmatmul.mubr.bf16.vlgmr.msra.gmra.mxu0 %v16920_v40  ;;  %v5534_v46 = vshll.u32 %v16920_v40, 16  ;;  %v5016_v38 = vadd.f32 %v5015_v19, %v4815_v41 }
 0x376   : > { %v4817_v5 = vpop.f32.mrf.mxu1  ;;  %v15490_v26 = vpop.f32.mrf.mxu0  ;;  %v6182_v49 = vrot.slane %v16920_v40, 1  ;;  %15709 = vmatpush3.bf16.msra.mxu0 %v16938_v0  ;;  %v19597_v18 = vcombine.low %v6497_v42, %v6498_v52  ;;  %v7430_v16 = vld [vmem:[#allocation2 + $0x8] sm:$0xc]  ;;  %v5538_v28 = vshrl.u32 %v16920_v40, 16 }
 0x377   : > { %v5536_v53 = vrot.slane %v5534_v46, 1  ;;  %15710 = vmatprep.subr.bf16.mxu0 %v16940_v31  ;;  %v13377_v48 = vcombine.low %v7430_v16, %v6498_v52  ;;  %v16949_v41 = vld [vmem:[%s22169_s4 + $0xa8] sm:$0xff]  }
 0x378   : > { %v4818_v21 = vpop.f32.mrf.mxu1  ;;  %v19599_v47 = vpop.f32.mrf.mxu0  ;;  %v19605_v22 = vsel %vm1343_vm1, %v6181_v8, %v6182_v49  ;;  %v6982_v17 = vshrl.u32 %v19597_v18, 16  ;;  %v6985_v4 = vshll.u32 %v19597_v18, 16 }
 0x379   : > { %v5019_v45 = vadd.f32 %v5018_v50, %v4818_v21  ;;  %v5537_v0 = vsel %vm687_vm0, %v5532_v1, %v5536_v53  ;;  %v7451_v57 = vrot.slane %v13377_v48, 2  ;;  %v5540_v2 = vor.u32 %v5538_v28, %v5536_v53 }
 0x37a   : > { %v4820_v60 = vpop.f32.mrf.mxu1  ;;  %v15491_v34 = vpop.f32.mrf.mxu0  ;;  %15568 = vmatprep.mubr.bf16.mxu1 %v5537_v0  ;;  %15711 = vmatpush3.bf16.msra.mxu0 %v16940_v31  ;;  %v6984_v35 = vrot.slane %v6982_v17, 1  ;;  %v6987_v12 = vrot.slane %v6985_v4, 2  ;;  %v16952_v4 = vld [vmem:[%s22169_s4 + $0xa0] sm:$0xff]  }
 0x37b   : > { %v14064_v20 = vpack.c.bf16 %v5019_v45, %v5016_v38  ;;  %15712 = vmatprep.subr.bf16.mxu0 %v16942_v58 }
 0x37c   : > { %v4823_v9 = vpop.f32.mrf.mxu1  ;;  %v19612_v24 = vld [vmem:[#allocation2 + $0x10] sm:$0xff]   ;;  %v19614_v32 = vpop.f32.mrf.mxu0  ;;  %v6988_v3 = vor.u32 %v6987_v12, %v6984_v35 }
 0x37d   : > { %14188 = vst [vmem:[#allocation2 + $0x18] sm:$0xff] %v14064_v20   ;;  %v19617_v19 = vld [vmem:[#allocation2 + $0x10] sm:$0xff]   ;;  %15624 = vmatprep.mubr.bf16.mxu0 %v19612_v24  ;;  %v5542_v15 = vshll.u32 %v19612_v24, 16  ;;  %v6184_v50 = vrot.slane %v19612_v24, 1  ;;  %v5024_v11 = vadd.f32 %v19587_v39, %v4823_v9  ;;  %v16951_v20 = vld [vmem:[%s22169_s4 + $0xc8] sm:$0xff]  }
 0x37e   : > { %v4825_v7 = vpop.f32.mrf.mxu1  ;;  %v15494_v29 = vpop.f32.mrf.mxu0  ;;  %15713 = vmatpush3.bf16.msra.mxu0 %v16942_v58  ;;  %v7452_v55 = vrot.slane %v19617_v19, 2  ;;  %v6990_v56 = vshrl.u32 %v19617_v19, 16  ;;  %v6993_v62 = vshll.u32 %v19617_v19, 16  ;;  %v16948_v39 = vld [vmem:[%s22169_s4 + $0xd0] sm:$0xff]   ;;  %v16956_v19 = vld [vmem:[%s22169_s4 + $0x98] sm:$0xff]  }
 0x37f   : > { %v5544_v23 = vrot.slane %v5542_v15, 1  ;;  %15714 = vmatprep.subr.bf16.mxu0 %v16943_v37  ;;  %v19631_v25 = vsel %vm1343_vm1, %v6182_v49, %v6184_v50  ;;  %v7768_v40 = vld [vmem:[#allocation2 + $0x14] sm:$0xf]  ;;  %v8700_v27 = vld [vmem:[#allocation2 + $0x10] sm:$0x8]  ;;  %v5546_v49 = vshrl.u32 %v19612_v24, 16 }
 0x380   : > { %v4826_v10 = vpop.f32.mrf.mxu1  ;;  %v19625_v36 = vpop.f32.mrf.mxu0  ;;  %v19641_v44 = vsel %vm2615_vm3, %v7451_v57, %v7452_v55  ;;  %v6992_v13 = vrot.slane %v6990_v56, 1  ;;  %v6995_v31 = vrot.slane %v6993_v62, 2  ;;  %v13470_v45 = vcombine.low %v8700_v27, %v7768_v40 }
 0x381   : > { %v5027_v51 = vadd.f32 %v19590_v43, %v4826_v10  ;;  %v5545_v6 = vsel %vm687_vm0, %v5540_v2, %v5544_v23  ;;  %v5548_v0 = vor.u32 %v5546_v49, %v5544_v23 }
 0x382   : > { %v4828_v14 = vpop.f32.mrf.mxu1  ;;  %v15495_v54 = vpop.f32.mrf.mxu0  ;;  %15569 = vmatmul.mubr.bf16.vlgmr.msra.gmra.mxu1 %v5545_v6  ;;  %15715 = vmatpush3.bf16.msra.mxu0 %v16943_v37  ;;  %v6996_v46 = vor.u32 %v6995_v31, %v6992_v13  ;;  %v8721_v2 = vrot.slane %v13470_v45, 3 }
 0x383   : > { %v14069_v43 = vpack.c.bf16 %v5027_v51, %v5024_v11  ;;  %15657 = vmatpush3.bf16.msra.mxu1 %v19585_v33  ;;  %15716 = vmatprep.subr.bf16.mxu0 %v16945_v63 }
 0x384   : > { %v4831_v42 = vpop.f32.mrf.mxu1  ;;  %v19650_v52 = vld [vmem:[#allocation2 + $0x18] sm:$0xff]   ;;  %v19652_v5 = vpop.f32.mrf.mxu0  ;;  %15658 = vmatprep.subr.bf16.mxu1 %v16946_v61  ;;  %v19662_v53 = vsel %vm2144_vm2, %v6988_v3, %v6996_v46  ;;  %v16958_v3 = vld [vmem:[%s22169_s4 + $0x90] sm:$0xff]  }
 0x385   : > { %14189 = vst [vmem:[#allocation2 + $0x20] sm:$0xff] %v14069_v43   ;;  %v19655_v26 = vld [vmem:[#allocation2 + $0x18] sm:$0xff]   ;;  %15625 = vmatmul.mubr.bf16.gmra.mxu0 %v19650_v52  ;;  %v5550_v16 = vshll.u32 %v19650_v52, 16  ;;  %v6186_v1 = vrot.slane %v19650_v52, 1  ;;  %22449 = vst [vmem:[#allocation20_spill] sm:$0xff] %v19662_v53  ;;  %v5032_v9 = vadd.f32 %v19595_v59, %v4831_v42  ;;  %v5554_v11 = vshrl.u32 %v19650_v52, 16 }
 0x386   : > { %v4833_v8 = vpop.f32.mrf.mxu1  ;;  %v15498_v21 = vpop.f32.mrf.mxu0  ;;  %15717 = vmatpush3.bf16.msra.mxu0 %v16945_v63  ;;  %v7454_v33 = vrot.slane %v19655_v26, 2  ;;  %v6999_v58 = vshrl.u32 %v19655_v26, 16  ;;  %v7002_v38 = vshll.u32 %v19655_v26, 16  ;;  %v19675_v17 = vld [vmem:[#allocation2 + $0x18] sm:$0xff]  }
 0x387   : > { %v5552_v34 = vrot.slane %v5550_v16, 1  ;;  %15659 = vmatpush3.bf16.msra.mxu1 %v16946_v61  ;;  %15718 = vmatprep.subr.bf16.mxu0 %v16948_v39  ;;  %v19673_v37 = vsel %vm1343_vm1, %v6184_v50, %v6186_v1 }
 0x388   : > { %v4834_v60 = vpop.f32.mrf.mxu1  ;;  %v19667_v48 = vpop.f32.mrf.mxu0  ;;  %15660 = vmatprep.subr.bf16.mxu1 %v16949_v41  ;;  %v19687_v28 = vsel %vm2615_vm3, %v7452_v55, %v7454_v33  ;;  %v7001_v7 = vrot.slane %v6999_v58, 1  ;;  %v7004_v59 = vrot.slane %v7002_v38, 2  ;;  %v8722_v55 = vrot.slane %v19675_v17, 3 }
 0x389   : > { %v5035_v24 = vadd.f32 %v19599_v47, %v4834_v60  ;;  %v5553_v29 = vsel %vm687_vm0, %v5548_v0, %v5552_v34  ;;  %v16955_v47 = vld [vmem:[%s22169_s4 + $0xc0] sm:$0xff]   ;;  %v5556_v43 = vor.u32 %v5554_v11, %v5552_v34 }
 0x38a   : > { %v4836_v15 = vpop.f32.mrf.mxu1  ;;  %v15499_v50 = vpop.f32.mrf.mxu0  ;;  %15572 = vmatprep.mubr.bf16.mxu1 %v5553_v29  ;;  %15719 = vmatpush3.bf16.msra.mxu0 %v16948_v39  ;;  %v7005_v23 = vor.u32 %v7004_v59, %v7001_v7  ;;  %v19706_v35 = vsel %vm3887_vm5, %v8721_v2, %v8722_v55 }
 0x38b   : > { %v14074_v57 = vpack.c.bf16 %v5035_v24, %v5032_v9  ;;  %15661 = vmatpush3.bf16.msra.mxu1 %v16949_v41  ;;  %15720 = vmatprep.subr.bf16.mxu0 %v16951_v20  ;;  %22450 = vst [vmem:[#allocation28_spill] sm:$0xff] %v19706_v35 }
 0x38c   : > { %v4839_v56 = vpop.f32.mrf.mxu1  ;;  %v19697_v62 = vld [vmem:[#allocation2 + $0x20] sm:$0xff]   ;;  %v19699_v10 = vpop.f32.mrf.mxu0  ;;  %15662 = vmatprep.subr.bf16.mxu1 %v16952_v4  ;;  %v19713_v14 = vsel %vm2144_vm2, %v6996_v46, %v7005_v23 }
 0x38d   : > { %14190 = vst [vmem:[#allocation2 + $0x28] sm:$0xff] %v14074_v57   ;;  %v19701_v63 = vld [vmem:[#allocation2 + $0x20] sm:$0xff]   ;;  %15628 = vmatprep.mubr.bf16.mxu0 %v19697_v62  ;;  %v5558_v51 = vshll.u32 %v19697_v62, 16  ;;  %v6188_v13 = vrot.slane %v19697_v62, 1  ;;  %22451 = vst [vmem:[#allocation31_spill] sm:$0xff] %v19713_v14  ;;  %v5040_v42 = vadd.f32 %v19614_v32, %v4839_v56  ;;  %v16961_v32 = vld [vmem:[%s22169_s4 + $0x88] sm:$0xff]  }
 0x38e   : > { %v4841_v12 = vpop.f32.mrf.mxu1  ;;  %v15502_v61 = vpop.f32.mrf.mxu0  ;;  %15721 = vmatpush3.bf16.msra.mxu0 %v16951_v20  ;;  %v7456_v6 = vrot.slane %v19701_v63, 2  ;;  %v7008_v54 = vshrl.u32 %v19701_v63, 16  ;;  %v7011_v39 = vshll.u32 %v19701_v63, 16  ;;  %v5562_v34 = vshrl.u32 %v19697_v62, 16 }
 0x38f   : > { %v5560_v41 = vrot.slane %v5558_v51, 1  ;;  %15663 = vmatpush3.bf16.msra.mxu1 %v16952_v4  ;;  %15722 = vmatprep.subr.bf16.mxu0 %v16955_v47  ;;  %v19721_v27 = vsel %vm1343_vm1, %v6186_v1, %v6188_v13 }
 0x390   : > { %v4842_v31 = vpop.f32.mrf.mxu1  ;;  %v19718_v40 = vpop.f32.mrf.mxu0  ;;  %15664 = vmatprep.subr.bf16.mxu1 %v16956_v19  ;;  %v19731_v46 = vsel %vm2615_vm3, %v7454_v33, %v7456_v6  ;;  %v7010_v8 = vrot.slane %v7008_v54, 1  ;;  %v7013_v1 = vrot.slane %v7011_v39, 2 }
 0x391   : > { %v5043_v52 = vadd.f32 %v19625_v36, %v4842_v31  ;;  %v5561_v16 = vsel %vm687_vm0, %v5556_v43, %v5560_v41  ;;  %v19737_v36 = vld [vmem:[#allocation2 + $0x20] sm:$0xff]   ;;  %v5564_v59 = vor.u32 %v5562_v34, %v5560_v41 }
 0x392   : > { %v4844_v49 = vpop.f32.mrf.mxu1  ;;  %v15503_v21 = vpop.f32.mrf.mxu0  ;;  %15573 = vmatmul.mubr.bf16.gmra.mxu1 %v5561_v16  ;;  %15723 = vmatpush3.bf16.msra.mxu0 %v16955_v47  ;;  %v7014_v45 = vor.u32 %v7013_v1, %v7010_v8  ;;  %v8724_v2 = vrot.slane %v19737_v36, 3 }
 0x393   : > { %v14079_v58 = vpack.c.bf16 %v5043_v52, %v5040_v42  ;;  %15665 = vmatpush3.bf16.msra.mxu1 %v16956_v19 }
 0x394   : > { %v4847_v38 = vpop.f32.mrf.mxu1  ;;  %v19739_v26 = vld [vmem:[#allocation2 + $0x28] sm:$0xff]   ;;  %v19741_v33 = vpop.f32.mrf.mxu0  ;;  %15666 = vmatprep.subr.bf16.mxu1 %v16958_v3  ;;  %v19748_v4 = vsel %vm2144_vm2, %v7005_v23, %v7014_v45  ;;  %v16963_v23 = vld [vmem:[%s22169_s4 + $0x80] sm:$0xff]  }
 0x395   : > { %14191 = vst [vmem:[#allocation2 + $0x30] sm:$0xff] %v14079_v58   ;;  %v16962_v60 = vld [vmem:[#allocation2 + $0x28] sm:$0xff]   ;;  %15629 = vmatmul.mubr.bf16.gmra.mxu0 %v19739_v26  ;;  %v5566_v20 = vshll.u32 %v19739_v26, 16  ;;  %v6190_v24 = vrot.slane %v19739_v26, 1  ;;  %22452 = vst [vmem:[#allocation23_spill] sm:$0xff] %v19748_v4  ;;  %v5048_v56 = vadd.f32 %v19652_v5, %v4847_v38  ;;  %v5570_v52 = vshrl.u32 %v19739_v26, 16 }
 0x396   : > { %v4849_v0 = vpop.f32.mrf.mxu1  ;;  %v15506_v9 = vpop.f32.mrf.mxu0  ;;  %v7458_v7 = vrot.slane %v16962_v60, 2  ;;  %v7017_v15 = vshrl.u32 %v16962_v60, 16  ;;  %v7020_v29 = vshll.u32 %v16962_v60, 16  ;;  %v19765_v39 = vld [vmem:[#allocation2 + $0x28] sm:$0xff]  }
 0x397   : > { %v5568_v57 = vrot.slane %v5566_v20, 1  ;;  %15667 = vmatpush3.bf16.msra.mxu1 %v16958_v3  ;;  %v19753_v19 = vsel %vm1343_vm1, %v6188_v13, %v6190_v24  ;;  %v8726_v26 = vrot.slane %v19765_v39, 3 }
 0x398   : > { %v4850_v50 = vpop.f32.mrf.mxu1  ;;  %v19750_v47 = vpop.f32.mrf.mxu0  ;;  %15668 = vmatprep.subr.bf16.mxu1 %v16961_v32  ;;  %v19762_v63 = vsel %vm2615_vm3, %v7456_v6, %v7458_v7  ;;  %v7019_v12 = vrot.slane %v7017_v15, 1  ;;  %v7022_v13 = vrot.slane %v7020_v29, 2  ;;  %v19772_v6 = vsel %vm3887_vm5, %v8722_v55, %v8724_v2 }
 0x399   : > { %v5051_v62 = vadd.f32 %v19667_v48, %v4850_v50  ;;  %22453 = vst [vmem:[#allocation44_spill] sm:$0xff] %v19762_v63  ;;  %v5569_v51 = vsel %vm687_vm0, %v5564_v59, %v5568_v57  ;;  %22454 = vst [vmem:[#allocation30_spill] sm:$0xff] %v19772_v6 }
 0x39a   : > { %v4852_v11 = vpop.f32.mrf.mxu1  ;;  %v15507_v61 = vpop.f32.mrf.mxu0  ;;  %15576 = vmatprep.mubr.bf16.mxu1 %v5569_v51  ;;  %v7023_v43 = vor.u32 %v7022_v13, %v7019_v12  ;;  %v19803_v13 = vld [vmem:[%s22169_s4 + $0x178] sm:$0xff]  }
 0x39b   : > { %v14084_v54 = vpack.c.bf16 %v5051_v62, %v5048_v56  ;;  %15669 = vmatpush3.bf16.msra.mxu1 %v16961_v32  ;;  %v5572_v32 = vor.u32 %v5570_v52, %v5568_v57  ;;  %15812 = vmatprep.subr.bf16.mxu0 %v19803_v13 }
 0x39c   : > { %v4855_v5 = vpop.f32.mrf.mxu1  ;;  %v16930_v48 = vld [vmem:[#allocation2 + $0x30] sm:$0xff]   ;;  %v19767_v31 = vpop.f32.mrf.mxu0  ;;  %15670 = vmatprep.subr.bf16.mxu1 %v16963_v23  ;;  %v19776_v16 = vsel %vm2144_vm2, %v7014_v45, %v7023_v43 }
 0x39d   : > { %14192 = vst [vmem:[#allocation2 + $0x38] sm:$0xff] %v14084_v54   ;;  %v16964_v41 = vld [vmem:[#allocation2 + $0x30] sm:$0xff]   ;;  %15632 = vmatprep.mubr.bf16.mxu0 %v16930_v48  ;;  %v5574_v3 = vshll.u32 %v16930_v48, 16  ;;  %v6192_v49 = vrot.slane %v16930_v48, 1  ;;  %22455 = vst [vmem:[#allocation45_spill] sm:$0xff] %v19776_v16  ;;  %v5056_v0 = vadd.f32 %v19699_v10, %v4855_v5  ;;  %v19795_v10 = vsel %vm3887_vm5, %v8724_v2, %v8726_v26 }
 0x39e   : > { %v4857_v42 = vpop.f32.mrf.mxu1  ;;  %v15510_v8 = vpop.f32.mrf.mxu0  ;;  %v7460_v21 = vrot.slane %v16964_v41, 2  ;;  %v7026_v1 = vshrl.u32 %v16964_v41, 16  ;;  %v7029_v58 = vshll.u32 %v16964_v41, 16  ;;  %v19783_v60 = vld [vmem:[#allocation2 + $0x30] sm:$0xff]   ;;  %22457 = vst [vmem:[#allocation35_spill] sm:$0xff] %v19795_v10  ;;  %v5578_v12 = vshrl.u32 %v16930_v48, 16 }
 0x39f   : > { %v5576_v55 = vrot.slane %v5574_v3, 1  ;;  %15671 = vmatpush3.bf16.msra.mxu1 %v16963_v23  ;;  %v19781_v38 = vsel %vm1343_vm1, %v6190_v24, %v6192_v49 }
 0x3a0   : > { %v4858_v17 = vpop.f32.mrf.mxu1  ;;  %v19778_v36 = vpop.f32.mrf.mxu0  ;;  %v19789_v34 = vsel %vm2615_vm3, %v7458_v7, %v7460_v21  ;;  %v7028_v20 = vrot.slane %v7026_v1, 1  ;;  %v7031_v50 = vrot.slane %v7029_v58, 2 }
 0x3a1   : > { %v5059_v45 = vadd.f32 %v19718_v40, %v4858_v17  ;;  %22456 = vst [vmem:[#allocation21_spill] sm:$0xff] %v19789_v34  ;;  %v5577_v15 = vsel %vm687_vm0, %v5572_v32, %v5576_v55  ;;  %v8728_v40 = vrot.slane %v19783_v60, 3  ;;  %v5580_v42 = vor.u32 %v5578_v12, %v5576_v55 }
 0x3a2   : > { %v4860_v9 = vpop.f32.mrf.mxu1  ;;  %v15511_v29 = vpop.f32.mrf.mxu0  ;;  %15577 = vmatmul.mubr.bf16.gmra.mxu1 %v5577_v15  ;;  %v7032_v62 = vor.u32 %v7031_v50, %v7028_v20 }
 0x3a3   : > { %v14089_v59 = vpack.c.bf16 %v5059_v45, %v5056_v0 }
 0x3a4   : > { %v4863_v24 = vpop.f32.mrf.mxu1  ;;  %v16931_v57 = vld [vmem:[#allocation2 + $0x38] sm:$0xff]   ;;  %v19792_v56 = vpop.f32.mrf.mxu0  ;;  %v19806_v54 = vsel %vm2144_vm2, %v7023_v43, %v7032_v62  ;;  %v19820_v43 = vsel %vm3887_vm5, %v8726_v26, %v8728_v40 }
 0x3a5   : > { %14193 = vst [vmem:[#allocation2 + $0x40] sm:$0xff] %v14089_v59   ;;  %v19798_v7 = vld [vmem:[#allocation2 + $0x38] sm:$0xff]   ;;  %15633 = vmatmul.mubr.bf16.gmra.mxu0 %v16931_v57  ;;  %v5582_v11 = vshll.u32 %v16931_v57, 16  ;;  %v6194_v61 = vrot.slane %v16931_v57, 1  ;;  %22458 = vst [vmem:[#allocation36_spill] sm:$0xff] %v19806_v54  ;;  %v5064_v1 = vadd.f32 %v19741_v33, %v4863_v24  ;;  %v5586_v29 = vshrl.u32 %v16931_v57, 16 }
 0x3a6   : > { %v4865_v23 = vpop.f32.mrf.mxu1  ;;  %v15514_v51 = vpop.f32.mrf.mxu0  ;;  %v7462_v2 = vrot.slane %v19798_v7, 2  ;;  %v7035_v39 = vshrl.u32 %v19798_v7, 16  ;;  %v7038_v5 = vshll.u32 %v19798_v7, 16  ;;  %v19817_v8 = vld [vmem:[#allocation2 + $0x38] sm:$0xff]   ;;  %22459 = vst [vmem:[#allocation32_spill] sm:$0xff] %v19820_v43 }
 0x3a7   : > { %v5584_v48 = vrot.slane %v5582_v11, 1  ;;  %v19814_v3 = vsel %vm1343_vm1, %v6192_v49, %v6194_v61  ;;  %v22220_v33 = vrot.slane %v19817_v8, 3 }
 0x3a8   : > { %v4866_v41 = vpop.f32.mrf.mxu1  ;;  %v19811_v52 = vpop.f32.mrf.mxu0  ;;  %v19825_v17 = vsel %vm2615_vm3, %v7460_v21, %v7462_v2  ;;  %v7037_v32 = vrot.slane %v7035_v39, 1  ;;  %v7040_v0 = vrot.slane %v7038_v5, 2 }
 0x3a9   : > { %v5067_v58 = vadd.f32 %v19750_v47, %v4866_v41  ;;  %22460 = vst [vmem:[#allocation34_spill] sm:$0xff] %v19825_v17  ;;  %v5585_v60 = vsel %vm687_vm0, %v5580_v42, %v5584_v48  ;;  %v5588_v5 = vor.u32 %v5586_v29, %v5584_v48  ;;  %v19847_v57 = vsel %vm3887_vm5, %v8728_v40, %v22220_v33 }
 0x3aa   : > { %v4868_v55 = vpop.f32.mrf.mxu1  ;;  %v15515_v49 = vpop.f32.mrf.mxu0  ;;  %15580 = vmatprep.mubr.bf16.mxu1 %v5585_v60  ;;  %v7041_v26 = vor.u32 %v7040_v0, %v7037_v32  ;;  %22462 = vst [vmem:[#allocation26_spill] sm:$0xff] %v19847_v57 }
 0x3ab   : > { %v14094_v45 = vpack.c.bf16 %v5067_v58, %v5064_v1 }
 0x3ac   : > { %v4871_v20 = vpop.f32.mrf.mxu1  ;;  %v16932_v9 = vld [vmem:[#allocation2 + $0x40] sm:$0xff]   ;;  %v19828_v15 = vpop.f32.mrf.mxu0  ;;  %v19834_v23 = vsel %vm2144_vm2, %v7032_v62, %v7041_v26 }
 0x3ad   : > { %14194 = vst [vmem:[#allocation2 + $0x48] sm:$0xff] %v14094_v45   ;;  %v19831_v47 = vld [vmem:[#allocation2 + $0x40] sm:$0xff]   ;;  %15636 = vmatprep.mubr.bf16.mxu0 %v16932_v9  ;;  %v5590_v50 = vshll.u32 %v16932_v9, 16  ;;  %v6196_v24 = vrot.slane %v16932_v9, 1  ;;  %22461 = vst [vmem:[#allocation40_spill] sm:$0xff] %v19834_v23  ;;  %v5072_v62 = vadd.f32 %v19767_v31, %v4871_v20 }
 0x3ae   : > { %v4873_v21 = vpop.f32.mrf.mxu1  ;;  %v15518_v59 = vpop.f32.mrf.mxu0  ;;  %v7464_v12 = vrot.slane %v19831_v47, 2  ;;  %v7044_v11 = vshrl.u32 %v19831_v47, 16  ;;  %v7047_v51 = vshll.u32 %v19831_v47, 16  ;;  %v19860_v45 = vld [vmem:[#allocation2 + $0x40] sm:$0xff]  }
 0x3af   : > { %v5592_v41 = vrot.slane %v5590_v50, 1  ;;  %v19842_v1 = vsel %vm1343_vm1, %v6194_v61, %v6196_v24  ;;  %v19858_v61 = vld [vmem:[%s22169_s4 + $0x138] sm:$0xff]   ;;  %v5594_v50 = vshrl.u32 %v16932_v9, 16  ;;  %v8732_v9 = vrot.slane %v19860_v45, 3 }
 0x3b0   : > { %v4874_v39 = vpop.f32.mrf.mxu1  ;;  %v19839_v42 = vpop.f32.mrf.mxu0  ;;  %v19852_v32 = vsel %vm2615_vm3, %v7462_v2, %v7464_v12  ;;  %v7046_v55 = vrot.slane %v7044_v11, 1  ;;  %v7049_v0 = vrot.slane %v7047_v51, 2  ;;  %15760 = vmatprep.subr.bf16.mxu1 %v19858_v61 }
 0x3b1   : > { %v5075_v58 = vadd.f32 %v19778_v36, %v4874_v39  ;;  %22463 = vst [vmem:[#allocation43_spill] sm:$0xff] %v19852_v32  ;;  %v5593_v60 = vsel %vm687_vm0, %v5588_v5, %v5592_v41 }
 0x3b2   : > { %v4876_v48 = vpop.f32.mrf.mxu1  ;;  %v15519_v49 = vpop.f32.mrf.mxu0  ;;  %15581 = vmatmul.mubr.bf16.gmra.mxu1 %v5593_v60  ;;  %v7050_v2 = vor.u32 %v7049_v0, %v7046_v55  ;;  %v5596_v55 = vor.u32 %v5594_v50, %v5592_v41 }
 0x3b3   : > { %v14099_v40 = vpack.c.bf16 %v5075_v58, %v5072_v62 }
 0x3b4   : > { %v4879_v31 = vpop.f32.mrf.mxu1  ;;  %v16933_v36 = vld [vmem:[#allocation2 + $0x48] sm:$0xff]   ;;  %v19862_v20 = vpop.f32.mrf.mxu0  ;;  %v19868_v39 = vsel %vm2144_vm2, %v7041_v26, %v7050_v2 }
 0x3b5   : > { %14195 = vst [vmem:[#allocation2 + $0x50] sm:$0xff] %v14099_v40   ;;  %v19865_v21 = vld [vmem:[#allocation2 + $0x48] sm:$0xff]   ;;  %15637 = vmatmul.mubr.bf16.gmra.mxu0 %v16933_v36  ;;  %v5598_v59 = vshll.u32 %v16933_v36, 16  ;;  %v6198_v51 = vrot.slane %v16933_v36, 1  ;;  %22464 = vst [vmem:[#allocation24_spill] sm:$0xff] %v19868_v39  ;;  %v5080_v40 = vadd.f32 %v19792_v56, %v4879_v31 }
 0x3b6   : > { %v4881_v29 = vpop.f32.mrf.mxu1  ;;  %v15522_v11 = vpop.f32.mrf.mxu0  ;;  %v7466_v5 = vrot.slane %v19865_v21, 2  ;;  %v7053_v62 = vshrl.u32 %v19865_v21, 16  ;;  %v7056_v58 = vshll.u32 %v19865_v21, 16  ;;  %v19885_v57 = vld [vmem:[#allocation2 + $0x48] sm:$0xff]  }
 0x3b7   : > { %v5600_v60 = vrot.slane %v5598_v59, 1  ;;  %v19876_v0 = vsel %vm1343_vm1, %v6196_v24, %v6198_v51 }
 0x3b8   : > { %v4882_v48 = vpop.f32.mrf.mxu1  ;;  %v19873_v49 = vpop.f32.mrf.mxu0  ;;  %v19882_v29 = vsel %vm2615_vm3, %v7464_v12, %v7466_v5  ;;  %v7055_v11 = vrot.slane %v7053_v62, 1  ;;  %v7058_v50 = vrot.slane %v7056_v58, 2  ;;  %v5602_v62 = vshrl.u32 %v16933_v36, 16 }
 0x3b9   : > { %v5083_v26 = vadd.f32 %v19811_v52, %v4882_v48  ;;  %22465 = vst [vmem:[#allocation33_spill] sm:$0xff] %v19882_v29  ;;  %v5601_v30 = vsel %vm687_vm0, %v5596_v55, %v5600_v60  ;;  %v22466_v52 = vrot.slane %v19817_v8, 3  ;;  %v8734_v36 = vrot.slane %v19885_v57, 3 }
 0x3ba   : > { %v4884_v33 = vpop.f32.mrf.mxu1  ;;  %v15523_v41 = vpop.f32.mrf.mxu0  ;;  %15584 = vmatprep.mubr.bf16.mxu1 %v5601_v30  ;;  %v7059_v56 = vor.u32 %v7058_v50, %v7055_v11 }
 0x3bb   : > { %v14104_v59 = vpack.c.bf16 %v5083_v26, %v5080_v40  ;;  %v19892_v12 = vsel %vm3887_vm5, %v22466_v52, %v8732_v9  ;;  %v5604_v41 = vor.u32 %v5602_v62, %v5600_v60 }
 0x3bc   : > { %v4887_v24 = vpop.f32.mrf.mxu1  ;;  %v16934_v43 = vld [vmem:[#allocation2 + $0x50] sm:$0xff]   ;;  %v19887_v45 = vpop.f32.mrf.mxu0  ;;  %22467 = vst [vmem:[#allocation37_spill] sm:$0xff] %v19892_v12  ;;  %v19897_v55 = vsel %vm2144_vm2, %v7050_v2, %v7059_v56 }
 0x3bd   : > { %14196 = vst [vmem:[#allocation2 + $0x58] sm:$0xff] %v14104_v59   ;;  %v19894_v33 = vld [vmem:[#allocation2 + $0x50] sm:$0xff]   ;;  %15640 = vmatprep.mubr.bf16.mxu0 %v16934_v43  ;;  %v5606_v58 = vshll.u32 %v16934_v43, 16  ;;  %v6200_v48 = vrot.slane %v16934_v43, 1  ;;  %22468 = vst [vmem:[#allocation46_spill] sm:$0xff] %v19897_v55 }
 0x3be   : > { %v4889_v31 = vpop.f32.mrf.mxu1  ;;  %v15526_v30 = vpop.f32.mrf.mxu0  ;;  %v7468_v40 = vrot.slane %v19894_v33, 2  ;;  %v7062_v26 = vshrl.u32 %v19894_v33, 16  ;;  %v7065_v8 = vshll.u32 %v19894_v33, 16  ;;  %v17020_v35 = vld [vmem:[#allocation2 + $0x50] sm:$0xff]  }
 0x3bf   : > { %v5608_v50 = vrot.slane %v5606_v58, 1  ;;  %v19905_v52 = vsel %vm1343_vm1, %v6198_v51, %v6200_v48  ;;  %v5088_v31 = vadd.f32 %v19828_v15, %v4887_v24  ;;  %v19917_v15 = vsel %vm3887_vm5, %v8732_v9, %v8734_v36 }
 0x3c0   : > { %v4890_v11 = vpop.f32.mrf.mxu1  ;;  %v19902_v59 = vpop.f32.mrf.mxu0  ;;  %v19911_v30 = vsel %vm2615_vm3, %v7466_v5, %v7468_v40  ;;  %v7064_v12 = vrot.slane %v7062_v26, 1  ;;  %v7067_v62 = vrot.slane %v7065_v8, 2  ;;  %22470 = vst [vmem:[#allocation47_spill] sm:$0xff] %v19917_v15 }
 0x3c1   : > { %v5091_v2 = vadd.f32 %v19839_v42, %v4890_v11  ;;  %22469 = vst [vmem:[#allocation49_spill] sm:$0xff] %v19911_v30  ;;  %v5609_v6 = vsel %vm687_vm0, %v5604_v41, %v5608_v50 }
 0x3c2   : > { %v4892_v10 = vpop.f32.mrf.mxu1  ;;  %v15527_v60 = vpop.f32.mrf.mxu0  ;;  %15585 = vmatmul.mubr.bf16.gmra.mxu1 %v5609_v6  ;;  %v7068_v57 = vor.u32 %v7067_v62, %v7064_v12 }
 0x3c3   : > { %v14109_v58 = vpack.c.bf16 %v5091_v2, %v5088_v31  ;;  %v5610_v10 = vshrl.u32 %v16934_v43, 16 }
 0x3c4   : > { %v4895_v51 = vpop.f32.mrf.mxu1  ;;  %v16935_v55 = vld [vmem:[#allocation2 + $0x58] sm:$0xff]   ;;  %v19914_v39 = vpop.f32.mrf.mxu0  ;;  %v19922_v6 = vsel %vm2144_vm2, %v7059_v56, %v7068_v57 }
 0x3c5   : > { %14197 = vst [vmem:[#allocation2 + $0x60] sm:$0xff] %v14109_v58   ;;  %v19919_v42 = vld [vmem:[#allocation2 + $0x58] sm:$0xff]   ;;  %15641 = vmatmul.mubr.bf16.gmra.mxu0 %v16935_v55  ;;  %v5614_v24 = vshll.u32 %v16935_v55, 16  ;;  %v6202_v8 = vrot.slane %v16935_v55, 1  ;;  %22471 = vst [vmem:[#allocation50_spill] sm:$0xff] %v19922_v6  ;;  %v5612_v31 = vor.u32 %v5610_v10, %v5608_v50  ;;  %v8736_v58 = vrot.slane %v17020_v35, 3 }
 0x3c6   : > { %v4897_v5 = vpop.f32.mrf.mxu1  ;;  %v15530_v26 = vpop.f32.mrf.mxu0  ;;  %v7470_v11 = vrot.slane %v19919_v42, 2  ;;  %v7071_v41 = vshrl.u32 %v19919_v42, 16  ;;  %v7074_v12 = vshll.u32 %v19919_v42, 16  ;;  %v19932_v43 = vld [vmem:[#allocation2 + $0x58] sm:$0xff]   ;;  %v5096_v56 = vadd.f32 %v19862_v20, %v4895_v51 }
 0x3c7   : > { %v5616_v2 = vrot.slane %v5614_v24, 1  ;;  %v19930_v62 = vsel %vm1343_vm1, %v6200_v48, %v6202_v8  ;;  %v19943_v20 = vsel %vm3887_vm5, %v8734_v36, %v8736_v58 }
 0x3c8   : > { %v4898_v9 = vpop.f32.mrf.mxu1  ;;  %v19927_v60 = vpop.f32.mrf.mxu0  ;;  %v19937_v26 = vsel %vm2615_vm3, %v7468_v40, %v7470_v11  ;;  %v7073_v15 = vrot.slane %v7071_v41, 1  ;;  %v7076_v24 = vrot.slane %v7074_v12, 2  ;;  %22473 = vst [vmem:[#allocation39_spill] sm:$0xff] %v19943_v20 }
 0x3c9   : > { %v5099_v5 = vadd.f32 %v19873_v49, %v4898_v9  ;;  %22472 = vst [vmem:[#allocation38_spill] sm:$0xff] %v19937_v26  ;;  %v5617_v50 = vsel %vm687_vm0, %v5612_v31, %v5616_v2  ;;  %v22222_v49 = vrot.slane %v19932_v43, 3 }
 0x3ca   : > { %v4900_v6 = vpop.f32.mrf.mxu1  ;;  %v15531_v10 = vpop.f32.mrf.mxu0  ;;  %15588 = vmatprep.mubr.bf16.mxu1 %v5617_v50  ;;  %v7077_v35 = vor.u32 %v7076_v24, %v7073_v15 }
 0x3cb   : > { %v14114_v23 = vpack.c.bf16 %v5099_v5, %v5096_v56  ;;  %v5618_v6 = vshrl.u32 %v16935_v55, 16  ;;  %v19962_v55 = vsel %vm3887_vm5, %v8736_v58, %v22222_v49 }
 0x3cc   : > { %v4903_v48 = vpop.f32.mrf.mxu1  ;;  %v16936_v30 = vld [vmem:[#allocation2 + $0x60] sm:$0xff]   ;;  %v19940_v29 = vpop.f32.mrf.mxu0  ;;  %v19949_v31 = vsel %vm2144_vm2, %v7068_v57, %v7077_v35  ;;  %22475 = vst [vmem:[#allocation27_spill] sm:$0xff] %v19962_v55 }
 0x3cd   : > { %14198 = vst [vmem:[#allocation2 + $0x68] sm:$0xff] %v14114_v23   ;;  %v19946_v40 = vld [vmem:[#allocation2 + $0x60] sm:$0xff]   ;;  %15644 = vmatprep.mubr.bf16.mxu0 %v16936_v30  ;;  %v5622_v41 = vshll.u32 %v16936_v30, 16  ;;  %v6204_v9 = vrot.slane %v16936_v30, 1  ;;  %22474 = vst [vmem:[#allocation52_spill] sm:$0xff] %v19949_v31  ;;  %v5620_v50 = vor.u32 %v5618_v6, %v5616_v2  ;;  %v5104_v57 = vadd.f32 %v19887_v45, %v4903_v48 }
 0x3ce   : > { %v4905_v51 = vpop.f32.mrf.mxu1  ;;  %v15534_v12 = vpop.f32.mrf.mxu0  ;;  %v7472_v56 = vrot.slane %v19946_v40, 2  ;;  %v7080_v15 = vshrl.u32 %v19946_v40, 16  ;;  %v7083_v36 = vshll.u32 %v19946_v40, 16  ;;  %v19970_v26 = vld [vmem:[#allocation2 + $0x60] sm:$0xff]   ;;  %v5626_v48 = vshrl.u32 %v16936_v30, 16 }
 0x3cf   : > { %v5624_v23 = vrot.slane %v5622_v41, 1  ;;  %v19957_v24 = vsel %vm1343_vm1, %v6202_v8, %v6204_v9  ;;  %v8740_v30 = vrot.slane %v19970_v26, 3 }
 0x3d0   : > { %v4906_v5 = vpop.f32.mrf.mxu1  ;;  %v19954_v10 = vpop.f32.mrf.mxu0  ;;  %v19967_v12 = vsel %vm2615_vm3, %v7470_v11, %v7472_v56  ;;  %v7082_v20 = vrot.slane %v7080_v15, 1  ;;  %v7085_v31 = vrot.slane %v7083_v36, 2 }
 0x3d1   : > { %v5107_v51 = vadd.f32 %v19902_v59, %v4906_v5  ;;  %22476 = vst [vmem:[#allocation25_spill] sm:$0xff] %v19967_v12  ;;  %v5625_v6 = vsel %vm687_vm0, %v5620_v50, %v5624_v23 }
 0x3d2   : > { %v4908_v2 = vpop.f32.mrf.mxu1  ;;  %v15535_v41 = vpop.f32.mrf.mxu0  ;;  %15589 = vmatmul.mubr.bf16.gmra.mxu1 %v5625_v6  ;;  %v7086_v45 = vor.u32 %v7085_v31, %v7082_v20  ;;  %v5628_v20 = vor.u32 %v5626_v48, %v5624_v23 }
 0x3d3   : > { %v14119_v8 = vpack.c.bf16 %v5107_v51, %v5104_v57 }
 0x3d4   : > { %v4911_v54 = vpop.f32.mrf.mxu1  ;;  %v16937_v58 = vld [vmem:[#allocation2 + $0x68] sm:$0xff]   ;;  %v19972_v49 = vpop.f32.mrf.mxu0  ;;  %v19977_v36 = vsel %vm2144_vm2, %v7077_v35, %v7086_v45 }
 0x3d5   : > { %14199 = vst [vmem:[#allocation2 + $0x70] sm:$0xff] %v14119_v8   ;;  %v19974_v59 = vld [vmem:[#allocation2 + $0x68] sm:$0xff]   ;;  %15645 = vmatmul.mubr.bf16.gmra.mxu0 %v16937_v58  ;;  %v5630_v15 = vshll.u32 %v16937_v58, 16  ;;  %v6206_v50 = vrot.slane %v16937_v58, 1  ;;  %22477 = vst [vmem:[#allocation48_spill] sm:$0xff] %v19977_v36 }
 0x3d6   : > { %v4913_v11 = vpop.f32.mrf.mxu1  ;;  %v15538_v5 = vpop.f32.mrf.mxu0  ;;  %v7474_v57 = vrot.slane %v19974_v59, 2  ;;  %v7089_v51 = vshrl.u32 %v19974_v59, 16  ;;  %v7092_v2 = vshll.u32 %v19974_v59, 16  ;;  %v19994_v16 = vld [vmem:[#allocation2 + $0x68] sm:$0xff]  }
 0x3d7   : > { %v5632_v31 = vrot.slane %v5630_v15, 1  ;;  %v19985_v8 = vsel %vm1343_vm1, %v6204_v9, %v6206_v50  ;;  %v5112_v11 = vadd.f32 %v19914_v39, %v4911_v54  ;;  %v22479_v39 = vrot.slane %v19932_v43, 3 }
 0x3d8   : > { %v4914_v6 = vpop.f32.mrf.mxu1  ;;  %v19982_v41 = vpop.f32.mrf.mxu0  ;;  %v19991_v5 = vsel %vm2615_vm3, %v7472_v56, %v7474_v57  ;;  %v7091_v55 = vrot.slane %v7089_v51, 1  ;;  %v7094_v48 = vrot.slane %v7092_v2, 2  ;;  %v5634_v51 = vshrl.u32 %v16937_v58, 16 }
 0x3d9   : > { %v5115_v35 = vadd.f32 %v19927_v60, %v4914_v6  ;;  %22478 = vst [vmem:[#allocation51_spill] sm:$0xff] %v19991_v5  ;;  %v5633_v12 = vsel %vm687_vm0, %v5628_v20, %v5632_v31  ;;  %v20001_v60 = vsel %vm3887_vm5, %v22479_v39, %v8740_v30  ;;  %v8742_v58 = vrot.slane %v19994_v16, 3 }
 0x3da   : > { %v4916_v36 = vpop.f32.mrf.mxu1  ;;  %v15539_v23 = vpop.f32.mrf.mxu0  ;;  %15592 = vmatprep.mubr.bf16.mxu1 %v5633_v12  ;;  %v7095_v54 = vor.u32 %v7094_v48, %v7091_v55  ;;  %22480 = vst [vmem:[#allocation41_spill] sm:$0xff] %v20001_v60 }
 0x3db   : > { %v14124_v15 = vpack.c.bf16 %v5115_v35, %v5112_v11  ;;  %v5636_v23 = vor.u32 %v5634_v51, %v5632_v31 }
 0x3dc   : > { %v4919_v9 = vpop.f32.mrf.mxu1  ;;  %v16939_v32 = vld [vmem:[#allocation2 + $0x70] sm:$0xff]   ;;  %v19996_v26 = vpop.f32.mrf.mxu0  ;;  %v20006_v20 = vsel %vm2144_vm2, %v7086_v45, %v7095_v54 }
 0x3dd   : > { %14200 = vst [vmem:[#allocation2 + $0x78] sm:$0xff] %v14124_v15   ;;  %v20003_v56 = vld [vmem:[#allocation2 + $0x70] sm:$0xff]   ;;  %15648 = vmatprep.mubr.bf16.mxu0 %v16939_v32  ;;  %v5638_v2 = vshll.u32 %v16939_v32, 16  ;;  %v6208_v6 = vrot.slane %v16939_v32, 1  ;;  %22481 = vst [vmem:[#allocation29_spill] sm:$0xff] %v20006_v20 }
 0x3de   : > { %v4921_v36 = vpop.f32.mrf.mxu1  ;;  %v15542_v12 = vpop.f32.mrf.mxu0  ;;  %v7476_v11 = vrot.slane %v20003_v56, 2  ;;  %v7098_v55 = vshrl.u32 %v20003_v56, 16  ;;  %v7101_v43 = vshll.u32 %v20003_v56, 16  ;;  %v20023_v17 = vld [vmem:[#allocation2 + $0x70] sm:$0xff]  }
 0x3df   : > { %v5640_v48 = vrot.slane %v5638_v2, 1  ;;  %v20014_v39 = vsel %vm1343_vm1, %v6206_v50, %v6208_v6  ;;  %v5120_v36 = vadd.f32 %v19940_v29, %v4919_v9 }
 0x3e0   : > { %v4922_v35 = vpop.f32.mrf.mxu1  ;;  %v20011_v15 = vpop.f32.mrf.mxu0  ;;  %v20020_v12 = vsel %vm2615_vm3, %v7474_v57, %v7476_v11  ;;  %v7100_v60 = vrot.slane %v7098_v55, 1  ;;  %v7103_v51 = vrot.slane %v7101_v43, 2 }
 0x3e1   : > { %v5123_v45 = vadd.f32 %v19954_v10, %v4922_v35  ;;  %22482 = vst [vmem:[#allocation53_spill] sm:$0xff] %v20020_v12  ;;  %v5641_v5 = vsel %vm687_vm0, %v5636_v23, %v5640_v48  ;;  %v20028_v10 = vsel %vm3887_vm5, %v8740_v30, %v8742_v58 }
 0x3e2   : > { %v4924_v20 = vpop.f32.mrf.mxu1  ;;  %v15543_v31 = vpop.f32.mrf.mxu0  ;;  %15593 = vmatmul.mubr.bf16.gmra.mxu1 %v5641_v5  ;;  %v7104_v29 = vor.u32 %v7103_v51, %v7100_v60  ;;  %22483 = vst [vmem:[#allocation42_spill] sm:$0xff] %v20028_v10 }
 0x3e3   : > { %v14129_v2 = vpack.c.bf16 %v5123_v45, %v5120_v36  ;;  %v5642_v20 = vshrl.u32 %v16939_v32, 16 }
 0x3e4   : > { %v4927_v50 = vpop.f32.mrf.mxu1  ;;  %v16941_v4 = vld [vmem:[#allocation2 + $0x78] sm:$0xff]   ;;  %v20025_v16 = vpop.f32.mrf.mxu0  ;;  %v20033_v5 = vsel %vm2144_vm2, %v7095_v54, %v7104_v29 }
 0x3e5   : > { %14201 = vst [vmem:[#allocation2 + $0x80] sm:$0xff] %v14129_v2   ;;  %v20030_v57 = vld [vmem:[#allocation2 + $0x78] sm:$0xff]   ;;  %15649 = vmatmul.mubr.bf16.gmra.mxu0 %v16941_v4  ;;  %v5646_v55 = vshll.u32 %v16941_v4, 16  ;;  %v6210_v35 = vrot.slane %v16941_v4, 1  ;;  %22484 = vst [vmem:[#allocation55_spill] sm:$0xff] %v20033_v5  ;;  %v5644_v45 = vor.u32 %v5642_v20, %v5640_v48  ;;  %v5128_v54 = vadd.f32 %v19972_v49, %v4927_v50 }
 0x3e6   : > { %v4929_v9 = vpop.f32.mrf.mxu1  ;;  %v15546_v43 = vpop.f32.mrf.mxu0  ;;  %v7478_v23 = vrot.slane %v20030_v57, 2  ;;  %v7107_v36 = vshrl.u32 %v20030_v57, 16  ;;  %v7110_v60 = vshll.u32 %v20030_v57, 16  ;;  %v20043_v32 = vld [vmem:[#allocation2 + $0x78] sm:$0xff]   ;;  %v5650_v50 = vshrl.u32 %v16941_v4, 16 }
 0x3e7   : > { %v5648_v31 = vrot.slane %v5646_v55, 1  ;;  %v20041_v2 = vsel %vm1343_vm1, %v6208_v6, %v6210_v35  ;;  %v8744_v9 = vrot.slane %v20023_v17, 3 }
 0x3e8   : > { %v4930_v30 = vpop.f32.mrf.mxu1  ;;  %v20038_v51 = vpop.f32.mrf.mxu0  ;;  %v20049_v10 = vsel %vm2615_vm3, %v7476_v11, %v7478_v23  ;;  %v7109_v5 = vrot.slane %v7107_v36, 1  ;;  %v7112_v55 = vrot.slane %v7110_v60, 2 }
 0x3e9   : > { %v5131_v43 = vadd.f32 %v19982_v41, %v4930_v30  ;;  %22485 = vst [vmem:[#allocation19_spill] sm:$0xff] %v20049_v10  ;;  %v5649_v48 = vsel %vm687_vm0, %v5644_v45, %v5648_v31  ;;  %v20055_v49 = vsel %vm3887_vm5, %v8742_v58, %v8744_v9  ;;  %v8746_v41 = vrot.slane %v20043_v32, 3 }
 0x3ea   : > { %v4932_v12 = vpop.f32.mrf.mxu1  ;;  %v15547_v20 = vpop.f32.mrf.mxu0  ;;  %15596 = vmatprep.mubr.bf16.mxu1 %v5649_v48  ;;  %v7113_v17 = vor.u32 %v7112_v55, %v7109_v5  ;;  %22486 = vst [vmem:[#allocation54_spill] sm:$0xff] %v20055_v49  ;;  %v5652_v48 = vor.u32 %v5650_v50, %v5648_v31 }
 0x3eb   : > { %v14134_v14 = vpack.c.bf16 %v5131_v43, %v5128_v54  ;;  %v20063_v54 = vld [vmem:[#allocation2 + $0x10] sm:$0xff]  }
 0x3ec   : > { %v4935_v6 = vpop.f32.mrf.mxu1  ;;  %v16947_v34 = vld [vmem:[#allocation2 + $0x80] sm:$0xff]   ;;  %v20052_v63 = vpop.f32.mrf.mxu0  ;;  %v20061_v45 = vsel %vm2144_vm2, %v7104_v29, %v7113_v17  ;;  %v20075_v29 = vsel %vm3887_vm5, %v8744_v9, %v8746_v41 }
 0x3ed   : > { %14202 = vst [vmem:[#allocation2 + $0x88] sm:$0xff] %v14134_v14   ;;  %v20058_v11 = vld [vmem:[#allocation2 + $0x80] sm:$0xff]   ;;  %15652 = vmatprep.mubr.bf16.mxu0 %v16947_v34  ;;  %v5654_v36 = vshll.u32 %v16947_v34, 16  ;;  %v6212_v30 = vrot.slane %v16947_v34, 1  ;;  %22487 = vst [vmem:[#allocation22_spill] sm:$0xff] %v20061_v45 }
 0x3ee   : > { %v4937_v12 = vpop.f32.mrf.mxu1  ;;  %v15550_v60 = vpop.f32.mrf.mxu0  ;;  %v7480_v58 = vrot.slane %v20058_v11, 2  ;;  %v7116_v32 = vshrl.u32 %v20058_v11, 16  ;;  %v7119_v14 = vshll.u32 %v20058_v11, 16  ;;  %22488 = vst [vmem:[#allocation56_spill] sm:$0xff] %v20075_v29 }
 0x3ef   : > { %v5656_v20 = vrot.slane %v5654_v36, 1  ;;  %v20070_v55 = vsel %vm1343_vm1, %v6210_v35, %v6212_v30  ;;  %v20072_v12 = vld [vmem:[#allocation2 + $0x80] sm:$0xff]   ;;  %v5136_v60 = vadd.f32 %v19996_v26, %v4935_v6 }
 0x3f0   : > { %v4938_v43 = vpop.f32.mrf.mxu1  ;;  %v5154_v4 = vpop.f32.mrf.mxu0  ;;  %v20080_v49 = vsel %vm2615_vm3, %v7478_v23, %v7480_v58  ;;  %v7118_v45 = vrot.slane %v7116_v32, 1  ;;  %v7121_v36 = vrot.slane %v7119_v14, 2  ;;  %v22223_v26 = vrot.slane %v20072_v12, 3 }
 0x3f1   : > { %v5139_v5 = vadd.f32 %v20011_v15, %v4938_v43  ;;  %v5657_v31 = vsel %vm687_vm0, %v5652_v48, %v5656_v20  ;;  %v6644_v4 = vrot.slane %v19597_v18, 1  ;;  %v22489_v15 = vrot.slane %v20063_v54, 1 }
 0x3f2   : > { %v4940_v10 = vpop.f32.mrf.mxu1  ;;  %v15551_v50 = vpop.f32.mrf.mxu0  ;;  %15597 = vmatmul.mubr.bf16.gmra.mxu1 %v5657_v31  ;;  %v7122_v29 = vor.u32 %v7121_v36, %v7118_v45 }
 0x3f3   : > { %v14139_v35 = vpack.c.bf16 %v5139_v5, %v5136_v60  ;;  %v6646_v23 = vsel %vm1343_vm1, %v6644_v4, %v22489_v15  ;;  %v17271_v10 = vld [vmem:[#allocation2 + $0x18] sm:$0xff]   ;;  %v5658_v5 = vshrl.u32 %v16947_v34, 16 }
 0x3f4   : > { %v4943_v53 = vpop.f32.mrf.mxu1  ;;  %v20084_v9 = vld [vmem:[#allocation2 + $0x88] sm:$0xff]   ;;  %v6647_v6 = vrot.slane %v17271_v10, 1  ;;  %v20096_v45 = vsel %vm2144_vm2, %v7113_v17, %v7122_v29  ;;  %v20108_v17 = vsel %vm3887_vm5, %v8746_v41, %v22223_v26 }
 0x3f5   : > { %14203 = vst [vmem:[#allocation2 + $0x90] sm:$0xff] %v14139_v35   ;;  %v20090_v32 = vld [vmem:[#allocation2 + $0x88] sm:$0xff]   ;;  %15653 = vmatmul.mubr.bf16.gmra.mxu0 %v20084_v9  ;;  %v5662_v18 = vshll.u32 %v20084_v9, 16  ;;  %v6214_v43 = vrot.slane %v20084_v9, 1  ;;  %v5144_v48 = vadd.f32 %v20025_v16, %v4943_v53  ;;  %v5660_v35 = vor.u32 %v5658_v5, %v5656_v20  ;;  %22490 = vst [vmem:[#allocation57_spill] sm:$0xff] %v20108_v17  ;;  %v17272_v16 = vld [vmem:[#allocation2 + $0x20] sm:$0xff]  }
 0x3f6   : > { %v4945_v14 = vpop.f32.mrf.mxu1  ;;  %15724 = vmatprep.mubr.bf16.mxu0 %v6646_v23  ;;  %v7482_v60 = vrot.slane %v20090_v32, 2  ;;  %v7125_v31 = vshrl.u32 %v20090_v32, 16  ;;  %v7128_v50 = vshll.u32 %v20090_v32, 16  ;;  %v6649_v15 = vrot.slane %v17272_v16, 1  ;;  %v20127_v17 = vld [vmem:[#allocation2 + $0x88] sm:$0xff]  }
 0x3f7   : > { %v5664_v4 = vrot.slane %v5662_v18, 1  ;;  %v20103_v34 = vsel %vm1343_vm1, %v6212_v30, %v6214_v43  ;;  %v16974_v30 = vld [vmem:[%s22169_s4 + $0x170] sm:$0xff]  }
 0x3f8   : > { %v4946_v36 = vpop.f32.mrf.mxu1  ;;  %v20112_v23 = vsel %vm2615_vm3, %v7480_v58, %v7482_v60  ;;  %v7127_v10 = vrot.slane %v7125_v31, 1  ;;  %v7130_v5 = vrot.slane %v7128_v50, 2  ;;  %v22491_v58 = vrot.slane %v20063_v54, 1 }
 0x3f9   : > { %v5147_v53 = vadd.f32 %v20038_v51, %v4946_v36  ;;  %v5665_v14 = vsel %vm687_vm0, %v5660_v35, %v5664_v4  ;;  %v6650_v35 = vsel %vm1343_vm1, %v6647_v6, %v6649_v15 }
 0x3fa   : > { %v4948_v20 = vpop.f32.mrf.mxu1  ;;  %15600 = vmatprep.mubr.bf16.mxu1 %v5665_v14  ;;  %v7131_v36 = vor.u32 %v7130_v5, %v7127_v10  ;;  %v6648_v31 = vsel %vm1343_vm1, %v22491_v58, %v6647_v6  ;;  %v17273_v58 = vld [vmem:[#allocation2 + $0x28] sm:$0xff]  }
 0x3fb   : > { %v14144_v18 = vpack.c.bf16 %v5147_v53, %v5144_v48  ;;  %v5666_v48 = vshrl.u32 %v20084_v9, 16 }
 0x3fc   : > { %v16960_v41 = vld [vmem:[#allocation2 + $0x90] ss:$0 sps:$4 sm:$0x11]   ;;  %v4951_v51 = vpop.f32.mrf.mxu1  ;;  %v20131_v10 = vsel %vm2144_vm2, %v7122_v29, %v7131_v36 }
 0x3fd   : > { %v20118_v26 = vld [vmem:[#allocation2 + $0x90] sm:$0xff]   ;;  %14204 = vst [vmem:[#allocation2 + $0x98] sm:$0xff] %v14144_v18   ;;  %v5152_v50 = vadd.f32 %v20052_v63, %v4951_v51  ;;  %15725 = vmatmul.mubr.bf16.vlgmr.msra.gmra.mxu0 %v6648_v31  ;;  %v5670_v53 = vshll.u32 %v16960_v41, 16  ;;  %v6216_v14 = vrot.slane %v16960_v41, 1  ;;  %v5668_v9 = vor.u32 %v5666_v48, %v5664_v4  ;;  %v16976_v41 = vld [vmem:[%s22169_s4 + $0x168] sm:$0xff]  }
 0x3fe   : > { %v4953_v16 = vpop.f32.mrf.mxu1  ;;  %v7484_v20 = vrot.slane %v20118_v26, 2  ;;  %15728 = vmatprep.mubr.bf16.mxu0 %v6650_v35  ;;  %15813 = vmatpush3.bf16.msra.mxu0 %v19803_v13  ;;  %v7134_v6 = vshrl.u32 %v20118_v26, 16  ;;  %v7137_v63 = vshll.u32 %v20118_v26, 16  ;;  %v20135_v5 = vld [vmem:[#allocation2 + $0x90] sm:$0xff]   ;;  %v6651_v31 = vrot.slane %v17273_v58, 1 }
 0x3ff   : > { %v14026_v54 = vpack.c.bf16 %v5152_v50, %v5152_v50  ;;  %v5672_v18 = vrot.slane %v5670_v53, 1  ;;  %15814 = vmatprep.subr.bf16.mxu0 %v16974_v30  ;;  %v20141_v13 = vsel %vm1343_vm1, %v6214_v43, %v6216_v14  ;;  %v17274_v48 = vld [vmem:[#allocation2 + $0x30] sm:$0xff]   ;;  %v8752_v14 = vrot.slane %v20135_v5, 3 }
 0x400   : > { %v4954_v51 = vpop.f32.mrf.mxu1  ;;  %v20146_v29 = vsel %vm2615_vm3, %v7482_v60, %v7484_v20  ;;  %v7136_v35 = vrot.slane %v7134_v6, 1  ;;  %v7139_v4 = vrot.slane %v7137_v63, 2  ;;  %v6653_v53 = vrot.slane %v17274_v48, 1  ;;  %v16978_v60 = vld [vmem:[%s22169_s4 + $0x160] sm:$0xff]   ;;  %v16987_v48 = vld [vmem:[%s22169_s4 + $0x148] sm:$0xff]  }
 0x401   : > { %5362 = vst [vmem:[#allocation2 + $0xa0] sm:$0x7] %v14026_v54  ;;  %v5673_v50 = vsel %vm687_vm0, %v5668_v9, %v5672_v18  ;;  %v8750_v51 = vrot.slane %v20127_v17, 3  ;;  %v22492_v54 = vrot.slane %v20072_v12, 3  ;;  %v6652_v63 = vsel %vm1343_vm1, %v6649_v15, %v6651_v31  ;;  %v16981_v15 = vld [vmem:[%s22169_s4 + $0x158] sm:$0xff]  }
 0x402   : > { %v4955_v16 = vpop.f32.mrf.mxu1  ;;  %15601 = vmatmul.mubr.bf16.gmra.mxu1 %v5673_v50  ;;  %15815 = vmatpush3.bf16.msra.mxu0 %v16974_v30  ;;  %v20150_v43 = vor.u32 %v7139_v4, %v7136_v35  ;;  %v6655_v12 = vrot.slane %v19798_v7, 1  ;;  %v6657_v35 = vrot.slane %v19831_v47, 1  ;;  %v16984_v7 = vld [vmem:[%s22169_s4 + $0x150] sm:$0xff]   ;;  %v16985_v47 = vld [vmem:[%s22169_s4 + $0x128] sm:$0xff]   ;;  %v6659_v50 = vrot.slane %v19865_v21, 1  ;;  %v16990_v21 = vld [vmem:[%s22169_s4 + $0x140] sm:$0xff]  }
 0x403   : > { %15672 = vmatprep.mubr.bf16.mxu1 %v19605_v22  ;;  %15816 = vmatprep.subr.bf16.mxu0 %v16976_v41  ;;  %v20160_v6 = vsel %vm3887_vm5, %v22492_v54, %v8750_v51  ;;  %v20168_v9 = vsel %vm3887_vm5, %v8750_v51, %v8752_v14  ;;  %v6654_v22 = vsel %vm1343_vm1, %v6651_v31, %v6653_v53  ;;  %v6661_v16 = vrot.slane %v19894_v33, 1 }
 0x404   : > { %v20165_v30 = vsel %vm2144_vm2, %v7131_v36, %v20150_v43  ;;  %22493 = vst [vmem:[#allocation58_spill] sm:$0xff] %v20168_v9  ;;  %v20171_v18 = vld [vmem:[#allocation2 + $0x98] sm:$0xff]   ;;  %v16983_v36 = vld [vmem:[%s22169_s4 + $0x130] sm:$0xff]   ;;  %v6656_v31 = vsel %vm1343_vm1, %v6653_v53, %v6655_v12  ;;  %v16988_v53 = vld [vmem:[%s22169_s4 + $0x120] sm:$0xff]   ;;  %v6660_v51 = vsel %vm1343_vm1, %v6657_v35, %v6659_v50  ;;  %v6665_v54 = vrot.slane %v19946_v40, 1 }
 0x405   : > { %15729 = vmatmul.mubr.bf16.gmra.mxu0 %v6652_v63  ;;  %v6662_v33 = vsel %vm1343_vm1, %v6659_v50, %v6661_v16  ;;  %v16993_v63 = vld [vmem:[%s22169_s4 + $0x108] sm:$0xff]   ;;  %v6669_v40 = vrot.slane %v20003_v56, 1  ;;  %v6671_v56 = vrot.slane %v20030_v57, 1  ;;  %v22498_v50 = vld [vmem:[#allocation44_spill] sm:$0xff] }
 0x406   : > { %15732 = vmatprep.mubr.bf16.mxu0 %v6654_v22  ;;  %15817 = vmatpush3.bf16.msra.mxu0 %v16976_v41  ;;  %v8754_v41 = vrot.slane %v20171_v18, 3 }
 0x407   : > { %15818 = vmatprep.subr.bf16.mxu0 %v16978_v60 }
 0x408   : > { %v20180_v58 = vld [vmem:[#allocation2 + $0xa0] ss:$0 sps:$4 sm:$0x77]  }
 0x409   : > { %v8756_v4 = vrot.slane %v20180_v58, 3 }
 0x40a   : > { %15673 = vmatmul.mubr.bf16.vlgmr.msra.gmra.mxu1 %v19631_v25  ;;  %15819 = vmatpush3.bf16.msra.mxu0 %v16978_v60  ;;  %v20195_v25 = vsel %vm3887_vm5, %v8752_v14, %v8754_v41  ;;  %v16991_v14 = vld [vmem:[%s22169_s4 + $0x118] sm:$0xff]  }
 0x40b   : > { %15676 = vmatprep.mubr.bf16.mxu1 %v19673_v37  ;;  %15761 = vmatpush3.bf16.msra.mxu1 %v19858_v61  ;;  %22494 = vst [vmem:[#allocation59_spill] sm:$0xff] %v20195_v25  ;;  %v6658_v37 = vsel %vm1343_vm1, %v6655_v12, %v6657_v35  ;;  %v20200_v61 = vsel %vm3887_vm5, %v8754_v41, %v8756_v4  ;;  %v20227_v60 = vld [vmem:[%s22169_s4 + $0x1f8] sm:$0xff]   ;;  %v6675_v35 = vrot.slane %v20090_v32, 1  ;;  %v6677_v41 = vrot.slane %v20118_v26, 1  ;;  %v20419_v26 = vld [vmem:[#allocation2 + $0x30] sm:$0xff]  }
 0x40c   : > { %15820 = vmatprep.subr.bf16.mxu0 %v16981_v15  ;;  %15762 = vmatprep.subr.bf16.mxu1 %v16983_v36  ;;  %22495 = vst [vmem:[#allocation60_spill] sm:$0xff] %v20200_v61  ;;  %v20506_v61 = vld [vmem:[#allocation2 + $0x70] sm:$0xff]  }
 0x40d   : > { %15733 = vmatmul.mubr.bf16.gmra.mxu0 %v6656_v31 }
 0x40e   : > { %15736 = vmatprep.mubr.bf16.mxu0 %v6658_v37  ;;  %15821 = vmatpush3.bf16.msra.mxu0 %v16981_v15  ;;  %v20249_v15 = vld [vmem:[%s22169_s4 + $0x1b8] sm:$0xff]  }
 0x40f   : > { %15763 = vmatpush3.bf16.msra.mxu1 %v16983_v36  ;;  %15822 = vmatprep.subr.bf16.mxu0 %v16984_v7 }
 0x410   : > { %15764 = vmatprep.subr.bf16.mxu1 %v16985_v47 }
 0x412   : > { %15677 = vmatmul.mubr.bf16.gmra.mxu1 %v19721_v27  ;;  %15823 = vmatpush3.bf16.msra.mxu0 %v16984_v7  ;;  %v6663_v27 = vrot.slane %v19919_v42, 1 }
 0x413   : > { %15680 = vmatprep.mubr.bf16.mxu1 %v19753_v19  ;;  %15765 = vmatpush3.bf16.msra.mxu1 %v16985_v47  ;;  %v16992_v19 = vld [vmem:[%s22169_s4 + $0x110] sm:$0xff]  }
 0x414   : > { %15824 = vmatprep.subr.bf16.mxu0 %v16987_v48  ;;  %15766 = vmatprep.subr.bf16.mxu1 %v16988_v53  ;;  %v6664_v42 = vsel %vm1343_vm1, %v6661_v16, %v6663_v27  ;;  %v6666_v22 = vsel %vm1343_vm1, %v6663_v27, %v6665_v54 }
 0x415   : > { %15737 = vmatmul.mubr.bf16.gmra.mxu0 %v6660_v51 }
 0x416   : > { %15740 = vmatprep.mubr.bf16.mxu0 %v6662_v33  ;;  %15825 = vmatpush3.bf16.msra.mxu0 %v16987_v48  ;;  %v22501_v33 = vld [vmem:[#allocation31_spill] sm:$0xff] }
 0x417   : > { %15767 = vmatpush3.bf16.msra.mxu1 %v16988_v53  ;;  %15826 = vmatprep.subr.bf16.mxu0 %v16990_v21  ;;  %v22499_v53 = vld [vmem:[#allocation21_spill] sm:$0xff] }
 0x418   : > { %15768 = vmatprep.subr.bf16.mxu1 %v16991_v14 }
 0x41a   : > { %15681 = vmatmul.mubr.bf16.gmra.mxu1 %v19781_v38  ;;  %15827 = vmatpush3.bf16.msra.mxu0 %v16990_v21  ;;  %v6667_v38 = vrot.slane %v19974_v59, 1  ;;  %v17001_v21 = vld [vmem:[%s22169_s4 + $0x1b0] sm:$0xff]  }
 0x41b   : > { %15684 = vmatprep.mubr.bf16.mxu1 %v19814_v3  ;;  %15769 = vmatpush3.bf16.msra.mxu1 %v16991_v14  ;;  %v16994_v3 = vld [vmem:[%s22169_s4 + $0x100] sm:$0xff]  }
 0x41c   : > { %15770 = vmatprep.subr.bf16.mxu1 %v16992_v19  ;;  %15916 = vmatprep.subr.bf16.mxu0 %v20227_v60  ;;  %v6668_v12 = vsel %vm1343_vm1, %v6665_v54, %v6667_v38  ;;  %v6670_v59 = vsel %vm1343_vm1, %v6667_v38, %v6669_v40 }
 0x41d   : > { %15741 = vmatmul.mubr.bf16.gmra.mxu0 %v6664_v42  ;;  %v17003_v42 = vld [vmem:[%s22169_s4 + $0x1a8] sm:$0xff]  }
 0x41e   : > { %15744 = vmatprep.mubr.bf16.mxu0 %v6666_v22  ;;  %v22503_v22 = vld [vmem:[#allocation34_spill] sm:$0xff] }
 0x41f   : > { %15771 = vmatpush3.bf16.msra.mxu1 %v16992_v19  ;;  %v22502_v19 = vld [vmem:[#allocation23_spill] sm:$0xff] }
 0x420   : > { %15772 = vmatprep.subr.bf16.mxu1 %v16993_v63 }
 0x422   : > { %15685 = vmatmul.mubr.bf16.gmra.mxu1 %v19842_v1  ;;  %v6673_v1 = vrot.slane %v20058_v11, 1  ;;  %v16986_v11 = vld [vmem:[#allocation2 + $0x98] ss:$0 sps:$4 sm:$0x11]  }
 0x423   : > { %15688 = vmatprep.mubr.bf16.mxu1 %v19876_v0  ;;  %15773 = vmatpush3.bf16.msra.mxu1 %v16993_v63  ;;  %v6672_v0 = vsel %vm1343_vm1, %v6669_v40, %v6671_v56  ;;  %v22504_v40 = vld [vmem:[#allocation43_spill] sm:$0xff] }
 0x424   : > { %15774 = vmatprep.subr.bf16.mxu1 %v16994_v3  ;;  %v6674_v36 = vsel %vm1343_vm1, %v6671_v56, %v6673_v1  ;;  %v6676_v57 = vsel %vm1343_vm1, %v6673_v1, %v6675_v35  ;;  %v22505_v56 = vld [vmem:[#allocation45_spill] sm:$0xff]  ;;  %v22506_v1 = vld [vmem:[#allocation36_spill] sm:$0xff] }
 0x425   : > { %15745 = vmatmul.mubr.bf16.gmra.mxu0 %v6668_v12 }
 0x426   : > { %15748 = vmatprep.mubr.bf16.mxu0 %v6670_v59  ;;  %v17006_v59 = vld [vmem:[%s22169_s4 + $0x1a0] sm:$0xff]  }
 0x427   : > { %15775 = vmatpush3.bf16.msra.mxu1 %v16994_v3 }
 0x428   : > { %15864 = vmatprep.subr.bf16.mxu1 %v20249_v15 }
 0x42a   : > { %15689 = vmatmul.mubr.bf16.gmra.mxu1 %v19905_v52  ;;  %v6678_v52 = vsel %vm1343_vm1, %v6675_v35, %v6677_v41  ;;  %v17010_v35 = vld [vmem:[%s22169_s4 + $0x198] sm:$0xff]  }
 0x42b   : > { %15692 = vmatprep.mubr.bf16.mxu1 %v19930_v62  ;;  %v6679_v62 = vrot.slane %v16986_v11, 1  ;;  %v22509_v11 = vld [vmem:[#allocation49_spill] sm:$0xff] }
 0x42d   : > { %15749 = vmatmul.mubr.bf16.gmra.mxu0 %v6672_v0  ;;  %v6680_v32 = vsel %vm1343_vm1, %v6677_v41, %v6679_v62  ;;  %v17009_v0 = vld [vmem:[%s22169_s4 + $0x1c0] sm:$0xff]   ;;  %v17012_v62 = vld [vmem:[%s22169_s4 + $0x190] sm:$0xff]  }
 0x42e   : > { %15752 = vmatprep.mubr.bf16.mxu0 %v6674_v36  ;;  %v22508_v41 = vld [vmem:[#allocation33_spill] sm:$0xff] }
 0x432   : > { %15693 = vmatmul.mubr.bf16.gmra.mxu1 %v19957_v24 }
 0x433   : > { %15696 = vmatprep.mubr.bf16.mxu1 %v19985_v8 }
 0x435   : > { %15753 = vmatmul.mubr.bf16.gmra.mxu0 %v6676_v57  ;;  %v15622_v7 = vpop.f32.mrf.mxu0 }
 0x436   : > { %15756 = vmatprep.mubr.bf16.mxu0 %v6678_v52 }
 0x437   : > { %v6017_v24 = vpop.f32.mrf.mxu0 }
 0x439   : > { %v15623_v4 = vpop.f32.mrf.mxu0 }
 0x43a   : > { %15697 = vmatmul.mubr.bf16.gmra.mxu1 %v20014_v39  ;;  %v16996_v39 = vld [vmem:[%s22169_s4 + $0x1f0] sm:$0xff]  }
 0x43b   : > { %15700 = vmatprep.mubr.bf16.mxu1 %v20041_v2 }
 0x43d   : > { %15757 = vmatmul.mubr.bf16.gmra.mxu0 %v6680_v32 }
 0x43e   : > { %15828 = vmatprep.mubr.bf16.mxu0 %v19641_v44 }
 0x442   : > { %v15570_v8 = vpop.f32.mrf.mxu1  ;;  %15701 = vmatmul.mubr.bf16.gmra.mxu1 %v20070_v55  ;;  %v16997_v55 = vld [vmem:[%s22169_s4 + $0x1e8] sm:$0xff]  }
 0x443   : > { %v20270_v31 = vadd.f32 %v15622_v7, %v15570_v8  ;;  %15704 = vmatprep.mubr.bf16.mxu1 %v20103_v34  ;;  %v22496_v34 = vld [vmem:[#allocation20_spill] sm:$0xff] }
 0x444   : > { %v5774_v47 = vpop.f32.mrf.mxu1 }
 0x445   : > { %v20276_v2 = vadd.f32 %v6017_v24, %v5774_v47  ;;  %15829 = vmatmul.mubr.bf16.vlgmr.msra.gmra.mxu0 %v19687_v28  ;;  %v16998_v28 = vld [vmem:[%s22169_s4 + $0x1e0] sm:$0xff]  }
 0x446   : > { %v15571_v37 = vpop.f32.mrf.mxu1  ;;  %15832 = vmatprep.mubr.bf16.mxu0 %v19731_v46  ;;  %15917 = vmatpush3.bf16.msra.mxu0 %v20227_v60  ;;  %v20291_v46 = vpop.f32.mrf.mxu0  ;;  %v17002_v60 = vld [vmem:[%s22169_s4 + $0x1d0] sm:$0xff]   ;;  %v22511_v24 = vld [vmem:[#allocation40_spill] sm:$0xff] }
 0x447   : > { %v20281_v44 = vadd.f32 %v15623_v4, %v15571_v37  ;;  %15918 = vmatprep.subr.bf16.mxu0 %v16996_v39  ;;  %22497 = vst [vmem:[#allocation20_spill] sm:$0xff] %v20291_v46  ;;  %v17014_v4 = vld [vmem:[%s22169_s4 + $0x188] sm:$0xff]  }
 0x448   : > { %v15626_v48 = vpop.f32.mrf.mxu0  ;;  %v20295_v16 = vpop.f32.mrf.mxu1 }
 0x449   : > { %22500 = vst [vmem:[#allocation44_spill] sm:$0xff] %v20295_v16 }
 0x44a   : > { %15705 = vmatmul.mubr.bf16.gmra.mxu1 %v20141_v13  ;;  %15919 = vmatpush3.bf16.msra.mxu0 %v16996_v39  ;;  %v17000_v13 = vld [vmem:[%s22169_s4 + $0x1d8] sm:$0xff]   ;;  %v6033_v51 = vpop.f32.mrf.mxu0 }
 0x44b   : > { %15776 = vmatprep.mubr.bf16.mxu1 %v22496_v34  ;;  %15920 = vmatprep.subr.bf16.mxu0 %v16997_v55  ;;  %v22512_v39 = vld [vmem:[#allocation24_spill] sm:$0xff] }
 0x44c   : > { %v15627_v38 = vpop.f32.mrf.mxu0 }
 0x44d   : > { %15833 = vmatmul.mubr.bf16.gmra.mxu0 %v22498_v50  ;;  %v22514_v50 = vld [vmem:[#allocation25_spill] sm:$0xff] }
 0x44e   : > { %15836 = vmatprep.mubr.bf16.mxu0 %v22499_v53  ;;  %15921 = vmatpush3.bf16.msra.mxu0 %v16997_v55  ;;  %v20331_v36 = vpop.f32.mrf.mxu0  ;;  %v22513_v55 = vld [vmem:[#allocation38_spill] sm:$0xff]  ;;  %v17016_v53 = vld [vmem:[%s22169_s4 + $0x180] sm:$0xff]  }
 0x44f   : > { %15922 = vmatprep.subr.bf16.mxu0 %v16998_v28  ;;  %22507 = vst [vmem:[#allocation21_spill] sm:$0xff] %v20331_v36 }
 0x452   : > { %v15574_v14 = vpop.f32.mrf.mxu1  ;;  %15777 = vmatmul.mubr.bf16.vlgmr.msra.gmra.mxu1 %v22501_v33  ;;  %15923 = vmatpush3.bf16.msra.mxu0 %v16998_v28  ;;  %v22517_v33 = vld [vmem:[#allocation51_spill] sm:$0xff] }
 0x453   : > { %v20304_v27 = vadd.f32 %v15626_v48, %v15574_v14  ;;  %15780 = vmatprep.mubr.bf16.mxu1 %v22502_v19  ;;  %15865 = vmatpush3.bf16.msra.mxu1 %v20249_v15  ;;  %v17005_v15 = vld [vmem:[%s22169_s4 + $0x1c8] sm:$0xff]   ;;  %v20366_v14 = vld [vmem:[%s22169_s4 + $0x238] sm:$0xff]  }
 0x454   : > { %v5790_v54 = vpop.f32.mrf.mxu1  ;;  %15924 = vmatprep.subr.bf16.mxu0 %v17000_v13  ;;  %15866 = vmatprep.subr.bf16.mxu1 %v17001_v21 }
 0x455   : > { %v20314_v63 = vadd.f32 %v6033_v51, %v5790_v54  ;;  %15837 = vmatmul.mubr.bf16.gmra.mxu0 %v22503_v22  ;;  %v15630_v57 = vpop.f32.mrf.mxu0 }
 0x456   : > { %v15575_v3 = vpop.f32.mrf.mxu1  ;;  %15840 = vmatprep.mubr.bf16.mxu0 %v22504_v40  ;;  %15925 = vmatpush3.bf16.msra.mxu0 %v17000_v13  ;;  %v22515_v13 = vld [vmem:[#allocation46_spill] sm:$0xff]  ;;  %v22520_v40 = vld [vmem:[#allocation48_spill] sm:$0xff] }
 0x457   : > { %v20318_v12 = vadd.f32 %v15627_v38, %v15575_v3  ;;  %15867 = vmatpush3.bf16.msra.mxu1 %v17001_v21  ;;  %15926 = vmatprep.subr.bf16.mxu0 %v17002_v60  ;;  %v6049_v32 = vpop.f32.mrf.mxu0  ;;  %v22516_v21 = vld [vmem:[#allocation50_spill] sm:$0xff]  ;;  %v22519_v38 = vld [vmem:[#allocation52_spill] sm:$0xff] }
 0x458   : > { %15868 = vmatprep.subr.bf16.mxu1 %v17003_v42  ;;  %v20338_v52 = vpop.f32.mrf.mxu1 }
 0x459   : > { %22510 = vst [vmem:[#allocation31_spill] sm:$0xff] %v20338_v52  ;;  %v15631_v34 = vpop.f32.mrf.mxu0  ;;  %v17035_v52 = vld [vmem:[%s22169_s4 + $0x218] sm:$0xff]  }
 0x45a   : > { %15781 = vmatmul.mubr.bf16.gmra.mxu1 %v22505_v56  ;;  %15927 = vmatpush3.bf16.msra.mxu0 %v17002_v60  ;;  %v22518_v60 = vld [vmem:[#allocation53_spill] sm:$0xff] }
 0x45b   : > { %15784 = vmatprep.mubr.bf16.mxu1 %v22506_v1  ;;  %15869 = vmatpush3.bf16.msra.mxu1 %v17003_v42  ;;  %v20361_v51 = vpop.f32.mrf.mxu0  ;;  %v22521_v1 = vld [vmem:[#allocation19_spill] sm:$0xff] }
 0x45c   : > { %15928 = vmatprep.subr.bf16.mxu0 %v17005_v15  ;;  %15870 = vmatprep.subr.bf16.mxu1 %v17006_v59 }
 0x45d   : > { %15841 = vmatmul.mubr.bf16.gmra.mxu0 %v22508_v41 }
 0x45e   : > { %15844 = vmatprep.mubr.bf16.mxu0 %v22509_v11  ;;  %15929 = vmatpush3.bf16.msra.mxu0 %v17005_v15 }
 0x45f   : > { %15871 = vmatpush3.bf16.msra.mxu1 %v17006_v59  ;;  %15930 = vmatprep.subr.bf16.mxu0 %v17009_v0  ;;  %v7767_v59 = vld [vmem:[#allocation2 + $0x10] sm:$0xc] }
 0x460   : > { %15872 = vmatprep.subr.bf16.mxu1 %v17010_v35 }
 0x462   : > { %v15578_v7 = vpop.f32.mrf.mxu1  ;;  %15785 = vmatmul.mubr.bf16.gmra.mxu1 %v22511_v24  ;;  %15931 = vmatpush3.bf16.msra.mxu0 %v17009_v0 }
 0x463   : > { %v20344_v8 = vadd.f32 %v15630_v57, %v15578_v7  ;;  %15788 = vmatprep.mubr.bf16.mxu1 %v22512_v39  ;;  %15873 = vmatpush3.bf16.msra.mxu1 %v17010_v35  ;;  %v17275_v57 = vld [vmem:[#allocation2 + $0x14] sm:$0xf]  ;;  %v22522_v39 = vld [vmem:[#allocation29_spill] sm:$0xff] }
 0x464   : > { %v5806_v47 = vpop.f32.mrf.mxu1  ;;  %15874 = vmatprep.subr.bf16.mxu1 %v17012_v62  ;;  %v20383_v11 = vcombine.low %v7767_v59, %v17275_v57  ;;  %v22524_v59 = vld [vmem:[#allocation22_spill] sm:$0xff] }
 0x465   : > { %v20350_v37 = vadd.f32 %v6049_v32, %v5806_v47  ;;  %15845 = vmatmul.mubr.bf16.gmra.mxu0 %v22513_v55  ;;  %v15634_v19 = vpop.f32.mrf.mxu0  ;;  %v22523_v47 = vld [vmem:[#allocation55_spill] sm:$0xff] }
 0x466   : > { %v15579_v28 = vpop.f32.mrf.mxu1  ;;  %15848 = vmatprep.mubr.bf16.mxu0 %v22514_v50 }
 0x467   : > { %v20354_v48 = vadd.f32 %v15631_v34, %v15579_v28  ;;  %15875 = vmatpush3.bf16.msra.mxu1 %v17012_v62  ;;  %v6065_v42 = vpop.f32.mrf.mxu0  ;;  %v20385_v62 = vld [vmem:[#allocation2 + $0x18] sm:$0xff]  }
 0x468   : > { %15876 = vmatprep.subr.bf16.mxu1 %v17014_v4  ;;  %v20370_v54 = vpop.f32.mrf.mxu1  ;;  %v8260_v32 = vshrl.u32 %v20385_v62, 16  ;;  %v8263_v7 = vshll.u32 %v20385_v62, 16  ;;  %v17004_v34 = vld [vmem:[#allocation2 + $0x98] ss:$0 sps:$4 sm:$0x33]  }
 0x469   : > { %v15635_v0 = vpop.f32.mrf.mxu0 }
 0x46a   : > { %15789 = vmatmul.mubr.bf16.gmra.mxu1 %v22515_v13  ;;  %v8262_v28 = vrot.slane %v8260_v32, 2  ;;  %v8265_v50 = vrot.slane %v8263_v7, 3 }
 0x46b   : > { %15792 = vmatprep.mubr.bf16.mxu1 %v22516_v21  ;;  %15877 = vmatpush3.bf16.msra.mxu1 %v17014_v4  ;;  %v20389_v24 = vpop.f32.mrf.mxu0  ;;  %v8252_v4 = vshrl.u32 %v20383_v11, 16  ;;  %v20397_v21 = vld [vmem:[#allocation2 + $0x20] sm:$0xff]  }
 0x46c   : > { %15878 = vmatprep.subr.bf16.mxu1 %v17016_v53 }
 0x46d   : > { %15849 = vmatmul.mubr.bf16.gmra.mxu0 %v22517_v33  ;;  %v8269_v33 = vshrl.u32 %v20397_v21, 16 }
 0x46e   : > { %15852 = vmatprep.mubr.bf16.mxu0 %v22518_v60 }
 0x46f   : > { %15879 = vmatpush3.bf16.msra.mxu1 %v17016_v53  ;;  %v8254_v53 = vrot.slane %v8252_v4, 2 }
 0x470   : > { %15968 = vmatprep.subr.bf16.mxu1 %v20366_v14 }
 0x472   : > { %v15582_v22 = vpop.f32.mrf.mxu1  ;;  %15793 = vmatmul.mubr.bf16.gmra.mxu1 %v22519_v38  ;;  %v20403_v38 = vld [vmem:[#allocation2 + $0x28] sm:$0xff]  }
 0x473   : > { %v20374_v3 = vadd.f32 %v15634_v19, %v15582_v22  ;;  %15796 = vmatprep.mubr.bf16.mxu1 %v22520_v40  ;;  %v8272_v19 = vshll.u32 %v20397_v21, 16  ;;  %v7486_v22 = vrot.slane %v17004_v34, 2  ;;  %v8281_v40 = vshll.u32 %v20403_v38, 16 }
 0x474   : > { %v5822_v15 = vpop.f32.mrf.mxu1 }
 0x475   : > { %v20377_v56 = vadd.f32 %v6065_v42, %v5822_v15  ;;  %15853 = vmatmul.mubr.bf16.gmra.mxu0 %v22521_v1  ;;  %v15638_v55 = vpop.f32.mrf.mxu0  ;;  %v8266_v15 = vor.u32 %v8265_v50, %v8262_v28  ;;  %v8274_v57 = vrot.slane %v8272_v19, 3  ;;  %v8283_v4 = vrot.slane %v8281_v40, 3 }
 0x476   : > { %v15583_v35 = vpop.f32.mrf.mxu1  ;;  %15856 = vmatprep.mubr.bf16.mxu0 %v20080_v49  ;;  %v8255_v49 = vshll.u32 %v20383_v11, 16  ;;  %v7146_v50 = vshll.u32 %v17004_v34, 16 }
 0x477   : > { %v20381_v41 = vadd.f32 %v15635_v0, %v15583_v35  ;;  %v6081_v60 = vpop.f32.mrf.mxu0  ;;  %v8271_v35 = vrot.slane %v8269_v33, 2 }
 0x478   : > { %v8257_v13 = vrot.slane %v8255_v49, 3  ;;  %v20401_v42 = vpop.f32.mrf.mxu1 }
 0x479   : > { %v15639_v32 = vpop.f32.mrf.mxu0 }
 0x47a   : > { %15797 = vmatmul.mubr.bf16.gmra.mxu1 %v22522_v39  ;;  %v8258_v0 = vor.u32 %v8257_v13, %v8254_v53  ;;  %v7487_v39 = vsel %vm2615_vm3, %v7484_v20, %v7486_v22  ;;  %v8275_v53 = vor.u32 %v8274_v57, %v8271_v35  ;;  %v8287_v20 = vshrl.u32 %v20419_v26, 16  ;;  %v20423_v22 = vld [vmem:[#allocation2 + $0x38] sm:$0xff]  }
 0x47b   : > { %15800 = vmatprep.mubr.bf16.mxu1 %v22523_v47  ;;  %v6084_v13 = vpop.f32.mrf.mxu0 }
 0x47c   : > { %v8267_v28 = vsel %vm3416_vm4, %v8258_v0, %v8266_v15  ;;  %v8299_v0 = vshll.u32 %v20423_v22, 16  ;;  %v8276_v57 = vsel %vm3416_vm4, %v8266_v15, %v8275_v53 }
 0x47d   : > { %15857 = vmatmul.mubr.bf16.gmra.mxu0 %v20112_v23  ;;  %v8278_v23 = vshrl.u32 %v20403_v38, 16 }
 0x47e   : > { %15860 = vmatprep.mubr.bf16.mxu0 %v20146_v29 }
 0x47f   : > { %v8280_v47 = vrot.slane %v8278_v23, 2  ;;  %v8296_v23 = vshrl.u32 %v20423_v22, 16 }
 0x481   : > { %v8284_v19 = vor.u32 %v8283_v4, %v8280_v47  ;;  %v8298_v4 = vrot.slane %v8296_v23, 2 }
 0x482   : > { %v15586_v29 = vpop.f32.mrf.mxu1  ;;  %15801 = vmatmul.mubr.bf16.gmra.mxu1 %v22524_v59  ;;  %v7148_v59 = vrot.slane %v7146_v50, 2 }
 0x483   : > { %v20408_v1 = vadd.f32 %v15638_v55, %v15586_v29  ;;  %15804 = vmatprep.mubr.bf16.mxu1 %v20096_v45  ;;  %v7143_v55 = vshrl.u32 %v17004_v34, 16 }
 0x484   : > { %v5838_v7 = vpop.f32.mrf.mxu1 }
 0x485   : > { %v20414_v49 = vadd.f32 %v6081_v60, %v5838_v7  ;;  %15861 = vmatmul.mubr.bf16.gmra.mxu0 %v7487_v39  ;;  %v8290_v60 = vshll.u32 %v20419_v26, 16  ;;  %v7145_v34 = vrot.slane %v7143_v55, 1  ;;  %v15642_v35 = vpop.f32.mrf.mxu0  ;;  %v8285_v39 = vsel %vm3416_vm4, %v8275_v53, %v8284_v19 }
 0x486   : > { %v15587_v29 = vpop.f32.mrf.mxu1  ;;  %15932 = vmatprep.mubr.bf16.mxu0 %v8267_v28  ;;  %v8301_v28 = vrot.slane %v8299_v0, 3  ;;  %v7915_v55 = vrot.slane %v20385_v62, 2 }
 0x487   : > { %v20417_v45 = vadd.f32 %v15639_v32, %v15587_v29  ;;  %v8289_v32 = vrot.slane %v8287_v20, 2  ;;  %v8292_v7 = vrot.slane %v8290_v60, 3  ;;  %v7149_v47 = vor.u32 %v7148_v59, %v7145_v34  ;;  %v6097_v50 = vpop.f32.mrf.mxu0  ;;  %v20441_v20 = vld [vmem:[#allocation2 + $0x48] sm:$0xff]  }
 0x488   : > { %v5841_v33 = vpop.f32.mrf.mxu1  ;;  %v7914_v29 = vrot.slane %v20383_v11, 2  ;;  %v8302_v53 = vor.u32 %v8301_v28, %v8298_v4  ;;  %v8314_v60 = vshrl.u32 %v20441_v20, 16  ;;  %v8317_v62 = vshll.u32 %v20441_v20, 16 }
 0x489   : > { %v20426_v40 = vadd.f32 %v6084_v13, %v5841_v33  ;;  %v20435_v13 = vld [vmem:[#allocation2 + $0x40] sm:$0xff]   ;;  %v7150_v33 = vsel %vm2144_vm2, %v20150_v43, %v7149_v47  ;;  %v15643_v34 = vpop.f32.mrf.mxu0  ;;  %v7917_v43 = vrot.slane %v20397_v21, 2 }
 0x48a   : > { %15805 = vmatmul.mubr.bf16.gmra.mxu1 %v20131_v10  ;;  %v8293_v10 = vor.u32 %v8292_v7, %v8289_v32  ;;  %v8308_v15 = vshll.u32 %v20435_v13, 16  ;;  %v7916_v11 = vsel %vm2615_vm3, %v7914_v29, %v7915_v55  ;;  %v8316_v4 = vrot.slane %v8314_v60, 2 }
 0x48b   : > { %15808 = vmatprep.mubr.bf16.mxu1 %v20165_v30  ;;  %v8305_v30 = vshrl.u32 %v20435_v13, 16  ;;  %v8319_v28 = vrot.slane %v8317_v62, 3  ;;  %v6100_v29 = vpop.f32.mrf.mxu0 }
 0x48c   : > { %v8310_v7 = vrot.slane %v8308_v15, 3  ;;  %v8303_v47 = vsel %vm3416_vm4, %v8293_v10, %v8302_v53 }
 0x48d   : > { %15933 = vmatmul.mubr.bf16.vlgmr.msra.gmra.mxu0 %v8276_v57  ;;  %v8294_v57 = vsel %vm3416_vm4, %v8284_v19, %v8293_v10  ;;  %v8307_v32 = vrot.slane %v8305_v30, 2  ;;  %v7918_v19 = vsel %vm2615_vm3, %v7915_v55, %v7917_v43  ;;  %v20457_v30 = vld [vmem:[#allocation2 + $0x50] sm:$0xff]  }
 0x48e   : > { %15936 = vmatprep.mubr.bf16.mxu0 %v8285_v39  ;;  %v8326_v15 = vshll.u32 %v20457_v30, 16  ;;  %v17031_v10 = vld [vmem:[%s22169_s4 + $0x230] sm:$0xff]  }
 0x48f   : > { %v8311_v21 = vor.u32 %v8310_v7, %v8307_v32 }
 0x491   : > { %v8312_v32 = vsel %vm3416_vm4, %v8302_v53, %v8311_v21 }
 0x492   : > { %v15590_v23 = vpop.f32.mrf.mxu1  ;;  %15809 = vmatmul.mubr.bf16.gmra.mxu1 %v7150_v33 }
 0x493   : > { %v20446_v59 = vadd.f32 %v15642_v35, %v15590_v23  ;;  %15880 = vmatprep.mubr.bf16.mxu1 %v7916_v11  ;;  %v7919_v35 = vrot.slane %v20403_v38, 2  ;;  %v8320_v38 = vor.u32 %v8319_v28, %v8316_v4  ;;  %v17032_v4 = vld [vmem:[%s22169_s4 + $0x228] sm:$0xff]  }
 0x494   : > { %v5854_v0 = vpop.f32.mrf.mxu1 }
 0x495   : > { %v20450_v39 = vadd.f32 %v6097_v50, %v5854_v0  ;;  %15937 = vmatmul.mubr.bf16.gmra.mxu0 %v8294_v57  ;;  %v8323_v50 = vshrl.u32 %v20457_v30, 16  ;;  %v15646_v60 = vpop.f32.mrf.mxu0  ;;  %v7920_v57 = vsel %vm2615_vm3, %v7917_v43, %v7919_v35 }
 0x496   : > { %v15591_v33 = vpop.f32.mrf.mxu1  ;;  %15940 = vmatprep.mubr.bf16.mxu0 %v8303_v47  ;;  %v8328_v47 = vrot.slane %v8326_v15, 3 }
 0x497   : > { %v20454_v23 = vadd.f32 %v15643_v34, %v15591_v33  ;;  %v20466_v34 = vld [vmem:[#allocation2 + $0x58] sm:$0xff]   ;;  %v8325_v7 = vrot.slane %v8323_v50, 2  ;;  %v6113_v28 = vpop.f32.mrf.mxu0  ;;  %v8321_v33 = vsel %vm3416_vm4, %v8311_v21, %v8320_v38  ;;  %v17034_v21 = vld [vmem:[%s22169_s4 + $0x220] sm:$0xff]  }
 0x498   : > { %v5857_v11 = vpop.f32.mrf.mxu1  ;;  %v8332_v0 = vshrl.u32 %v20466_v34, 16  ;;  %v8335_v55 = vshll.u32 %v20466_v34, 16 }
 0x499   : > { %v20464_v62 = vadd.f32 %v6100_v29, %v5857_v11  ;;  %v7921_v29 = vrot.slane %v20419_v26, 2  ;;  %v8329_v53 = vor.u32 %v8328_v47, %v8325_v7 }
 0x49a   : > { %15881 = vmatmul.mubr.bf16.vlgmr.msra.gmra.mxu1 %v7918_v19  ;;  %v8334_v11 = vrot.slane %v8332_v0, 2  ;;  %v8337_v43 = vrot.slane %v8335_v55, 3  ;;  %v20479_v19 = vld [vmem:[#allocation2 + $0x60] sm:$0xff]   ;;  %v20487_v55 = vld [vmem:[#allocation2 + $0x68] sm:$0xff]  }
 0x49b   : > { %15884 = vmatprep.mubr.bf16.mxu1 %v7920_v57  ;;  %15969 = vmatpush3.bf16.msra.mxu1 %v20366_v14  ;;  %v7923_v14 = vrot.slane %v20423_v22, 2  ;;  %v8341_v50 = vshrl.u32 %v20479_v19, 16  ;;  %v8344_v15 = vshll.u32 %v20479_v19, 16  ;;  %v15647_v57 = vpop.f32.mrf.mxu0  ;;  %v7922_v26 = vsel %vm2615_vm3, %v7919_v35, %v7921_v29 }
 0x49c   : > { %15970 = vmatprep.subr.bf16.mxu1 %v17031_v10  ;;  %v8338_v0 = vor.u32 %v8337_v43, %v8334_v11  ;;  %v8350_v22 = vshrl.u32 %v20487_v55, 16  ;;  %v8330_v36 = vsel %vm3416_vm4, %v8320_v38, %v8329_v53  ;;  %v7925_v35 = vrot.slane %v20435_v13, 2 }
 0x49d   : > { %15941 = vmatmul.mubr.bf16.gmra.mxu0 %v8312_v32  ;;  %v7924_v7 = vsel %vm2615_vm3, %v7921_v29, %v7923_v14  ;;  %v8343_v11 = vrot.slane %v8341_v50, 2  ;;  %v8346_v43 = vrot.slane %v8344_v15, 3  ;;  %v6116_v46 = vpop.f32.mrf.mxu0  ;;  %v7927_v38 = vrot.slane %v20441_v20, 2 }
 0x49e   : > { %15944 = vmatprep.mubr.bf16.mxu0 %v8321_v33  ;;  %v8352_v29 = vrot.slane %v8350_v22, 2  ;;  %v20515_v22 = vld [vmem:[#allocation2 + $0x78] sm:$0xff]   ;;  %v7933_v25 = vrot.slane %v20479_v19, 2 }
 0x49f   : > { %15971 = vmatpush3.bf16.msra.mxu1 %v17031_v10  ;;  %v8353_v10 = vshll.u32 %v20487_v55, 16  ;;  %v8347_v16 = vor.u32 %v8346_v43, %v8343_v11 }
 0x4a0   : > { %15972 = vmatprep.subr.bf16.mxu1 %v17032_v4 }
 0x4a1   : > { %v8348_v11 = vsel %vm3416_vm4, %v8338_v0, %v8347_v16 }
 0x4a2   : > { %v15594_v32 = vpop.f32.mrf.mxu1  ;;  %15885 = vmatmul.mubr.bf16.gmra.mxu1 %v7922_v26 }
 0x4a3   : > { %v20492_v47 = vadd.f32 %v15646_v60, %v15594_v32  ;;  %15888 = vmatprep.mubr.bf16.mxu1 %v7924_v7  ;;  %15973 = vmatpush3.bf16.msra.mxu1 %v17032_v4  ;;  %v8339_v60 = vsel %vm3416_vm4, %v8329_v53, %v8338_v0  ;;  %v8355_v4 = vrot.slane %v8353_v10, 3  ;;  %v7926_v7 = vsel %vm2615_vm3, %v7923_v14, %v7925_v35  ;;  %v17036_v53 = vld [vmem:[%s22169_s4 + $0x210] sm:$0xff]  }
 0x4a4   : > { %v5870_v33 = vpop.f32.mrf.mxu1  ;;  %15974 = vmatprep.subr.bf16.mxu1 %v17034_v21  ;;  %v8371_v14 = vshll.u32 %v20515_v22, 16  ;;  %v7928_v10 = vsel %vm2615_vm3, %v7925_v35, %v7927_v38  ;;  %v7931_v35 = vrot.slane %v20466_v34, 2  ;;  %v8389_v34 = vshll.u32 %v20127_v17, 16 }
 0x4a5   : > { %v20499_v26 = vadd.f32 %v6113_v28, %v5870_v33  ;;  %15945 = vmatmul.mubr.bf16.gmra.mxu0 %v8330_v36  ;;  %v15650_v13 = vpop.f32.mrf.mxu0  ;;  %v8359_v36 = vshrl.u32 %v20506_v61, 16  ;;  %v8362_v28 = vshll.u32 %v20506_v61, 16 }
 0x4a6   : > { %v15595_v32 = vpop.f32.mrf.mxu1  ;;  %15948 = vmatprep.mubr.bf16.mxu0 %v8339_v60  ;;  %v8391_v9 = vrot.slane %v8389_v34, 3  ;;  %v8404_v34 = vshrl.u32 %v20171_v18, 16 }
 0x4a7   : > { %v20503_v50 = vadd.f32 %v15647_v57, %v15595_v32  ;;  %15975 = vmatpush3.bf16.msra.mxu1 %v17034_v21  ;;  %v8356_v57 = vor.u32 %v8355_v4, %v8352_v29  ;;  %v8368_v21 = vshrl.u32 %v20515_v22, 16  ;;  %v6129_v33 = vpop.f32.mrf.mxu0  ;;  %v8361_v43 = vrot.slane %v8359_v36, 2 }
 0x4a8   : > { %v5873_v15 = vpop.f32.mrf.mxu1  ;;  %15976 = vmatprep.subr.bf16.mxu1 %v17035_v52  ;;  %v8364_v60 = vrot.slane %v8362_v28, 3  ;;  %v7929_v4 = vrot.slane %v20457_v30, 2 }
 0x4a9   : > { %v20513_v20 = vadd.f32 %v6116_v46, %v5873_v15  ;;  %v17038_v46 = vld [vmem:[%s22169_s4 + $0x208] sm:$0xff]   ;;  %v8357_v29 = vsel %vm3416_vm4, %v8347_v16, %v8356_v57  ;;  %v8370_v32 = vrot.slane %v8368_v21, 2  ;;  %v8373_v15 = vrot.slane %v8371_v14, 3  ;;  %v17040_v16 = vld [vmem:[%s22169_s4 + $0x200] sm:$0xff]  }
 0x4aa   : > { %15889 = vmatmul.mubr.bf16.gmra.mxu1 %v7926_v7  ;;  %v8365_v0 = vor.u32 %v8364_v60, %v8361_v43  ;;  %v20527_v7 = vld [vmem:[#allocation2 + $0x80] sm:$0xff]   ;;  %v7930_v30 = vsel %vm2615_vm3, %v7927_v38, %v7929_v4  ;;  %v8386_v14 = vshrl.u32 %v20127_v17, 16 }
 0x4ab   : > { %15892 = vmatprep.mubr.bf16.mxu1 %v7928_v10  ;;  %15977 = vmatpush3.bf16.msra.mxu1 %v17035_v52  ;;  %v15651_v52 = vpop.f32.mrf.mxu0  ;;  %v8377_v36 = vshrl.u32 %v20527_v7, 16  ;;  %v8380_v28 = vshll.u32 %v20527_v7, 16  ;;  %v8374_v21 = vor.u32 %v8373_v15, %v8370_v32  ;;  %v7932_v10 = vsel %vm2615_vm3, %v7929_v4, %v7931_v35 }
 0x4ac   : > { %15978 = vmatprep.subr.bf16.mxu1 %v17036_v53  ;;  %v8388_v4 = vrot.slane %v8386_v14, 2 }
 0x4ad   : > { %15949 = vmatmul.mubr.bf16.gmra.mxu0 %v8348_v11  ;;  %v6132_v11 = vpop.f32.mrf.mxu0  ;;  %v8379_v38 = vrot.slane %v8377_v36, 2  ;;  %v8382_v32 = vrot.slane %v8380_v28, 3  ;;  %v7934_v36 = vsel %vm2615_vm3, %v7931_v35, %v7933_v25 }
 0x4ae   : > { %15952 = vmatprep.mubr.bf16.mxu0 %v8357_v29  ;;  %v8366_v29 = vsel %vm3416_vm4, %v8356_v57, %v8365_v0  ;;  %v8392_v14 = vor.u32 %v8391_v9, %v8388_v4  ;;  %v7937_v9 = vrot.slane %v20506_v61, 2 }
 0x4af   : > { %15979 = vmatpush3.bf16.msra.mxu1 %v17036_v53  ;;  %v8383_v28 = vor.u32 %v8382_v32, %v8379_v38 }
 0x4b0   : > { %15980 = vmatprep.subr.bf16.mxu1 %v17038_v46 }
 0x4b1   : > { %v8384_v35 = vsel %vm3416_vm4, %v8374_v21, %v8383_v28 }
 0x4b2   : > { %v15598_v53 = vpop.f32.mrf.mxu1  ;;  %15893 = vmatmul.mubr.bf16.gmra.mxu1 %v7930_v30  ;;  %v8375_v30 = vsel %vm3416_vm4, %v8365_v0, %v8374_v21 }
 0x4b3   : > { %v20538_v43 = vadd.f32 %v15650_v13, %v15598_v53  ;;  %15896 = vmatprep.mubr.bf16.mxu1 %v7932_v10  ;;  %15981 = vmatpush3.bf16.msra.mxu1 %v17038_v46  ;;  %v7935_v46 = vrot.slane %v20487_v55, 2  ;;  %v8398_v10 = vshll.u32 %v20135_v5, 16  ;;  %v8407_v55 = vshll.u32 %v20171_v18, 16 }
 0x4b4   : > { %v5886_v60 = vpop.f32.mrf.mxu1  ;;  %15982 = vmatprep.subr.bf16.mxu1 %v17040_v16  ;;  %v7939_v18 = vrot.slane %v20515_v22, 2 }
 0x4b5   : > { %v20542_v15 = vadd.f32 %v6129_v33, %v5886_v60  ;;  %v15654_v17 = vpop.f32.mrf.mxu0  ;;  %15953 = vmatmul.mubr.bf16.gmra.mxu0 %v8366_v29  ;;  %v8395_v33 = vshrl.u32 %v20135_v5, 16  ;;  %v8400_v38 = vrot.slane %v8398_v10, 3  ;;  %v8393_v5 = vsel %vm3416_vm4, %v8383_v28, %v8392_v14 }
 0x4b6   : > { %v15599_v13 = vpop.f32.mrf.mxu1  ;;  %15956 = vmatprep.mubr.bf16.mxu0 %v8375_v30  ;;  %v8409_v30 = vrot.slane %v8407_v55, 3  ;;  %v7940_v28 = vsel %vm2615_vm3, %v7937_v9, %v7939_v18 }
 0x4b7   : > { %v20546_v53 = vadd.f32 %v15651_v52, %v15599_v13  ;;  %v6145_v57 = vpop.f32.mrf.mxu0  ;;  %15983 = vmatpush3.bf16.msra.mxu1 %v17040_v16  ;;  %v7936_v52 = vsel %vm2615_vm3, %v7933_v25, %v7935_v46  ;;  %v8397_v29 = vrot.slane %v8395_v33, 2  ;;  %v8413_v13 = vshrl.u32 %v20180_v58, 16 }
 0x4b8   : > { %v5889_v19 = vpop.f32.mrf.mxu1 }
 0x4b9   : > { %v20551_v60 = vadd.f32 %v6132_v11, %v5889_v19  ;;  %v15655_v0 = vpop.f32.mrf.mxu0  ;;  %v8406_v11 = vrot.slane %v8404_v34, 2  ;;  %v8401_v25 = vor.u32 %v8400_v38, %v8397_v29  ;;  %v8416_v19 = vshll.u32 %v20180_v58, 16 }
 0x4ba   : > { %15897 = vmatmul.mubr.bf16.gmra.mxu1 %v7934_v36  ;;  %v7938_v36 = vsel %vm2615_vm3, %v7935_v46, %v7937_v9  ;;  %v7941_v38 = vrot.slane %v20527_v7, 2 }
 0x4bb   : > { %v20556_v16 = vpop.f32.mrf.mxu0  ;;  %15900 = vmatprep.mubr.bf16.mxu1 %v7936_v52  ;;  %v8410_v33 = vor.u32 %v8409_v30, %v8406_v11  ;;  %v8402_v55 = vsel %vm3416_vm4, %v8392_v14, %v8401_v25  ;;  %v8415_v52 = vrot.slane %v8413_v13, 2 }
 0x4bc   : > { %22525 = vst [vmem:[#allocation23_spill] sm:$0xff] %v20556_v16  ;;  %v22538_v16 = vld [vmem:[#allocation39_spill] sm:$0xff] }
 0x4bd   : > { %v15726_v32 = vpop.f32.mrf.mxu0  ;;  %15957 = vmatmul.mubr.bf16.gmra.mxu0 %v8384_v35  ;;  %v8418_v35 = vrot.slane %v8416_v19, 3  ;;  %v8411_v46 = vsel %vm3416_vm4, %v8401_v25, %v8410_v33 }
 0x4be   : > { %15960 = vmatprep.mubr.bf16.mxu0 %v8393_v5 }
 0x4bf   : > { %v6781_v4 = vpop.f32.mrf.mxu0  ;;  %v8419_v14 = vor.u32 %v8418_v35, %v8415_v52  ;;  %v17291_v52 = vld [vmem:[#allocation2 + $0x90] sm:$0xff]  }
 0x4c0   : > { %v7945_v35 = vrot.slane %v17291_v52, 2 }
 0x4c1   : > { %v15727_v21 = vpop.f32.mrf.mxu0 }
 0x4c2   : > { %v15602_v10 = vpop.f32.mrf.mxu1  ;;  %15901 = vmatmul.mubr.bf16.gmra.mxu1 %v7938_v36 }
 0x4c3   : > { %v20566_v61 = vadd.f32 %v15654_v17, %v15602_v10  ;;  %v20568_v34 = vpop.f32.mrf.mxu0  ;;  %15904 = vmatprep.mubr.bf16.mxu1 %v7940_v28  ;;  %v17290_v17 = vld [vmem:[#allocation2 + $0x88] sm:$0xff]  }
 0x4c4   : > { %v5902_v22 = vpop.f32.mrf.mxu1  ;;  %v7943_v9 = vrot.slane %v17290_v17, 2 }
 0x4c5   : > { %v20571_v29 = vadd.f32 %v6145_v57, %v5902_v22  ;;  %v15730_v58 = vpop.f32.mrf.mxu0  ;;  %15961 = vmatmul.mubr.bf16.gmra.mxu0 %v8402_v55  ;;  %v7942_v57 = vsel %vm2615_vm3, %v7939_v18, %v7941_v38 }
 0x4c6   : > { %v15603_v5 = vpop.f32.mrf.mxu1  ;;  %15964 = vmatprep.mubr.bf16.mxu0 %v8411_v46  ;;  %v7944_v10 = vsel %vm2615_vm3, %v7941_v38, %v7943_v9 }
 0x4c7   : > { %v20575_v11 = vadd.f32 %v15655_v0, %v15603_v5  ;;  %v6797_v30 = vpop.f32.mrf.mxu0  ;;  %v8420_v0 = vsel %vm3416_vm4, %v8410_v33, %v8419_v14  ;;  %v17292_v5 = vld [vmem:[#allocation2 + $0x98] sm:$0xff]   ;;  %v7946_v33 = vsel %vm2615_vm3, %v7943_v9, %v7945_v35 }
 0x4c8   : > { %v20577_v36 = vpop.f32.mrf.mxu1  ;;  %v7947_v17 = vrot.slane %v17292_v5, 2 }
 0x4c9   : > { %22526 = vst [vmem:[#allocation34_spill] sm:$0xff] %v20577_v36  ;;  %v15731_v13 = vpop.f32.mrf.mxu0  ;;  %v22542_v36 = vld [vmem:[#allocation41_spill] sm:$0xff] }
 0x4ca   : > { %v15674_v19 = vpop.f32.mrf.mxu1  ;;  %15905 = vmatmul.mubr.bf16.gmra.mxu1 %v7942_v57 }
 0x4cb   : > { %v6463_v25 = vadd.f32 %v15674_v19, %v20270_v31  ;;  %v20582_v7 = vpop.f32.mrf.mxu0  ;;  %15908 = vmatprep.mubr.bf16.mxu1 %v7944_v10 }
 0x4cc   : > { %v6318_v28 = vpop.f32.mrf.mxu1 }
 0x4cd   : > { %v6461_v22 = vadd.f32 %v6318_v28, %v20276_v2  ;;  %v15734_v55 = vpop.f32.mrf.mxu0  ;;  %15965 = vmatmul.mubr.bf16.gmra.mxu0 %v8420_v0  ;;  %v20586_v46 = vadd.f32 %v15726_v32, %v6463_v25  ;;  %v17037_v2 = vld [vmem:[#allocation2 + $0xa0] ss:$0 sps:$4 sm:$0x33]   ;;  %v7948_v32 = vsel %vm2615_vm3, %v7945_v35, %v7947_v17 }
 0x4ce   : > { %v15675_v18 = vpop.f32.mrf.mxu1  ;;  %v7949_v52 = vrot.slane %v17037_v2, 2 }
 0x4cf   : > { %v6464_v38 = vadd.f32 %v15675_v18, %v20281_v44  ;;  %v6813_v31 = vpop.f32.mrf.mxu0  ;;  %v20589_v57 = vadd.f32 %v6781_v4, %v6461_v22 }
 0x4d0   : > { %v20591_v19 = vpop.f32.mrf.mxu1 }
 0x4d1   : > { %v15735_v10 = vpop.f32.mrf.mxu0  ;;  %v20594_v14 = vadd.f32 %v15727_v21, %v6464_v38 }
 0x4d2   : > { %v15678_v28 = vpop.f32.mrf.mxu1  ;;  %15909 = vmatmul.mubr.bf16.gmra.mxu1 %v7946_v33 }
 0x4d3   : > { %v6467_v25 = vadd.f32 %v15678_v28, %v20304_v27  ;;  %v20598_v0 = vpop.f32.mrf.mxu0  ;;  %15912 = vmatprep.mubr.bf16.mxu1 %v7948_v32  ;;  %v7950_v27 = vsel %vm2615_vm3, %v7947_v17, %v7949_v52  ;;  %v6053_v17 = vadd.f32 %v20361_v51, %v20370_v54 }
 0x4d4   : > { %v6334_v44 = vpop.f32.mrf.mxu1 }
 0x4d5   : > { %v6465_v4 = vadd.f32 %v6334_v44, %v20314_v63  ;;  %v15738_v22 = vpop.f32.mrf.mxu0  ;;  %v20601_v18 = vadd.f32 %v15730_v58, %v6467_v25  ;;  %v22527_v58 = vld [vmem:[#allocation28_spill] sm:$0xff] }
 0x4d6   : > { %v15679_v9 = vpop.f32.mrf.mxu1 }
 0x4d7   : > { %v6468_v21 = vadd.f32 %v15679_v9, %v20318_v12  ;;  %v6829_v5 = vpop.f32.mrf.mxu0  ;;  %v20604_v38 = vadd.f32 %v6797_v30, %v6465_v4 }
 0x4d8   : > { %v20606_v33 = vpop.f32.mrf.mxu1 }
 0x4d9   : > { %v15739_v35 = vpop.f32.mrf.mxu0  ;;  %v20609_v28 = vadd.f32 %v15731_v13, %v6468_v21 }
 0x4da   : > { %v15682_v32 = vpop.f32.mrf.mxu1  ;;  %15913 = vmatmul.mubr.bf16.gmra.mxu1 %v7950_v27 }
 0x4db   : > { %v6471_v63 = vadd.f32 %v15682_v32, %v20344_v8  ;;  %v20612_v2 = vpop.f32.mrf.mxu0  ;;  %15984 = vmatprep.mubr.bf16.mxu1 %v22527_v58 }
 0x4dc   : > { %v6350_v25 = vpop.f32.mrf.mxu1 }
 0x4dd   : > { %v6469_v12 = vadd.f32 %v6350_v25, %v20350_v37  ;;  %v15742_v30 = vpop.f32.mrf.mxu0  ;;  %v20616_v44 = vadd.f32 %v15734_v55, %v6471_v63  ;;  %v22528_v37 = vld [vmem:[#allocation30_spill] sm:$0xff]  ;;  %v22530_v25 = vld [vmem:[#allocation35_spill] sm:$0xff] }
 0x4de   : > { %v15683_v4 = vpop.f32.mrf.mxu1 }
 0x4df   : > { %v6472_v13 = vadd.f32 %v15683_v4, %v20354_v48  ;;  %v6845_v52 = vpop.f32.mrf.mxu0  ;;  %v20621_v9 = vadd.f32 %v6813_v31, %v6469_v12 }
 0x4e0   : > { %v6353_v8 = vpop.f32.mrf.mxu1 }
 0x4e1   : > { %v20623_v21 = vadd.f32 %v6353_v8, %v6053_v17  ;;  %v15743_v27 = vpop.f32.mrf.mxu0  ;;  %v20625_v32 = vadd.f32 %v15735_v10, %v6472_v13  ;;  %v6069_v10 = vadd.f32 %v20389_v24, %v20401_v42 }
 0x4e2   : > { %v15686_v58 = vpop.f32.mrf.mxu1  ;;  %15985 = vmatmul.mubr.bf16.vlgmr.msra.gmra.mxu1 %v22528_v37 }
 0x4e3   : > { %v6475_v55 = vadd.f32 %v15686_v58, %v20374_v3  ;;  %v20629_v63 = vpop.f32.mrf.mxu0  ;;  %15988 = vmatprep.mubr.bf16.mxu1 %v22530_v25 }
 0x4e4   : > { %22529 = vst [vmem:[#allocation43_spill] sm:$0xff] %v20629_v63  ;;  %v6366_v51 = vpop.f32.mrf.mxu1 }
 0x4e5   : > { %v6473_v48 = vadd.f32 %v6366_v51, %v20377_v56  ;;  %v15746_v54 = vpop.f32.mrf.mxu0  ;;  %v20633_v31 = vadd.f32 %v15738_v22, %v6475_v55  ;;  %v22531_v56 = vld [vmem:[#allocation32_spill] sm:$0xff]  ;;  %v22533_v51 = vld [vmem:[#allocation26_spill] sm:$0xff] }
 0x4e6   : > { %v15687_v12 = vpop.f32.mrf.mxu1 }
 0x4e7   : > { %v6476_v4 = vadd.f32 %v15687_v12, %v20381_v41  ;;  %v6861_v17 = vpop.f32.mrf.mxu0  ;;  %v20638_v13 = vadd.f32 %v6829_v5, %v6473_v48 }
 0x4e8   : > { %v6369_v3 = vpop.f32.mrf.mxu1 }
 0x4e9   : > { %v20640_v8 = vadd.f32 %v6369_v3, %v6069_v10  ;;  %v15747_v58 = vpop.f32.mrf.mxu0  ;;  %v20642_v37 = vadd.f32 %v15739_v35, %v6476_v4 }
 0x4ea   : > { %v15690_v25 = vpop.f32.mrf.mxu1  ;;  %15989 = vmatmul.mubr.bf16.gmra.mxu1 %v22531_v56 }
 0x4eb   : > { %v6479_v22 = vadd.f32 %v15690_v25, %v20408_v1  ;;  %v20646_v55 = vpop.f32.mrf.mxu0  ;;  %15992 = vmatprep.mubr.bf16.mxu1 %v22533_v51  ;;  %v22534_v51 = vld [vmem:[#allocation37_spill] sm:$0xff] }
 0x4ec   : > { %22532 = vst [vmem:[#allocation45_spill] sm:$0xff] %v20646_v55  ;;  %v6382_v24 = vpop.f32.mrf.mxu1 }
 0x4ed   : > { %v6477_v41 = vadd.f32 %v6382_v24, %v20414_v49  ;;  %v15750_v42 = vpop.f32.mrf.mxu0  ;;  %v20650_v5 = vadd.f32 %v15742_v30, %v6479_v22  ;;  %v22536_v22 = vld [vmem:[#allocation47_spill] sm:$0xff] }
 0x4ee   : > { %v15691_v48 = vpop.f32.mrf.mxu1 }
 0x4ef   : > { %v6480_v12 = vadd.f32 %v15691_v48, %v20417_v45  ;;  %v6877_v35 = vpop.f32.mrf.mxu0  ;;  %v20653_v10 = vadd.f32 %v6845_v52, %v6477_v41 }
 0x4f0   : > { %v6385_v4 = vpop.f32.mrf.mxu1 }
 0x4f1   : > { %v20656_v3 = vadd.f32 %v6385_v4, %v20426_v40  ;;  %v15751_v1 = vpop.f32.mrf.mxu0  ;;  %v20658_v25 = vadd.f32 %v15743_v27, %v6480_v12 }
 0x4f2   : > { %v15694_v56 = vpop.f32.mrf.mxu1  ;;  %15993 = vmatmul.mubr.bf16.gmra.mxu1 %v22534_v51 }
 0x4f3   : > { %v6483_v49 = vadd.f32 %v15694_v56, %v20446_v59  ;;  %v20662_v30 = vpop.f32.mrf.mxu0  ;;  %15996 = vmatprep.mubr.bf16.mxu1 %v22536_v22 }
 0x4f4   : > { %22535 = vst [vmem:[#allocation36_spill] sm:$0xff] %v20662_v30  ;;  %v6398_v45 = vpop.f32.mrf.mxu1  ;;  %v22552_v30 = vld [vmem:[#allocation60_spill] sm:$0xff] }
 0x4f5   : > { %v6481_v52 = vadd.f32 %v6398_v45, %v20450_v39  ;;  %v15754_v24 = vpop.f32.mrf.mxu0  ;;  %v20666_v41 = vadd.f32 %v15746_v54, %v6483_v49  ;;  %v22540_v49 = vld [vmem:[#allocation27_spill] sm:$0xff] }
 0x4f6   : > { %v15695_v40 = vpop.f32.mrf.mxu1 }
 0x4f7   : > { %v6484_v48 = vadd.f32 %v15695_v40, %v20454_v23  ;;  %v6893_v27 = vpop.f32.mrf.mxu0  ;;  %v20669_v12 = vadd.f32 %v6861_v17, %v6481_v52 }
 0x4f8   : > { %v6401_v4 = vpop.f32.mrf.mxu1 }
 0x4f9   : > { %v20672_v51 = vadd.f32 %v6401_v4, %v20464_v62  ;;  %v15755_v59 = vpop.f32.mrf.mxu0  ;;  %v20674_v56 = vadd.f32 %v15747_v58, %v6484_v48 }
 0x4fa   : > { %v15698_v22 = vpop.f32.mrf.mxu1  ;;  %15997 = vmatmul.mubr.bf16.gmra.mxu1 %v22538_v16 }
 0x4fb   : > { %22537 = vst [vmem:[#allocation33_spill] sm:$0xff] %v20672_v51  ;;  %v6487_v39 = vadd.f32 %v15698_v22, %v20492_v47  ;;  %v20678_v54 = vpop.f32.mrf.mxu0  ;;  %16000 = vmatprep.mubr.bf16.mxu1 %v22540_v49 }
 0x4fc   : > { %22539 = vst [vmem:[#allocation49_spill] sm:$0xff] %v20678_v54  ;;  %v6414_v23 = vpop.f32.mrf.mxu1  ;;  %v22549_v54 = vld [vmem:[#allocation57_spill] sm:$0xff] }
 0x4fd   : > { %v6485_v17 = vadd.f32 %v6414_v23, %v20499_v26  ;;  %v15758_v45 = vpop.f32.mrf.mxu0  ;;  %v20682_v52 = vadd.f32 %v15750_v42, %v6487_v39  ;;  %v22544_v39 = vld [vmem:[#allocation42_spill] sm:$0xff] }
 0x4fe   : > { %v15699_v62 = vpop.f32.mrf.mxu1 }
 0x4ff   : > { %v6488_v40 = vadd.f32 %v15699_v62, %v20503_v50  ;;  %v6909_v58 = vpop.f32.mrf.mxu0  ;;  %v20685_v48 = vadd.f32 %v6877_v35, %v6485_v17 }
 0x500   : > { %v6417_v4 = vpop.f32.mrf.mxu1 }
 0x501   : > { %v20688_v16 = vadd.f32 %v6417_v4, %v20513_v20  ;;  %v15759_v47 = vpop.f32.mrf.mxu0  ;;  %v20690_v22 = vadd.f32 %v15751_v1, %v6488_v40 }
 0x502   : > { %v15702_v49 = vpop.f32.mrf.mxu1  ;;  %16001 = vmatmul.mubr.bf16.gmra.mxu1 %v22542_v36 }
 0x503   : > { %22541 = vst [vmem:[#allocation40_spill] sm:$0xff] %v20688_v16  ;;  %v6491_v26 = vadd.f32 %v15702_v49, %v20538_v43  ;;  %v20694_v42 = vpop.f32.mrf.mxu0  ;;  %16004 = vmatprep.mubr.bf16.mxu1 %v22544_v39 }
 0x504   : > { %22543 = vst [vmem:[#allocation24_spill] sm:$0xff] %v20694_v42  ;;  %v6430_v50 = vpop.f32.mrf.mxu1  ;;  %v22546_v42 = vld [vmem:[#allocation54_spill] sm:$0xff] }
 0x505   : > { %v6489_v35 = vadd.f32 %v6430_v50, %v20542_v15  ;;  %v15830_v23 = vpop.f32.mrf.mxu0  ;;  %v20698_v17 = vadd.f32 %v15754_v24, %v6491_v26  ;;  %v22547_v26 = vld [vmem:[#allocation56_spill] sm:$0xff] }
 0x506   : > { %v15703_v20 = vpop.f32.mrf.mxu1 }
 0x507   : > { %v6492_v62 = vadd.f32 %v15703_v20, %v20546_v53  ;;  %v7588_v1 = vpop.f32.mrf.mxu0  ;;  %v20701_v40 = vadd.f32 %v6893_v27, %v6489_v35 }
 0x508   : > { %v6433_v4 = vpop.f32.mrf.mxu1 }
 0x509   : > { %v20704_v36 = vadd.f32 %v6433_v4, %v20551_v60  ;;  %v15831_v43 = vpop.f32.mrf.mxu0  ;;  %v20706_v49 = vadd.f32 %v15755_v59, %v6492_v62 }
 0x50a   : > { %v15706_v39 = vpop.f32.mrf.mxu1  ;;  %16005 = vmatmul.mubr.bf16.gmra.mxu1 %v22546_v42 }
 0x50b   : > { %22545 = vst [vmem:[#allocation38_spill] sm:$0xff] %v20704_v36  ;;  %v6495_v15 = vadd.f32 %v15706_v39, %v20566_v61  ;;  %v20710_v24 = vpop.f32.mrf.mxu0  ;;  %16008 = vmatprep.mubr.bf16.mxu1 %v22547_v26 }
 0x50c   : > { %v6446_v53 = vpop.f32.mrf.mxu1 }
 0x50d   : > { %v6493_v27 = vadd.f32 %v6446_v53, %v20571_v29  ;;  %v15834_v50 = vpop.f32.mrf.mxu0  ;;  %v20714_v35 = vadd.f32 %v15758_v45, %v6495_v15 }
 0x50e   : > { %v15707_v60 = vpop.f32.mrf.mxu1 }
 0x50f   : > { %v6496_v20 = vadd.f32 %v15707_v60, %v20575_v11  ;;  %v7604_v59 = vpop.f32.mrf.mxu0  ;;  %v20717_v62 = vadd.f32 %v6909_v58, %v6493_v27 }
 0x510   : > { %v20719_v4 = vpop.f32.mrf.mxu1 }
 0x511   : > { %22548 = vst [vmem:[#allocation25_spill] sm:$0xff] %v20719_v4  ;;  %v15835_v42 = vpop.f32.mrf.mxu0  ;;  %v20721_v61 = vadd.f32 %v15759_v47, %v6496_v20  ;;  %v22550_v4 = vld [vmem:[#allocation58_spill] sm:$0xff] }
 0x512   : > { %v15778_v39 = vpop.f32.mrf.mxu1  ;;  %16009 = vmatmul.mubr.bf16.gmra.mxu1 %v22549_v54 }
 0x513   : > { %v7396_v26 = vadd.f32 %v15778_v39, %v20586_v46  ;;  %v20725_v29 = vpop.f32.mrf.mxu0  ;;  %16012 = vmatprep.mubr.bf16.mxu1 %v20160_v6 }
 0x514   : > { %v7251_v45 = vpop.f32.mrf.mxu1 }
 0x515   : > { %v7394_v11 = vadd.f32 %v7251_v45, %v20589_v57  ;;  %v15838_v15 = vpop.f32.mrf.mxu0  ;;  %v20729_v58 = vadd.f32 %v15830_v23, %v7396_v26  ;;  %v22551_v23 = vld [vmem:[#allocation59_spill] sm:$0xff] }
 0x516   : > { %v15779_v53 = vpop.f32.mrf.mxu1 }
 0x517   : > { %v7397_v27 = vadd.f32 %v15779_v53, %v20594_v14  ;;  %v7620_v47 = vpop.f32.mrf.mxu0  ;;  %v20732_v60 = vadd.f32 %v7588_v1, %v7394_v11 }
 0x518   : > { %v20734_v20 = vpop.f32.mrf.mxu1 }
 0x519   : > { %v15839_v54 = vpop.f32.mrf.mxu0  ;;  %v20736_v46 = vadd.f32 %v15831_v43, %v7397_v27 }
 0x51a   : > { %v15782_v39 = vpop.f32.mrf.mxu1  ;;  %16013 = vmatmul.mubr.bf16.gmra.mxu1 %v22550_v4 }
 0x51b   : > { %v7400_v6 = vadd.f32 %v15782_v39, %v20601_v18  ;;  %v20740_v57 = vpop.f32.mrf.mxu0  ;;  %16016 = vmatprep.mubr.bf16.mxu1 %v22551_v23 }
 0x51c   : > { %v7267_v26 = vpop.f32.mrf.mxu1 }
 0x51d   : > { %v7398_v14 = vadd.f32 %v7267_v26, %v20604_v38  ;;  %v15842_v45 = vpop.f32.mrf.mxu0  ;;  %v20744_v1 = vadd.f32 %v15834_v50, %v7400_v6 }
 0x51e   : > { %v15783_v11 = vpop.f32.mrf.mxu1 }
 0x51f   : > { %v7401_v53 = vadd.f32 %v15783_v11, %v20609_v28  ;;  %v7636_v43 = vpop.f32.mrf.mxu0  ;;  %v20747_v27 = vadd.f32 %v7604_v59, %v7398_v14 }
 0x520   : > { %v20749_v36 = vpop.f32.mrf.mxu1 }
 0x521   : > { %v15843_v4 = vpop.f32.mrf.mxu0  ;;  %v20751_v18 = vadd.f32 %v15835_v42, %v7401_v53 }
 0x522   : > { %v15786_v39 = vpop.f32.mrf.mxu1  ;;  %16017 = vmatmul.mubr.bf16.gmra.mxu1 %v22552_v30 }
 0x523   : > { %v7404_v23 = vadd.f32 %v15786_v39, %v20616_v44  ;;  %v20755_v38 = vpop.f32.mrf.mxu0 }
 0x524   : > { %v7283_v50 = vpop.f32.mrf.mxu1 }
 0x525   : > { %v7402_v6 = vadd.f32 %v7283_v50, %v20621_v9  ;;  %v15846_v26 = vpop.f32.mrf.mxu0  ;;  %v20758_v28 = vadd.f32 %v15838_v15, %v7404_v23 }
 0x526   : > { %v15787_v59 = vpop.f32.mrf.mxu1 }
 0x527   : > { %v7405_v14 = vadd.f32 %v15787_v59, %v20625_v32  ;;  %v7652_v11 = vpop.f32.mrf.mxu0  ;;  %v20761_v16 = vadd.f32 %v7620_v47, %v7402_v6 }
 0x528   : > { %v20763_v42 = vpop.f32.mrf.mxu1 }
 0x529   : > { %v15847_v53 = vpop.f32.mrf.mxu0  ;;  %v20765_v30 = vadd.f32 %v15839_v54, %v7405_v14 }
 0x52a   : > { %v15790_v44 = vpop.f32.mrf.mxu1 }
 0x52b   : > { %v7408_v39 = vadd.f32 %v15790_v44, %v20633_v31  ;;  %v20768_v55 = vpop.f32.mrf.mxu0 }
 0x52c   : > { %22553 = vst [vmem:[#allocation46_spill] sm:$0xff] %v20768_v55  ;;  %v7299_v9 = vpop.f32.mrf.mxu1 }
 0x52d   : > { %v7406_v15 = vadd.f32 %v7299_v9, %v20638_v13  ;;  %v15850_v23 = vpop.f32.mrf.mxu0  ;;  %v20771_v50 = vadd.f32 %v15842_v45, %v7408_v39 }
 0x52e   : > { %v15791_v32 = vpop.f32.mrf.mxu1 }
 0x52f   : > { %v7409_v47 = vadd.f32 %v15791_v32, %v20642_v37  ;;  %v7668_v6 = vpop.f32.mrf.mxu0  ;;  %v20774_v59 = vadd.f32 %v7636_v43, %v7406_v15 }
 0x530   : > { %v20776_v51 = vpop.f32.mrf.mxu1 }
 0x531   : > { %v15851_v54 = vpop.f32.mrf.mxu0  ;;  %v20778_v14 = vadd.f32 %v15843_v4, %v7409_v47 }
 0x532   : > { %v15794_v31 = vpop.f32.mrf.mxu1 }
 0x533   : > { %v7412_v44 = vadd.f32 %v15794_v31, %v20650_v5  ;;  %v20781_v55 = vpop.f32.mrf.mxu0 }
 0x534   : > { %22554 = vst [vmem:[#allocation50_spill] sm:$0xff] %v20781_v55  ;;  %v7315_v13 = vpop.f32.mrf.mxu1 }
 0x535   : > { %v7410_v45 = vadd.f32 %v7315_v13, %v20653_v10  ;;  %v15854_v39 = vpop.f32.mrf.mxu0  ;;  %v20784_v9 = vadd.f32 %v15846_v26, %v7412_v44 }
 0x536   : > { %v15795_v37 = vpop.f32.mrf.mxu1 }
 0x537   : > { %v7413_v43 = vadd.f32 %v15795_v37, %v20658_v25  ;;  %v7684_v15 = vpop.f32.mrf.mxu0  ;;  %v20787_v32 = vadd.f32 %v7652_v11, %v7410_v45 }
 0x538   : > { %v20789_v63 = vpop.f32.mrf.mxu1 }
 0x539   : > { %22555 = vst [vmem:[#allocation51_spill] sm:$0xff] %v20789_v63  ;;  %v15855_v4 = vpop.f32.mrf.mxu0  ;;  %v20791_v47 = vadd.f32 %v15847_v53, %v7413_v43 }
 0x53a   : > { %v15798_v5 = vpop.f32.mrf.mxu1 }
 0x53b   : > { %v7416_v31 = vadd.f32 %v15798_v5, %v20666_v41  ;;  %v20794_v55 = vpop.f32.mrf.mxu0 }
 0x53c   : > { %22556 = vst [vmem:[#allocation53_spill] sm:$0xff] %v20794_v55  ;;  %v7331_v10 = vpop.f32.mrf.mxu1 }
 0x53d   : > { %v7414_v26 = vadd.f32 %v7331_v10, %v20669_v12  ;;  %v15858_v44 = vpop.f32.mrf.mxu0  ;;  %v20797_v13 = vadd.f32 %v15850_v23, %v7416_v31 }
 0x53e   : > { %v15799_v25 = vpop.f32.mrf.mxu1 }
 0x53f   : > { %v7417_v11 = vadd.f32 %v15799_v25, %v20674_v56  ;;  %v7700_v45 = vpop.f32.mrf.mxu0  ;;  %v20800_v37 = vadd.f32 %v7668_v6, %v7414_v26 }
 0x540   : > { %v20802_v63 = vpop.f32.mrf.mxu1 }
 0x541   : > { %22557 = vst [vmem:[#allocation52_spill] sm:$0xff] %v20802_v63  ;;  %v15859_v53 = vpop.f32.mrf.mxu0  ;;  %v20804_v43 = vadd.f32 %v15851_v54, %v7417_v11 }
 0x542   : > { %v15802_v41 = vpop.f32.mrf.mxu1 }
 0x543   : > { %v7420_v5 = vadd.f32 %v15802_v41, %v20682_v52  ;;  %v20807_v55 = vpop.f32.mrf.mxu0 }
 0x544   : > { %22558 = vst [vmem:[#allocation48_spill] sm:$0xff] %v20807_v55  ;;  %v7347_v12 = vpop.f32.mrf.mxu1 }
 0x545   : > { %v7418_v23 = vadd.f32 %v7347_v12, %v20685_v48  ;;  %v15862_v31 = vpop.f32.mrf.mxu0  ;;  %v20810_v10 = vadd.f32 %v15854_v39, %v7420_v5 }
 0x546   : > { %v15803_v56 = vpop.f32.mrf.mxu1 }
 0x547   : > { %v7421_v6 = vadd.f32 %v15803_v56, %v20690_v22  ;;  %v7716_v26 = vpop.f32.mrf.mxu0  ;;  %v20813_v25 = vadd.f32 %v7684_v15, %v7418_v23 }
 0x548   : > { %v20815_v63 = vpop.f32.mrf.mxu1 }
 0x549   : > { %22559 = vst [vmem:[#allocation19_spill] sm:$0xff] %v20815_v63  ;;  %v15863_v54 = vpop.f32.mrf.mxu0  ;;  %v20817_v11 = vadd.f32 %v15855_v4, %v7421_v6 }
 0x54a   : > { %v15806_v52 = vpop.f32.mrf.mxu1 }
 0x54b   : > { %v7424_v41 = vadd.f32 %v15806_v52, %v20698_v17  ;;  %v20820_v55 = vpop.f32.mrf.mxu0 }
 0x54c   : > { %22560 = vst [vmem:[#allocation29_spill] sm:$0xff] %v20820_v55  ;;  %v7363_v48 = vpop.f32.mrf.mxu1 }
 0x54d   : > { %v7422_v39 = vadd.f32 %v7363_v48, %v20701_v40  ;;  %v20823_v5 = vadd.f32 %v15858_v44, %v7424_v41  ;;  %v15934_v23 = vpop.f32.mrf.mxu0 }
 0x54e   : > { %v15807_v12 = vpop.f32.mrf.mxu1 }
 0x54f   : > { %v7425_v22 = vadd.f32 %v15807_v12, %v20706_v49  ;;  %v20826_v15 = vadd.f32 %v7700_v45, %v7422_v39  ;;  %v8521_v52 = vpop.f32.mrf.mxu0 }
 0x550   : > { %v20828_v56 = vpop.f32.mrf.mxu1 }
 0x551   : > { %22561 = vst [vmem:[#allocation55_spill] sm:$0xff] %v20828_v56  ;;  %v20830_v4 = vadd.f32 %v15859_v53, %v7425_v22  ;;  %v15935_v45 = vpop.f32.mrf.mxu0 }
 0x552   : > { %v15810_v6 = vpop.f32.mrf.mxu1 }
 0x553   : > { %v7428_v17 = vadd.f32 %v15810_v6, %v20714_v35  ;;  %v20844_v35 = vpop.f32.mrf.mxu0 }
 0x554   : > { %v7379_v55 = vpop.f32.mrf.mxu1 }
 0x555   : > { %v7426_v63 = vadd.f32 %v7379_v55, %v20717_v62  ;;  %v20834_v40 = vadd.f32 %v15862_v31, %v7428_v17 }
 0x556   : > { %v15811_v44 = vpop.f32.mrf.mxu1 }
 0x557   : > { %v7429_v41 = vadd.f32 %v15811_v44, %v20721_v61  ;;  %v20837_v49 = vadd.f32 %v7716_v26, %v7426_v63  ;;  %v15938_v26 = vpop.f32.mrf.mxu0 }
 0x558   : > { %v20839_v48 = vpop.f32.mrf.mxu1 }
 0x559   : > { %22562 = vst [vmem:[#allocation22_spill] sm:$0xff] %v20839_v48  ;;  %v20841_v39 = vadd.f32 %v15863_v54, %v7429_v41  ;;  %v8537_v44 = vpop.f32.mrf.mxu0 }
 0x55a   : > { %v15882_v53 = vpop.f32.mrf.mxu1 }
 0x55b   : > { %v8196_v12 = vadd.f32 %v15882_v53, %v20729_v58 }
 0x55c   : > { %v8051_v22 = vpop.f32.mrf.mxu1 }
 0x55d   : > { %v8194_v55 = vadd.f32 %v8051_v22, %v20732_v60  ;;  %v20847_v62 = vadd.f32 %v15934_v23, %v8196_v12 }
 0x55e   : > { %v15883_v31 = vpop.f32.mrf.mxu1 }
 0x55f   : > { %v8197_v61 = vadd.f32 %v15883_v31, %v20736_v46  ;;  %v20850_v63 = vadd.f32 %v8521_v52, %v8194_v55  ;;  %v15939_v52 = vpop.f32.mrf.mxu0 }
 0x560   : > { %v20852_v6 = vpop.f32.mrf.mxu1 }
 0x561   : > { %v20854_v54 = vadd.f32 %v15935_v45, %v8197_v61 }
 0x562   : > { %v15886_v17 = vpop.f32.mrf.mxu1 }
 0x563   : > { %v8200_v58 = vadd.f32 %v15886_v17, %v20744_v1 }
 0x564   : > { %v8067_v41 = vpop.f32.mrf.mxu1 }
 0x565   : > { %v8198_v53 = vadd.f32 %v8067_v41, %v20747_v27  ;;  %v20858_v60 = vadd.f32 %v15938_v26, %v8200_v58  ;;  %v20881_v41 = vpop.f32.mrf.mxu0 }
 0x566   : > { %v15887_v23 = vpop.f32.mrf.mxu1 }
 0x567   : > { %v8201_v12 = vadd.f32 %v15887_v23, %v20751_v18  ;;  %v20861_v46 = vadd.f32 %v8537_v44, %v8198_v53 }
 0x568   : > { %v20863_v22 = vpop.f32.mrf.mxu1 }
 0x569   : > { %v20865_v55 = vadd.f32 %v15939_v52, %v8201_v12 }
 0x56a   : > { %v15890_v45 = vpop.f32.mrf.mxu1 }
 0x56b   : > { %v20868_v31 = vadd.f32 %v15890_v45, %v20758_v28 }
 0x56c   : > { %v8083_v1 = vpop.f32.mrf.mxu1 }
 0x56d   : > { %v20871_v61 = vadd.f32 %v8083_v1, %v20761_v16 }
 0x56e   : > { %v15891_v27 = vpop.f32.mrf.mxu1 }
 0x56f   : > { %v20874_v26 = vadd.f32 %v15891_v27, %v20765_v30  ;;  %v20891_v30 = vpop.f32.mrf.mxu0 }
 0x570   : > { %v20876_v18 = vpop.f32.mrf.mxu1 }
 0x571   : > { %v20896_v45 = vpop.f32.mrf.mxu0 }
 0x572   : > { %v15894_v17 = vpop.f32.mrf.mxu1 }
 0x573   : > { %v20879_v58 = vadd.f32 %v15894_v17, %v20771_v50  ;;  %v20906_v17 = vpop.f32.mrf.mxu0 }
 0x574   : > { %v8099_v44 = vpop.f32.mrf.mxu1 }
 0x575   : > { %v20884_v28 = vadd.f32 %v8099_v44, %v20774_v59  ;;  %v20913_v48 = vpop.f32.mrf.mxu0 }
 0x576   : > { %v15895_v53 = vpop.f32.mrf.mxu1 }
 0x577   : > { %v20887_v16 = vadd.f32 %v15895_v53, %v20778_v14 }
 0x578   : > { %v20889_v23 = vpop.f32.mrf.mxu1 }
 0x57a   : > { %v15898_v12 = vpop.f32.mrf.mxu1 }
 0x57b   : > { %v20894_v52 = vadd.f32 %v15898_v12, %v20784_v9  ;;  %v20911_v12 = vld [vmem:[#allocation8 + $0x90] sm:$0x77] }
 0x57c   : > { %v8115_v50 = vpop.f32.mrf.mxu1  ;;  %22566 = vst [vmem:[#allocation32_spill] sm:$0xff] %v20911_v12 }
 0x57d   : > { %v20899_v1 = vadd.f32 %v8115_v50, %v20787_v32 }
 0x57e   : > { %v15899_v59 = vpop.f32.mrf.mxu1 }
 0x57f   : > { %22563 = vst [vmem:[#allocation28_spill] sm:$0xff] %v20899_v1  ;;  %v20902_v27 = vadd.f32 %v15899_v59, %v20791_v47  ;;  %v13499_v47 = vcombine.high %v20911_v12, %v20911_v12 }
 0x580   : > { %v20904_v14 = vpop.f32.mrf.mxu1 }
 0x581   : > { %22564 = vst [vmem:[#allocation30_spill] sm:$0xff] %v20902_v27  ;;  %9361 = vmatprep.mubr.bf16.mxu1 %v13499_v47 }
 0x582   : > { %v15902_v44 = vpop.f32.mrf.mxu1 }
 0x583   : > { %v20909_v53 = vadd.f32 %v15902_v44, %v20797_v13  ;;  %v17045_v13 = vld [vmem:[#allocation8 + $0x4] ss:$12 sps:$4 sm:$0xff]   ;;  %v20925_v44 = vpop.f32.mrf.mxu0 }
 0x584   : > { %v8131_v9 = vpop.f32.mrf.mxu1  ;;  %9313 = vmatprep.mubr.bf16.mxu0 %v17045_v13 }
 0x585   : > { %22565 = vst [vmem:[#allocation35_spill] sm:$0xff] %v20909_v53  ;;  %v20916_v32 = vadd.f32 %v8131_v9, %v20800_v37  ;;  %v20930_v9 = vpop.f32.mrf.mxu0 }
 0x586   : > { %v15903_v50 = vpop.f32.mrf.mxu1 }
 0x587   : > { %22567 = vst [vmem:[#allocation26_spill] sm:$0xff] %v20916_v32  ;;  %v20921_v59 = vadd.f32 %v15903_v50, %v20804_v43  ;;  %v20940_v50 = vpop.f32.mrf.mxu0 }
 0x588   : > { %v20923_v56 = vpop.f32.mrf.mxu1 }
 0x589   : > { %22568 = vst [vmem:[#allocation37_spill] sm:$0xff] %v20921_v59  ;;  %22569 = vst [vmem:[#allocation47_spill] sm:$0xff] %v20923_v56  ;;  %v20947_v1 = vpop.f32.mrf.mxu0 }
 0x58a   : > { %v15906_v53 = vpop.f32.mrf.mxu1 }
 0x58b   : > { %v20928_v27 = vadd.f32 %v15906_v53, %v20810_v10  ;;  %v22574_v53 = vld [vmem:[#allocation44_spill] sm:$0xff] }
 0x58c   : > { %v8147_v37 = vpop.f32.mrf.mxu1 }
 0x58d   : > { %22570 = vst [vmem:[#allocation39_spill] sm:$0xff] %v20928_v27  ;;  %v20933_v12 = vadd.f32 %v8147_v37, %v20813_v25  ;;  %v22575_v27 = vld [vmem:[#allocation20_spill] sm:$0xff] }
 0x58e   : > { %v15907_v32 = vpop.f32.mrf.mxu1  ;;  %v6021_v56 = vadd.f32 %v22575_v27, %v22574_v53  ;;  %v22578_v53 = vld [vmem:[#allocation31_spill] sm:$0xff] }
 0x58f   : > { %22571 = vst [vmem:[#allocation27_spill] sm:$0xff] %v20933_v12  ;;  %v20936_v43 = vadd.f32 %v15907_v32, %v20817_v11  ;;  %v20958_v12 = vpop.f32.mrf.mxu0 }
 0x590   : > { %v20938_v47 = vpop.f32.mrf.mxu1  ;;  %v6462_v11 = vadd.f32 %v20591_v19, %v6021_v56 }
 0x591   : > { %22572 = vst [vmem:[#allocation41_spill] sm:$0xff] %v20936_v43  ;;  %v20967_v19 = vpop.f32.mrf.mxu0 }
 0x592   : > { %v15910_v59 = vpop.f32.mrf.mxu1 }
 0x593   : > { %v20943_v13 = vadd.f32 %v15910_v59, %v20823_v5  ;;  %v6925_v59 = vadd.f32 %v20568_v34, %v6462_v11  ;;  %v20979_v11 = vpop.f32.mrf.mxu0 }
 0x594   : > { %v8163_v10 = vpop.f32.mrf.mxu1 }
 0x595   : > { %22573 = vst [vmem:[#allocation42_spill] sm:$0xff] %v20943_v13  ;;  %v20950_v25 = vadd.f32 %v8163_v10, %v20826_v15  ;;  %v22579_v13 = vld [vmem:[#allocation21_spill] sm:$0xff] }
 0x596   : > { %v15911_v37 = vpop.f32.mrf.mxu1  ;;  %v6037_v15 = vadd.f32 %v22579_v13, %v22578_v53  ;;  %v20990_v53 = vpop.f32.mrf.mxu0 }
 0x597   : > { %22576 = vst [vmem:[#allocation54_spill] sm:$0xff] %v20950_v25  ;;  %v20954_v32 = vadd.f32 %v15911_v37, %v20830_v4  ;;  %v7395_v25 = vadd.f32 %v20734_v20, %v6925_v59 }
 0x598   : > { %v20956_v43 = vpop.f32.mrf.mxu1  ;;  %v6466_v4 = vadd.f32 %v20606_v33, %v6037_v15  ;;  %v20988_v33 = vld [vmem:[%s22170_s5] ss:$0 sm:$0xff] }
 0x599   : > { %22577 = vst [vmem:[#allocation56_spill] sm:$0xff] %v20954_v32 }
 0x59a   : > { %v15914_v5 = vpop.f32.mrf.mxu1  ;;  %v6929_v13 = vadd.f32 %v20582_v7, %v6466_v4 }
 0x59b   : > { %v20962_v27 = vadd.f32 %v15914_v5, %v20834_v40  ;;  %v7732_v40 = vadd.f32 %v20710_v24, %v7395_v25 }
 0x59c   : > { %v8179_v10 = vpop.f32.mrf.mxu1  ;;  %v7399_v59 = vadd.f32 %v20749_v36, %v6929_v13 }
 0x59d   : > { %v20970_v56 = vadd.f32 %v8179_v10, %v20837_v49  ;;  %v8195_v5 = vadd.f32 %v20852_v6, %v7732_v40  ;;  %v20997_v10 = vpop.f32.mrf.mxu0 }
 0x59e   : > { %v15915_v37 = vpop.f32.mrf.mxu1 }
 0x59f   : > { %v20974_v32 = vadd.f32 %v15915_v37, %v20841_v39  ;;  %v8665_v6 = vadd.f32 %v20844_v35, %v8195_v5 }
 0x5a0   : > { %v20976_v34 = vpop.f32.mrf.mxu1 }
 0x5a2   : > { %v15986_v20 = vpop.f32.mrf.mxu1 }
 0x5a3   : > { %v9003_v49 = vadd.f32 %v15986_v20, %v20847_v62  ;;  %v7736_v62 = vadd.f32 %v20725_v29, %v7399_v59 }
 0x5a4   : > { %v8858_v39 = vpop.f32.mrf.mxu1 }
 0x5a5   : > { %v9001_v24 = vadd.f32 %v8858_v39, %v20850_v63  ;;  %v9046_v7 = vadd.f32 %v20988_v33, %v9003_v49  ;;  %v6933_v63 = vadd.f32 %v20598_v0, %v20623_v21  ;;  %v8199_v13 = vadd.f32 %v20863_v22, %v7736_v62  ;;  %v21007_v39 = vpop.f32.mrf.mxu0 }
 0x5a6   : > { %v15987_v25 = vpop.f32.mrf.mxu1 }
 0x5a7   : > { %v9004_v15 = vadd.f32 %v15987_v25, %v20854_v54  ;;  %v9044_v4 = vadd.f32 %v20988_v33, %v9001_v24  ;;  %v9082_v49 = vmax.f32 %v9046_v7, 0.0  ;;  %v7403_v5 = vadd.f32 %v20763_v42, %v6933_v63 }
 0x5a8   : > { %v8861_v36 = vpop.f32.mrf.mxu1  ;;  %v6937_v63 = vadd.f32 %v20612_v2, %v20640_v8 }
 0x5a9   : > { %v9047_v37 = vadd.f32 %v20988_v33, %v9004_v15  ;;  %v9002_v40 = vadd.f32 %v8861_v36, %v8665_v6  ;;  %v9080_v24 = vmax.f32 %v9044_v4, 0.0  ;;  %v7740_v42 = vadd.f32 %v20740_v57, %v7403_v5  ;;  %v21018_v36 = vpop.f32.mrf.mxu0 }
 0x5aa   : > { %v15990_v20 = vpop.f32.mrf.mxu1  ;;  %v8672_v57 = vadd.f32 %v20896_v45, %v20871_v61 }
 0x5ab   : > { %v9083_v54 = vmax.f32 %v9047_v37, 0.0  ;;  %v9045_v35 = vadd.f32 %v20988_v33, %v9002_v40  ;;  %v9007_v29 = vadd.f32 %v15990_v20, %v20858_v60  ;;  %v8669_v60 = vadd.f32 %v20881_v41, %v8199_v13 }
 0x5ac   : > { %v8874_v59 = vpop.f32.mrf.mxu1 }
 0x5ad   : > { %v21009_v25 = vpack.c.bf16 %v9083_v54, %v9082_v49  ;;  %v9081_v15 = vmax.f32 %v9045_v35, 0.0  ;;  %v9005_v0 = vadd.f32 %v8874_v59, %v20861_v46  ;;  %v9050_v7 = vadd.f32 %v20988_v33, %v9007_v29 }
 0x5ae   : > { %v15991_v21 = vpop.f32.mrf.mxu1  ;;  %v8674_v46 = vadd.f32 %v20891_v30, %v20868_v31  ;;  %v7407_v35 = vadd.f32 %v20776_v51, %v6937_v63  ;;  %v8675_v31 = vadd.f32 %v20906_v17, %v20874_v26  ;;  %v21033_v30 = vpop.f32.mrf.mxu0  ;;  %v22581_v63 = vld [vmem:[#allocation51_spill] sm:$0xff] }
 0x5af   : > { %v21012_v22 = vpack.c.bf16 %v9081_v15, %v9080_v24  ;;  %v9008_v6 = vadd.f32 %v15991_v21, %v20865_v55  ;;  %v9048_v4 = vadd.f32 %v20988_v33, %v9005_v0  ;;  %v8203_v55 = vadd.f32 %v20876_v18, %v7740_v42 }
 0x5b0   : > { %v8877_v62 = vpop.f32.mrf.mxu1  ;;  %v9086_v41 = vmax.f32 %v9050_v7, 0.0  ;;  %v7744_v51 = vadd.f32 %v20755_v38, %v7407_v35  ;;  %v21042_v21 = vpop.f32.mrf.mxu0  ;;  %v8676_v38 = vadd.f32 %v20930_v9, %v20884_v28  ;;  %v22582_v35 = vld [vmem:[#allocation46_spill] sm:$0xff] }
 0x5b1   : > { %v9051_v37 = vadd.f32 %v20988_v33, %v9008_v6  ;;  %v9006_v40 = vadd.f32 %v8877_v62, %v8669_v60  ;;  %v9084_v2 = vmax.f32 %v9048_v4, 0.0  ;;  %v8673_v15 = vadd.f32 %v20913_v48, %v8203_v55  ;;  %v22580_v60 = vld [vmem:[#allocation43_spill] sm:$0xff] }
 0x5b2   : > { %v15994_v20 = vpop.f32.mrf.mxu1  ;;  %v8678_v6 = vadd.f32 %v20925_v44, %v20879_v58  ;;  %v6941_v42 = vadd.f32 %v22580_v60, %v20656_v3  ;;  %v8207_v62 = vadd.f32 %v20889_v23, %v7744_v51  ;;  %v8679_v58 = vadd.f32 %v20940_v50, %v20887_v16  ;;  %v21057_v44 = vpop.f32.mrf.mxu0  ;;  %v22586_v60 = vld [vmem:[#allocation52_spill] sm:$0xff] }
 0x5b3   : > { %v9087_v13 = vmax.f32 %v9051_v37, 0.0  ;;  %v9049_v49 = vadd.f32 %v20988_v33, %v9006_v40  ;;  %v9011_v54 = vadd.f32 %v15994_v20, %v8674_v46 }
 0x5b4   : > { %v8890_v29 = vpop.f32.mrf.mxu1  ;;  %v7411_v55 = vadd.f32 %v22581_v63, %v6941_v42 }
 0x5b5   : > { %v21035_v8 = vpack.c.bf16 %v9087_v13, %v9086_v41  ;;  %v9085_v18 = vmax.f32 %v9049_v49, 0.0  ;;  %v9009_v5 = vadd.f32 %v8890_v29, %v8672_v57  ;;  %v9054_v45 = vadd.f32 %v20988_v33, %v9011_v54 }
 0x5b6   : > { %v15995_v59 = vpop.f32.mrf.mxu1  ;;  %v8677_v54 = vadd.f32 %v20947_v1, %v8207_v62  ;;  %v7748_v29 = vadd.f32 %v22582_v35, %v7411_v55  ;;  %v22585_v1 = vld [vmem:[#allocation28_spill] sm:$0xff] }
 0x5b7   : > { %v21037_v61 = vpack.c.bf16 %v9085_v18, %v9084_v2  ;;  %v9012_v24 = vadd.f32 %v15995_v59, %v8675_v31  ;;  %v9052_v26 = vadd.f32 %v20988_v33, %v9009_v5  ;;  %v9090_v48 = vmax.f32 %v9054_v45, 0.0  ;;  %v21066_v2 = vpop.f32.mrf.mxu0  ;;  %v22583_v59 = vld [vmem:[#allocation33_spill] sm:$0xff]  ;;  %v22591_v35 = vld [vmem:[#allocation36_spill] sm:$0xff] }
 0x5b8   : > { %v8893_v0 = vpop.f32.mrf.mxu1  ;;  %v8682_v5 = vadd.f32 %v20958_v12, %v20894_v52  ;;  %v22584_v45 = vld [vmem:[#allocation45_spill] sm:$0xff] }
 0x5b9   : > { %v9055_v17 = vadd.f32 %v20988_v33, %v9012_v24  ;;  %v9010_v7 = vadd.f32 %v8893_v0, %v8673_v15  ;;  %v9088_v3 = vmax.f32 %v9052_v26, 0.0  ;;  %v6945_v24 = vadd.f32 %v22584_v45, %v22583_v59  ;;  %v21081_v12 = vpop.f32.mrf.mxu0 }
 0x5ba   : > { %v15998_v4 = vpop.f32.mrf.mxu1  ;;  %v8211_v15 = vadd.f32 %v20904_v14, %v7748_v29  ;;  %v8680_v0 = vadd.f32 %v20967_v19, %v22585_v1 }
 0x5bb   : > { %v9091_v37 = vmax.f32 %v9055_v17, 0.0  ;;  %v9053_v40 = vadd.f32 %v20988_v33, %v9010_v7  ;;  %v9015_v46 = vadd.f32 %v15998_v4, %v8678_v6  ;;  %v7415_v42 = vadd.f32 %v22586_v60, %v6945_v24  ;;  %v22587_v4 = vld [vmem:[#allocation30_spill] sm:$0xff] }
 0x5bc   : > { %v8906_v20 = vpop.f32.mrf.mxu1  ;;  %v8683_v52 = vadd.f32 %v20979_v11, %v22587_v4  ;;  %v8681_v55 = vadd.f32 %v20990_v53, %v8211_v15  ;;  %v22594_v15 = vld [vmem:[#allocation19_spill] sm:$0xff] }
 0x5bd   : > { %v21059_v57 = vpack.c.bf16 %v9091_v37, %v9090_v48  ;;  %v9089_v23 = vmax.f32 %v9053_v40, 0.0  ;;  %v9013_v41 = vadd.f32 %v8906_v20, %v8676_v38  ;;  %v9058_v9 = vadd.f32 %v20988_v33, %v9015_v46  ;;  %v22588_v20 = vld [vmem:[#allocation50_spill] sm:$0xff] }
 0x5be   : > { %v15999_v13 = vpop.f32.mrf.mxu1 }
 0x5bf   : > { %v21061_v28 = vpack.c.bf16 %v9089_v23, %v9088_v3  ;;  %v9016_v49 = vadd.f32 %v15999_v13, %v8679_v58  ;;  %v9056_v16 = vadd.f32 %v20988_v33, %v9013_v41  ;;  %v9094_v26 = vmax.f32 %v9058_v9, 0.0  ;;  %v15962_v23 = vpop.f32.mrf.mxu0  ;;  %v22589_v9 = vld [vmem:[#allocation35_spill] sm:$0xff] }
 0x5c0   : > { %v8909_v31 = vpop.f32.mrf.mxu1  ;;  %v7752_v58 = vadd.f32 %v22588_v20, %v7415_v42 }
 0x5c1   : > { %v9059_v50 = vadd.f32 %v20988_v33, %v9016_v49  ;;  %v9014_v18 = vadd.f32 %v8909_v31, %v8677_v54  ;;  %v9092_v38 = vmax.f32 %v9056_v16, 0.0  ;;  %v8686_v49 = vadd.f32 %v20997_v10, %v22589_v9  ;;  %v22590_v54 = vld [vmem:[#allocation40_spill] sm:$0xff]  ;;  %v22592_v31 = vld [vmem:[#allocation47_spill] sm:$0xff] }
 0x5c2   : > { %v16002_v51 = vpop.f32.mrf.mxu1  ;;  %v6949_v29 = vadd.f32 %v22591_v35, %v22590_v54  ;;  %v8215_v16 = vadd.f32 %v22592_v31, %v7752_v58  ;;  %v22598_v58 = vld [vmem:[#allocation38_spill] sm:$0xff] }
 0x5c3   : > { %v9095_v17 = vmax.f32 %v9059_v50, 0.0  ;;  %v9057_v7 = vadd.f32 %v20988_v33, %v9014_v18  ;;  %v9019_v6 = vadd.f32 %v16002_v51, %v8682_v5  ;;  %v22593_v18 = vld [vmem:[#allocation26_spill] sm:$0xff] }
 0x5c4   : > { %v8922_v62 = vpop.f32.mrf.mxu1  ;;  %v8684_v53 = vadd.f32 %v21007_v39, %v22593_v18  ;;  %v7419_v51 = vadd.f32 %v22594_v15, %v6949_v29  ;;  %v8685_v4 = vadd.f32 %v21033_v30, %v8215_v16  ;;  %v22601_v31 = vld [vmem:[#allocation34_spill] sm:$0xff]  ;;  %v22602_v16 = vld [vmem:[#allocation23_spill] sm:$0xff] }
 0x5c5   : > { %v21083_v48 = vpack.c.bf16 %v9095_v17, %v9094_v26  ;;  %v9093_v14 = vmax.f32 %v9057_v7, 0.0  ;;  %v9017_v37 = vadd.f32 %v8922_v62, %v8680_v0  ;;  %v9062_v46 = vadd.f32 %v20988_v33, %v9019_v6  ;;  %v22595_v0 = vld [vmem:[#allocation37_spill] sm:$0xff]  ;;  %v8633_v26 = vpop.f32.mrf.mxu0  ;;  %v22603_v18 = vld [vmem:[#allocation55_spill] sm:$0xff] }
 0x5c6   : > { %v16003_v40 = vpop.f32.mrf.mxu1  ;;  %v8687_v10 = vadd.f32 %v21018_v36, %v22595_v0 }
 0x5c7   : > { %v21085_v19 = vpack.c.bf16 %v9093_v14, %v9092_v38  ;;  %v9020_v63 = vadd.f32 %v16003_v40, %v8683_v52  ;;  %v9060_v11 = vadd.f32 %v20988_v33, %v9017_v37  ;;  %v9098_v5 = vmax.f32 %v9062_v46, 0.0  ;;  %v22596_v38 = vld [vmem:[#allocation53_spill] sm:$0xff]  ;;  %v15963_v40 = vpop.f32.mrf.mxu0 }
 0x5c8   : > { %v8925_v3 = vpop.f32.mrf.mxu1  ;;  %v7756_v14 = vadd.f32 %v22596_v38, %v7419_v51 }
 0x5c9   : > { %v9063_v41 = vadd.f32 %v20988_v33, %v9020_v63  ;;  %v9018_v13 = vadd.f32 %v8925_v3, %v8681_v55  ;;  %v9096_v17 = vmax.f32 %v9060_v11, 0.0  ;;  %v22597_v55 = vld [vmem:[#allocation39_spill] sm:$0xff]  ;;  %v22599_v3 = vld [vmem:[#allocation49_spill] sm:$0xff] }
 0x5ca   : > { %v16006_v50 = vpop.f32.mrf.mxu1  ;;  %v8690_v20 = vadd.f32 %v21042_v21, %v22597_v55  ;;  %v6953_v11 = vadd.f32 %v22599_v3, %v22598_v58  ;;  %v22609_v58 = vld [vmem:[#allocation54_spill] sm:$0xff] }
 0x5cb   : > { %v9099_v59 = vmax.f32 %v9063_v41, 0.0  ;;  %v9061_v45 = vadd.f32 %v20988_v33, %v9018_v13  ;;  %v9023_v24 = vadd.f32 %v16006_v50, %v8686_v49  ;;  %v8219_v41 = vadd.f32 %v20938_v47, %v7756_v14  ;;  %v22600_v13 = vld [vmem:[#allocation27_spill] sm:$0xff] }
 0x5cc   : > { %v8938_v1 = vpop.f32.mrf.mxu1  ;;  %v8688_v9 = vadd.f32 %v21057_v44, %v22600_v13  ;;  %v6149_v50 = vadd.f32 %v22602_v16, %v22601_v31  ;;  %v22605_v44 = vld [vmem:[#allocation25_spill] sm:$0xff]  ;;  %v22610_v13 = vld [vmem:[#allocation22_spill] sm:$0xff] }
 0x5cd   : > { %v9097_v7 = vmax.f32 %v9061_v45, 0.0  ;;  %v9021_v6 = vadd.f32 %v8938_v1, %v8684_v53  ;;  %v21103_v60 = vpack.c.bf16 %v9099_v59, %v9098_v5  ;;  %v9066_v39 = vadd.f32 %v20988_v33, %v9023_v24  ;;  %v22604_v5 = vld [vmem:[#allocation41_spill] sm:$0xff]  ;;  %v8636_v45 = vpop.f32.mrf.mxu0 }
 0x5ce   : > { %v16007_v42 = vpop.f32.mrf.mxu1  ;;  %v7423_v53 = vadd.f32 %v22603_v18, %v6953_v11  ;;  %v8691_v59 = vadd.f32 %v21066_v2, %v22604_v5  ;;  %v6494_v1 = vadd.f32 %v22605_v44, %v6149_v50  ;;  %v22612_v5 = vld [vmem:[#allocation29_spill] sm:$0xff] }
 0x5cf   : > { %v9024_v62 = vadd.f32 %v16007_v42, %v8687_v10  ;;  %v21107_v52 = vpack.c.bf16 %v9097_v7, %v9096_v17  ;;  %v9064_v36 = vadd.f32 %v20988_v33, %v9021_v6  ;;  %v9102_v49 = vmax.f32 %v9066_v39, 0.0  ;;  %v22606_v42 = vld [vmem:[#allocation48_spill] sm:$0xff]  ;;  %v15966_v2 = vpop.f32.mrf.mxu0 }
 0x5d0   : > { %v8941_v37 = vpop.f32.mrf.mxu1  ;;  %v8689_v7 = vadd.f32 %v21081_v12, %v8219_v41  ;;  %v7760_v39 = vadd.f32 %v22606_v42, %v7423_v53  ;;  %v8692_v12 = vadd.f32 %v8633_v26, %v22609_v58 }
 0x5d1   : > { %v9067_v46 = vadd.f32 %v20988_v33, %v9024_v62  ;;  %v9022_v63 = vadd.f32 %v8941_v37, %v8685_v4  ;;  %v9100_v47 = vmax.f32 %v9064_v36, 0.0  ;;  %v22607_v37 = vld [vmem:[#allocation42_spill] sm:$0xff] }
 0x5d2   : > { %v16010_v30 = vpop.f32.mrf.mxu1  ;;  %v8694_v36 = vadd.f32 %v15962_v23, %v22607_v37  ;;  %v8223_v55 = vadd.f32 %v20956_v43, %v7760_v39 }
 0x5d3   : > { %v9103_v54 = vmax.f32 %v9067_v46, 0.0  ;;  %v9065_v35 = vadd.f32 %v20988_v33, %v9022_v63  ;;  %v9027_v29 = vadd.f32 %v16010_v30, %v8690_v20  ;;  %v22608_v46 = vld [vmem:[#allocation24_spill] sm:$0xff] }
 0x5d4   : > { %v8954_v21 = vpop.f32.mrf.mxu1  ;;  %v6957_v63 = vadd.f32 %v22608_v46, %v6494_v1  ;;  %v8693_v26 = vadd.f32 %v8636_v45, %v8223_v55  ;;  %v8698_v1 = vadd.f32 %v15966_v2, %v20962_v27 }
 0x5d5   : > { %v9101_v24 = vmax.f32 %v9065_v35, 0.0  ;;  %v9025_v15 = vadd.f32 %v8954_v21, %v8688_v9  ;;  %v21125_v51 = vpack.c.bf16 %v9103_v54, %v9102_v49  ;;  %v9070_v10 = vadd.f32 %v20988_v33, %v9027_v29  ;;  %v22611_v54 = vld [vmem:[#allocation56_spill] sm:$0xff]  ;;  %v8649_v29 = vpop.f32.mrf.mxu0 }
 0x5d6   : > { %v16011_v0 = vpop.f32.mrf.mxu1  ;;  %v7427_v9 = vadd.f32 %v22610_v13, %v6957_v63  ;;  %v8695_v35 = vadd.f32 %v15963_v40, %v22611_v54  ;;  %v17061_v54 = vld [vmem:[#allocation8 + $0x64] ss:$12 sps:$4 sm:$0xff]  }
 0x5d7   : > { %v9028_v17 = vadd.f32 %v16011_v0, %v8691_v59  ;;  %v21130_v6 = vpack.c.bf16 %v9101_v24, %v9100_v47  ;;  %v9068_v4 = vadd.f32 %v20988_v33, %v9025_v15  ;;  %v9106_v3 = vmax.f32 %v9070_v10, 0.0  ;;  %v15967_v24 = vpop.f32.mrf.mxu0 }
 0x5d8   : > { %v8957_v62 = vpop.f32.mrf.mxu1  ;;  %v7764_v59 = vadd.f32 %v22612_v5, %v7427_v9  ;;  %v17054_v9 = vld [vmem:[#allocation8 + $0x38] ss:$12 sps:$4 sm:$0xff]  }
 0x5d9   : > { %v9071_v38 = vadd.f32 %v20988_v33, %v9028_v17  ;;  %v9026_v14 = vadd.f32 %v8957_v62, %v8689_v7  ;;  %v9104_v31 = vmax.f32 %v9068_v4, 0.0  ;;  %v8696_v17 = vadd.f32 %v8649_v29, %v20970_v56  ;;  %v17059_v29 = vld [vmem:[#allocation8 + $0x60] ss:$12 sps:$4 sm:$0xff]  }
 0x5da   : > { %v16014_v20 = vpop.f32.mrf.mxu1  ;;  %v8227_v0 = vadd.f32 %v20976_v34, %v7764_v59  ;;  %v8699_v4 = vadd.f32 %v15967_v24, %v20974_v32  ;;  %v17073_v5 = vld [vmem:[%s22172_s7 + $0x18] sm:$0xff]   ;;  %v17074_v59 = vld [vmem:[%s22172_s7 + $0x70] sm:$0xff]   ;;  %v17076_v24 = vld [vmem:[%s22172_s7 + $0x68] sm:$0xff]  }
 0x5db   : > { %v9107_v11 = vmax.f32 %v9071_v38, 0.0  ;;  %v9069_v41 = vadd.f32 %v20988_v33, %v9026_v14  ;;  %v9031_v30 = vadd.f32 %v16014_v20, %v8694_v36  ;;  %v8652_v38 = vpop.f32.mrf.mxu0 }
 0x5dc   : > { %v8970_v49 = vpop.f32.mrf.mxu1  ;;  %v8697_v27 = vadd.f32 %v8652_v38, %v8227_v0  ;;  %v17082_v0 = vld [vmem:[%s22172_s7 + $0x50] sm:$0xff]  }
 0x5dd   : > { %v9105_v23 = vmax.f32 %v9069_v41, 0.0  ;;  %v9029_v16 = vadd.f32 %v8970_v49, %v8692_v12  ;;  %v9155_v50 = vpack.c.bf16 %v9107_v11, %v9106_v3  ;;  %v9074_v43 = vadd.f32 %v20988_v33, %v9031_v30  ;;  %v17055_v49 = vld [vmem:[#allocation8 + $0x48] ss:$12 sps:$4 sm:$0xff]  }
 0x5de   : > { %v16015_v18 = vpop.f32.mrf.mxu1 }
 0x5df   : > { %v9032_v53 = vadd.f32 %v16015_v18, %v8695_v35  ;;  %v9154_v21 = vpack.c.bf16 %v9105_v23, %v9104_v31  ;;  %v9072_v15 = vadd.f32 %v20988_v33, %v9029_v16  ;;  %v9110_v7 = vmax.f32 %v9074_v43, 0.0  ;;  %v17058_v35 = vld [vmem:[#allocation8 + $0x50] ss:$12 sps:$4 sm:$0xff]   ;;  %v17062_v23 = vld [vmem:[#allocation8 + $0x68] ss:$12 sps:$4 sm:$0xff]  }
 0x5e0   : > { %v8973_v47 = vpop.f32.mrf.mxu1  ;;  %v17065_v31 = vld [vmem:[#allocation8 + $0x7c] ss:$12 sps:$4 sm:$0xff]   ;;  %v17063_v16 = vld [vmem:[#allocation8 + $0x78] ss:$12 sps:$4 sm:$0xff]  }
 0x5e1   : > { %v9075_v44 = vadd.f32 %v20988_v33, %v9032_v53  ;;  %v9030_v40 = vadd.f32 %v8973_v47, %v8693_v26  ;;  %v9108_v14 = vmax.f32 %v9072_v15, 0.0  ;;  %v17067_v18 = vld [vmem:[#allocation8 + $0x98] ss:$0 sps:$4 sm:$0x77]   ;;  %v17070_v53 = vld [vmem:[%s22172_s7 + $0x28] sm:$0xff]   ;;  %v17071_v26 = vld [vmem:[%s22172_s7 + $0x20] sm:$0xff]  }
 0x5e2   : > { %v16018_v10 = vpop.f32.mrf.mxu1  ;;  %v17069_v43 = vld [vmem:[%s22172_s7 + $0x30] sm:$0xff]   ;;  %v17077_v15 = vld [vmem:[%s22172_s7 + $0x8] sm:$0xff]  }
 0x5e3   : > { %v9111_v42 = vmax.f32 %v9075_v44, 0.0  ;;  %v9073_v45 = vadd.f32 %v20988_v33, %v9030_v40  ;;  %v9035_v39 = vadd.f32 %v16018_v10, %v8698_v1  ;;  %v17075_v47 = vld [vmem:[%s22172_s7 + $0x10] sm:$0xff]   ;;  %v17078_v44 = vld [vmem:[%s22172_s7 + $0x60] sm:$0xff]   ;;  %v17080_v1 = vld [vmem:[%s22172_s7 + $0x58] sm:$0xff]  }
 0x5e4   : > { %v8986_v62 = vpop.f32.mrf.mxu1  ;;  %v17079_v40 = vld [vmem:[%s22172_s7] sm:$0xff]   ;;  %v17083_v10 = vld [vmem:[%s22172_s7 + $0x48] sm:$0xff]  }
 0x5e5   : > { %v9109_v37 = vmax.f32 %v9073_v45, 0.0  ;;  %v9033_v36 = vadd.f32 %v8986_v62, %v8696_v17  ;;  %v9157_v46 = vpack.c.bf16 %v9111_v42, %v9110_v7  ;;  %v9078_v34 = vadd.f32 %v20988_v33, %v9035_v39  ;;  %v17086_v17 = vld [vmem:[%s22172_s7 + $0x40] sm:$0xff]  }
 0x5e6   : > { %v16019_v63 = vpop.f32.mrf.mxu1 }
 0x5e7   : > { %v9036_v2 = vadd.f32 %v16019_v63, %v8699_v4  ;;  %14702 = vmatprep.subr.bf16.mxu0 %v9157_v46  ;;  %16606 = vmatprep.subr.bf16.mxu1 %v9157_v46  ;;  %v9156_v56 = vpack.c.bf16 %v9109_v37, %v9108_v14  ;;  %v9076_v32 = vadd.f32 %v20988_v33, %v9033_v36  ;;  %v9114_v12 = vmax.f32 %v9078_v34, 0.0 }
 0x5e8   : > { %v8989_v55 = vpop.f32.mrf.mxu1  ;;  %14703 = vmatpush3.bf16.msra.mxu0 %v21083_v48  ;;  %16614 = vmatpush3.bf16.msra.mxu1 %v21083_v48 }
 0x5e9   : > { %v9079_v20 = vadd.f32 %v20988_v33, %v9036_v2  ;;  %v9034_v58 = vadd.f32 %v8989_v55, %v8697_v27  ;;  %14704 = vmatprep.subr.bf16.mxu0 %v9156_v56  ;;  %16607 = vmatprep.subr.bf16.mxu1 %v9156_v56  ;;  %v9112_v41 = vmax.f32 %v9076_v32, 0.0 }
 0x5eb   : > { %v9115_v3 = vmax.f32 %v9079_v20, 0.0  ;;  %v9077_v11 = vadd.f32 %v20988_v33, %v9034_v58  ;;  %v22613_v33 = vld [vmem:[#allocation32_spill] sm:$0xff] }
 0x5ec   : > { %14705 = vmatpush3.bf16.msra.mxu0 %v21085_v19  ;;  %16615 = vmatpush3.bf16.msra.mxu1 %v21085_v19  ;;  %v17047_v19 = vld [vmem:[#allocation8 + $0x18] ss:$12 sps:$4 sm:$0xff]  }
 0x5ed   : > { %v9159_v30 = vpack.c.bf16 %v9115_v3, %v9114_v12  ;;  %v9113_v13 = vmax.f32 %v9077_v11, 0.0  ;;  %14706 = vmatprep.subr.bf16.mxu0 %v9155_v50  ;;  %16608 = vmatprep.subr.bf16.mxu1 %v9155_v50  ;;  %v17066_v50 = vld [vmem:[#allocation8 + $0x80] ss:$12 sps:$4 sm:$0xff]  }
 0x5ef   : > { %v9158_v48 = vpack.c.bf16 %v9113_v13, %v9112_v41 }
 0x5f0   : > { %14707 = vmatpush3.bf16.msra.mxu0 %v21059_v57  ;;  %16616 = vmatpush3.bf16.msra.mxu1 %v21059_v57  ;;  %v17043_v57 = vld [vmem:[#allocation8] ss:$12 sps:$4 sm:$0xff]  }
 0x5f1   : > { %14708 = vmatprep.subr.bf16.mxu0 %v9154_v21  ;;  %16609 = vmatprep.subr.bf16.mxu1 %v9154_v21  ;;  %v17072_v21 = vld [vmem:[%s22172_s7 + $0x78] sm:$0xff]  }
 0x5f4   : > { %14709 = vmatpush3.bf16.msra.mxu0 %v21061_v28  ;;  %16617 = vmatpush3.bf16.msra.mxu1 %v21061_v28  ;;  %v17049_v28 = vld [vmem:[#allocation8 + $0x1c] ss:$12 sps:$4 sm:$0xff]  }
 0x5f5   : > { %14710 = vmatprep.subr.bf16.mxu0 %v21125_v51  ;;  %16610 = vmatprep.subr.bf16.mxu1 %v21125_v51  ;;  %v17051_v51 = vld [vmem:[#allocation8 + $0x30] ss:$12 sps:$4 sm:$0xff]  }
 0x5f8   : > { %14711 = vmatpush3.bf16.msra.mxu0 %v21035_v8  ;;  %16618 = vmatpush3.bf16.msra.mxu1 %v21035_v8  ;;  %v13498_v8 = vcombine.low %v22613_v33, %v22613_v33 }
 0x5f9   : > { %14712 = vmatprep.subr.bf16.mxu0 %v21130_v6  ;;  %16611 = vmatprep.subr.bf16.mxu1 %v21130_v6  ;;  %v17057_v6 = vld [vmem:[#allocation8 + $0x4c] ss:$12 sps:$4 sm:$0xff]  }
 0x5fc   : > { %14713 = vmatpush3.bf16.msra.mxu0 %v21037_v61  ;;  %16619 = vmatpush3.bf16.msra.mxu1 %v21037_v61  ;;  %v22614_v61 = vmov 0.0  }
 0x5fd   : > { %14714 = vmatprep.subr.bf16.mxu0 %v21103_v60  ;;  %16612 = vmatprep.subr.bf16.mxu1 %v21103_v60  ;;  %v17053_v60 = vld [vmem:[#allocation8 + $0x34] ss:$12 sps:$4 sm:$0xff]  }
 0x600   : > { %14715 = vmatpush3.bf16.msra.mxu0 %v21009_v25  ;;  %16620 = vmatpush3.bf16.msra.mxu1 %v21009_v25  ;;  %v17046_v25 = vld [vmem:[#allocation8 + $0x8] ss:$12 sps:$4 sm:$0xff]  }
 0x601   : > { %14716 = vmatprep.subr.bf16.mxu0 %v21107_v52  ;;  %16613 = vmatprep.subr.bf16.mxu1 %v21107_v52  ;;  %v17050_v52 = vld [vmem:[#allocation8 + $0x20] ss:$12 sps:$4 sm:$0xff]  }
 0x604   : > { %14717 = vmatpush3.bf16.msra.mxu0 %v21012_v22  ;;  %16621 = vmatpush3.bf16.msra.mxu1 %v21012_v22  ;;  %v17068_v22 = vld [vmem:[%s22172_s7 + $0x38] sm:$0xff]  }
 0x605   : > { %16020 = vmatprep.subr.bf16.mxu1 %v22614_v61  ;;  %16052 = vmatprep.subr.bf16.mxu0 %v22614_v61 }
 0x607   : > { %9362 = vmatmul.mubr.bf16.vlgmr.msra.gmra.mxu1 %v13498_v8  ;;  %9314 = vmatmul.mubr.bf16.vlgmr.msra.gmra.mxu0 %v17043_v57 }
 0x608   : > { %16021 = vmatpush3.bf16.msra.mxu1 %v9159_v30  ;;  %16024 = vmatprep.mubr.msk.bf16.mxu1 %vm17421_vm6, %v22614_v61 }
 0x609   : > { %16022 = vmatprep.subr.bf16.mxu1 %v22614_v61  ;;  %9321 = vmatprep.mubr.bf16.mxu0 %v17049_v28 }
 0x60a   : > { %16053 = vmatpush3.bf16.msra.mxu0 %v17072_v21 }
 0x60b   : > { %16054 = vmatprep.subr.bf16.mxu0 %v22614_v61 }
 0x60c   : > { %16023 = vmatpush3.bf16.msra.mxu1 %v9158_v48 }
 0x60d   : > { %16088 = vmatprep.subr.bf16.mxu1 %v22614_v61 }
 0x60e   : > { %16055 = vmatpush3.bf16.msra.mxu0 %v17074_v59  ;;  %v17089_v59 = vld [vmem:[%s22172_s7 + $0xe8] sm:$0xff]  }
 0x60f   : > { %16025 = vmatmul.mubr.msk.bf16.vlgmr.msra.gmra.mxu1 %vm4693_vm7, %v17046_v25  ;;  %9322 = vmatmul.mubr.bf16.gmra.mxu0 %v17047_v19 }
 0x610   : > { %16028 = vmatprep.mubr.msk.bf16.mxu1 %vm17421_vm6, %v22614_v61  ;;  %9329 = vmatprep.mubr.bf16.mxu0 %v17053_v60 }
 0x611   : > { %16089 = vmatpush3.bf16.msra.mxu1 %v17068_v22  ;;  %16056 = vmatprep.subr.bf16.mxu0 %v22614_v61 }
 0x612   : > { %16090 = vmatprep.subr.bf16.mxu1 %v22614_v61  ;;  %16057 = vmatpush3.bf16.msra.mxu0 %v17076_v24 }
 0x613   : > { %16058 = vmatprep.subr.bf16.mxu0 %v22614_v61 }
 0x615   : > { %16091 = vmatpush3.bf16.msra.mxu1 %v17069_v43 }
 0x616   : > { %16092 = vmatprep.subr.bf16.mxu1 %v22614_v61  ;;  %16059 = vmatpush3.bf16.msra.mxu0 %v17078_v44 }
 0x617   : > { %16029 = vmatmul.mubr.msk.bf16.gmra.mxu1 %vm4693_vm7, %v17050_v52  ;;  %9330 = vmatmul.mubr.bf16.gmra.mxu0 %v17051_v51 }
 0x618   : > { %16032 = vmatprep.mubr.msk.bf16.mxu1 %vm17421_vm6, %v22614_v61  ;;  %9337 = vmatprep.mubr.bf16.mxu0 %v17057_v6 }
 0x619   : > { %16093 = vmatpush3.bf16.msra.mxu1 %v17070_v53  ;;  %16060 = vmatprep.subr.bf16.mxu0 %v22614_v61 }
 0x61a   : > { %16094 = vmatprep.subr.bf16.mxu1 %v22614_v61  ;;  %16061 = vmatpush3.bf16.msra.mxu0 %v17080_v1 }
 0x61b   : > { %16062 = vmatprep.subr.bf16.mxu0 %v22614_v61 }
 0x61d   : > { %16095 = vmatpush3.bf16.msra.mxu1 %v17071_v26 }
 0x61e   : > { %16096 = vmatprep.subr.bf16.mxu1 %v22614_v61  ;;  %16063 = vmatpush3.bf16.msra.mxu0 %v17082_v0 }
 0x61f   : > { %16033 = vmatmul.mubr.msk.bf16.gmra.mxu1 %vm4693_vm7, %v17054_v9  ;;  %9338 = vmatmul.mubr.bf16.gmra.mxu0 %v17055_v49  ;;  %v17085_v9 = vld [vmem:[%s22172_s7 + $0xf8] sm:$0xff]  }
 0x620   : > { %16036 = vmatprep.mubr.msk.bf16.mxu1 %vm17421_vm6, %v22614_v61  ;;  %9345 = vmatprep.mubr.bf16.mxu0 %v17061_v54 }
 0x621   : > { %16097 = vmatpush3.bf16.msra.mxu1 %v17073_v5  ;;  %16064 = vmatprep.subr.bf16.mxu0 %v22614_v61 }
 0x622   : > { %16098 = vmatprep.subr.bf16.mxu1 %v22614_v61  ;;  %16065 = vmatpush3.bf16.msra.mxu0 %v17083_v10 }
 0x623   : > { %16066 = vmatprep.subr.bf16.mxu0 %v22614_v61 }
 0x625   : > { %16099 = vmatpush3.bf16.msra.mxu1 %v17075_v47 }
 0x626   : > { %16100 = vmatprep.subr.bf16.mxu1 %v22614_v61  ;;  %16067 = vmatpush3.bf16.msra.mxu0 %v17086_v17 }
 0x627   : > { %16037 = vmatmul.mubr.msk.bf16.gmra.mxu1 %vm4693_vm7, %v17058_v35  ;;  %9346 = vmatmul.mubr.bf16.gmra.mxu0 %v17059_v29 }
 0x628   : > { %16040 = vmatprep.mubr.msk.bf16.mxu1 %vm17421_vm6, %v22614_v61  ;;  %9353 = vmatprep.mubr.bf16.mxu0 %v17065_v31 }
 0x629   : > { %16101 = vmatpush3.bf16.msra.mxu1 %v17077_v15  ;;  %16124 = vmatprep.subr.bf16.mxu0 %v22614_v61 }
 0x62a   : > { %16102 = vmatprep.subr.bf16.mxu1 %v22614_v61 }
 0x62d   : > { %16103 = vmatpush3.bf16.msra.mxu1 %v17079_v40 }
 0x62e   : > { %16160 = vmatprep.subr.bf16.mxu1 %v22614_v61 }
 0x62f   : > { %16041 = vmatmul.mubr.msk.bf16.gmra.mxu1 %vm4693_vm7, %v17062_v23  ;;  %9354 = vmatmul.mubr.bf16.gmra.mxu0 %v17063_v16 }
 0x630   : > { %16044 = vmatprep.mubr.msk.bf16.mxu1 %vm17421_vm6, %v22614_v61  ;;  %16068 = vmatprep.mubr.msk.bf16.mxu0 %vm17421_vm6, %v22614_v61 }
 0x637   : > { %16045 = vmatmul.mubr.msk.bf16.gmra.mxu1 %vm4693_vm7, %v17066_v50 }
 0x638   : > { %16048 = vmatprep.mubr.msk.bf16.mxu1 %vm17421_vm6, %v22614_v61 }
 0x63f   : > { %16049 = vmatmul.mubr.msk.bf16.gmra.mxu1 %vm4693_vm7, %v17067_v18  ;;  %v17087_v18 = vld [vmem:[%s22172_s7 + $0xf0] sm:$0xff]  }
 0x640   : > { %16104 = vmatprep.mubr.msk.bf16.mxu1 %vm17421_vm6, %v22614_v61 }
 0x6c7   : > { %v21274_v7 = vpop.f32.mrf.mxu1  ;;  %v14718_v42 = vpop.f32.mrf.mxu0 }
 0x6c9   : > { %v21276_v45 = vpop.f32.mrf.mxu1  ;;  %v14719_v39 = vpop.f32.mrf.mxu0 }
 0x6ca   : > { %v14720_v27 = vadd.f32 %v14719_v39, %v14718_v42 }
 0x6cb   : > { %v14757_v62 = vpop.f32.mrf.mxu1  ;;  %v14721_v4 = vpop.f32.mrf.mxu0 }
 0x6cd   : > { %v14758_v38 = vpop.f32.mrf.mxu1  ;;  %v14722_v14 = vpop.f32.mrf.mxu0 }
 0x6ce   : > { %v14723_v34 = vadd.f32 %v14722_v14, %v14721_v4  ;;  %v17090_v14 = vld [vmem:[%s22172_s7 + $0xe0] sm:$0xff]  }
 0x6cf   : > { %v9403_v37 = vpop.f32.mrf.mxu1  ;;  %v14724_v36 = vpop.f32.mrf.mxu0 }
 0x6d0   : > { %v9404_v55 = vadd.f32 %v14720_v27, %v9403_v37 }
 0x6d1   : > { %v16026_v46 = vpop.f32.mrf.mxu1  ;;  %v14725_v63 = vpop.f32.mrf.mxu0 }
 0x6d2   : > { %v14726_v13 = vadd.f32 %v14725_v63, %v14724_v36  ;;  %v17091_v46 = vld [vmem:[%s22172_s7 + $0xb8] sm:$0xff]  }
 0x6d3   : > { %v9406_v2 = vpop.f32.mrf.mxu1  ;;  %v14727_v56 = vpop.f32.mrf.mxu0 }
 0x6d4   : > { %v9407_v32 = vadd.f32 %v14723_v34, %v9406_v2 }
 0x6d5   : > { %v16027_v20 = vpop.f32.mrf.mxu1  ;;  %v14728_v58 = vpop.f32.mrf.mxu0 }
 0x6d6   : > { %v14149_v12 = vpack.c.bf16 %v9407_v32, %v9404_v55  ;;  %v14729_v48 = vadd.f32 %v14728_v58, %v14727_v56  ;;  %v17093_v56 = vld [vmem:[%s22172_s7 + $0xd8] sm:$0xff]   ;;  %v17094_v58 = vld [vmem:[%s22172_s7 + $0xb0] sm:$0xff]  }
 0x6d7   : > { %v9411_v3 = vpop.f32.mrf.mxu1  ;;  %v14730_v11 = vpop.f32.mrf.mxu0 }
 0x6d8   : > { %14150 = vst [vmem:[#allocation3] sm:$0xff] %v14149_v12   ;;  %v9412_v57 = vadd.f32 %v14726_v13, %v9411_v3 }
 0x6d9   : > { %v16030_v41 = vpop.f32.mrf.mxu1  ;;  %v14731_v30 = vpop.f32.mrf.mxu0 }
 0x6da   : > { %v14732_v29 = vadd.f32 %v14731_v30, %v14730_v11 }
 0x6db   : > { %v9414_v33 = vpop.f32.mrf.mxu1  ;;  %v14733_v8 = vpop.f32.mrf.mxu0 }
 0x6dc   : > { %v9415_v28 = vadd.f32 %v14729_v48, %v9414_v33 }
 0x6dd   : > { %v16031_v25 = vpop.f32.mrf.mxu1  ;;  %v14734_v19 = vpop.f32.mrf.mxu0 }
 0x6de   : > { %v14154_v60 = vpack.c.bf16 %v9415_v28, %v9412_v57  ;;  %v14735_v31 = vadd.f32 %v14734_v19, %v14733_v8  ;;  %v17095_v28 = vld [vmem:[%s22172_s7 + $0xd0] sm:$0xff]  }
 0x6df   : > { %v9419_v22 = vpop.f32.mrf.mxu1  ;;  %v9523_v52 = vld [vmem:[#allocation3] sm:$0xf]  ;;  %v21278_v51 = vld [vmem:[#allocation3 + $0x4] sm:$0xf]  ;;  %v14736_v6 = vpop.f32.mrf.mxu0 }
 0x6e0   : > { %14205 = vst [vmem:[#allocation3 + $0x8] sm:$0xff] %v14154_v60   ;;  %v13537_v49 = vcombine.low %v9523_v52, %v21278_v51  ;;  %v9420_v43 = vadd.f32 %v14732_v29, %v9419_v22  ;;  %v17096_v60 = vld [vmem:[%s22172_s7 + $0xa8] sm:$0xff]   ;;  %v17099_v29 = vld [vmem:[%s22172_s7 + $0xa0] sm:$0xff]  }
 0x6e1   : > { %v16034_v54 = vpop.f32.mrf.mxu1  ;;  %v14737_v35 = vpop.f32.mrf.mxu0 }
 0x6e2   : > { %16105 = vmatmul.mubr.bf16.vlgmr.msra.gmra.mxu1 %v13537_v49  ;;  %v9598_v50 = vshll.u32 %v13537_v49, 16  ;;  %v9596_v0 = vshrl.u32 %v13537_v49, 16  ;;  %v14738_v17 = vadd.f32 %v14737_v35, %v14736_v6 }
 0x6e3   : > { %v9422_v23 = vpop.f32.mrf.mxu1  ;;  %v14739_v16 = vpop.f32.mrf.mxu0  ;;  %16108 = vmatprep.mubr.msk.bf16.mxu1 %vm17421_vm6, %v22614_v61  ;;  %16161 = vmatpush3.bf16.msra.mxu1 %v17085_v9  ;;  %v17098_v9 = vld [vmem:[%s22172_s7 + $0xc8] sm:$0xff]  }
 0x6e4   : > { %v9423_v53 = vadd.f32 %v14735_v31, %v9422_v23  ;;  %16162 = vmatprep.subr.bf16.mxu1 %v22614_v61  ;;  %v9600_v44 = vrot.slane %v9598_v50, 1 }
 0x6e5   : > { %v16035_v26 = vpop.f32.mrf.mxu1  ;;  %v14740_v21 = vpop.f32.mrf.mxu0 }
 0x6e6   : > { %v14159_v5 = vpack.c.bf16 %v9423_v53, %v9420_v43  ;;  %v14741_v42 = vadd.f32 %v14740_v21, %v14739_v16  ;;  %v9601_v4 = vor.u32 %v9600_v44, %v9596_v0  ;;  %v17100_v21 = vld [vmem:[%s22172_s7 + $0xc0] sm:$0xff]   ;;  %v17104_v0 = vld [vmem:[%s22172_s7 + $0x90] sm:$0xff]  }
 0x6e7   : > { %v9427_v47 = vpop.f32.mrf.mxu1  ;;  %v21293_v24 = vld [vmem:[#allocation3 + $0x8] sm:$0xff]   ;;  %v14742_v15 = vpop.f32.mrf.mxu0  ;;  %16163 = vmatpush3.bf16.msra.mxu1 %v17087_v18 }
 0x6e8   : > { %14206 = vst [vmem:[#allocation3 + $0x10] sm:$0xff] %v14159_v5   ;;  %16164 = vmatprep.subr.bf16.mxu1 %v22614_v61  ;;  %v9603_v10 = vshll.u32 %v21293_v24, 16  ;;  %v9428_v37 = vadd.f32 %v14738_v17, %v9427_v47  ;;  %v9607_v11 = vshrl.u32 %v21293_v24, 16  ;;  %v17101_v47 = vld [vmem:[%s22172_s7 + $0x98] sm:$0xff]  }
 0x6e9   : > { %v16038_v40 = vpop.f32.mrf.mxu1  ;;  %v14743_v1 = vpop.f32.mrf.mxu0 }
 0x6ea   : > { %16109 = vmatmul.mubr.bf16.gmra.mxu1 %v21293_v24  ;;  %v9605_v38 = vrot.slane %v9603_v10, 1  ;;  %v14744_v30 = vadd.f32 %v14743_v1, %v14742_v15  ;;  %v14756_v40 = vadd.f32 %v21276_v45, %v21274_v7 }
 0x6eb   : > { %v9430_v39 = vpop.f32.mrf.mxu1  ;;  %v14745_v62 = vpop.f32.mrf.mxu0  ;;  %16112 = vmatprep.mubr.msk.bf16.mxu1 %vm17421_vm6, %v22614_v61  ;;  %16165 = vmatpush3.bf16.msra.mxu1 %v17089_v59 }
 0x6ec   : > { %v9431_v36 = vadd.f32 %v14741_v42, %v9430_v39  ;;  %16166 = vmatprep.subr.bf16.mxu1 %v22614_v61  ;;  %v9606_v27 = vsel %vm687_vm0, %v9601_v4, %v9605_v38  ;;  %v9609_v8 = vor.u32 %v9607_v11, %v9605_v38  ;;  %v21369_v39 = vld [vmem:[#allocation3 + $0x8] sm:$0xf] }
 0x6ed   : > { %v16039_v63 = vpop.f32.mrf.mxu1  ;;  %v14746_v34 = vpop.f32.mrf.mxu0  ;;  %16069 = vmatmul.mubr.bf16.vlgmr.msra.gmra.mxu0 %v9606_v27  ;;  %v17106_v27 = vld [vmem:[%s22172_s7 + $0x88] sm:$0xff]  }
 0x6ee   : > { %v14164_v2 = vpack.c.bf16 %v9431_v36, %v9428_v37  ;;  %16072 = vmatprep.mubr.msk.bf16.mxu0 %vm17421_vm6, %v22614_v61  ;;  %16125 = vmatpush3.bf16.msra.mxu0 %v17091_v46  ;;  %v14747_v13 = vadd.f32 %v14746_v34, %v14745_v62 }
 0x6ef   : > { %v9435_v55 = vpop.f32.mrf.mxu1  ;;  %v21311_v32 = vld [vmem:[#allocation3 + $0x10] sm:$0xff]   ;;  %v14748_v20 = vpop.f32.mrf.mxu0  ;;  %16167 = vmatpush3.bf16.msra.mxu1 %v17090_v14  ;;  %16126 = vmatprep.subr.bf16.mxu0 %v22614_v61  ;;  %v10059_v14 = vld [vmem:[#allocation3 + $0x4] sm:$0xe] }
 0x6f0   : > { %14207 = vst [vmem:[#allocation3 + $0x18] sm:$0xff] %v14164_v2   ;;  %16168 = vmatprep.subr.bf16.mxu1 %v22614_v61  ;;  %v9611_v41 = vshll.u32 %v21311_v32, 16  ;;  %v9436_v25 = vadd.f32 %v14744_v30, %v9435_v55  ;;  %v9615_v23 = vshrl.u32 %v21311_v32, 16  ;;  %v21374_v62 = vld [vmem:[#allocation3 + $0xc] sm:$0xff]   ;;  %v21381_v46 = vcombine.low %v10059_v14, %v21369_v39  ;;  %v17108_v55 = vld [vmem:[%s22172_s7 + $0x178] sm:$0xff]  }
 0x6f1   : > { %v16042_v12 = vpop.f32.mrf.mxu1  ;;  %v14749_v3 = vpop.f32.mrf.mxu0  ;;  %v10116_v2 = vrot.slane %v21374_v62, 1 }
 0x6f2   : > { %16113 = vmatmul.mubr.bf16.gmra.mxu1 %v21311_v32  ;;  %v9613_v57 = vrot.slane %v9611_v41, 1  ;;  %16127 = vmatpush3.bf16.msra.mxu0 %v17094_v58  ;;  %v14750_v50 = vadd.f32 %v14749_v3, %v14748_v20  ;;  %v17109_v20 = vld [vmem:[%s22172_s7 + $0x80] sm:$0xff]   ;;  %v10115_v58 = vrot.slane %v21381_v46, 1 }
 0x6f3   : > { %v9438_v48 = vpop.f32.mrf.mxu1  ;;  %v14751_v33 = vpop.f32.mrf.mxu0  ;;  %16116 = vmatprep.mubr.msk.bf16.mxu1 %vm17421_vm6, %v22614_v61  ;;  %16169 = vmatpush3.bf16.msra.mxu1 %v17093_v56 }
 0x6f4   : > { %v9439_v19 = vadd.f32 %v14747_v13, %v9438_v48  ;;  %16170 = vmatprep.subr.bf16.mxu1 %v22614_v61  ;;  %v9614_v52 = vsel %vm687_vm0, %v9609_v8, %v9613_v57  ;;  %16128 = vmatprep.subr.bf16.mxu0 %v22614_v61  ;;  %v9617_v53 = vor.u32 %v9615_v23, %v9613_v57  ;;  %v9891_v8 = vld [vmem:[#allocation3] sm:$0xe]  ;;  %v9915_v23 = vrot.slane %v21311_v32, 1  ;;  %v17120_v32 = vld [vmem:[%s22172_s7 + $0x128] sm:$0xff]  }
 0x6f5   : > { %v16043_v22 = vpop.f32.mrf.mxu1  ;;  %16073 = vmatmul.mubr.bf16.gmra.mxu0 %v9614_v52  ;;  %v14752_v54 = vpop.f32.mrf.mxu0  ;;  %v10117_v3 = vsel %vm1343_vm1, %v10115_v58, %v10116_v2 }
 0x6f6   : > { %v14169_v6 = vpack.c.bf16 %v9439_v19, %v9436_v25  ;;  %16076 = vmatprep.mubr.msk.bf16.mxu0 %vm17421_vm6, %v22614_v61  ;;  %16129 = vmatpush3.bf16.msra.mxu0 %v17096_v60  ;;  %v14753_v18 = vadd.f32 %v14752_v54, %v14751_v33  ;;  %v17111_v33 = vld [vmem:[%s22172_s7 + $0x170] sm:$0xff]   ;;  %v13575_v25 = vcombine.low %v9891_v8, %v21278_v51  ;;  %v17113_v19 = vld [vmem:[%s22172_s7 + $0x168] sm:$0xff]   ;;  %v9913_v22 = vrot.slane %v21293_v24, 1  ;;  %v17114_v51 = vld [vmem:[%s22172_s7 + $0x160] sm:$0xff]  }
 0x6f7   : > { %v9443_v49 = vpop.f32.mrf.mxu1  ;;  %v21337_v35 = vld [vmem:[#allocation3 + $0x18] sm:$0xff]   ;;  %16171 = vmatpush3.bf16.msra.mxu1 %v17095_v28  ;;  %16130 = vmatprep.subr.bf16.mxu0 %v22614_v61 }
 0x6f8   : > { %14208 = vst [vmem:[#allocation3 + $0x20] sm:$0xff] %v14169_v6   ;;  %16172 = vmatprep.subr.bf16.mxu1 %v22614_v61  ;;  %v9619_v16 = vshll.u32 %v21337_v35, 16  ;;  %v9444_v5 = vadd.f32 %v14750_v50, %v9443_v49  ;;  %v9623_v7 = vshrl.u32 %v21337_v35, 16  ;;  %v21403_v30 = vld [vmem:[#allocation3 + $0x14] sm:$0xff]   ;;  %v9912_v6 = vrot.slane %v13575_v25, 1  ;;  %v17119_v50 = vld [vmem:[%s22172_s7 + $0x150] sm:$0xff]  }
 0x6f9   : > { %v16046_v31 = vpop.f32.mrf.mxu1  ;;  %v10118_v28 = vrot.slane %v21403_v30, 1  ;;  %v17117_v54 = vld [vmem:[%s22172_s7 + $0x158] sm:$0xff]  }
 0x6fa   : > { %16117 = vmatmul.mubr.bf16.gmra.mxu1 %v21337_v35  ;;  %v9621_v26 = vrot.slane %v9619_v16, 1  ;;  %16131 = vmatpush3.bf16.msra.mxu0 %v17099_v29  ;;  %v9914_v24 = vsel %vm1343_vm1, %v9912_v6, %v9913_v22  ;;  %v17118_v29 = vld [vmem:[%s22172_s7 + $0x130] sm:$0xff]   ;;  %v17134_v8 = vld [vmem:[%s22172_s7 + $0x1b8] sm:$0xff]  }
 0x6fb   : > { %v9446_v43 = vpop.f32.mrf.mxu1  ;;  %16120 = vmatprep.mubr.msk.bf16.mxu1 %vm17421_vm6, %v22614_v61  ;;  %16173 = vmatpush3.bf16.msra.mxu1 %v17098_v9  ;;  %v10119_v60 = vsel %vm1343_vm1, %v10116_v2, %v10118_v28  ;;  %v17115_v9 = vld [vmem:[%s22172_s7 + $0x138] sm:$0xff]   ;;  %v17131_v2 = vld [vmem:[%s22172_s7 + $0x1f0] sm:$0xff]  }
 0x6fc   : > { %v9447_v59 = vadd.f32 %v14753_v18, %v9446_v43  ;;  %16174 = vmatprep.subr.bf16.mxu1 %v22614_v61  ;;  %v9622_v44 = vsel %vm687_vm0, %v9617_v53, %v9621_v26  ;;  %16132 = vmatprep.subr.bf16.mxu0 %v22614_v61  ;;  %v9625_v37 = vor.u32 %v9623_v7, %v9621_v26  ;;  %v17122_v53 = vld [vmem:[%s22172_s7 + $0x148] sm:$0xff]   ;;  %v17123_v26 = vld [vmem:[%s22172_s7 + $0x120] sm:$0xff]  }
 0x6fd   : > { %v16047_v15 = vpop.f32.mrf.mxu1  ;;  %16077 = vmatmul.mubr.bf16.gmra.mxu0 %v9622_v44  ;;  %v9916_v18 = vsel %vm1343_vm1, %v9913_v22, %v9915_v23  ;;  %v17128_v7 = vld [vmem:[%s22172_s7 + $0x108] sm:$0xff]  }
 0x6fe   : > { %v14174_v1 = vpack.c.bf16 %v9447_v59, %v9444_v5  ;;  %16080 = vmatprep.mubr.msk.bf16.mxu0 %vm17421_vm6, %v22614_v61  ;;  %16133 = vmatpush3.bf16.msra.mxu0 %v17101_v47  ;;  %v9917_v5 = vrot.slane %v21337_v35, 1  ;;  %v17124_v47 = vld [vmem:[%s22172_s7 + $0x140] sm:$0xff]   ;;  %v17125_v15 = vld [vmem:[%s22172_s7 + $0x118] sm:$0xff]  }
 0x6ff   : > { %v9451_v10 = vpop.f32.mrf.mxu1  ;;  %v21365_v17 = vld [vmem:[#allocation3 + $0x20] sm:$0xff]   ;;  %16175 = vmatpush3.bf16.msra.mxu1 %v17100_v21  ;;  %16134 = vmatprep.subr.bf16.mxu0 %v22614_v61 }
 0x700   : > { %14209 = vst [vmem:[#allocation3 + $0x28] sm:$0xff] %v14174_v1   ;;  %v9452_v42 = vadd.f32 %v14756_v40, %v9451_v10  ;;  %16232 = vmatprep.subr.bf16.mxu1 %v22614_v61  ;;  %v9627_v45 = vshll.u32 %v21365_v17, 16  ;;  %v9631_v11 = vshrl.u32 %v21365_v17, 16  ;;  %v21424_v52 = vld [vmem:[#allocation3 + $0x1c] sm:$0xff]   ;;  %v9918_v35 = vsel %vm1343_vm1, %v9915_v23, %v9917_v5  ;;  %v17127_v40 = vld [vmem:[%s22172_s7 + $0x110] sm:$0xff]   ;;  %v17140_v23 = vld [vmem:[%s22172_s7 + $0x1c8] sm:$0xff]  }
 0x701   : > { %v16050_v4 = vpop.f32.mrf.mxu1  ;;  %v10120_v49 = vrot.slane %v21424_v52, 1  ;;  %v10472_v10 = vld [vmem:[#allocation3 + $0x4] sm:$0xc] }
 0x702   : > { %v14039_v38 = vpack.c.bf16 %v9452_v42, %v9452_v42  ;;  %16121 = vmatmul.mubr.bf16.gmra.mxu1 %v21365_v17  ;;  %v9629_v36 = vrot.slane %v9627_v45, 1  ;;  %16135 = vmatpush3.bf16.msra.mxu0 %v17104_v0  ;;  %v9919_v0 = vrot.slane %v21365_v17, 1  ;;  %v13655_v42 = vcombine.low %v10472_v10, %v21369_v39  ;;  %v17129_v39 = vld [vmem:[%s22172_s7 + $0x1f8] sm:$0xff]  }
 0x703   : > { %16176 = vmatprep.mubr.msk.bf16.mxu1 %vm17421_vm6, %v22614_v61  ;;  %v9454_v63 = vpop.f32.mrf.mxu1  ;;  %16136 = vmatprep.subr.bf16.mxu0 %v22614_v61  ;;  %v10121_v31 = vsel %vm1343_vm1, %v10118_v28, %v10120_v49  ;;  %v10494_v4 = vrot.slane %v21374_v62, 2 }
 0x704   : > { %9522 = vst [vmem:[#allocation3 + $0x30] sm:$0x7] %v14039_v38  ;;  %v9630_v34 = vsel %vm687_vm0, %v9625_v37, %v9629_v36  ;;  %v9633_v13 = vor.u32 %v9631_v11, %v9629_v36  ;;  %v9920_v45 = vsel %vm1343_vm1, %v9917_v5, %v9919_v0  ;;  %v10493_v17 = vrot.slane %v13655_v42, 2  ;;  %v17130_v38 = vld [vmem:[%s22172_s7 + $0x100] sm:$0xff]  }
 0x705   : > { %v16051_v56 = vpop.f32.mrf.mxu1  ;;  %16081 = vmatmul.mubr.bf16.gmra.mxu0 %v9630_v34  ;;  %v10292_v36 = vshrl.u32 %v21374_v62, 16  ;;  %v10295_v63 = vshll.u32 %v21374_v62, 16  ;;  %v10287_v34 = vshll.u32 %v21381_v46, 16  ;;  %v10496_v62 = vrot.slane %v21403_v30, 2 }
 0x706   : > { %16084 = vmatprep.mubr.msk.bf16.mxu0 %vm17421_vm6, %v22614_v61  ;;  %16137 = vmatpush3.bf16.msra.mxu0 %v17106_v27  ;;  %v10495_v14 = vsel %vm2615_vm3, %v10493_v17, %v10494_v4  ;;  %v10284_v27 = vshrl.u32 %v21381_v46, 16  ;;  %v17146_v17 = vld [vmem:[%s22172_s7 + $0x190] sm:$0xff]  }
 0x707   : > { %v21398_v12 = vld [vmem:[#allocation3 + $0x28] ss:$0 sps:$4 sm:$0x11]   ;;  %16138 = vmatprep.subr.bf16.mxu0 %v22614_v61  ;;  %v17121_v59 = vld [vmem:[#allocation3 + $0x2c] ss:$0 sps:$4 sm:$0x11]  }
 0x708   : > { %v9635_v41 = vshll.u32 %v21398_v12, 16  ;;  %v21448_v16 = vld [vmem:[#allocation3 + $0x24] sm:$0xff]   ;;  %v10124_v44 = vrot.slane %v17121_v59, 1  ;;  %v9921_v37 = vrot.slane %v21398_v12, 1  ;;  %v10286_v46 = vrot.slane %v10284_v27, 1 }
 0x709   : > { %v10122_v43 = vrot.slane %v21448_v16, 1  ;;  %v10289_v58 = vrot.slane %v10287_v34, 2  ;;  %v17132_v12 = vld [vmem:[%s22172_s7 + $0x1e8] sm:$0xff]   ;;  %v10319_v5 = vshrl.u32 %v21448_v16, 16  ;;  %v10322_v59 = vshll.u32 %v21448_v16, 16 }
 0x70a   : > { %16177 = vmatmul.mubr.bf16.vlgmr.msra.gmra.mxu1 %v10117_v3  ;;  %v9637_v48 = vrot.slane %v9635_v41, 1  ;;  %16139 = vmatpush3.bf16.msra.mxu0 %v17109_v20  ;;  %v9922_v56 = vsel %vm1343_vm1, %v9919_v0, %v9921_v37  ;;  %v10297_v20 = vrot.slane %v10295_v63, 2  ;;  %v10497_v3 = vsel %vm2615_vm3, %v10494_v4, %v10496_v62 }
 0x70b   : > { %16180 = vmatprep.mubr.msk.bf16.mxu1 %vm17421_vm6, %v22614_v61  ;;  %16233 = vmatpush3.bf16.msra.mxu1 %v17108_v55  ;;  %v10123_v21 = vsel %vm1343_vm1, %v10120_v49, %v10122_v43  ;;  %v10125_v1 = vsel %vm1343_vm1, %v10122_v43, %v10124_v44  ;;  %v10294_v55 = vrot.slane %v10292_v36, 1  ;;  %v10301_v41 = vshrl.u32 %v21403_v30, 16  ;;  %v17138_v49 = vld [vmem:[%s22172_s7 + $0x1a8] sm:$0xff]   ;;  %v21584_v43 = vld [vmem:[#allocation3 + $0x10] sm:$0xff]  }
 0x70c   : > { %16234 = vmatprep.subr.bf16.mxu1 %v22614_v61  ;;  %v9638_v57 = vsel %vm687_vm0, %v9633_v13, %v9637_v48  ;;  %16196 = vmatprep.subr.bf16.mxu0 %v22614_v61  ;;  %v10304_v13 = vshll.u32 %v21403_v30, 16  ;;  %v10290_v48 = vor.u32 %v10289_v58, %v10286_v46  ;;  %v10498_v30 = vrot.slane %v21424_v52, 2 }
 0x70d   : > { %16085 = vmatmul.mubr.bf16.gmra.mxu0 %v9638_v57  ;;  %v10298_v11 = vor.u32 %v10297_v20, %v10294_v55  ;;  %v10303_v28 = vrot.slane %v10301_v41, 1  ;;  %v10876_v44 = vshll.u32 %v21584_v43, 16  ;;  %v10321_v0 = vrot.slane %v10319_v5, 1 }
 0x70e   : > { %16140 = vmatprep.mubr.msk.bf16.mxu0 %vm17421_vm6, %v22614_v61  ;;  %v10306_v25 = vrot.slane %v10304_v13, 2  ;;  %v10499_v22 = vsel %vm2615_vm3, %v10496_v62, %v10498_v30  ;;  %v10324_v10 = vrot.slane %v10322_v59, 2 }
 0x70f   : > { %16235 = vmatpush3.bf16.msra.mxu1 %v17111_v33  ;;  %v17133_v33 = vld [vmem:[%s22172_s7 + $0x1e0] sm:$0xff]   ;;  %v10299_v57 = vsel %vm2144_vm2, %v10290_v48, %v10298_v11  ;;  %v10878_v4 = vrot.slane %v10876_v44, 3 }
 0x710   : > { %16236 = vmatprep.subr.bf16.mxu1 %v22614_v61  ;;  %v10307_v6 = vor.u32 %v10306_v25, %v10303_v28  ;;  %v21634_v48 = vld [vmem:[#allocation3 + $0x20] sm:$0xff]   ;;  %v10697_v25 = vrot.slane %v21584_v43, 2 }
 0x712   : > { %16181 = vmatmul.mubr.bf16.gmra.mxu1 %v10119_v60  ;;  %v17136_v60 = vld [vmem:[%s22172_s7 + $0x1b0] sm:$0xff]  }
 0x713   : > { %16184 = vmatprep.mubr.msk.bf16.mxu1 %vm17421_vm6, %v22614_v61  ;;  %16237 = vmatpush3.bf16.msra.mxu1 %v17113_v19  ;;  %v17135_v19 = vld [vmem:[%s22172_s7 + $0x1d8] sm:$0xff]  }
 0x714   : > { %16238 = vmatprep.subr.bf16.mxu1 %v22614_v61 }
 0x715   : > { %16141 = vmatmul.mubr.bf16.vlgmr.msra.gmra.mxu0 %v9914_v24  ;;  %v17137_v24 = vld [vmem:[%s22172_s7 + $0x1d0] sm:$0xff]  }
 0x716   : > { %16144 = vmatprep.mubr.msk.bf16.mxu0 %vm17421_vm6, %v22614_v61  ;;  %16197 = vmatpush3.bf16.msra.mxu0 %v17115_v9  ;;  %v10313_v9 = vshll.u32 %v21424_v52, 16 }
 0x717   : > { %16239 = vmatpush3.bf16.msra.mxu1 %v17114_v51  ;;  %16198 = vmatprep.subr.bf16.mxu0 %v22614_v61  ;;  %v10310_v51 = vshrl.u32 %v21424_v52, 16  ;;  %v10500_v52 = vrot.slane %v21448_v16, 2  ;;  %v10873_v16 = vshrl.u32 %v21584_v43, 16 }
 0x718   : > { %16240 = vmatprep.subr.bf16.mxu1 %v22614_v61 }
 0x71a   : > { %16185 = vmatmul.mubr.bf16.gmra.mxu1 %v10121_v31  ;;  %16199 = vmatpush3.bf16.msra.mxu0 %v17118_v29  ;;  %v10312_v29 = vrot.slane %v10310_v51, 1  ;;  %v10315_v31 = vrot.slane %v10313_v9, 2  ;;  %v17151_v51 = vld [vmem:[%s22172_s7 + $0x238] sm:$0xff]  }
 0x71b   : > { %16188 = vmatprep.mubr.msk.bf16.mxu1 %vm17421_vm6, %v22614_v61  ;;  %16241 = vmatpush3.bf16.msra.mxu1 %v17117_v54  ;;  %v10308_v54 = vsel %vm2144_vm2, %v10298_v11, %v10307_v6 }
 0x71c   : > { %16242 = vmatprep.subr.bf16.mxu1 %v22614_v61  ;;  %16200 = vmatprep.subr.bf16.mxu0 %v22614_v61 }
 0x71d   : > { %16145 = vmatmul.mubr.bf16.gmra.mxu0 %v9916_v18  ;;  %v21582_v18 = vld [vmem:[#allocation3 + $0xc] sm:$0xf] }
 0x71e   : > { %16148 = vmatprep.mubr.msk.bf16.mxu0 %vm17421_vm6, %v22614_v61  ;;  %16201 = vmatpush3.bf16.msra.mxu0 %v17120_v32  ;;  %v10640_v32 = vld [vmem:[#allocation3 + $0x8] sm:$0xc] }
 0x71f   : > { %16243 = vmatpush3.bf16.msra.mxu1 %v17119_v50  ;;  %16202 = vmatprep.subr.bf16.mxu0 %v22614_v61  ;;  %v17141_v50 = vld [vmem:[%s22172_s7 + $0x1a0] sm:$0xff]  }
 0x720   : > { %16244 = vmatprep.subr.bf16.mxu1 %v22614_v61 }
 0x722   : > { %16189 = vmatmul.mubr.bf16.gmra.mxu1 %v10123_v21  ;;  %16203 = vmatpush3.bf16.msra.mxu0 %v17123_v26  ;;  %v10316_v26 = vor.u32 %v10315_v31, %v10312_v29  ;;  %v17139_v21 = vld [vmem:[#allocation3 + $0x2c] ss:$0 sps:$4 sm:$0x33]  }
 0x723   : > { %16192 = vmatprep.mubr.msk.bf16.mxu1 %vm17421_vm6, %v22614_v61  ;;  %16245 = vmatpush3.bf16.msra.mxu1 %v17122_v53  ;;  %v10501_v53 = vsel %vm2615_vm3, %v10498_v30, %v10500_v52  ;;  %v10328_v37 = vshrl.u32 %v17139_v21, 16  ;;  %v10331_v36 = vshll.u32 %v17139_v21, 16  ;;  %v10894_v30 = vshll.u32 %v21634_v48, 16 }
 0x724   : > { %16246 = vmatprep.subr.bf16.mxu1 %v22614_v61  ;;  %16204 = vmatprep.subr.bf16.mxu0 %v22614_v61 }
 0x725   : > { %16149 = vmatmul.mubr.bf16.gmra.mxu0 %v9918_v35  ;;  %v17143_v35 = vld [vmem:[%s22172_s7 + $0x198] sm:$0xff]   ;;  %v10330_v55 = vrot.slane %v10328_v37, 1  ;;  %v10333_v20 = vrot.slane %v10331_v36, 2  ;;  %v11053_v37 = vld [vmem:[#allocation3 + $0x8] sm:$0x8] }
 0x726   : > { %16152 = vmatprep.mubr.msk.bf16.mxu0 %vm17421_vm6, %v22614_v61  ;;  %16205 = vmatpush3.bf16.msra.mxu0 %v17125_v15  ;;  %v21596_v15 = vcombine.low %v10640_v32, %v21582_v18  ;;  %v21665_v32 = vld [vmem:[#allocation3 + $0x30] ss:$0 sps:$4 sm:$0x77]  }
 0x727   : > { %16247 = vmatpush3.bf16.msra.mxu1 %v17124_v47  ;;  %16206 = vmatprep.subr.bf16.mxu0 %v22614_v61  ;;  %v17142_v47 = vld [vmem:[%s22172_s7 + $0x1c0] sm:$0xff]   ;;  %v10334_v11 = vor.u32 %v10333_v20, %v10330_v55  ;;  %v10909_v5 = vshrl.u32 %v21665_v32, 16  ;;  %v10912_v59 = vshll.u32 %v21665_v32, 16  ;;  %v11079_v55 = vrot.slane %v21634_v48, 3 }
 0x728   : > { %16304 = vmatprep.subr.bf16.mxu1 %v22614_v61  ;;  %v10865_v42 = vshrl.u32 %v21596_v15, 16 }
 0x729   : > { %v10914_v44 = vrot.slane %v10912_v59, 3 }
 0x72a   : > { %16193 = vmatmul.mubr.bf16.gmra.mxu1 %v10125_v1  ;;  %16207 = vmatpush3.bf16.msra.mxu0 %v17127_v40  ;;  %v10317_v40 = vsel %vm2144_vm2, %v10307_v6, %v10316_v26  ;;  %v10502_v1 = vrot.slane %v17139_v21, 2  ;;  %v10867_v63 = vrot.slane %v10865_v42, 2  ;;  %v10696_v6 = vrot.slane %v21596_v15, 2 }
 0x72b   : > { %16248 = vmatprep.mubr.msk.bf16.mxu1 %vm17421_vm6, %v22614_v61  ;;  %16208 = vmatprep.subr.bf16.mxu0 %v22614_v61 }
 0x72c   : > { %v10698_v9 = vsel %vm2615_vm3, %v10696_v6, %v10697_v25 }
 0x72d   : > { %16153 = vmatmul.mubr.bf16.gmra.mxu0 %v9920_v45  ;;  %v10875_v45 = vrot.slane %v10873_v16, 2  ;;  %v10911_v16 = vrot.slane %v10909_v5, 2 }
 0x72e   : > { %16156 = vmatprep.mubr.msk.bf16.mxu0 %vm17421_vm6, %v22614_v61  ;;  %16209 = vmatpush3.bf16.msra.mxu0 %v17128_v7  ;;  %v10868_v7 = vshll.u32 %v21596_v15, 16 }
 0x72f   : > { %16210 = vmatprep.subr.bf16.mxu0 %v22614_v61  ;;  %v10879_v34 = vor.u32 %v10878_v4, %v10875_v45  ;;  %v17160_v45 = vld [vmem:[%s22172_s7 + $0x208] sm:$0xff]  }
 0x730   : > { %v10870_v27 = vrot.slane %v10868_v7, 3 }
 0x732   : > { %16249 = vmatmul.mubr.bf16.vlgmr.msra.gmra.mxu1 %v10495_v14  ;;  %16211 = vmatpush3.bf16.msra.mxu0 %v17130_v38  ;;  %v10503_v38 = vsel %vm2615_vm3, %v10500_v52, %v10502_v1  ;;  %v10325_v14 = vor.u32 %v10324_v10, %v10321_v0  ;;  %v10871_v58 = vor.u32 %v10870_v27, %v10867_v63  ;;  %v17153_v52 = vld [vmem:[%s22172_s7 + $0x230] sm:$0xff]   ;;  %v11075_v27 = vrot.slane %v21584_v43, 3 }
 0x733   : > { %16252 = vmatprep.mubr.msk.bf16.mxu1 %vm17421_vm6, %v22614_v61  ;;  %16305 = vmatpush3.bf16.msra.mxu1 %v17129_v39  ;;  %v21613_v39 = vld [vmem:[#allocation3 + $0x18] sm:$0xff]   ;;  %v10915_v0 = vor.u32 %v10914_v44, %v10911_v16  ;;  %v17158_v10 = vld [vmem:[%s22172_s7 + $0x210] sm:$0xff]   ;;  %v13735_v63 = vcombine.low %v11053_v37, %v21582_v18 }
 0x734   : > { %16306 = vmatprep.subr.bf16.mxu1 %v22614_v61  ;;  %16268 = vmatprep.subr.bf16.mxu0 %v22614_v61  ;;  %v10326_v62 = vsel %vm2144_vm2, %v10316_v26, %v10325_v14  ;;  %v10885_v46 = vshll.u32 %v21613_v39, 16  ;;  %v10699_v31 = vrot.slane %v21613_v39, 2 }
 0x735   : > { %16157 = vmatmul.mubr.bf16.gmra.mxu0 %v9922_v56  ;;  %v10882_v56 = vshrl.u32 %v21613_v39, 16 }
 0x736   : > { %16212 = vmatprep.mubr.msk.bf16.mxu0 %vm17421_vm6, %v22614_v61  ;;  %v10887_v13 = vrot.slane %v10885_v46, 3  ;;  %v10700_v26 = vsel %vm2615_vm3, %v10697_v25, %v10699_v31 }
 0x737   : > { %16307 = vmatpush3.bf16.msra.mxu1 %v17131_v2  ;;  %v17147_v2 = vld [vmem:[%s22172_s7 + $0x188] sm:$0xff]   ;;  %v10884_v41 = vrot.slane %v10882_v56, 2  ;;  %v11077_v56 = vrot.slane %v21613_v39, 3 }
 0x738   : > { %16308 = vmatprep.subr.bf16.mxu1 %v22614_v61 }
 0x739   : > { %v11080_v18 = vsel %vm3887_vm5, %v11077_v56, %v11079_v55 }
 0x73a   : > { %16253 = vmatmul.mubr.bf16.gmra.mxu1 %v10497_v3  ;;  %v10880_v3 = vsel %vm3416_vm4, %v10871_v58, %v10879_v34 }
 0x73b   : > { %16256 = vmatprep.mubr.msk.bf16.mxu1 %vm17421_vm6, %v22614_v61  ;;  %16309 = vmatpush3.bf16.msra.mxu1 %v17132_v12  ;;  %v17149_v12 = vld [vmem:[%s22172_s7 + $0x180] sm:$0xff]  }
 0x73c   : > { %16310 = vmatprep.subr.bf16.mxu1 %v22614_v61 }
 0x73d   : > { %16213 = vmatmul.mubr.bf16.vlgmr.msra.gmra.mxu0 %v10299_v57  ;;  %v10891_v57 = vshrl.u32 %v21634_v48, 16 }
 0x73e   : > { %16216 = vmatprep.mubr.msk.bf16.mxu0 %vm17421_vm6, %v22614_v61  ;;  %16269 = vmatpush3.bf16.msra.mxu0 %v17134_v8  ;;  %v10888_v8 = vor.u32 %v10887_v13, %v10884_v41 }
 0x73f   : > { %16311 = vmatpush3.bf16.msra.mxu1 %v17133_v33  ;;  %16270 = vmatprep.subr.bf16.mxu0 %v22614_v61  ;;  %v10335_v33 = vsel %vm2144_vm2, %v10325_v14, %v10334_v11 }
 0x740   : > { %16312 = vmatprep.subr.bf16.mxu1 %v22614_v61  ;;  %v10889_v28 = vsel %vm3416_vm4, %v10879_v34, %v10888_v8  ;;  %v11074_v34 = vrot.slane %v13735_v63, 3 }
 0x742   : > { %16257 = vmatmul.mubr.bf16.gmra.mxu1 %v10499_v22  ;;  %16271 = vmatpush3.bf16.msra.mxu0 %v17136_v60  ;;  %v10896_v60 = vrot.slane %v10894_v30, 3  ;;  %v21646_v22 = vld [vmem:[#allocation3 + $0x28] sm:$0xff]  }
 0x743   : > { %16260 = vmatprep.mubr.msk.bf16.mxu1 %vm17421_vm6, %v22614_v61  ;;  %16313 = vmatpush3.bf16.msra.mxu1 %v17135_v19  ;;  %v10893_v19 = vrot.slane %v10891_v57, 2  ;;  %v10703_v7 = vrot.slane %v21646_v22, 2  ;;  %v11081_v43 = vrot.slane %v21646_v22, 3 }
 0x744   : > { %16314 = vmatprep.subr.bf16.mxu1 %v22614_v61  ;;  %16272 = vmatprep.subr.bf16.mxu0 %v22614_v61 }
 0x745   : > { %16217 = vmatmul.mubr.bf16.gmra.mxu0 %v10308_v54  ;;  %v10903_v54 = vshll.u32 %v21646_v22, 16  ;;  %v11082_v39 = vsel %vm3887_vm5, %v11079_v55, %v11081_v43 }
 0x746   : > { %16220 = vmatprep.mubr.msk.bf16.mxu0 %vm17421_vm6, %v22614_v61  ;;  %16273 = vmatpush3.bf16.msra.mxu0 %v17138_v49  ;;  %v10900_v49 = vshrl.u32 %v21646_v22, 16 }
 0x747   : > { %16315 = vmatpush3.bf16.msra.mxu1 %v17137_v24  ;;  %16274 = vmatprep.subr.bf16.mxu0 %v22614_v61  ;;  %v10897_v24 = vor.u32 %v10896_v60, %v10893_v19 }
 0x748   : > { %16316 = vmatprep.subr.bf16.mxu1 %v22614_v61 }
 0x749   : > { %v10898_v29 = vsel %vm3416_vm4, %v10888_v8, %v10897_v24 }
 0x74a   : > { %16261 = vmatmul.mubr.bf16.gmra.mxu1 %v10501_v53  ;;  %16275 = vmatpush3.bf16.msra.mxu0 %v17141_v50  ;;  %v10905_v50 = vrot.slane %v10903_v54, 3  ;;  %v17154_v53 = vld [vmem:[%s22172_s7 + $0x228] sm:$0xff]  }
 0x74b   : > { %16264 = vmatprep.mubr.msk.bf16.mxu1 %vm17421_vm6, %v22614_v61  ;;  %16317 = vmatpush3.bf16.msra.mxu1 %v17140_v23  ;;  %v10902_v23 = vrot.slane %v10900_v49, 2 }
 0x74c   : > { %16318 = vmatprep.subr.bf16.mxu1 %v22614_v61  ;;  %16276 = vmatprep.subr.bf16.mxu0 %v22614_v61 }
 0x74d   : > { %16221 = vmatmul.mubr.bf16.gmra.mxu0 %v10317_v40  ;;  %v10906_v21 = vor.u32 %v10905_v50, %v10902_v23  ;;  %v17157_v40 = vld [vmem:[%s22172_s7 + $0x218] sm:$0xff]  }
 0x74e   : > { %16224 = vmatprep.mubr.msk.bf16.mxu0 %vm17421_vm6, %v22614_v61  ;;  %16277 = vmatpush3.bf16.msra.mxu0 %v17143_v35  ;;  %v10701_v35 = vrot.slane %v21634_v48, 2 }
 0x74f   : > { %16319 = vmatpush3.bf16.msra.mxu1 %v17142_v47  ;;  %16278 = vmatprep.subr.bf16.mxu0 %v22614_v61  ;;  %v17156_v47 = vld [vmem:[%s22172_s7 + $0x220] sm:$0xff]   ;;  %v10907_v15 = vsel %vm3416_vm4, %v10897_v24, %v10906_v21  ;;  %v10916_v42 = vsel %vm3416_vm4, %v10906_v21, %v10915_v0 }
 0x750   : > { %16376 = vmatprep.subr.bf16.mxu1 %v22614_v61  ;;  %v10702_v1 = vsel %vm2615_vm3, %v10699_v31, %v10701_v35  ;;  %v10704_v4 = vsel %vm2615_vm3, %v10701_v35, %v10703_v7 }
 0x752   : > { %16265 = vmatmul.mubr.bf16.gmra.mxu1 %v10503_v38  ;;  %16279 = vmatpush3.bf16.msra.mxu0 %v17146_v17  ;;  %v17159_v17 = vld [vmem:[#allocation3 + $0x30] ss:$0 sps:$4 sm:$0x33]   ;;  %v17161_v38 = vld [vmem:[%s22172_s7 + $0x200] sm:$0xff]  }
 0x753   : > { %16320 = vmatprep.mubr.msk.bf16.mxu1 %vm17421_vm6, %v22614_v61  ;;  %16280 = vmatprep.subr.bf16.mxu0 %v22614_v61  ;;  %v10705_v14 = vrot.slane %v17159_v17, 2 }
 0x755   : > { %16225 = vmatmul.mubr.bf16.gmra.mxu0 %v10326_v62  ;;  %v10706_v36 = vsel %vm2615_vm3, %v10703_v7, %v10705_v14  ;;  %v11078_v62 = vsel %vm3887_vm5, %v11075_v27, %v11077_v56 }
 0x756   : > { %16228 = vmatprep.mubr.msk.bf16.mxu0 %vm17421_vm6, %v22614_v61  ;;  %16281 = vmatpush3.bf16.msra.mxu0 %v17147_v2  ;;  %v11076_v2 = vsel %vm3887_vm5, %v11074_v34, %v11075_v27 }
 0x757   : > { %16282 = vmatprep.subr.bf16.mxu0 %v22614_v61 }
 0x75a   : > { %16321 = vmatmul.mubr.bf16.vlgmr.msra.gmra.mxu1 %v10880_v3  ;;  %16283 = vmatpush3.bf16.msra.mxu0 %v17149_v12  ;;  %v11083_v3 = vrot.slane %v21665_v32, 3 }
 0x75b   : > { %16324 = vmatprep.mubr.msk.bf16.mxu1 %vm17421_vm6, %v22614_v61  ;;  %16340 = vmatprep.subr.bf16.mxu0 %v22614_v61 }
 0x75c   : > { %v11084_v13 = vsel %vm3887_vm5, %v11081_v43, %v11083_v3 }
 0x75d   : > { %16229 = vmatmul.mubr.bf16.gmra.mxu0 %v10335_v33 }
 0x75e   : > { %16284 = vmatprep.mubr.msk.bf16.mxu0 %vm17421_vm6, %v22614_v61 }
 0x762   : > { %16325 = vmatmul.mubr.bf16.gmra.mxu1 %v10889_v28 }
 0x763   : > { %16328 = vmatprep.mubr.msk.bf16.mxu1 %vm17421_vm6, %v22614_v61 }
 0x765   : > { %16285 = vmatmul.mubr.bf16.vlgmr.msra.gmra.mxu0 %v10698_v9 }
 0x766   : > { %16288 = vmatprep.mubr.msk.bf16.mxu0 %vm17421_vm6, %v22614_v61  ;;  %16341 = vmatpush3.bf16.msra.mxu0 %v17151_v51 }
 0x767   : > { %16342 = vmatprep.subr.bf16.mxu0 %v22614_v61 }
 0x76a   : > { %16329 = vmatmul.mubr.bf16.gmra.mxu1 %v10898_v29  ;;  %16343 = vmatpush3.bf16.msra.mxu0 %v17153_v52 }
 0x76b   : > { %16332 = vmatprep.mubr.msk.bf16.mxu1 %vm17421_vm6, %v22614_v61  ;;  %16344 = vmatprep.subr.bf16.mxu0 %v22614_v61 }
 0x76d   : > { %16289 = vmatmul.mubr.bf16.gmra.mxu0 %v10700_v26 }
 0x76e   : > { %16292 = vmatprep.mubr.msk.bf16.mxu0 %vm17421_vm6, %v22614_v61  ;;  %16345 = vmatpush3.bf16.msra.mxu0 %v17154_v53 }
 0x76f   : > { %16346 = vmatprep.subr.bf16.mxu0 %v22614_v61 }
 0x772   : > { %16333 = vmatmul.mubr.bf16.gmra.mxu1 %v10907_v15  ;;  %16347 = vmatpush3.bf16.msra.mxu0 %v17156_v47 }
 0x773   : > { %16336 = vmatprep.mubr.msk.bf16.mxu1 %vm17421_vm6, %v22614_v61  ;;  %16348 = vmatprep.subr.bf16.mxu0 %v22614_v61 }
 0x775   : > { %16293 = vmatmul.mubr.bf16.gmra.mxu0 %v10702_v1 }
 0x776   : > { %16296 = vmatprep.mubr.msk.bf16.mxu0 %vm17421_vm6, %v22614_v61  ;;  %16349 = vmatpush3.bf16.msra.mxu0 %v17157_v40 }
 0x777   : > { %16350 = vmatprep.subr.bf16.mxu0 %v22614_v61 }
 0x77a   : > { %16337 = vmatmul.mubr.bf16.gmra.mxu1 %v10916_v42  ;;  %16351 = vmatpush3.bf16.msra.mxu0 %v17158_v10 }
 0x77b   : > { %16386 = vmatprep.mubr.msk.bf16.mxu1 %vm17421_vm6, %v22614_v61  ;;  %16352 = vmatprep.subr.bf16.mxu0 %v22614_v61 }
 0x77d   : > { %16297 = vmatmul.mubr.bf16.gmra.mxu0 %v10704_v4 }
 0x77e   : > { %16300 = vmatprep.mubr.msk.bf16.mxu0 %vm17421_vm6, %v22614_v61  ;;  %16353 = vmatpush3.bf16.msra.mxu0 %v17160_v45 }
 0x77f   : > { %16354 = vmatprep.subr.bf16.mxu0 %v22614_v61 }
 0x782   : > { %16355 = vmatpush3.bf16.msra.mxu0 %v17161_v38 }
 0x785   : > { %16301 = vmatmul.mubr.bf16.gmra.mxu0 %v10706_v36 }
 0x786   : > { %16356 = vmatprep.mubr.msk.bf16.mxu0 %vm17421_vm6, %v22614_v61 }
 0x78d   : > { %16357 = vmatmul.mubr.bf16.vlgmr.msra.gmra.mxu0 %v11076_v2 }
 0x78e   : > { %16360 = vmatprep.mubr.msk.bf16.mxu0 %vm17421_vm6, %v22614_v61 }
 0x795   : > { %16361 = vmatmul.mubr.bf16.gmra.mxu0 %v11078_v62 }
 0x796   : > { %16364 = vmatprep.mubr.msk.bf16.mxu0 %vm17421_vm6, %v22614_v61 }
 0x79d   : > { %16365 = vmatmul.mubr.bf16.gmra.mxu0 %v11080_v18 }
 0x79e   : > { %16368 = vmatprep.mubr.msk.bf16.mxu0 %vm17421_vm6, %v22614_v61 }
 0x7a2   : > { %v9852_v20 = vpop.f32.mrf.mxu1 }
 0x7a4   : > { %v16106_v46 = vpop.f32.mrf.mxu1 }
 0x7a5   : > { %16369 = vmatmul.mubr.bf16.gmra.mxu0 %v11082_v39 }
 0x7a6   : > { %v9855_v58 = vpop.f32.mrf.mxu1  ;;  %16372 = vmatprep.mubr.msk.bf16.mxu0 %vm17421_vm6, %v22614_v61 }
 0x7a8   : > { %v16107_v12 = vpop.f32.mrf.mxu1 }
 0x7aa   : > { %v9860_v11 = vpop.f32.mrf.mxu1 }
 0x7ac   : > { %v16110_v41 = vpop.f32.mrf.mxu1 }
 0x7ad   : > { %v9726_v33 = vpop.f32.mrf.mxu0  ;;  %16373 = vmatmul.mubr.bf16.gmra.mxu0 %v11084_v13 }
 0x7ae   : > { %v9863_v48 = vpop.f32.mrf.mxu1  ;;  %v9853_v8 = vadd.f32 %v9852_v20, %v9726_v33 }
 0x7af   : > { %v16070_v30 = vpop.f32.mrf.mxu0 }
 0x7b0   : > { %v16111_v57 = vpop.f32.mrf.mxu1 }
 0x7b1   : > { %v9729_v25 = vpop.f32.mrf.mxu0 }
 0x7b2   : > { %v9868_v28 = vpop.f32.mrf.mxu1  ;;  %v9856_v19 = vadd.f32 %v9855_v58, %v9729_v25 }
 0x7b3   : > { %v16071_v22 = vpop.f32.mrf.mxu0 }
 0x7b4   : > { %v16114_v60 = vpop.f32.mrf.mxu1 }
 0x7b5   : > { %v9734_v51 = vpop.f32.mrf.mxu0 }
 0x7b6   : > { %v9871_v6 = vpop.f32.mrf.mxu1  ;;  %v9861_v9 = vadd.f32 %v9860_v11, %v9734_v51 }
 0x7b7   : > { %v16074_v49 = vpop.f32.mrf.mxu0 }
 0x7b8   : > { %v16115_v24 = vpop.f32.mrf.mxu1 }
 0x7b9   : > { %v9737_v52 = vpop.f32.mrf.mxu0 }
 0x7ba   : > { %v9876_v54 = vpop.f32.mrf.mxu1  ;;  %v9864_v29 = vadd.f32 %v9863_v48, %v9737_v52 }
 0x7bb   : > { %v16075_v23 = vpop.f32.mrf.mxu0 }
 0x7bc   : > { %v16118_v31 = vpop.f32.mrf.mxu1 }
 0x7bd   : > { %v9742_v32 = vpop.f32.mrf.mxu0 }
 0x7be   : > { %v9879_v50 = vpop.f32.mrf.mxu1  ;;  %v9869_v53 = vadd.f32 %v9868_v28, %v9742_v32 }
 0x7bf   : > { %v16078_v21 = vpop.f32.mrf.mxu0 }
 0x7c0   : > { %v16119_v26 = vpop.f32.mrf.mxu1 }
 0x7c1   : > { %v9745_v59 = vpop.f32.mrf.mxu0 }
 0x7c2   : > { %v9884_v5 = vpop.f32.mrf.mxu1  ;;  %v9872_v47 = vadd.f32 %v9871_v6, %v9745_v59 }
 0x7c3   : > { %v16079_v35 = vpop.f32.mrf.mxu0 }
 0x7c4   : > { %v16122_v15 = vpop.f32.mrf.mxu1 }
 0x7c5   : > { %v9750_v44 = vpop.f32.mrf.mxu0 }
 0x7c6   : > { %v9887_v16 = vpop.f32.mrf.mxu1  ;;  %v9877_v40 = vadd.f32 %v9876_v54, %v9750_v44 }
 0x7c7   : > { %v16082_v0 = vpop.f32.mrf.mxu0 }
 0x7c8   : > { %v16123_v1 = vpop.f32.mrf.mxu1 }
 0x7c9   : > { %v9753_v42 = vpop.f32.mrf.mxu0 }
 0x7ca   : > { %v10213_v10 = vpop.f32.mrf.mxu1  ;;  %v9880_v7 = vadd.f32 %v9879_v50, %v9753_v42 }
 0x7cb   : > { %v16083_v4 = vpop.f32.mrf.mxu0 }
 0x7cc   : > { %v16178_v45 = vpop.f32.mrf.mxu1 }
 0x7cd   : > { %v9758_v38 = vpop.f32.mrf.mxu0 }
 0x7ce   : > { %v10216_v17 = vpop.f32.mrf.mxu1  ;;  %v9885_v14 = vadd.f32 %v9884_v5, %v9758_v38 }
 0x7cf   : > { %v16086_v36 = vpop.f32.mrf.mxu0 }
 0x7d0   : > { %v16179_v37 = vpop.f32.mrf.mxu1 }
 0x7d1   : > { %v9761_v27 = vpop.f32.mrf.mxu0 }
 0x7d2   : > { %v10221_v63 = vpop.f32.mrf.mxu1  ;;  %v9888_v34 = vadd.f32 %v9887_v16, %v9761_v27 }
 0x7d3   : > { %v16087_v56 = vpop.f32.mrf.mxu0 }
 0x7d4   : > { %v16182_v2 = vpop.f32.mrf.mxu1 }
 0x7d5   : > { %v10010_v55 = vpop.f32.mrf.mxu0 }
 0x7d6   : > { %v10224_v62 = vpop.f32.mrf.mxu1  ;;  %v10049_v18 = vadd.f32 %v10010_v55, %v9853_v8 }
 0x7d7   : > { %v16142_v20 = vpop.f32.mrf.mxu0 }
 0x7d8   : > { %v16183_v43 = vpop.f32.mrf.mxu1  ;;  %v10252_v46 = vadd.f32 %v10213_v10, %v10049_v18 }
 0x7d9   : > { %v10013_v58 = vpop.f32.mrf.mxu0 }
 0x7da   : > { %v10229_v39 = vpop.f32.mrf.mxu1  ;;  %v10050_v12 = vadd.f32 %v10013_v58, %v9856_v19 }
 0x7db   : > { %v16143_v11 = vpop.f32.mrf.mxu0 }
 0x7dc   : > { %v16186_v3 = vpop.f32.mrf.mxu1  ;;  %v10253_v41 = vadd.f32 %v10216_v17, %v10050_v12 }
 0x7dd   : > { %v10018_v48 = vpop.f32.mrf.mxu0 }
 0x7de   : > { %v10232_v13 = vpop.f32.mrf.mxu1  ;;  %v10051_v33 = vadd.f32 %v10018_v48, %v9861_v9 }
 0x7df   : > { %v16146_v30 = vpop.f32.mrf.mxu0 }
 0x7e0   : > { %v16187_v57 = vpop.f32.mrf.mxu1  ;;  %v10254_v28 = vadd.f32 %v10221_v63, %v10051_v33 }
 0x7e1   : > { %v10021_v60 = vpop.f32.mrf.mxu0 }
 0x7e2   : > { %v10237_v25 = vpop.f32.mrf.mxu1  ;;  %v10052_v22 = vadd.f32 %v10021_v60, %v9864_v29 }
 0x7e3   : > { %v16147_v8 = vpop.f32.mrf.mxu0 }
 0x7e4   : > { %v16190_v6 = vpop.f32.mrf.mxu1  ;;  %v10255_v51 = vadd.f32 %v10224_v62, %v10052_v22 }
 0x7e5   : > { %v10026_v49 = vpop.f32.mrf.mxu0 }
 0x7e6   : > { %v10240_v24 = vpop.f32.mrf.mxu1  ;;  %v10053_v54 = vadd.f32 %v10026_v49, %v9869_v53 }
 0x7e7   : > { %v16150_v19 = vpop.f32.mrf.mxu0 }
 0x7e8   : > { %v16191_v52 = vpop.f32.mrf.mxu1  ;;  %v10256_v31 = vadd.f32 %v10229_v39, %v10053_v54 }
 0x7e9   : > { %v10029_v50 = vpop.f32.mrf.mxu0 }
 0x7ea   : > { %v10245_v23 = vpop.f32.mrf.mxu1  ;;  %v10054_v32 = vadd.f32 %v10029_v50, %v9872_v47 }
 0x7eb   : > { %v16151_v9 = vpop.f32.mrf.mxu0 }
 0x7ec   : > { %v16194_v26 = vpop.f32.mrf.mxu1  ;;  %v10257_v21 = vadd.f32 %v10232_v13, %v10054_v32 }
 0x7ed   : > { %v10034_v59 = vpop.f32.mrf.mxu0 }
 0x7ee   : > { %v10248_v5 = vpop.f32.mrf.mxu1  ;;  %v10055_v15 = vadd.f32 %v10034_v59, %v9877_v40 }
 0x7ef   : > { %v16154_v29 = vpop.f32.mrf.mxu0 }
 0x7f0   : > { %v16195_v35 = vpop.f32.mrf.mxu1  ;;  %v10258_v16 = vadd.f32 %v10237_v25, %v10055_v15 }
 0x7f1   : > { %v10037_v1 = vpop.f32.mrf.mxu0 }
 0x7f2   : > { %v10591_v44 = vpop.f32.mrf.mxu1  ;;  %v10056_v0 = vadd.f32 %v10037_v1, %v9880_v7 }
 0x7f3   : > { %v16155_v53 = vpop.f32.mrf.mxu0 }
 0x7f4   : > { %v16250_v10 = vpop.f32.mrf.mxu1  ;;  %v10259_v42 = vadd.f32 %v10240_v24, %v10056_v0 }
 0x7f5   : > { %v10042_v4 = vpop.f32.mrf.mxu0 }
 0x7f6   : > { %v10594_v45 = vpop.f32.mrf.mxu1  ;;  %v10057_v17 = vadd.f32 %v10042_v4, %v9885_v14  ;;  %v17166_v4 = vld [vmem:[%s22175_s10 + $0x38] sm:$0xff]  }
 0x7f7   : > { %v16158_v47 = vpop.f32.mrf.mxu0  ;;  %16418 = vmatprep.subr.bf16.mxu0 %v17166_v4 }
 0x7f8   : > { %v16251_v38 = vpop.f32.mrf.mxu1  ;;  %v10260_v37 = vadd.f32 %v10245_v23, %v10057_v17  ;;  %16419 = vmatpush3.bf16.msra.mxu0 %v17166_v4 }
 0x7f9   : > { %v10045_v63 = vpop.f32.mrf.mxu0 }
 0x7fa   : > { %v10599_v36 = vpop.f32.mrf.mxu1  ;;  %v10058_v27 = vadd.f32 %v10045_v63, %v9888_v34 }
 0x7fb   : > { %v16159_v40 = vpop.f32.mrf.mxu0 }
 0x7fc   : > { %v16254_v2 = vpop.f32.mrf.mxu1  ;;  %v10261_v56 = vadd.f32 %v10248_v5, %v10058_v27 }
 0x7fd   : > { %v10423_v55 = vpop.f32.mrf.mxu0 }
 0x7fe   : > { %v10602_v62 = vpop.f32.mrf.mxu1  ;;  %v10462_v18 = vadd.f32 %v10423_v55, %v10252_v46 }
 0x7ff   : > { %v16214_v7 = vpop.f32.mrf.mxu0 }
 0x800   : > { %v16255_v43 = vpop.f32.mrf.mxu1  ;;  %v21734_v20 = vadd.f32 %v10591_v44, %v10462_v18 }
 0x801   : > { %v10426_v58 = vpop.f32.mrf.mxu0 }
 0x802   : > { %v10607_v39 = vpop.f32.mrf.mxu1  ;;  %v10463_v12 = vadd.f32 %v10426_v58, %v10253_v41 }
 0x803   : > { %v16215_v3 = vpop.f32.mrf.mxu0 }
 0x804   : > { %v16258_v14 = vpop.f32.mrf.mxu1  ;;  %v21736_v11 = vadd.f32 %v10594_v45, %v10463_v12 }
 0x805   : > { %v10431_v48 = vpop.f32.mrf.mxu0 }
 0x806   : > { %v10610_v13 = vpop.f32.mrf.mxu1  ;;  %v10464_v34 = vadd.f32 %v10431_v48, %v10254_v28 }
 0x807   : > { %v16218_v57 = vpop.f32.mrf.mxu0 }
 0x808   : > { %v16259_v33 = vpop.f32.mrf.mxu1  ;;  %v21738_v30 = vadd.f32 %v10599_v36, %v10464_v34 }
 0x809   : > { %v10434_v46 = vpop.f32.mrf.mxu0 }
 0x80a   : > { %v10615_v25 = vpop.f32.mrf.mxu1  ;;  %v10465_v60 = vadd.f32 %v10434_v46, %v10255_v51 }
 0x80b   : > { %v16219_v6 = vpop.f32.mrf.mxu0 }
 0x80c   : > { %v16262_v22 = vpop.f32.mrf.mxu1  ;;  %v21740_v8 = vadd.f32 %v10602_v62, %v10465_v60 }
 0x80d   : > { %v10439_v41 = vpop.f32.mrf.mxu0 }
 0x80e   : > { %v10618_v24 = vpop.f32.mrf.mxu1  ;;  %v10466_v49 = vadd.f32 %v10439_v41, %v10256_v31 }
 0x80f   : > { %v16222_v52 = vpop.f32.mrf.mxu0 }
 0x810   : > { %v16263_v54 = vpop.f32.mrf.mxu1  ;;  %v21742_v19 = vadd.f32 %v10607_v39, %v10466_v49 }
 0x811   : > { %v10442_v28 = vpop.f32.mrf.mxu0 }
 0x812   : > { %v10623_v23 = vpop.f32.mrf.mxu1  ;;  %v10467_v50 = vadd.f32 %v10442_v28, %v10257_v21 }
 0x813   : > { %v16223_v26 = vpop.f32.mrf.mxu0 }
 0x814   : > { %v16266_v32 = vpop.f32.mrf.mxu1  ;;  %v21744_v9 = vadd.f32 %v10610_v13, %v10467_v50 }
 0x815   : > { %v10447_v51 = vpop.f32.mrf.mxu0 }
 0x816   : > { %v10626_v5 = vpop.f32.mrf.mxu1  ;;  %v10468_v59 = vadd.f32 %v10447_v51, %v10258_v16  ;;  %v17167_v16 = vld [vmem:[%s22175_s10 + $0x30] sm:$0xff]  }
 0x817   : > { %v16226_v35 = vpop.f32.mrf.mxu0  ;;  %16420 = vmatprep.subr.bf16.mxu0 %v17167_v16 }
 0x818   : > { %v16267_v15 = vpop.f32.mrf.mxu1  ;;  %v21746_v29 = vadd.f32 %v10615_v25, %v10468_v59  ;;  %16421 = vmatpush3.bf16.msra.mxu0 %v17167_v16 }
 0x819   : > { %v10450_v31 = vpop.f32.mrf.mxu0 }
 0x81a   : > { %v11004_v44 = vpop.f32.mrf.mxu1  ;;  %v10469_v1 = vadd.f32 %v10450_v31, %v10259_v42 }
 0x81b   : > { %v16227_v10 = vpop.f32.mrf.mxu0 }
 0x81c   : > { %v16322_v0 = vpop.f32.mrf.mxu1  ;;  %v21748_v53 = vadd.f32 %v10618_v24, %v10469_v1 }
 0x81d   : > { %v10455_v21 = vpop.f32.mrf.mxu0 }
 0x81e   : > { %v11007_v45 = vpop.f32.mrf.mxu1  ;;  %v10470_v17 = vadd.f32 %v10455_v21, %v10260_v37 }
 0x81f   : > { %v16230_v47 = vpop.f32.mrf.mxu0 }
 0x820   : > { %v16323_v38 = vpop.f32.mrf.mxu1  ;;  %v21756_v36 = vadd.f32 %v10623_v23, %v10470_v17 }
 0x821   : > { %v10458_v63 = vpop.f32.mrf.mxu0 }
 0x822   : > { %v11012_v42 = vpop.f32.mrf.mxu1  ;;  %v10471_v27 = vadd.f32 %v10458_v63, %v10261_v56 }
 0x823   : > { %v16231_v40 = vpop.f32.mrf.mxu0 }
 0x824   : > { %v16326_v2 = vpop.f32.mrf.mxu1  ;;  %v21758_v62 = vadd.f32 %v10626_v5, %v10471_v27 }
 0x825   : > { %v10794_v18 = vpop.f32.mrf.mxu0 }
 0x826   : > { %v11015_v55 = vpop.f32.mrf.mxu1  ;;  %v10833_v43 = vadd.f32 %v10794_v18, %v21734_v20 }
 0x827   : > { %v16286_v7 = vpop.f32.mrf.mxu0 }
 0x828   : > { %v16327_v37 = vpop.f32.mrf.mxu1  ;;  %v11043_v39 = vadd.f32 %v11004_v44, %v10833_v43 }
 0x829   : > { %v10797_v12 = vpop.f32.mrf.mxu0 }
 0x82a   : > { %v11020_v58 = vpop.f32.mrf.mxu1  ;;  %v10834_v14 = vadd.f32 %v10797_v12, %v21736_v11 }
 0x82b   : > { %v16287_v13 = vpop.f32.mrf.mxu0 }
 0x82c   : > { %v16330_v3 = vpop.f32.mrf.mxu1  ;;  %v11044_v48 = vadd.f32 %v11007_v45, %v10834_v14 }
 0x82d   : > { %v10802_v34 = vpop.f32.mrf.mxu0 }
 0x82e   : > { %v11023_v56 = vpop.f32.mrf.mxu1  ;;  %v10835_v33 = vadd.f32 %v10802_v34, %v21738_v30 }
 0x82f   : > { %v16290_v25 = vpop.f32.mrf.mxu0 }
 0x830   : > { %v16331_v57 = vpop.f32.mrf.mxu1  ;;  %v11045_v46 = vadd.f32 %v11012_v42, %v10835_v33 }
 0x831   : > { %v10805_v22 = vpop.f32.mrf.mxu0 }
 0x832   : > { %v11028_v60 = vpop.f32.mrf.mxu1  ;;  %v10836_v20 = vadd.f32 %v10805_v22, %v21740_v8 }
 0x833   : > { %v16291_v24 = vpop.f32.mrf.mxu0 }
 0x834   : > { %v16334_v6 = vpop.f32.mrf.mxu1  ;;  %v11046_v41 = vadd.f32 %v11015_v55, %v10836_v20 }
 0x835   : > { %v10810_v11 = vpop.f32.mrf.mxu0 }
 0x836   : > { %v21764_v49 = vpop.f32.mrf.mxu1  ;;  %v10837_v54 = vadd.f32 %v10810_v11, %v21742_v19 }
 0x837   : > { %v16294_v23 = vpop.f32.mrf.mxu0 }
 0x838   : > { %v16335_v52 = vpop.f32.mrf.mxu1  ;;  %v11047_v28 = vadd.f32 %v11020_v58, %v10837_v54 }
 0x839   : > { %v10813_v30 = vpop.f32.mrf.mxu0 }
 0x83a   : > { %v21767_v50 = vpop.f32.mrf.mxu1  ;;  %v10838_v32 = vadd.f32 %v10813_v30, %v21744_v9  ;;  %v13744_v9 = vld [vmem:[%s22173_s8] ss:$0 sm:$0xff] }
 0x83b   : > { %v16295_v5 = vpop.f32.mrf.mxu0 }
 0x83c   : > { %v16338_v26 = vpop.f32.mrf.mxu1  ;;  %v11048_v51 = vadd.f32 %v11023_v56, %v10838_v32 }
 0x83d   : > { %v10818_v59 = vpop.f32.mrf.mxu0 }
 0x83e   : > { %v21770_v8 = vpop.f32.mrf.mxu1  ;;  %v10839_v15 = vadd.f32 %v10818_v59, %v21746_v29 }
 0x83f   : > { %v16298_v44 = vpop.f32.mrf.mxu0 }
 0x840   : > { %v16339_v35 = vpop.f32.mrf.mxu1  ;;  %v11049_v31 = vadd.f32 %v11028_v60, %v10839_v15 }
 0x841   : > { %v10821_v19 = vpop.f32.mrf.mxu0 }
 0x842   : > { %v10840_v22 = vadd.f32 %v10821_v19, %v21748_v53 }
 0x843   : > { %v16299_v1 = vpop.f32.mrf.mxu0 }
 0x844   : > { %v11050_v23 = vadd.f32 %v21764_v49, %v10840_v22 }
 0x845   : > { %v10826_v0 = vpop.f32.mrf.mxu0 }
 0x846   : > { %v10841_v54 = vadd.f32 %v10826_v0, %v21756_v36 }
 0x847   : > { %v16302_v10 = vpop.f32.mrf.mxu0 }
 0x848   : > { %v11051_v53 = vadd.f32 %v21767_v50, %v10841_v54  ;;  %v17163_v50 = vld [vmem:[%s22174_s9] sm:$0xff]  }
 0x849   : > { %v10829_v45 = vpop.f32.mrf.mxu0 }
 0x84a   : > { %v10842_v5 = vadd.f32 %v10829_v45, %v21758_v62  ;;  %v17168_v62 = vld [vmem:[%s22175_s10 + $0x78] sm:$0xff]   ;;  %v17165_v45 = vld [vmem:[%s22174_s9 + $0x10] ss:$0 sps:$4 sm:$0x77]  }
 0x84b   : > { %v16303_v21 = vpop.f32.mrf.mxu0 }
 0x84c   : > { %v11052_v36 = vadd.f32 %v21770_v8, %v10842_v5  ;;  %v17164_v8 = vld [vmem:[%s22174_s9 + $0x8] sm:$0xff]  }
 0x84d   : > { %v11172_v4 = vpop.f32.mrf.mxu0 }
 0x84e   : > { %v11211_v16 = vadd.f32 %v11172_v4, %v11043_v39 }
 0x84f   : > { %v16358_v17 = vpop.f32.mrf.mxu0 }
 0x850   : > { %v11228_v47 = vadd.f32 %v13744_v9, %v11211_v16 }
 0x851   : > { %v11175_v38 = vpop.f32.mrf.mxu0 }
 0x852   : > { %v11212_v42 = vadd.f32 %v11175_v38, %v11044_v48  ;;  %v11238_v2 = vmax.f32 %v11228_v47, 0.0  ;;  %v17170_v38 = vld [vmem:[%s22175_s10 + $0x70] sm:$0xff]   ;;  %v17171_v47 = vld [vmem:[%s22175_s10 + $0x20] sm:$0xff]  }
 0x853   : > { %v16359_v29 = vpop.f32.mrf.mxu0 }
 0x854   : > { %v11229_v63 = vadd.f32 %v13744_v9, %v11212_v42  ;;  %v17172_v42 = vld [vmem:[%s22175_s10 + $0x68] sm:$0xff]   ;;  %v17173_v29 = vld [vmem:[%s22175_s10 + $0x18] sm:$0xff]  }
 0x855   : > { %v11180_v27 = vpop.f32.mrf.mxu0 }
 0x856   : > { %v11239_v40 = vmax.f32 %v11229_v63, 0.0  ;;  %v11213_v55 = vadd.f32 %v11180_v27, %v11045_v46  ;;  %v17174_v63 = vld [vmem:[%s22175_s10 + $0x60] sm:$0xff]   ;;  %v17175_v27 = vld [vmem:[%s22175_s10 + $0x10] sm:$0xff]  }
 0x857   : > { %v16362_v18 = vpop.f32.mrf.mxu0 }
 0x858   : > { %v11253_v43 = vpack.c.bf16 %v11239_v40, %v11238_v2  ;;  %v11230_v7 = vadd.f32 %v13744_v9, %v11213_v55  ;;  %v17176_v2 = vld [vmem:[%s22175_s10 + $0x58] sm:$0xff]   ;;  %v17177_v40 = vld [vmem:[%s22175_s10 + $0x8] sm:$0xff]   ;;  %v17178_v55 = vld [vmem:[%s22175_s10 + $0x50] sm:$0xff]  }
 0x859   : > { %v11183_v37 = vpop.f32.mrf.mxu0  ;;  %v17179_v18 = vld [vmem:[%s22175_s10] sm:$0xff]  }
 0x85a   : > { %v11214_v58 = vadd.f32 %v11183_v37, %v11046_v41  ;;  %v11240_v3 = vmax.f32 %v11230_v7, 0.0  ;;  %v17182_v37 = vld [vmem:[%s22175_s10 + $0xf8] sm:$0xff]   ;;  %v17184_v7 = vld [vmem:[%s22175_s10 + $0x40] sm:$0xff]  }
 0x85b   : > { %v16363_v39 = vpop.f32.mrf.mxu0 }
 0x85c   : > { %v11231_v12 = vadd.f32 %v13744_v9, %v11214_v58  ;;  %v17187_v58 = vld [vmem:[%s22175_s10 + $0xb8] sm:$0xff]  }
 0x85d   : > { %v11188_v14 = vpop.f32.mrf.mxu0 }
 0x85e   : > { %v11241_v13 = vmax.f32 %v11231_v12, 0.0  ;;  %v11215_v56 = vadd.f32 %v11188_v14, %v11047_v28 }
 0x85f   : > { %v16366_v34 = vpop.f32.mrf.mxu0 }
 0x860   : > { %v11254_v33 = vpack.c.bf16 %v11241_v13, %v11240_v3  ;;  %v11232_v57 = vadd.f32 %v13744_v9, %v11215_v56 }
 0x861   : > { %v11191_v48 = vpop.f32.mrf.mxu0 }
 0x862   : > { %v11216_v25 = vadd.f32 %v11191_v48, %v11048_v51  ;;  %v11242_v6 = vmax.f32 %v11232_v57, 0.0 }
 0x863   : > { %v16367_v60 = vpop.f32.mrf.mxu0 }
 0x864   : > { %v11233_v46 = vadd.f32 %v13744_v9, %v11216_v25 }
 0x865   : > { %v11196_v20 = vpop.f32.mrf.mxu0 }
 0x866   : > { %v11243_v24 = vmax.f32 %v11233_v46, 0.0  ;;  %v11217_v11 = vadd.f32 %v11196_v20, %v11049_v31 }
 0x867   : > { %v16370_v41 = vpop.f32.mrf.mxu0 }
 0x868   : > { %v11255_v52 = vpack.c.bf16 %v11243_v24, %v11242_v6  ;;  %v11234_v30 = vadd.f32 %v13744_v9, %v11217_v11 }
 0x869   : > { %v11199_v28 = vpop.f32.mrf.mxu0 }
 0x86a   : > { %v11218_v32 = vadd.f32 %v11199_v28, %v11050_v23  ;;  %v11244_v15 = vmax.f32 %v11234_v30, 0.0 }
 0x86b   : > { %v16371_v26 = vpop.f32.mrf.mxu0 }
 0x86c   : > { %v11235_v51 = vadd.f32 %v13744_v9, %v11218_v32 }
 0x86d   : > { %v11204_v59 = vpop.f32.mrf.mxu0 }
 0x86e   : > { %v11245_v35 = vmax.f32 %v11235_v51, 0.0  ;;  %v11219_v44 = vadd.f32 %v11204_v59, %v11051_v53  ;;  %v17185_v51 = vld [vmem:[%s22175_s10 + $0xf0] sm:$0xff]  }
 0x86f   : > { %v16374_v31 = vpop.f32.mrf.mxu0 }
 0x870   : > { %v11256_v19 = vpack.c.bf16 %v11245_v35, %v11244_v15  ;;  %v11236_v0 = vadd.f32 %v13744_v9, %v11219_v44 }
 0x871   : > { %v11207_v1 = vpop.f32.mrf.mxu0 }
 0x872   : > { %v11220_v49 = vadd.f32 %v11207_v1, %v11052_v36  ;;  %v11246_v4 = vmax.f32 %v11236_v0, 0.0 }
 0x873   : > { %v16375_v10 = vpop.f32.mrf.mxu0 }
 0x874   : > { %v11237_v21 = vadd.f32 %v13744_v9, %v11220_v49  ;;  %v17169_v9 = vld [vmem:[%s22175_s10 + $0x28] sm:$0xff]  }
 0x875   : > { %16422 = vmatprep.subr.bf16.mxu0 %v17169_v9  ;;  %v17188_v49 = vld [vmem:[%s22175_s10 + $0xe8] sm:$0xff]  }
 0x876   : > { %v11247_v16 = vmax.f32 %v11237_v21, 0.0  ;;  %16423 = vmatpush3.bf16.msra.mxu0 %v17169_v9  ;;  %v17192_v9 = vld [vmem:[%s22175_s10 + $0xd8] sm:$0xff]  }
 0x877   : > { %16424 = vmatprep.subr.bf16.mxu0 %v17171_v47 }
 0x878   : > { %v11257_v17 = vpack.c.bf16 %v11247_v16, %v11246_v4 }
 0x87a   : > { %16377 = vmatpush3.bf16.msra.mxu1 %v11257_v17  ;;  %16425 = vmatpush3.bf16.msra.mxu0 %v17171_v47  ;;  %v17189_v17 = vld [vmem:[%s22175_s10 + $0xb0] sm:$0xff]  }
 0x87b   : > { %16378 = vmatprep.subr.bf16.mxu1 %v22614_v61  ;;  %16426 = vmatprep.subr.bf16.mxu0 %v17173_v29  ;;  %v17194_v47 = vld [vmem:[%s22175_s10 + $0xd0] sm:$0xff]  }
 0x87e   : > { %16379 = vmatpush3.bf16.msra.mxu1 %v11256_v19  ;;  %16427 = vmatpush3.bf16.msra.mxu0 %v17173_v29  ;;  %v17196_v29 = vld [vmem:[%s22175_s10 + $0xc8] sm:$0xff]  }
 0x87f   : > { %16380 = vmatprep.subr.bf16.mxu1 %v22614_v61  ;;  %16428 = vmatprep.subr.bf16.mxu0 %v17175_v27 }
 0x882   : > { %16381 = vmatpush3.bf16.msra.mxu1 %v11255_v52  ;;  %16429 = vmatpush3.bf16.msra.mxu0 %v17175_v27  ;;  %v17197_v27 = vld [vmem:[%s22175_s10 + $0x90] sm:$0xff]  }
 0x883   : > { %16382 = vmatprep.subr.bf16.mxu1 %v22614_v61  ;;  %16430 = vmatprep.subr.bf16.mxu0 %v17177_v40 }
 0x886   : > { %16383 = vmatpush3.bf16.msra.mxu1 %v11254_v33  ;;  %16431 = vmatpush3.bf16.msra.mxu0 %v17177_v40 }
 0x887   : > { %16384 = vmatprep.subr.bf16.mxu1 %v22614_v61  ;;  %16432 = vmatprep.subr.bf16.mxu0 %v17179_v18 }
 0x88a   : > { %16385 = vmatpush3.bf16.msra.mxu1 %v11253_v43  ;;  %v17180_v43 = vld [vmem:[%s22175_s10 + $0x48] sm:$0xff]   ;;  %16433 = vmatpush3.bf16.msra.mxu0 %v17179_v18  ;;  %v17202_v18 = vld [vmem:[%s22175_s10 + $0x178] sm:$0xff]  }
 0x88b   : > { %16398 = vmatprep.subr.bf16.mxu1 %v17168_v62  ;;  %16458 = vmatprep.subr.bf16.mxu0 %v17182_v37 }
 0x88d   : > { %16387 = vmatmul.mubr.msk.bf16.vlgmr.msra.gmra.mxu1 %vm11271_vm8, %v17163_v50  ;;  %v17190_v50 = vld [vmem:[%s22175_s10 + $0xe0] sm:$0xff]  }
 0x88e   : > { %16390 = vmatprep.mubr.msk.bf16.mxu1 %vm17421_vm6, %v22614_v61  ;;  %16399 = vmatpush3.bf16.msra.mxu1 %v17168_v62 }
 0x88f   : > { %16400 = vmatprep.subr.bf16.mxu1 %v17170_v38 }
 0x892   : > { %16401 = vmatpush3.bf16.msra.mxu1 %v17170_v38  ;;  %v17193_v38 = vld [vmem:[%s22175_s10 + $0xa0] sm:$0xff]  }
 0x893   : > { %16402 = vmatprep.subr.bf16.mxu1 %v17172_v42 }
 0x895   : > { %16391 = vmatmul.mubr.msk.bf16.gmra.mxu1 %vm11271_vm8, %v17164_v8 }
 0x896   : > { %16394 = vmatprep.mubr.msk.bf16.mxu1 %vm17421_vm6, %v22614_v61  ;;  %16403 = vmatpush3.bf16.msra.mxu1 %v17172_v42  ;;  %v17195_v42 = vld [vmem:[%s22175_s10 + $0x98] sm:$0xff]  }
 0x897   : > { %16404 = vmatprep.subr.bf16.mxu1 %v17174_v63 }
 0x89a   : > { %16405 = vmatpush3.bf16.msra.mxu1 %v17174_v63 }
 0x89b   : > { %16406 = vmatprep.subr.bf16.mxu1 %v17176_v2 }
 0x89d   : > { %16395 = vmatmul.mubr.msk.bf16.gmra.mxu1 %vm11271_vm8, %v17165_v45  ;;  %v17191_v45 = vld [vmem:[%s22175_s10 + $0xa8] sm:$0xff]  }
 0x89e   : > { %16407 = vmatpush3.bf16.msra.mxu1 %v17176_v2  ;;  %v17198_v2 = vld [vmem:[%s22175_s10 + $0xc0] sm:$0xff]  }
 0x89f   : > { %16408 = vmatprep.subr.bf16.mxu1 %v17178_v55 }
 0x8a2   : > { %16409 = vmatpush3.bf16.msra.mxu1 %v17178_v55  ;;  %v17199_v55 = vld [vmem:[%s22175_s10 + $0x88] sm:$0xff]  }
 0x8a3   : > { %16410 = vmatprep.subr.bf16.mxu1 %v17180_v43 }
 0x8a6   : > { %16411 = vmatpush3.bf16.msra.mxu1 %v17180_v43 }
 0x8a7   : > { %16412 = vmatprep.subr.bf16.mxu1 %v17184_v7 }
 0x8aa   : > { %16413 = vmatpush3.bf16.msra.mxu1 %v17184_v7  ;;  %v17203_v7 = vld [vmem:[%s22175_s10 + $0x80] sm:$0xff]  }
 0x8ab   : > { %16438 = vmatprep.subr.bf16.mxu1 %v17187_v58 }
 0x94d   : > { %v11315_v39 = vpop.f32.mrf.mxu1 }
 0x94f   : > { %v16388_v12 = vpop.f32.mrf.mxu1 }
 0x950   : > { %v17204_v12 = vld [vmem:[%s22175_s10 + $0x170] sm:$0xff]  }
 0x951   : > { %v11318_v14 = vpop.f32.mrf.mxu1 }
 0x952   : > { %v14179_v3 = vpack.c.bf16 %v11318_v14, %v11315_v39 }
 0x953   : > { %v16389_v13 = vpop.f32.mrf.mxu1 }
 0x954   : > { %14180 = vst [vmem:[#allocation4] sm:$0xff] %v14179_v3  }
 0x955   : > { %v11323_v56 = vpop.f32.mrf.mxu1 }
 0x957   : > { %v16392_v34 = vpop.f32.mrf.mxu1 }
 0x959   : > { %v11326_v33 = vpop.f32.mrf.mxu1 }
 0x95a   : > { %v14184_v48 = vpack.c.bf16 %v11326_v33, %v11323_v56  ;;  %v17207_v56 = vld [vmem:[%s22175_s10 + $0x138] sm:$0xff]  }
 0x95b   : > { %v11363_v57 = vld [vmem:[#allocation4] sm:$0xf]  ;;  %v21847_v25 = vld [vmem:[#allocation4 + $0x4] sm:$0xf]  ;;  %v16393_v60 = vpop.f32.mrf.mxu1 }
 0x95c   : > { %14210 = vst [vmem:[#allocation4 + $0x8] sm:$0xff] %v14184_v48   ;;  %v13772_v22 = vcombine.low %v11363_v57, %v21847_v25  ;;  %v11747_v24 = vld [vmem:[#allocation4] sm:$0x8]  ;;  %v17208_v48 = vld [vmem:[%s22175_s10 + $0x168] sm:$0xff]  }
 0x95d   : > { %v11331_v46 = vpop.f32.mrf.mxu1  ;;  %v21851_v52 = vcombine.low %v11747_v24, %v21847_v25  ;;  %v11622_v23 = vld [vmem:[#allocation4] sm:$0xe]  ;;  %v17214_v24 = vld [vmem:[%s22175_s10 + $0x120] sm:$0xff]  }
 0x95e   : > { %v11413_v20 = vshll.u32 %v13772_v22, 16  ;;  %16434 = vmatprep.mubr.bf16.mxu0 %v13772_v22  ;;  %v14044_v6 = vpack.c.bf16 %v11331_v46, %v11331_v46  ;;  %v11411_v15 = vshrl.u32 %v13772_v22, 16  ;;  %v13807_v19 = vcombine.low %v11622_v23, %v21847_v25  ;;  %v17211_v46 = vld [vmem:[%s22175_s10 + $0x160] sm:$0xff]   ;;  %v17216_v23 = vld [vmem:[%s22175_s10 + $0x118] sm:$0xff]  }
 0x95f   : > { %v16396_v11 = vpop.f32.mrf.mxu1  ;;  %v11772_v44 = vrot.slane %v21851_v52, 3  ;;  %v11902_v39 = vshll.u32 %v21851_v52, 16 }
 0x960   : > { %11362 = vst [vmem:[#allocation4 + $0x10] sm:$0x7] %v14044_v6  ;;  %v11415_v54 = vrot.slane %v11413_v20, 1  ;;  %v11643_v62 = vrot.slane %v13807_v19, 1  ;;  %v17212_v20 = vld [vmem:[%s22175_s10 + $0x128] sm:$0xff]   ;;  %v17213_v6 = vld [vmem:[%s22175_s10 + $0x158] sm:$0xff]  }
 0x961   : > { %v11334_v41 = vpop.f32.mrf.mxu1  ;;  %v11904_v33 = vrot.slane %v11902_v39, 4  ;;  %v12410_v39 = vld [vmem:[#allocation4 + $0x4] sm:$0x8] }
 0x962   : > { %v11416_v36 = vor.u32 %v11415_v54, %v11411_v15  ;;  %v17215_v41 = vld [vmem:[%s22175_s10 + $0x150] sm:$0xff]  }
 0x963   : > { %v21853_v28 = vld [vmem:[#allocation4 + $0x8] sm:$0xf]  ;;  %v11382_v30 = vld [vmem:[#allocation4 + $0xc] sm:$0x1]  ;;  %v16397_v26 = vpop.f32.mrf.mxu1 }
 0x964   : > { %v11748_v32 = vld [vmem:[#allocation4 + $0xc] sm:$0x7]  ;;  %v13782_v5 = vcombine.low %v21853_v28, %v21853_v28  ;;  %v21861_v53 = vcombine.low %v21853_v28, %v11382_v30  ;;  %v13883_v13 = vcombine.low %v21847_v25, %v21853_v28  ;;  %v17209_v25 = vld [vmem:[%s22175_s10 + $0x130] sm:$0xff]   ;;  %v21960_v54 = vld [vmem:[#allocation4 + $0x8] sm:$0xf] }
 0x965   : > { %v13833_v59 = vcombine.low %v21853_v28, %v11748_v32  ;;  %v21904_v63 = vld [vmem:[#allocation4 + $0xc] sm:$0xf]  ;;  %v12136_v30 = vld [vmem:[#allocation4 + $0x4] sm:$0xc]  ;;  %v17217_v32 = vld [vmem:[%s22175_s10 + $0x148] sm:$0xff]  }
 0x966   : > { %16435 = vmatmul.mubr.bf16.vlgmr.msra.gmra.mxu0 %v13782_v5  ;;  %v11418_v35 = vshll.u32 %v21861_v53, 16  ;;  %v11422_v0 = vshrl.u32 %v21861_v53, 16  ;;  %v11644_v21 = vrot.slane %v21861_v53, 1  ;;  %v13858_v40 = vcombine.low %v21853_v28, %v21904_v63  ;;  %v17218_v5 = vld [vmem:[%s22175_s10 + $0x110] sm:$0xff]  }
 0x967   : > { %v21866_v31 = vrot.slane %v13833_v59, 3  ;;  %16459 = vmatpush3.bf16.msra.mxu0 %v17182_v37  ;;  %v12271_v11 = vld [vmem:[#allocation4 + $0x10] sm:$0x7]  ;;  %v13909_v26 = vcombine.low %v12136_v30, %v21960_v54  ;;  %v17219_v59 = vld [vmem:[%s22175_s10 + $0x140] sm:$0xff]  }
 0x968   : > { %16460 = vmatprep.subr.bf16.mxu0 %v17185_v51  ;;  %v11420_v1 = vrot.slane %v11418_v35, 1  ;;  %v11645_v8 = vsel %vm1343_vm1, %v11643_v62, %v11644_v21  ;;  %v11907_v43 = vshrl.u32 %v13858_v40, 16  ;;  %v11910_v37 = vshll.u32 %v13858_v40, 16  ;;  %v17235_v40 = vld [vmem:[%s22175_s10 + $0x1d0] sm:$0xff]  }
 0x969   : > { %v11774_v10 = vsel %vm3887_vm5, %v11772_v44, %v21866_v31  ;;  %v12293_v15 = vshrl.u32 %v13909_v26, 16  ;;  %v12296_v35 = vshll.u32 %v13909_v26, 16  ;;  %v17220_v44 = vld [vmem:[%s22175_s10 + $0x108] sm:$0xff]  }
 0x96a   : > { %16474 = vmatprep.mubr.bf16.mxu0 %v11774_v10  ;;  %v11421_v4 = vsel %vm687_vm0, %v11416_v36, %v11420_v1  ;;  %v11424_v16 = vor.u32 %v11422_v0, %v11420_v1  ;;  %v11909_v14 = vrot.slane %v11907_v43, 3  ;;  %v11912_v3 = vrot.slane %v11910_v37, 4  ;;  %v17222_v36 = vld [vmem:[%s22175_s10 + $0x1f8] sm:$0xff]   ;;  %v17238_v43 = vld [vmem:[%s22175_s10 + $0x190] sm:$0xff]   ;;  %v17239_v37 = vld [vmem:[%s22175_s10 + $0x1c0] sm:$0xff]  }
 0x96b   : > { %16461 = vmatpush3.bf16.msra.mxu0 %v17185_v51  ;;  %16414 = vmatprep.mubr.bf16.mxu1 %v11421_v4  ;;  %v12295_v1 = vrot.slane %v12293_v15, 2  ;;  %v12298_v0 = vrot.slane %v12296_v35, 3  ;;  %v13884_v4 = vcombine.low %v21904_v63, %v21904_v63  ;;  %v17232_v63 = vld [vmem:[%s22175_s10 + $0x1a8] sm:$0xff]  }
 0x96c   : > { %16415 = vmatmul.mubr.bf16.vlgmr.msra.gmra.mxu1 %v11424_v16  ;;  %16462 = vmatprep.subr.bf16.mxu0 %v17188_v49  ;;  %v21937_v57 = vor.u32 %v11912_v3, %v11909_v14  ;;  %v13960_v14 = vcombine.low %v12410_v39, %v21960_v54  ;;  %v13969_v39 = vld [vmem:[%s22176_s11] ss:$0 sm:$0xff] }
 0x96d   : > { %16439 = vmatpush3.bf16.msra.mxu1 %v17187_v58  ;;  %16454 = vmatprep.mubr.bf16.mxu1 %v11645_v8  ;;  %v11899_v58 = vshrl.u32 %v21851_v52, 16  ;;  %v12138_v52 = vld [vmem:[#allocation4 + $0xc] sm:$0xf]  ;;  %v12299_v16 = vor.u32 %v12298_v0, %v12295_v1  ;;  %v17227_v8 = vld [vmem:[%s22175_s10 + $0x1b8] sm:$0xff]  }
 0x96e   : > { %16440 = vmatprep.subr.bf16.mxu1 %v17189_v17  ;;  %v21965_v28 = vcombine.low %v12138_v52, %v12271_v11 }
 0x96f   : > { %16463 = vmatpush3.bf16.msra.mxu0 %v17188_v49  ;;  %v11901_v34 = vrot.slane %v11899_v58, 3  ;;  %v12139_v49 = vld [vmem:[#allocation4 + $0x10] sm:$0x3]  ;;  %v17241_v58 = vld [vmem:[%s22175_s10 + $0x180] sm:$0xff]  }
 0x970   : > { %16464 = vmatprep.subr.bf16.mxu0 %v17190_v50  ;;  %v12301_v51 = vshrl.u32 %v21965_v28, 16  ;;  %v12304_v53 = vshll.u32 %v21965_v28, 16  ;;  %v13910_v62 = vcombine.low %v12138_v52, %v12139_v49  ;;  %v12432_v3 = vrot.slane %v21965_v28, 3 }
 0x971   : > { %16441 = vmatpush3.bf16.msra.mxu1 %v17189_v17  ;;  %v11905_v60 = vor.u32 %v11904_v33, %v11901_v34  ;;  %v17226_v17 = vld [vmem:[%s22175_s10 + $0x1f0] sm:$0xff]   ;;  %v17245_v33 = vld [vmem:[%s22175_s10 + $0x228] sm:$0xff]  }
 0x972   : > { %16442 = vmatprep.subr.bf16.mxu1 %v17191_v45  ;;  %v12306_v19 = vrot.slane %v12304_v53, 3 }
 0x973   : > { %16465 = vmatpush3.bf16.msra.mxu0 %v17190_v50  ;;  %v11914_v22 = vsel %vm11897_vm9, %v11905_v60, %v21937_v57  ;;  %v17249_v60 = vld [vmem:[%s22175_s10 + $0x208] sm:$0xff]  }
 0x974   : > { %16466 = vmatprep.subr.bf16.mxu0 %v17192_v9 }
 0x975   : > { %16443 = vmatpush3.bf16.msra.mxu1 %v17191_v45  ;;  %v12168_v45 = vrot.slane %v13910_v62, 2 }
 0x976   : > { %16444 = vmatprep.subr.bf16.mxu1 %v17193_v38 }
 0x977   : > { %16467 = vmatpush3.bf16.msra.mxu0 %v17192_v9  ;;  %v17229_v9 = vld [vmem:[%s22175_s10 + $0x1e8] sm:$0xff]  }
 0x978   : > { %16468 = vmatprep.subr.bf16.mxu0 %v17194_v47 }
 0x979   : > { %16445 = vmatpush3.bf16.msra.mxu1 %v17193_v38  ;;  %v12167_v38 = vrot.slane %v13909_v26, 2 }
 0x97a   : > { %16446 = vmatprep.subr.bf16.mxu1 %v17195_v42 }
 0x97b   : > { %16469 = vmatpush3.bf16.msra.mxu0 %v17194_v47  ;;  %v17230_v47 = vld [vmem:[%s22175_s10 + $0x1b0] sm:$0xff]  }
 0x97c   : > { %16470 = vmatprep.subr.bf16.mxu0 %v17196_v29 }
 0x97d   : > { %16447 = vmatpush3.bf16.msra.mxu1 %v17195_v42  ;;  %v12169_v42 = vsel %vm2615_vm3, %v12167_v38, %v12168_v45 }
 0x97e   : > { %16448 = vmatprep.subr.bf16.mxu1 %v17197_v27 }
 0x97f   : > { %16471 = vmatpush3.bf16.msra.mxu0 %v17196_v29  ;;  %v17231_v29 = vld [vmem:[%s22175_s10 + $0x1e0] sm:$0xff]  }
 0x980   : > { %16472 = vmatprep.subr.bf16.mxu0 %v17198_v2 }
 0x981   : > { %16449 = vmatpush3.bf16.msra.mxu1 %v17197_v27  ;;  %v17233_v27 = vld [vmem:[%s22175_s10 + $0x1d8] sm:$0xff]  }
 0x982   : > { %16450 = vmatprep.subr.bf16.mxu1 %v17199_v55 }
 0x983   : > { %16473 = vmatpush3.bf16.msra.mxu0 %v17198_v2  ;;  %v17234_v2 = vld [vmem:[%s22175_s10 + $0x1a0] sm:$0xff]  }
 0x984   : > { %16498 = vmatprep.subr.bf16.mxu0 %v17202_v18 }
 0x985   : > { %16451 = vmatpush3.bf16.msra.mxu1 %v17199_v55  ;;  %v17236_v55 = vld [vmem:[%s22175_s10 + $0x198] sm:$0xff]  }
 0x986   : > { %16475 = vmatmul.mubr.bf16.vlgmr.msra.gmra.mxu0 %v21866_v31  ;;  %16452 = vmatprep.subr.bf16.mxu1 %v17203_v7  ;;  %v12303_v31 = vrot.slane %v12301_v51, 2 }
 0x987   : > { %16499 = vmatpush3.bf16.msra.mxu0 %v17202_v18  ;;  %16514 = vmatprep.mubr.bf16.mxu0 %v13883_v13  ;;  %v17237_v18 = vld [vmem:[%s22175_s10 + $0x1c8] sm:$0xff]   ;;  %v12431_v13 = vrot.slane %v13960_v14, 3 }
 0x988   : > { %16500 = vmatprep.subr.bf16.mxu0 %v17204_v12  ;;  %v21985_v10 = vor.u32 %v12306_v19, %v12303_v31 }
 0x989   : > { %16453 = vmatpush3.bf16.msra.mxu1 %v17203_v7  ;;  %v17240_v7 = vld [vmem:[%s22175_s10 + $0x188] sm:$0xff]   ;;  %v12433_v34 = vsel %vm3887_vm5, %v12431_v13, %v12432_v3 }
 0x98a   : > { %16478 = vmatprep.subr.bf16.mxu1 %v17207_v56  ;;  %v12308_v50 = vsel %vm3416_vm4, %v12299_v16, %v21985_v10 }
 0x98b   : > { %16501 = vmatpush3.bf16.msra.mxu0 %v17204_v12  ;;  %v17242_v12 = vld [vmem:[%s22175_s10 + $0x238] sm:$0xff]  }
 0x98c   : > { %16455 = vmatmul.mubr.bf16.vlgmr.msra.gmra.mxu1 %v11644_v21  ;;  %16502 = vmatprep.subr.bf16.mxu0 %v17208_v48  ;;  %v17225_v21 = vld [vmem:[%s22175_s10 + $0x100] sm:$0xff]  }
 0x98d   : > { %16479 = vmatpush3.bf16.msra.mxu1 %v17207_v56  ;;  %16494 = vmatprep.mubr.bf16.mxu1 %v11914_v22  ;;  %v17244_v56 = vld [vmem:[%s22175_s10 + $0x230] sm:$0xff]   ;;  %v17250_v22 = vld [vmem:[%s22175_s10 + $0x200] sm:$0xff]  }
 0x98e   : > { %16480 = vmatprep.subr.bf16.mxu1 %v17209_v25 }
 0x98f   : > { %16503 = vmatpush3.bf16.msra.mxu0 %v17208_v48  ;;  %v17246_v48 = vld [vmem:[%s22175_s10 + $0x220] sm:$0xff]  }
 0x990   : > { %16504 = vmatprep.subr.bf16.mxu0 %v17211_v46 }
 0x991   : > { %16481 = vmatpush3.bf16.msra.mxu1 %v17209_v25  ;;  %v17248_v25 = vld [vmem:[%s22175_s10 + $0x210] sm:$0xff]  }
 0x992   : > { %16482 = vmatprep.subr.bf16.mxu1 %v17212_v20 }
 0x993   : > { %16505 = vmatpush3.bf16.msra.mxu0 %v17211_v46 }
 0x994   : > { %16506 = vmatprep.subr.bf16.mxu0 %v17213_v6 }
 0x995   : > { %16483 = vmatpush3.bf16.msra.mxu1 %v17212_v20 }
 0x996   : > { %16484 = vmatprep.subr.bf16.mxu1 %v17214_v24 }
 0x997   : > { %16507 = vmatpush3.bf16.msra.mxu0 %v17213_v6 }
 0x998   : > { %16508 = vmatprep.subr.bf16.mxu0 %v17215_v41 }
 0x999   : > { %16485 = vmatpush3.bf16.msra.mxu1 %v17214_v24 }
 0x99a   : > { %16486 = vmatprep.subr.bf16.mxu1 %v17216_v23 }
 0x99b   : > { %16509 = vmatpush3.bf16.msra.mxu0 %v17215_v41 }
 0x99c   : > { %16510 = vmatprep.subr.bf16.mxu0 %v17217_v32 }
 0x99d   : > { %16487 = vmatpush3.bf16.msra.mxu1 %v17216_v23 }
 0x99e   : > { %16488 = vmatprep.subr.bf16.mxu1 %v17218_v5 }
 0x99f   : > { %16511 = vmatpush3.bf16.msra.mxu0 %v17217_v32 }
 0x9a0   : > { %16512 = vmatprep.subr.bf16.mxu0 %v17219_v59 }
 0x9a1   : > { %16489 = vmatpush3.bf16.msra.mxu1 %v17218_v5 }
 0x9a2   : > { %16490 = vmatprep.subr.bf16.mxu1 %v17220_v44 }
 0x9a3   : > { %16513 = vmatpush3.bf16.msra.mxu0 %v17219_v59 }
 0x9a4   : > { %16538 = vmatprep.subr.bf16.mxu0 %v17222_v36 }
 0x9a5   : > { %16491 = vmatpush3.bf16.msra.mxu1 %v17220_v44 }
 0x9a6   : > { %16515 = vmatmul.mubr.bf16.vlgmr.msra.gmra.mxu0 %v13884_v4  ;;  %16492 = vmatprep.subr.bf16.mxu1 %v17225_v21 }
 0x9a7   : > { %16539 = vmatpush3.bf16.msra.mxu0 %v17222_v36  ;;  %16554 = vmatprep.mubr.bf16.mxu0 %v12308_v50 }
 0x9a8   : > { %16540 = vmatprep.subr.bf16.mxu0 %v17226_v17 }
 0x9a9   : > { %16493 = vmatpush3.bf16.msra.mxu1 %v17225_v21 }
 0x9aa   : > { %16518 = vmatprep.subr.bf16.mxu1 %v17227_v8 }
 0x9ab   : > { %16541 = vmatpush3.bf16.msra.mxu0 %v17226_v17 }
 0x9ac   : > { %16495 = vmatmul.mubr.bf16.vlgmr.msra.gmra.mxu1 %v21937_v57  ;;  %16542 = vmatprep.subr.bf16.mxu0 %v17229_v9  ;;  %v17247_v57 = vld [vmem:[%s22175_s10 + $0x218] sm:$0xff]  }
 0x9ad   : > { %16519 = vmatpush3.bf16.msra.mxu1 %v17227_v8  ;;  %16534 = vmatprep.mubr.bf16.mxu1 %v12169_v42 }
 0x9ae   : > { %16520 = vmatprep.subr.bf16.mxu1 %v17230_v47 }
 0x9af   : > { %16543 = vmatpush3.bf16.msra.mxu0 %v17229_v9 }
 0x9b0   : > { %16544 = vmatprep.subr.bf16.mxu0 %v17231_v29 }
 0x9b1   : > { %16521 = vmatpush3.bf16.msra.mxu1 %v17230_v47 }
 0x9b2   : > { %16522 = vmatprep.subr.bf16.mxu1 %v17232_v63 }
 0x9b3   : > { %16545 = vmatpush3.bf16.msra.mxu0 %v17231_v29 }
 0x9b4   : > { %16546 = vmatprep.subr.bf16.mxu0 %v17233_v27 }
 0x9b5   : > { %16523 = vmatpush3.bf16.msra.mxu1 %v17232_v63 }
 0x9b6   : > { %16524 = vmatprep.subr.bf16.mxu1 %v17234_v2 }
 0x9b7   : > { %16547 = vmatpush3.bf16.msra.mxu0 %v17233_v27 }
 0x9b8   : > { %16548 = vmatprep.subr.bf16.mxu0 %v17235_v40 }
 0x9b9   : > { %16525 = vmatpush3.bf16.msra.mxu1 %v17234_v2 }
 0x9ba   : > { %16526 = vmatprep.subr.bf16.mxu1 %v17236_v55 }
 0x9bb   : > { %16549 = vmatpush3.bf16.msra.mxu0 %v17235_v40 }
 0x9bc   : > { %16550 = vmatprep.subr.bf16.mxu0 %v17237_v18 }
 0x9bd   : > { %16527 = vmatpush3.bf16.msra.mxu1 %v17236_v55 }
 0x9be   : > { %16528 = vmatprep.subr.bf16.mxu1 %v17238_v43 }
 0x9bf   : > { %16551 = vmatpush3.bf16.msra.mxu0 %v17237_v18 }
 0x9c0   : > { %16552 = vmatprep.subr.bf16.mxu0 %v17239_v37 }
 0x9c1   : > { %16529 = vmatpush3.bf16.msra.mxu1 %v17238_v43 }
 0x9c2   : > { %16530 = vmatprep.subr.bf16.mxu1 %v17240_v7 }
 0x9c3   : > { %16553 = vmatpush3.bf16.msra.mxu0 %v17239_v37 }
 0x9c4   : > { %16578 = vmatprep.subr.bf16.mxu0 %v22614_v61 }
 0x9c5   : > { %16531 = vmatpush3.bf16.msra.mxu1 %v17240_v7 }
 0x9c6   : > { %16555 = vmatmul.mubr.bf16.vlgmr.msra.gmra.mxu0 %v21985_v10  ;;  %16532 = vmatprep.subr.bf16.mxu1 %v17241_v58 }
 0x9c7   : > { %16582 = vmatprep.mubr.msk.bf16.mxu0 %vm17421_vm6, %v22614_v61 }
 0x9c9   : > { %16533 = vmatpush3.bf16.msra.mxu1 %v17241_v58 }
 0x9ca   : > { %16558 = vmatprep.subr.bf16.mxu1 %v17242_v12 }
 0x9cc   : > { %16535 = vmatmul.mubr.bf16.vlgmr.msra.gmra.mxu1 %v12168_v45 }
 0x9cd   : > { %16559 = vmatpush3.bf16.msra.mxu1 %v17242_v12  ;;  %16574 = vmatprep.mubr.bf16.mxu1 %v12433_v34 }
 0x9ce   : > { %16560 = vmatprep.subr.bf16.mxu1 %v17244_v56 }
 0x9d1   : > { %16561 = vmatpush3.bf16.msra.mxu1 %v17244_v56 }
 0x9d2   : > { %16562 = vmatprep.subr.bf16.mxu1 %v17245_v33 }
 0x9d5   : > { %16563 = vmatpush3.bf16.msra.mxu1 %v17245_v33 }
 0x9d6   : > { %16564 = vmatprep.subr.bf16.mxu1 %v17246_v48 }
 0x9d9   : > { %16565 = vmatpush3.bf16.msra.mxu1 %v17246_v48 }
 0x9da   : > { %16566 = vmatprep.subr.bf16.mxu1 %v17247_v57 }
 0x9dd   : > { %16567 = vmatpush3.bf16.msra.mxu1 %v17247_v57 }
 0x9de   : > { %16568 = vmatprep.subr.bf16.mxu1 %v17248_v25 }
 0x9e1   : > { %16569 = vmatpush3.bf16.msra.mxu1 %v17248_v25 }
 0x9e2   : > { %16570 = vmatprep.subr.bf16.mxu1 %v17249_v60 }
 0x9e5   : > { %16571 = vmatpush3.bf16.msra.mxu1 %v17249_v60 }
 0x9e6   : > { %16572 = vmatprep.subr.bf16.mxu1 %v17250_v22 }
 0x9e9   : > { %16573 = vmatpush3.bf16.msra.mxu1 %v17250_v22 }
 0x9ec   : > { %16575 = vmatmul.mubr.bf16.vlgmr.msra.gmra.mxu1 %v12432_v3 }
 0xa26   : > { %v16436_v46 = vpop.f32.mrf.mxu0 }
 0xa28   : > { %v11608_v20 = vpop.f32.mrf.mxu0 }
 0xa2a   : > { %v16437_v6 = vpop.f32.mrf.mxu0 }
 0xa2c   : > { %v16416_v24 = vpop.f32.mrf.mxu1  ;;  %v11611_v28 = vpop.f32.mrf.mxu0 }
 0xa2d   : > { %v11617_v11 = vadd.f32 %v16436_v46, %v16416_v24 }
 0xa2e   : > { %v11509_v41 = vpop.f32.mrf.mxu1 }
 0xa2f   : > { %v11609_v54 = vadd.f32 %v11608_v20, %v11509_v41 }
 0xa30   : > { %v16417_v52 = vpop.f32.mrf.mxu1 }
 0xa31   : > { %v17251_v52 = vld [vmem:[%s22177_s12] sm:$0xff]  }
 0xa32   : > { %v11512_v23 = vpop.f32.mrf.mxu1 }
 0xa33   : > { %v11612_v30 = vadd.f32 %v11611_v28, %v11512_v23  ;;  %v17252_v23 = vld [vmem:[%s22178_s13 + $0x38] sm:$0xff]   ;;  %v17253_v28 = vld [vmem:[%s22178_s13 + $0x30] sm:$0xff]  }
 0xa46   : > { %v16476_v32 = vpop.f32.mrf.mxu0 }
 0xa48   : > { %v11859_v26 = vpop.f32.mrf.mxu0 }
 0xa4a   : > { %v16477_v5 = vpop.f32.mrf.mxu0 }
 0xa4b   : > { %v17257_v5 = vld [vmem:[%s22178_s13 + $0x10] sm:$0xff]  }
 0xa4c   : > { %v16456_v51 = vpop.f32.mrf.mxu1  ;;  %v11862_v1 = vpop.f32.mrf.mxu0 }
 0xa4d   : > { %v11746_v53 = vadd.f32 %v16456_v51, %v11617_v11  ;;  %v17258_v51 = vld [vmem:[%s22178_s13 + $0x8] sm:$0xff]  }
 0xa4e   : > { %v11730_v59 = vpop.f32.mrf.mxu1 }
 0xa4f   : > { %v11744_v15 = vadd.f32 %v11730_v59, %v11609_v54  ;;  %v11875_v35 = vadd.f32 %v16476_v32, %v11746_v53  ;;  %v17255_v32 = vld [vmem:[%s22178_s13 + $0x20] sm:$0xff]  }
 0xa50   : > { %v16457_v44 = vpop.f32.mrf.mxu1  ;;  %v17259_v53 = vld [vmem:[%s22178_s13] sm:$0xff]  }
 0xa51   : > { %v11873_v31 = vadd.f32 %v11859_v26, %v11744_v15  ;;  %v17256_v26 = vld [vmem:[%s22178_s13 + $0x18] sm:$0xff]  }
 0xa52   : > { %v11733_v19 = vpop.f32.mrf.mxu1 }
 0xa53   : > { %v11745_v36 = vadd.f32 %v11733_v19, %v11612_v30  ;;  %v17254_v30 = vld [vmem:[%s22178_s13 + $0x28] sm:$0xff]   ;;  %v13972_v19 = vld [vmem:[%s22179_s14] ss:$0 sm:$0xff] }
 0xa55   : > { %v11874_v0 = vadd.f32 %v11862_v1, %v11745_v36 }
 0xa66   : > { %v16516_v49 = vpop.f32.mrf.mxu0 }
 0xa68   : > { %v12119_v10 = vpop.f32.mrf.mxu0 }
 0xa6a   : > { %v16517_v21 = vpop.f32.mrf.mxu0 }
 0xa6c   : > { %v16496_v4 = vpop.f32.mrf.mxu1  ;;  %v12122_v9 = vpop.f32.mrf.mxu0 }
 0xa6d   : > { %v12015_v16 = vadd.f32 %v16496_v4, %v11875_v35 }
 0xa6e   : > { %v11999_v17 = vpop.f32.mrf.mxu1 }
 0xa6f   : > { %v12013_v62 = vadd.f32 %v11999_v17, %v11873_v31  ;;  %v12135_v50 = vadd.f32 %v16516_v49, %v12015_v16 }
 0xa70   : > { %v16497_v8 = vpop.f32.mrf.mxu1 }
 0xa71   : > { %v12133_v45 = vadd.f32 %v12119_v10, %v12013_v62 }
 0xa72   : > { %v12002_v42 = vpop.f32.mrf.mxu1 }
 0xa73   : > { %v12014_v40 = vadd.f32 %v12002_v42, %v11874_v0 }
 0xa75   : > { %v12134_v37 = vadd.f32 %v12122_v9, %v12014_v40 }
 0xa86   : > { %v16556_v38 = vpop.f32.mrf.mxu0 }
 0xa88   : > { %v12393_v47 = vpop.f32.mrf.mxu0 }
 0xa8a   : > { %v16557_v29 = vpop.f32.mrf.mxu0 }
 0xa8c   : > { %v16536_v63 = vpop.f32.mrf.mxu1  ;;  %v12396_v33 = vpop.f32.mrf.mxu0 }
 0xa8d   : > { %v12270_v55 = vadd.f32 %v16536_v63, %v12135_v50 }
 0xa8e   : > { %v12254_v27 = vpop.f32.mrf.mxu1 }
 0xa8f   : > { %v12268_v18 = vadd.f32 %v12254_v27, %v12133_v45  ;;  %v12409_v7 = vadd.f32 %v16556_v38, %v12270_v55 }
 0xa90   : > { %v16537_v2 = vpop.f32.mrf.mxu1 }
 0xa91   : > { %v12407_v3 = vadd.f32 %v12393_v47, %v12268_v18 }
 0xa92   : > { %v12257_v43 = vpop.f32.mrf.mxu1 }
 0xa93   : > { %v12269_v12 = vadd.f32 %v12257_v43, %v12134_v37 }
 0xa95   : > { %v12408_v25 = vadd.f32 %v12396_v33, %v12269_v12 }
 0xaac   : > { %v16576_v58 = vpop.f32.mrf.mxu1 }
 0xaad   : > { %v12534_v14 = vadd.f32 %v16576_v58, %v12409_v7 }
 0xaae   : > { %v12518_v13 = vpop.f32.mrf.mxu1 }
 0xaaf   : > { %v12544_v56 = vadd.f32 %v13969_v39, %v12534_v14  ;;  %v12532_v34 = vadd.f32 %v12518_v13, %v12407_v3 }
 0xab0   : > { %v16577_v48 = vpop.f32.mrf.mxu1 }
 0xab1   : > { %v12547_v57 = vmax.f32 %v12544_v56, 0.0  ;;  %v12542_v46 = vadd.f32 %v13969_v39, %v12532_v34 }
 0xab2   : > { %v12521_v60 = vpop.f32.mrf.mxu1 }
 0xab3   : > { %v12551_v22 = vpack.c.bf16 %v12547_v57, %v12547_v57  ;;  %v12533_v20 = vadd.f32 %v12521_v60, %v12408_v25  ;;  %v12545_v11 = vmax.f32 %v12542_v46, 0.0 }
 0xab5   : > { %v12543_v6 = vadd.f32 %v13969_v39, %v12533_v20  ;;  %v12563_v24 = vsel %vm12561_vm10, %v12551_v22, 0 }
 0xab6   : > { %16579 = vmatpush3.bf16.msra.mxu0 %v12563_v24 }
 0xab7   : > { %v12546_v41 = vmax.f32 %v12543_v6, 0.0  ;;  %16580 = vmatprep.subr.bf16.mxu0 %v22614_v61 }
 0xab9   : > { %v12550_v54 = vpack.c.bf16 %v12546_v41, %v12545_v11 }
 0xabb   : > { %16581 = vmatpush3.bf16.msra.mxu0 %v12550_v54 }
 0xabc   : > { %16586 = vmatprep.subr.bf16.mxu0 %v22614_v61 }
 0xabe   : > { %16583 = vmatmul.mubr.msk.bf16.vlgmr.msra.gmra.mxu0 %vm12557_vm11, %v17251_v52 }
 0xabf   : > { %16587 = vmatpush3.bf16.msra.mxu0 %v17252_v23  ;;  %16602 = vmatprep.mubr.msk.bf16.mxu0 %vm17421_vm6, %v22614_v61 }
 0xac0   : > { %16588 = vmatprep.subr.bf16.mxu0 %v22614_v61 }
 0xac3   : > { %16589 = vmatpush3.bf16.msra.mxu0 %v17253_v28 }
 0xac4   : > { %16590 = vmatprep.subr.bf16.mxu0 %v22614_v61 }
 0xac7   : > { %16591 = vmatpush3.bf16.msra.mxu0 %v17254_v30 }
 0xac8   : > { %16592 = vmatprep.subr.bf16.mxu0 %v22614_v61 }
 0xacb   : > { %16593 = vmatpush3.bf16.msra.mxu0 %v17255_v32 }
 0xacc   : > { %16594 = vmatprep.subr.bf16.mxu0 %v22614_v61 }
 0xacf   : > { %16595 = vmatpush3.bf16.msra.mxu0 %v17256_v26 }
 0xad0   : > { %16596 = vmatprep.subr.bf16.mxu0 %v22614_v61 }
 0xad3   : > { %16597 = vmatpush3.bf16.msra.mxu0 %v17257_v5 }
 0xad4   : > { %16598 = vmatprep.subr.bf16.mxu0 %v22614_v61 }
 0xad7   : > { %16599 = vmatpush3.bf16.msra.mxu0 %v17258_v51 }
 0xad8   : > { %16600 = vmatprep.subr.bf16.mxu0 %v22614_v61 }
 0xadb   : > { %16601 = vmatpush3.bf16.msra.mxu0 %v17259_v53 }
 0xb7e   : > { %v12599_v59 = vpop.f32.mrf.mxu0 }
 0xb80   : > { %v16584_v15 = vpop.f32.mrf.mxu0 }
 0xb82   : > { %v12602_v35 = vpop.f32.mrf.mxu0 }
 0xb83   : > { %v12606_v44 = vpack.c.bf16 %v12602_v35, %v12599_v59 }
 0xb84   : > { %v16585_v31 = vpop.f32.mrf.mxu0 }
 0xb85   : > { %16603 = vmatmul.mubr.bf16.vlgmr.msra.gmra.mxu0 %v12606_v44 }
 0xc45   : > { %v12712_v36 = vpop.f32.mrf.mxu0 }
 0xc46   : > { %v12713_v61 = vadd.f32 %v13972_v19, %v12712_v36 }
 0xc47   : > { %v16604_v1 = vpop.f32.mrf.mxu0 }
 0xc48   : > { %12719 = vst [vmem:[%s517_s18] sm:$0xff] %v12713_v61 }
 0xc49   : > { %v12715_v0 = vpop.f32.mrf.mxu0 }
 0xc4a   : > { %v12716_v49 = vadd.f32 %v13972_v19, %v12715_v0 }
 0xc4b   : > { %v16605_v10 = vpop.f32.mrf.mxu0 }
 0xc4c   : > { %12720 = vst [vmem:[%s517_s18 + $0x8] sm:$0xff] %v12716_v49 }
 0xc4d   : > { %17358 = shalt.err (!%p17355_p3)
}
 0xc4e   : > { %s17359_s16 = scalar_lea.hbm %s22123_s20, 256  ;;  %s17363_s29 = scalar_lea.hbm %s22180_s15, 512 }
 0xc4f   : > { %p17360_p2 = scmp.ne.s32.totalorder %s22123_s20, %s17359_s16  ;;  %p17364_p7 = scmp.lt.s32.totalorder %s22123_s20, %s22180_s15 }
 0xc50   : > { %p17365_p6 = scmp.lt.s32.totalorder %s17363_s29, %s17359_s16 }
 0xc51   : > { %p17361_p4 = pnand %p17360_p2, %p17543_p5 }
 0xc52   : > { %p17366_p9 = por %p17365_p6, %p17364_p7 }
 0xc53   : > { %p17362_p13 = pneg %p17361_p4 }
 0xc55   : > { %p17367_p10 = pnand %p17366_p9, %p17362_p13 }
 0xc57   : > { %17370 = shalt.err (!%p17367_p10)
}
 0xc58   : > { %s17423_s25 = smov 128   ;;  %s17424_s27 = smov 8  }
 0xc59   : > { %16631 = dma.vmem_to_hbm [thread:$0]  (%p17543_p5), %s22118_s30, 256, %s22123_s20, %s22125_s23, %s17423_s25, %s17423_s25, %s17424_s27  }
 0xc5a PF: > { %s22615_s24 = sld [smem:[#allocation14_spill]]  ;;  %p16648_p12 = scmp.ge.s32.totalorder %s17413_s21, 2 }
 0xc5b   : > { %s22616_s18 = sld [smem:[#allocation18_spill]] }
 0xc60   : > { %s12750_s17 = sand.u32 1, %s22615_s24  }
 0xc61   : > { %p22617_p8 = scmp.ne.s32.totalorder %s22616_s18, 0  ;;  %s12751_s16 = scalar_lea.sflag [#allocation7], %s12750_s17 }
 0xc63   : > { %p16641_p11 = pnand %p16648_p12, %p22617_p8 }
 0xc65   : > { %p16642_p0 = pneg %p16641_p11 }
 0xc67   : > { %17396 = dma.done.wait (%p16642_p0), %s12751_s16, 256  }
 0xc68   : > { %17398 = vsyncadd (%p16642_p0), %s12751_s16, 4294967040  ;;  %s22618_s21 = sld [smem:[#allocation16_spill]]  ;;  %s22621_s18 = smov %s17405_s19 }
 0xc69   : > { %s22619_s29 = sld [smem:[#allocation15_spill]] }
 0xc6a   : > { %s22620_s20 = sld [smem:[#allocation17_spill]] }
 0xc6e   : > { %p27_p1 = scmp.ge.s32.totalorder %s22618_s21, 4  }
 0xc6f   : > { %s22622_s19 = smov %s22619_s29 }
 0xc70   :  { %29 = sbr.rel (!%p27_p1) target bundleno = 5 (0x5), region = 156 }
 0xc75   :  { %12756 = vsyncpa [#allocation6], 1 }
 0xc76   :  { %12758 = vsyncpa [#allocation6 + $0x1], 1 }
 0xc77   :  { %12759 = vsyncpa [#allocation9], 1 }
 0xc78   :  { %12760 = vsyncpa [#allocation7], 1 }
 0xc79   :  { %12762 = vsyncpa [#allocation7 + $0x1], 1 }

</bundles_post_ra>
